<compile_context>
chip_gen: v7x
topology: tpu7x:2x2x1
jax: 0.10.0
libtpu: 0.0.40
codegen_flags: <defaults>
</compile_context>

<pallas_src>
import jax
import jax.numpy as jnp
from jax.experimental import pallas as pl
from jax.experimental.pallas import tpu as pltpu

LANES = 128


def _cdiv(a, b):
    return (a + b - 1) // b


def _round_up(x, m):
    return _cdiv(x, m) * m


# ----------------------------- Pallas kernels -----------------------------

def conv_bn_relu_pool_kernel(p_ref, w_ref, b_ref, o_ref):
    """Fused conv3x3(pad=1) + folded-BN + ReLU + 2x2 max-pool.

    p_ref: (4, TM, K)  bf16 im2col patches, leading axis = pool phase
    w_ref: (K, 128)    bf16 BN-scaled conv weight, N zero-padded to 128 lanes
    b_ref: (1, 128)    f32  folded bias
    o_ref: (TM, 128)   bf16 pooled activations (lane-dense)
    """
    w = w_ref[...]

    def phase(k):
        return jnp.dot(p_ref[k], w, preferred_element_type=jnp.float32)

    pooled = jnp.maximum(jnp.maximum(phase(0), phase(1)),
                         jnp.maximum(phase(2), phase(3)))
    # ReLU is monotone and the bias is the same for every pool phase, so
    # bias + ReLU commute with the max -> apply them once on the pooled tile.
    o_ref[...] = jnp.maximum(pooled + b_ref[...], 0.0).astype(o_ref.dtype)


def mlp_kernel(x_ref, w1_ref, b1_ref, w2_ref, b2_ref, w3_ref, b3_ref, o_ref):
    """fc1 -> relu -> fc2 -> relu -> fc3; every N dim padded to 128 lanes."""
    h1 = jnp.maximum(
        jnp.dot(x_ref[...], w1_ref[...], preferred_element_type=jnp.float32)
        + b1_ref[...], 0.0)
    h2 = jnp.maximum(
        jnp.dot(h1.astype(jnp.bfloat16), w2_ref[...],
                preferred_element_type=jnp.float32) + b2_ref[...], 0.0)
    o_ref[...] = (jnp.dot(h2.astype(jnp.bfloat16), w3_ref[...],
                          preferred_element_type=jnp.float32) + b3_ref[...])


# ------------------------------ wrappers -----------------------------------

def _im2col_pool_phases(x_nhwc):
    """(B,H,W,Cin) -> (4, B*Ho*Wo, 9*Cin) pool-phase-major im2col patches.

    K is ordered (ki, kj, cin) to match the (2,3,1,0)-transposed folded weight.
    Row order inside each phase is (b, ho, wo).
    """
    B, H, W, Cin = x_nhwc.shape
    Ho, Wo = H // 2, W // 2
    K = 9 * Cin
    xp = jnp.pad(x_nhwc, ((0, 0), (1, 1), (1, 1), (0, 0)))
    # All 9 taps at full conv resolution (9 un-strided slices + 1 concat).
    taps = jnp.concatenate(
        [xp[:, ki:ki + H, kj:kj + W, :] for ki in range(3) for kj in range(3)],
        axis=-1)                                               # (B, H, W, K)
    # 2x2 max-pool phases (di, dj): 4 strided slices.
    phases = [taps[:, di::2, dj::2, :].reshape(B * Ho * Wo, K)
              for di in range(2) for dj in range(2)]
    return jnp.stack(phases, axis=0)                           # (4, B*Q, K)


def conv3x3_bn_relu_pool(x_nhwc, w_pad, b_pad, cout, *, row_tile=1024):
    """x: (B,H,W,Cin) bf16 -> pooled (B,H/2,W/2,cout) bf16, one fused kernel."""
    B, H, W, Cin = x_nhwc.shape
    Ho, Wo = H // 2, W // 2
    K = 9 * Cin
    R = B * Ho * Wo

    patches = _im2col_pool_phases(x_nhwc)                      # (4, R, K)

    # Row tiling: pad rows so the grid divides evenly (tiles multiple of 16 for bf16).
    n_tiles = _cdiv(R, row_tile)
    tm = _round_up(_cdiv(R, n_tiles), 16)
    r_pad = tm * n_tiles
    patches = jnp.pad(patches, ((0, 0), (0, r_pad - R), (0, 0))).astype(jnp.bfloat16)

    out = pl.pallas_call(
        conv_bn_relu_pool_kernel,
        out_shape=jax.ShapeDtypeStruct((r_pad, LANES), jnp.bfloat16),
        grid_spec=pltpu.PrefetchScalarGridSpec(
            num_scalar_prefetch=0,
            grid=(n_tiles,),
            in_specs=[
                pl.BlockSpec((4, tm, K), lambda r: (0, r, 0)),
                pl.BlockSpec((K, LANES), lambda r: (0, 0)),     # resident weight
                pl.BlockSpec((1, LANES), lambda r: (0, 0)),     # resident bias
            ],
            out_specs=pl.BlockSpec((tm, LANES), lambda r: (r, 0)),
        ),
        compiler_params=pltpu.CompilerParams(
            dimension_semantics=("parallel",)),
    )(patches, w_pad, b_pad)

    return out[:R, :cout].reshape(B, Ho, Wo, cout)


def mlp_head(x, w1, b1, w2, b2, w3, b3, *, num_classes, batch_tile=256):
    """x: (B, 784) bf16 (NHWC flatten) -> logits (B, num_classes) f32."""
    B, D = x.shape
    n_tiles = _cdiv(B, batch_tile)
    tb = _round_up(_cdiv(B, n_tiles), 16)
    b_rows = tb * n_tiles
    x = jnp.pad(x, ((0, b_rows - B), (0, 0))).astype(jnp.bfloat16)

    out = pl.pallas_call(
        mlp_kernel,
        out_shape=jax.ShapeDtypeStruct((b_rows, LANES), jnp.float32),
        grid_spec=pltpu.PrefetchScalarGridSpec(
            num_scalar_prefetch=0,
            grid=(n_tiles,),
            in_specs=[
                pl.BlockSpec((tb, D), lambda r: (r, 0)),
                pl.BlockSpec((D, LANES), lambda r: (0, 0)),
                pl.BlockSpec((1, LANES), lambda r: (0, 0)),
                pl.BlockSpec((LANES, LANES), lambda r: (0, 0)),
                pl.BlockSpec((1, LANES), lambda r: (0, 0)),
                pl.BlockSpec((LANES, LANES), lambda r: (0, 0)),
                pl.BlockSpec((1, LANES), lambda r: (0, 0)),
            ],
            out_specs=pl.BlockSpec((tb, LANES), lambda r: (r, 0)),
        ),
        compiler_params=pltpu.CompilerParams(
            dimension_semantics=("parallel",)),
    )(x, w1, b1, w2, b2, w3, b3)
    return out[:B, :num_classes]


# ------------------------- parameter preparation ---------------------------

def prepare_params(p, num_classes=10, eps=1e-5):
    """One-time prep: fold eval-mode BN into conv weights, pad N->128, cast GEMM
    inputs to bf16, and permute fc1's input rows to the NHWC flatten order."""

    def fold_conv(w_oihw, bias, gamma, beta, mean, var):
        cout, cin = int(w_oihw.shape[0]), int(w_oihw.shape[1])
        scale = gamma / jnp.sqrt(var + eps)
        w_col = jnp.transpose(w_oihw, (2, 3, 1, 0)).reshape(9 * cin, cout) * scale[None, :]
        b_eff = (bias - mean) * scale + beta
        w_pad = jnp.pad(w_col, ((0, 0), (0, LANES - cout))).astype(jnp.bfloat16)
        b_pad = jnp.pad(b_eff, (0, LANES - cout)).reshape(1, LANES).astype(jnp.float32)
        return w_pad, b_pad, cout

    c1 = fold_conv(p["conv1_w"], p["conv1_b"], p["bn1_gamma"],
                   p["bn1_beta"], p["bn1_mean"], p["bn1_var"])
    c2 = fold_conv(p["conv2_w"], p["conv2_b"], p["bn2_gamma"],
                   p["bn2_beta"], p["bn2_mean"], p["bn2_var"])

    # fc1: our flatten index g = (ho*7+wo)*16 + c; PyTorch NCHW flatten f = c*49 + (ho*7+wo).
    s = jnp.arange(7 * 7)
    c = jnp.arange(16)
    perm = (c[None, :] * 49 + s[:, None]).reshape(-1)          # ours -> torch
    w1 = jnp.pad(p["fc1_w"].T[perm], ((0, 0), (0, LANES - 120))).astype(jnp.bfloat16)
    b1 = jnp.pad(p["fc1_b"], (0, LANES - 120)).reshape(1, LANES).astype(jnp.float32)
    w2 = jnp.pad(p["fc2_w"].T, ((0, LANES - 120), (0, LANES - 84))).astype(jnp.bfloat16)
    b2 = jnp.pad(p["fc2_b"], (0, LANES - 84)).reshape(1, LANES).astype(jnp.float32)
    w3 = jnp.pad(p["fc3_w"].T,
                 ((0, LANES - 84), (0, LANES - num_classes))).astype(jnp.bfloat16)
    b3 = jnp.pad(p["fc3_b"], (0, LANES - num_classes)).reshape(1, LANES).astype(jnp.float32)

    return {"conv1": c1, "conv2": c2, "fc": (w1, b1, w2, b2, w3, b3),
            "num_classes": num_classes}


# ------------------------------ full forward -------------------------------

def efficient_lenet_forward(x_nchw, prep):
    x = jnp.transpose(x_nchw, (0, 2, 3, 1)).astype(jnp.bfloat16)   # NCHW -> NHWC
    x = conv3x3_bn_relu_pool(x, *prep["conv1"])                    # (B,14,14,6)
    x = conv3x3_bn_relu_pool(x, *prep["conv2"])                    # (B,7,7,16)
    B = x.shape[0]
    x = x.reshape(B, 7 * 7 * 16)       # NHWC flatten; fc1 rows are pre-permuted to match
    return mlp_head(x, *prep["fc"], num_classes=prep["num_classes"])


def init_params(key, num_classes=10):
    ks = jax.random.split(key, 12)
    f32 = jnp.float32
    return {
        "conv1_w": 0.1 * jax.random.normal(ks[0], (6, 1, 3, 3), f32),
        "conv1_b": 0.1 * jax.random.normal(ks[1], (6,), f32),
        "bn1_gamma": jnp.ones((6,), f32) + 0.05 * jax.random.normal(ks[2], (6,), f32),
        "bn1_beta": 0.05 * jax.random.normal(ks[3], (6,), f32),
        "bn1_mean": jnp.zeros((6,), f32),
        "bn1_var": jnp.ones((6,), f32),
        "conv2_w": 0.1 * jax.random.normal(ks[4], (16, 6, 3, 3), f32),
        "conv2_b": 0.1 * jax.random.normal(ks[5], (16,), f32),
        "bn2_gamma": jnp.ones((16,), f32) + 0.05 * jax.random.normal(ks[6], (16,), f32),
        "bn2_beta": 0.05 * jax.random.normal(ks[7], (16,), f32),
        "bn2_mean": jnp.zeros((16,), f32),
        "bn2_var": jnp.ones((16,), f32),
        "fc1_w": 0.05 * jax.random.normal(ks[8], (120, 16 * 7 * 7), f32),
        "fc1_b": jnp.zeros((120,), f32),
        "fc2_w": 0.05 * jax.random.normal(ks[9], (84, 120), f32),
        "fc2_b": jnp.zeros((84,), f32),
        "fc3_w": 0.05 * jax.random.normal(ks[10], (num_classes, 84), f32),
        "fc3_b": jnp.zeros((num_classes,), f32),
    }


if __name__ == "__main__":
    key = jax.random.PRNGKey(0)
    k_x, k_p = jax.random.split(key)
    params = init_params(k_p, num_classes=10)
    prep = prepare_params(params, num_classes=10)   # one-time host-side prep

    # fc1 expects 16*7*7 = 784 features -> input spatial must be 28x28, Cin=1.
    B = 8
    x = jax.random.normal(k_x, (B, 1, 28, 28), jnp.float32)

    fwd = jax.jit(lambda xx: efficient_lenet_forward(xx, prep))
    out = jax.block_until_ready(fwd(x))
    assert out.shape == (B, 10), out.shape
    assert bool(jnp.all(jnp.isfinite(out)))
    print("KERNEL_OK")
</pallas_src>

<mosaic_0001>
module attributes {stable_mosaic.version = 11 : i64} {
  func.func @conv_bn_relu_pool_kernel(%arg0: i32, %arg1: memref<4x784x9xbf16, #tpu.memory_space<vmem>>, %arg2: memref<9x128xbf16, #tpu.memory_space<vmem>>, %arg3: memref<1x128xf32, #tpu.memory_space<vmem>>, %arg4: memref<784x128xbf16, #tpu.memory_space<vmem>>) attributes {dimension_semantics = [#tpu.dimension_semantics<parallel>], iteration_bounds = array<i64: 2>, scalar_prefetch = 0 : i64, scratch_operands = 0 : i64, tpu.core_type = #tpu.core_type<tc>, window_params = [{transform_indices = @transform_0, window_bounds = array<i64: 4, 784, 9>}, {pipeline_mode = #tpu.pipeline_mode<synchronous>, transform_indices = @transform_1, window_bounds = array<i64: 9, 128>}, {pipeline_mode = #tpu.pipeline_mode<synchronous>, transform_indices = @transform_2, window_bounds = array<i64: 1, 128>}, {transform_indices = @transform_3, window_bounds = array<i64: 784, 128>}]} {
    %c0 = arith.constant 0 : index
    %c0_0 = arith.constant 0 : index
    %0 = vector.load %arg2[%c0, %c0_0] : memref<9x128xbf16, #tpu.memory_space<vmem>>, vector<9x128xbf16>
    %c0_1 = arith.constant 0 : index
    %c0_2 = arith.constant 0 : index
    %c0_3 = arith.constant 0 : index
    %1 = vector.load %arg1[%c0_1, %c0_2, %c0_3] : memref<4x784x9xbf16, #tpu.memory_space<vmem>>, vector<1x784x9xbf16>
    %2 = vector.shape_cast %1 : vector<1x784x9xbf16> to vector<784x9xbf16>
    %cst = arith.constant dense<0.000000e+00> : vector<784x128xf32>
    %3 = tpu.matmul %2, %0, %cst {dimension_numbers = #tpu.dot_dimension_numbers<[1], [0], [0], [1], [0, 0, 1, 1], [], []>} : vector<784x9xbf16>, vector<9x128xbf16>, vector<784x128xf32> -> vector<784x128xf32>
    %c1 = arith.constant 1 : index
    %c0_4 = arith.constant 0 : index
    %c0_5 = arith.constant 0 : index
    %4 = vector.load %arg1[%c1, %c0_4, %c0_5] : memref<4x784x9xbf16, #tpu.memory_space<vmem>>, vector<1x784x9xbf16>
    %5 = vector.shape_cast %4 : vector<1x784x9xbf16> to vector<784x9xbf16>
    %cst_6 = arith.constant dense<0.000000e+00> : vector<784x128xf32>
    %6 = tpu.matmul %5, %0, %cst_6 {dimension_numbers = #tpu.dot_dimension_numbers<[1], [0], [0], [1], [0, 0, 1, 1], [], []>} : vector<784x9xbf16>, vector<9x128xbf16>, vector<784x128xf32> -> vector<784x128xf32>
    %7 = arith.maximumf %3, %6 : vector<784x128xf32>
    %c2 = arith.constant 2 : index
    %c0_7 = arith.constant 0 : index
    %c0_8 = arith.constant 0 : index
    %8 = vector.load %arg1[%c2, %c0_7, %c0_8] : memref<4x784x9xbf16, #tpu.memory_space<vmem>>, vector<1x784x9xbf16>
    %9 = vector.shape_cast %8 : vector<1x784x9xbf16> to vector<784x9xbf16>
    %cst_9 = arith.constant dense<0.000000e+00> : vector<784x128xf32>
    %10 = tpu.matmul %9, %0, %cst_9 {dimension_numbers = #tpu.dot_dimension_numbers<[1], [0], [0], [1], [0, 0, 1, 1], [], []>} : vector<784x9xbf16>, vector<9x128xbf16>, vector<784x128xf32> -> vector<784x128xf32>
    %c3 = arith.constant 3 : index
    %c0_10 = arith.constant 0 : index
    %c0_11 = arith.constant 0 : index
    %11 = vector.load %arg1[%c3, %c0_10, %c0_11] : memref<4x784x9xbf16, #tpu.memory_space<vmem>>, vector<1x784x9xbf16>
    %12 = vector.shape_cast %11 : vector<1x784x9xbf16> to vector<784x9xbf16>
    %cst_12 = arith.constant dense<0.000000e+00> : vector<784x128xf32>
    %13 = tpu.matmul %12, %0, %cst_12 {dimension_numbers = #tpu.dot_dimension_numbers<[1], [0], [0], [1], [0, 0, 1, 1], [], []>} : vector<784x9xbf16>, vector<9x128xbf16>, vector<784x128xf32> -> vector<784x128xf32>
    %14 = arith.maximumf %10, %13 : vector<784x128xf32>
    %15 = arith.maximumf %7, %14 : vector<784x128xf32>
    %c0_13 = arith.constant 0 : index
    %c0_14 = arith.constant 0 : index
    %16 = vector.load %arg3[%c0_13, %c0_14] : memref<1x128xf32, #tpu.memory_space<vmem>>, vector<1x128xf32>
    %17 = vector.broadcast %16 : vector<1x128xf32> to vector<784x128xf32>
    %18 = arith.addf %15, %17 : vector<784x128xf32>
    %cst_15 = arith.constant 0.000000e+00 : f32
    %19 = vector.broadcast %cst_15 : f32 to vector<784x128xf32>
    %20 = arith.maximumf %18, %19 : vector<784x128xf32>
    %21 = arith.truncf %20 : vector<784x128xf32> to vector<784x128xbf16>
    %c0_16 = arith.constant 0 : index
    %c0_17 = arith.constant 0 : index
    %22 = vector.load %arg4[%c0_16, %c0_17] : memref<784x128xbf16, #tpu.memory_space<vmem>>, vector<784x128xbf16>
    tpu.vector_store %arg4[%c0_16, %c0_17], %21 {strides = array<i32>} : memref<784x128xbf16, #tpu.memory_space<vmem>>, vector<784x128xbf16>,
    return
  }
  func.func @transform_0(%arg0: i32) -> (i32, i32, i32) {
    %c0_i32 = arith.constant 0 : i32
    %c0_i32_0 = arith.constant 0 : i32
    %c0_i32_1 = arith.constant 0 : i32
    return %c0_i32, %arg0, %c0_i32_0 : i32, i32, i32
  }
  func.func @transform_1(%arg0: i32) -> (i32, i32) {
    %c0_i32 = arith.constant 0 : i32
    %c0_i32_0 = arith.constant 0 : i32
    %c0_i32_1 = arith.constant 0 : i32
    return %c0_i32, %c0_i32_0 : i32, i32
  }
  func.func @transform_2(%arg0: i32) -> (i32, i32) {
    %c0_i32 = arith.constant 0 : i32
    %c0_i32_0 = arith.constant 0 : i32
    %c0_i32_1 = arith.constant 0 : i32
    return %c0_i32, %c0_i32_0 : i32, i32
  }
  func.func @transform_3(%arg0: i32) -> (i32, i32) {
    %c0_i32 = arith.constant 0 : i32
    %c0_i32_0 = arith.constant 0 : i32
    return %arg0, %c0_i32 : i32, i32
  }
}

module attributes {stable_mosaic.version = 11 : i64} {
  func.func @conv_bn_relu_pool_kernel(%arg0: i32, %arg1: memref<4x400x54xbf16, #tpu.memory_space<vmem>>, %arg2: memref<54x128xbf16, #tpu.memory_space<vmem>>, %arg3: memref<1x128xf32, #tpu.memory_space<vmem>>, %arg4: memref<400x128xbf16, #tpu.memory_space<vmem>>) attributes {dimension_semantics = [#tpu.dimension_semantics<parallel>], iteration_bounds = array<i64: 1>, scalar_prefetch = 0 : i64, scratch_operands = 0 : i64, tpu.core_type = #tpu.core_type<tc>, window_params = [{transform_indices = @transform_0, window_bounds = array<i64: 4, 400, 54>}, {pipeline_mode = #tpu.pipeline_mode<synchronous>, transform_indices = @transform_1, window_bounds = array<i64: 54, 128>}, {pipeline_mode = #tpu.pipeline_mode<synchronous>, transform_indices = @transform_2, window_bounds = array<i64: 1, 128>}, {transform_indices = @transform_3, window_bounds = array<i64: 400, 128>}]} {
    %c0 = arith.constant 0 : index
    %c0_0 = arith.constant 0 : index
    %0 = vector.load %arg2[%c0, %c0_0] : memref<54x128xbf16, #tpu.memory_space<vmem>>, vector<54x128xbf16>
    %c0_1 = arith.constant 0 : index
    %c0_2 = arith.constant 0 : index
    %c0_3 = arith.constant 0 : index
    %1 = vector.load %arg1[%c0_1, %c0_2, %c0_3] : memref<4x400x54xbf16, #tpu.memory_space<vmem>>, vector<1x400x54xbf16>
    %2 = vector.shape_cast %1 : vector<1x400x54xbf16> to vector<400x54xbf16>
    %cst = arith.constant dense<0.000000e+00> : vector<400x128xf32>
    %3 = tpu.matmul %2, %0, %cst {dimension_numbers = #tpu.dot_dimension_numbers<[1], [0], [0], [1], [0, 0, 1, 1], [], []>} : vector<400x54xbf16>, vector<54x128xbf16>, vector<400x128xf32> -> vector<400x128xf32>
    %c1 = arith.constant 1 : index
    %c0_4 = arith.constant 0 : index
    %c0_5 = arith.constant 0 : index
    %4 = vector.load %arg1[%c1, %c0_4, %c0_5] : memref<4x400x54xbf16, #tpu.memory_space<vmem>>, vector<1x400x54xbf16>
    %5 = vector.shape_cast %4 : vector<1x400x54xbf16> to vector<400x54xbf16>
    %cst_6 = arith.constant dense<0.000000e+00> : vector<400x128xf32>
    %6 = tpu.matmul %5, %0, %cst_6 {dimension_numbers = #tpu.dot_dimension_numbers<[1], [0], [0], [1], [0, 0, 1, 1], [], []>} : vector<400x54xbf16>, vector<54x128xbf16>, vector<400x128xf32> -> vector<400x128xf32>
    %7 = arith.maximumf %3, %6 : vector<400x128xf32>
    %c2 = arith.constant 2 : index
    %c0_7 = arith.constant 0 : index
    %c0_8 = arith.constant 0 : index
    %8 = vector.load %arg1[%c2, %c0_7, %c0_8] : memref<4x400x54xbf16, #tpu.memory_space<vmem>>, vector<1x400x54xbf16>
    %9 = vector.shape_cast %8 : vector<1x400x54xbf16> to vector<400x54xbf16>
    %cst_9 = arith.constant dense<0.000000e+00> : vector<400x128xf32>
    %10 = tpu.matmul %9, %0, %cst_9 {dimension_numbers = #tpu.dot_dimension_numbers<[1], [0], [0], [1], [0, 0, 1, 1], [], []>} : vector<400x54xbf16>, vector<54x128xbf16>, vector<400x128xf32> -> vector<400x128xf32>
    %c3 = arith.constant 3 : index
    %c0_10 = arith.constant 0 : index
    %c0_11 = arith.constant 0 : index
    %11 = vector.load %arg1[%c3, %c0_10, %c0_11] : memref<4x400x54xbf16, #tpu.memory_space<vmem>>, vector<1x400x54xbf16>
    %12 = vector.shape_cast %11 : vector<1x400x54xbf16> to vector<400x54xbf16>
    %cst_12 = arith.constant dense<0.000000e+00> : vector<400x128xf32>
    %13 = tpu.matmul %12, %0, %cst_12 {dimension_numbers = #tpu.dot_dimension_numbers<[1], [0], [0], [1], [0, 0, 1, 1], [], []>} : vector<400x54xbf16>, vector<54x128xbf16>, vector<400x128xf32> -> vector<400x128xf32>
    %14 = arith.maximumf %10, %13 : vector<400x128xf32>
    %15 = arith.maximumf %7, %14 : vector<400x128xf32>
    %c0_13 = arith.constant 0 : index
    %c0_14 = arith.constant 0 : index
    %16 = vector.load %arg3[%c0_13, %c0_14] : memref<1x128xf32, #tpu.memory_space<vmem>>, vector<1x128xf32>
    %17 = vector.broadcast %16 : vector<1x128xf32> to vector<400x128xf32>
    %18 = arith.addf %15, %17 : vector<400x128xf32>
    %cst_15 = arith.constant 0.000000e+00 : f32
    %19 = vector.broadcast %cst_15 : f32 to vector<400x128xf32>
    %20 = arith.maximumf %18, %19 : vector<400x128xf32>
    %21 = arith.truncf %20 : vector<400x128xf32> to vector<400x128xbf16>
    %c0_16 = arith.constant 0 : index
    %c0_17 = arith.constant 0 : index
    %22 = vector.load %arg4[%c0_16, %c0_17] : memref<400x128xbf16, #tpu.memory_space<vmem>>, vector<400x128xbf16>
    tpu.vector_store %arg4[%c0_16, %c0_17], %21 {strides = array<i32>} : memref<400x128xbf16, #tpu.memory_space<vmem>>, vector<400x128xbf16>,
    return
  }
  func.func @transform_0(%arg0: i32) -> (i32, i32, i32) {
    %c0_i32 = arith.constant 0 : i32
    %c0_i32_0 = arith.constant 0 : i32
    %c0_i32_1 = arith.constant 0 : i32
    return %c0_i32, %arg0, %c0_i32_0 : i32, i32, i32
  }
  func.func @transform_1(%arg0: i32) -> (i32, i32) {
    %c0_i32 = arith.constant 0 : i32
    %c0_i32_0 = arith.constant 0 : i32
    %c0_i32_1 = arith.constant 0 : i32
    return %c0_i32, %c0_i32_0 : i32, i32
  }
  func.func @transform_2(%arg0: i32) -> (i32, i32) {
    %c0_i32 = arith.constant 0 : i32
    %c0_i32_0 = arith.constant 0 : i32
    %c0_i32_1 = arith.constant 0 : i32
    return %c0_i32, %c0_i32_0 : i32, i32
  }
  func.func @transform_3(%arg0: i32) -> (i32, i32) {
    %c0_i32 = arith.constant 0 : i32
    %c0_i32_0 = arith.constant 0 : i32
    return %arg0, %c0_i32 : i32, i32
  }
}

module attributes {stable_mosaic.version = 11 : i64} {
  func.func @mlp_kernel(%arg0: i32, %arg1: memref<16x784xbf16, #tpu.memory_space<vmem>>, %arg2: memref<784x128xbf16, #tpu.memory_space<vmem>>, %arg3: memref<1x128xf32, #tpu.memory_space<vmem>>, %arg4: memref<128x128xbf16, #tpu.memory_space<vmem>>, %arg5: memref<1x128xf32, #tpu.memory_space<vmem>>, %arg6: memref<128x128xbf16, #tpu.memory_space<vmem>>, %arg7: memref<1x128xf32, #tpu.memory_space<vmem>>, %arg8: memref<16x128xf32, #tpu.memory_space<vmem>>) attributes {dimension_semantics = [#tpu.dimension_semantics<parallel>], iteration_bounds = array<i64: 1>, scalar_prefetch = 0 : i64, scratch_operands = 0 : i64, tpu.core_type = #tpu.core_type<tc>, window_params = [{transform_indices = @transform_0, window_bounds = array<i64: 16, 784>}, {pipeline_mode = #tpu.pipeline_mode<synchronous>, transform_indices = @transform_1, window_bounds = array<i64: 784, 128>}, {pipeline_mode = #tpu.pipeline_mode<synchronous>, transform_indices = @transform_2, window_bounds = array<i64: 1, 128>}, {pipeline_mode = #tpu.pipeline_mode<synchronous>, transform_indices = @transform_3, window_bounds = array<i64: 128, 128>}, {pipeline_mode = #tpu.pipeline_mode<synchronous>, transform_indices = @transform_4, window_bounds = array<i64: 1, 128>}, {pipeline_mode = #tpu.pipeline_mode<synchronous>, transform_indices = @transform_5, window_bounds = array<i64: 128, 128>}, {pipeline_mode = #tpu.pipeline_mode<synchronous>, transform_indices = @transform_6, window_bounds = array<i64: 1, 128>}, {transform_indices = @transform_7, window_bounds = array<i64: 16, 128>}]} {
    %c0 = arith.constant 0 : index
    %c0_0 = arith.constant 0 : index
    %0 = vector.load %arg1[%c0, %c0_0] : memref<16x784xbf16, #tpu.memory_space<vmem>>, vector<16x784xbf16>
    %c0_1 = arith.constant 0 : index
    %c0_2 = arith.constant 0 : index
    %1 = vector.load %arg2[%c0_1, %c0_2] : memref<784x128xbf16, #tpu.memory_space<vmem>>, vector<784x128xbf16>
    %cst = arith.constant dense<0.000000e+00> : vector<16x128xf32>
    %2 = tpu.matmul %0, %1, %cst {dimension_numbers = #tpu.dot_dimension_numbers<[1], [0], [0], [1], [0, 0, 1, 1], [], []>} : vector<16x784xbf16>, vector<784x128xbf16>, vector<16x128xf32> -> vector<16x128xf32>
    %c0_3 = arith.constant 0 : index
    %c0_4 = arith.constant 0 : index
    %3 = vector.load %arg3[%c0_3, %c0_4] : memref<1x128xf32, #tpu.memory_space<vmem>>, vector<1x128xf32>
    %4 = vector.broadcast %3 : vector<1x128xf32> to vector<16x128xf32>
    %5 = arith.addf %2, %4 : vector<16x128xf32>
    %cst_5 = arith.constant 0.000000e+00 : f32
    %6 = vector.broadcast %cst_5 : f32 to vector<16x128xf32>
    %7 = arith.maximumf %5, %6 : vector<16x128xf32>
    %8 = arith.truncf %7 : vector<16x128xf32> to vector<16x128xbf16>
    %c0_6 = arith.constant 0 : index
    %c0_7 = arith.constant 0 : index
    %9 = vector.load %arg4[%c0_6, %c0_7] : memref<128x128xbf16, #tpu.memory_space<vmem>>, vector<128x128xbf16>
    %cst_8 = arith.constant dense<0.000000e+00> : vector<16x128xf32>
    %10 = tpu.matmul %8, %9, %cst_8 {dimension_numbers = #tpu.dot_dimension_numbers<[1], [0], [0], [1], [0, 0, 1, 1], [], []>} : vector<16x128xbf16>, vector<128x128xbf16>, vector<16x128xf32> -> vector<16x128xf32>
    %c0_9 = arith.constant 0 : index
    %c0_10 = arith.constant 0 : index
    %11 = vector.load %arg5[%c0_9, %c0_10] : memref<1x128xf32, #tpu.memory_space<vmem>>, vector<1x128xf32>
    %12 = vector.broadcast %11 : vector<1x128xf32> to vector<16x128xf32>
    %13 = arith.addf %10, %12 : vector<16x128xf32>
    %cst_11 = arith.constant 0.000000e+00 : f32
    %14 = vector.broadcast %cst_11 : f32 to vector<16x128xf32>
    %15 = arith.maximumf %13, %14 : vector<16x128xf32>
    %16 = arith.truncf %15 : vector<16x128xf32> to vector<16x128xbf16>
    %c0_12 = arith.constant 0 : index
    %c0_13 = arith.constant 0 : index
    %17 = vector.load %arg6[%c0_12, %c0_13] : memref<128x128xbf16, #tpu.memory_space<vmem>>, vector<128x128xbf16>
    %cst_14 = arith.constant dense<0.000000e+00> : vector<16x128xf32>
    %18 = tpu.matmul %16, %17, %cst_14 {dimension_numbers = #tpu.dot_dimension_numbers<[1], [0], [0], [1], [0, 0, 1, 1], [], []>} : vector<16x128xbf16>, vector<128x128xbf16>, vector<16x128xf32> -> vector<16x128xf32>
    %c0_15 = arith.constant 0 : index
    %c0_16 = arith.constant 0 : index
    %19 = vector.load %arg7[%c0_15, %c0_16] : memref<1x128xf32, #tpu.memory_space<vmem>>, vector<1x128xf32>
    %20 = vector.broadcast %19 : vector<1x128xf32> to vector<16x128xf32>
    %21 = arith.addf %18, %20 : vector<16x128xf32>
    %c0_17 = arith.constant 0 : index
    %c0_18 = arith.constant 0 : index
    %22 = vector.load %arg8[%c0_17, %c0_18] : memref<16x128xf32, #tpu.memory_space<vmem>>, vector<16x128xf32>
    tpu.vector_store %arg8[%c0_17, %c0_18], %21 {strides = array<i32>} : memref<16x128xf32, #tpu.memory_space<vmem>>, vector<16x128xf32>,
    return
  }
  func.func @transform_0(%arg0: i32) -> (i32, i32) {
    %c0_i32 = arith.constant 0 : i32
    %c0_i32_0 = arith.constant 0 : i32
    return %arg0, %c0_i32 : i32, i32
  }
  func.func @transform_1(%arg0: i32) -> (i32, i32) {
    %c0_i32 = arith.constant 0 : i32
    %c0_i32_0 = arith.constant 0 : i32
    %c0_i32_1 = arith.constant 0 : i32
    return %c0_i32, %c0_i32_0 : i32, i32
  }
  func.func @transform_2(%arg0: i32) -> (i32, i32) {
    %c0_i32 = arith.constant 0 : i32
    %c0_i32_0 = arith.constant 0 : i32
    %c0_i32_1 = arith.constant 0 : i32
    return %c0_i32, %c0_i32_0 : i32, i32
  }
  func.func @transform_3(%arg0: i32) -> (i32, i32) {
    %c0_i32 = arith.constant 0 : i32
    %c0_i32_0 = arith.constant 0 : i32
    %c0_i32_1 = arith.constant 0 : i32
    return %c0_i32, %c0_i32_0 : i32, i32
  }
  func.func @transform_4(%arg0: i32) -> (i32, i32) {
    %c0_i32 = arith.constant 0 : i32
    %c0_i32_0 = arith.constant 0 : i32
    %c0_i32_1 = arith.constant 0 : i32
    return %c0_i32, %c0_i32_0 : i32, i32
  }
  func.func @transform_5(%arg0: i32) -> (i32, i32) {
    %c0_i32 = arith.constant 0 : i32
    %c0_i32_0 = arith.constant 0 : i32
    %c0_i32_1 = arith.constant 0 : i32
    return %c0_i32, %c0_i32_0 : i32, i32
  }
  func.func @transform_6(%arg0: i32) -> (i32, i32) {
    %c0_i32 = arith.constant 0 : i32
    %c0_i32_0 = arith.constant 0 : i32
    %c0_i32_1 = arith.constant 0 : i32
    return %c0_i32, %c0_i32_0 : i32, i32
  }
  func.func @transform_7(%arg0: i32) -> (i32, i32) {
    %c0_i32 = arith.constant 0 : i32
    %c0_i32_0 = arith.constant 0 : i32
    return %arg0, %c0_i32 : i32, i32
  }
}

</mosaic_0001>

<bundles_post_ra>
// kernel: _lambda_.3
= control target key start
LH: loop header
LB: loop body
LE: loop exit
PB: predicated region body
PF: predicated region fallthrough
CT: control target
= control target key end

     0   :  { %s8960_s12 = smov 0   ;;  %s8962_s13 = smov 0   ;;  %s11242_s0 = inlined_call_operand.vmem [shape: bf16[4,1568,9], index: 0, kind: input, shape index: {}]   ;;  %s11243_s1 = inlined_call_operand.vmem [shape: bf16[9,128], index: 1, kind: input, shape index: {}]   ;;  %s11244_s2 = inlined_call_operand.vmem [shape: f32[1,128], index: 2, kind: input, shape index: {}]   ;;  %s11245_s3 = inlined_call_operand.vmem [shape: bf16[1568,128], index: 3, kind: output, shape index: {}]  }
   0x1   :  { %s8964_s14 = smov 0  }
   0x2 LB: > { %s6507_s15 = sadd.s32 4294967295, %s8935_s14   ;;  %s8977_s16 = sadd.s32 1, %s8935_s14   ;;  %s8935_s14 = sphi %s8964_s14, %s11793_s14   ;;  %s8931_s13 = sphi %s8962_s13, %s11792_s13   ;;  %s8927_s12 = sphi %s8960_s12, %s11791_s12  }
   0x3   : > { %s17_s17 = ssub.s32 %s8935_s14, %s8977_s16  ;;  %s20_s18 = sadd.s32 1, %s8931_s13 }
   0x4   : > { %p18_p0 = scmp.eq.s32.totalorder %s17_s17, 0  ;;  %p27_p1 = scmp.ne.s32.totalorder %s8931_s13, %s8927_s12 }
   0x5   : > { %p28_p2 = scmp.eq.s32.totalorder %s8935_s14, 0  ;;  %p6510_p4 = scmp.ge.s32.totalorder %s8935_s14, 2 }
   0x6   : > { %s8986_s19 = scalar_select %p18_p0, %s8931_s13, %s20_s18  }
   0x7   : > { %p29_p3 = por %p28_p2, %p27_p1  ;;  %127 = sbr.rel (%p6510_p4) target bundleno = 117 (0x75), region = 24 }
   0xe   : > { %130 = sbr.rel (!%p29_p3) target bundleno = 117 (0x75), region = 28  ;;  %s132_s20 = sand.u32 (%p29_p3), 1, %s8931_s13  }
   0xf   : > { %s7302_s21 = smul.u32 (%p29_p3), 392, %s8935_s14 }
  0x10   : > { %s8686_s22 = smul.u32 (%p29_p3), 1568, %s132_s20 }
  0x11   : > { %s8994_s25 = scalar_lea.vmem (%p29_p3), %s11242_s0, %s7302_s21 }
  0x12   : > { %v153_v0 = vld [vmem:[%s8994_s25] sm:$0xff] (%p29_p3)   ;;  %v157_v1 = vld [vmem:[%s8994_s25 + $0x8] sm:$0xff] (%p29_p3)   ;;  %v161_v2 = vld [vmem:[%s8994_s25 + $0x10] sm:$0xff] (%p29_p3)   ;;  %s8999_s26 = scalar_lea.vmem (%p29_p3), [#allocation2], %s8686_s22 }
  0x13   : > { %154 = vst [vmem:[%s8999_s26] sm:$0xff] (%p29_p3), %v153_v0   ;;  %158 = vst [vmem:[%s8999_s26 + $0x8] sm:$0xff] (%p29_p3), %v157_v1   ;;  %v165_v3 = vld [vmem:[%s8994_s25 + $0x18] sm:$0xff] (%p29_p3)   ;;  %v169_v4 = vld [vmem:[%s8994_s25 + $0x20] sm:$0xff] (%p29_p3)  }
  0x14   : > { %162 = vst [vmem:[%s8999_s26 + $0x10] sm:$0xff] (%p29_p3), %v161_v2   ;;  %v173_v5 = vld [vmem:[%s8994_s25 + $0x28] sm:$0xff] (%p29_p3)   ;;  %166 = vst [vmem:[%s8999_s26 + $0x18] sm:$0xff] (%p29_p3), %v165_v3   ;;  %v177_v6 = vld [vmem:[%s8994_s25 + $0x30] sm:$0xff] (%p29_p3)  }
  0x15   : > { %170 = vst [vmem:[%s8999_s26 + $0x20] sm:$0xff] %v169_v4   ;;  %174 = vst [vmem:[%s8999_s26 + $0x28] sm:$0xff] %v173_v5   ;;  %v181_v7 = vld [vmem:[%s8994_s25 + $0x38] sm:$0xff]   ;;  %v185_v8 = vld [vmem:[%s8994_s25 + $0x40] sm:$0xff]  }
  0x16   : > { %178 = vst [vmem:[%s8999_s26 + $0x30] sm:$0xff] %v177_v6   ;;  %182 = vst [vmem:[%s8999_s26 + $0x38] sm:$0xff] %v181_v7   ;;  %v189_v9 = vld [vmem:[%s8994_s25 + $0x48] sm:$0xff]   ;;  %v193_v10 = vld [vmem:[%s8994_s25 + $0x50] sm:$0xff]  }
  0x17   : > { %186 = vst [vmem:[%s8999_s26 + $0x40] sm:$0xff] %v185_v8   ;;  %v197_v11 = vld [vmem:[%s8994_s25 + $0x58] sm:$0xff]   ;;  %190 = vst [vmem:[%s8999_s26 + $0x48] sm:$0xff] %v189_v9   ;;  %v201_v12 = vld [vmem:[%s8994_s25 + $0x60] sm:$0xff]  }
  0x18   : > { %194 = vst [vmem:[%s8999_s26 + $0x50] sm:$0xff] %v193_v10   ;;  %198 = vst [vmem:[%s8999_s26 + $0x58] sm:$0xff] %v197_v11   ;;  %v205_v13 = vld [vmem:[%s8994_s25 + $0x68] sm:$0xff]   ;;  %v209_v14 = vld [vmem:[%s8994_s25 + $0x70] sm:$0xff]  }
  0x19   : > { %202 = vst [vmem:[%s8999_s26 + $0x60] sm:$0xff] %v201_v12   ;;  %206 = vst [vmem:[%s8999_s26 + $0x68] sm:$0xff] %v205_v13   ;;  %v213_v15 = vld [vmem:[%s8994_s25 + $0x78] sm:$0xff]   ;;  %v217_v16 = vld [vmem:[%s8994_s25 + $0x80] sm:$0xff]  }
  0x1a   : > { %210 = vst [vmem:[%s8999_s26 + $0x70] sm:$0xff] %v209_v14   ;;  %v221_v17 = vld [vmem:[%s8994_s25 + $0x88] sm:$0xff]   ;;  %214 = vst [vmem:[%s8999_s26 + $0x78] sm:$0xff] %v213_v15   ;;  %v225_v18 = vld [vmem:[%s8994_s25 + $0x90] sm:$0xff]  }
  0x1b   : > { %218 = vst [vmem:[%s8999_s26 + $0x80] sm:$0xff] %v217_v16   ;;  %222 = vst [vmem:[%s8999_s26 + $0x88] sm:$0xff] %v221_v17   ;;  %v229_v19 = vld [vmem:[%s8994_s25 + $0x98] sm:$0xff]   ;;  %v233_v20 = vld [vmem:[%s8994_s25 + $0xa0] sm:$0xff]  }
  0x1c   : > { %226 = vst [vmem:[%s8999_s26 + $0x90] sm:$0xff] %v225_v18   ;;  %230 = vst [vmem:[%s8999_s26 + $0x98] sm:$0xff] %v229_v19   ;;  %v237_v21 = vld [vmem:[%s8994_s25 + $0xa8] sm:$0xff]   ;;  %v241_v22 = vld [vmem:[%s8994_s25 + $0xb0] sm:$0xff]  }
  0x1d   : > { %234 = vst [vmem:[%s8999_s26 + $0xa0] sm:$0xff] %v233_v20   ;;  %v245_v23 = vld [vmem:[%s8994_s25 + $0xb8] sm:$0xff]   ;;  %238 = vst [vmem:[%s8999_s26 + $0xa8] sm:$0xff] %v237_v21   ;;  %v249_v24 = vld [vmem:[%s8994_s25 + $0xc0] sm:$0xff]  }
  0x1e   : > { %242 = vst [vmem:[%s8999_s26 + $0xb0] sm:$0xff] %v241_v22   ;;  %246 = vst [vmem:[%s8999_s26 + $0xb8] sm:$0xff] %v245_v23   ;;  %v253_v25 = vld [vmem:[%s8994_s25 + $0xc8] sm:$0xff]   ;;  %v257_v26 = vld [vmem:[%s8994_s25 + $0xd0] sm:$0xff]  }
  0x1f   : > { %250 = vst [vmem:[%s8999_s26 + $0xc0] sm:$0xff] %v249_v24   ;;  %254 = vst [vmem:[%s8999_s26 + $0xc8] sm:$0xff] %v253_v25   ;;  %v261_v27 = vld [vmem:[%s8994_s25 + $0xd8] sm:$0xff]   ;;  %v265_v28 = vld [vmem:[%s8994_s25 + $0xe0] sm:$0xff]  }
  0x20   : > { %258 = vst [vmem:[%s8999_s26 + $0xd0] sm:$0xff] %v257_v26   ;;  %v269_v29 = vld [vmem:[%s8994_s25 + $0xe8] sm:$0xff]   ;;  %262 = vst [vmem:[%s8999_s26 + $0xd8] sm:$0xff] %v261_v27   ;;  %v273_v30 = vld [vmem:[%s8994_s25 + $0xf0] sm:$0xff]  }
  0x21   : > { %266 = vst [vmem:[%s8999_s26 + $0xe0] sm:$0xff] %v265_v28   ;;  %270 = vst [vmem:[%s8999_s26 + $0xe8] sm:$0xff] %v269_v29   ;;  %v277_v31 = vld [vmem:[%s8994_s25 + $0xf8] sm:$0xff]   ;;  %v281_v32 = vld [vmem:[%s8994_s25 + $0x100] sm:$0xff]  }
  0x22   : > { %274 = vst [vmem:[%s8999_s26 + $0xf0] sm:$0xff] %v273_v30   ;;  %278 = vst [vmem:[%s8999_s26 + $0xf8] sm:$0xff] %v277_v31   ;;  %v285_v33 = vld [vmem:[%s8994_s25 + $0x108] sm:$0xff]   ;;  %v289_v34 = vld [vmem:[%s8994_s25 + $0x110] sm:$0xff]  }
  0x23   : > { %282 = vst [vmem:[%s8999_s26 + $0x100] sm:$0xff] %v281_v32   ;;  %v293_v35 = vld [vmem:[%s8994_s25 + $0x118] sm:$0xff]   ;;  %286 = vst [vmem:[%s8999_s26 + $0x108] sm:$0xff] %v285_v33   ;;  %v297_v36 = vld [vmem:[%s8994_s25 + $0x120] sm:$0xff]  }
  0x24   : > { %290 = vst [vmem:[%s8999_s26 + $0x110] sm:$0xff] %v289_v34   ;;  %294 = vst [vmem:[%s8999_s26 + $0x118] sm:$0xff] %v293_v35   ;;  %v301_v37 = vld [vmem:[%s8994_s25 + $0x128] sm:$0xff]   ;;  %v305_v38 = vld [vmem:[%s8994_s25 + $0x130] sm:$0xff]  }
  0x25   : > { %298 = vst [vmem:[%s8999_s26 + $0x120] sm:$0xff] %v297_v36   ;;  %302 = vst [vmem:[%s8999_s26 + $0x128] sm:$0xff] %v301_v37   ;;  %v309_v39 = vld [vmem:[%s8994_s25 + $0x138] sm:$0xff]   ;;  %v313_v40 = vld [vmem:[%s8994_s25 + $0x140] sm:$0xff]  }
  0x26   : > { %306 = vst [vmem:[%s8999_s26 + $0x130] sm:$0xff] %v305_v38   ;;  %v317_v41 = vld [vmem:[%s8994_s25 + $0x148] sm:$0xff]   ;;  %310 = vst [vmem:[%s8999_s26 + $0x138] sm:$0xff] %v309_v39   ;;  %v321_v42 = vld [vmem:[%s8994_s25 + $0x150] sm:$0xff]  }
  0x27   : > { %314 = vst [vmem:[%s8999_s26 + $0x140] sm:$0xff] %v313_v40   ;;  %318 = vst [vmem:[%s8999_s26 + $0x148] sm:$0xff] %v317_v41   ;;  %v325_v43 = vld [vmem:[%s8994_s25 + $0x158] sm:$0xff]   ;;  %v329_v44 = vld [vmem:[%s8994_s25 + $0x160] sm:$0xff]  }
  0x28   : > { %322 = vst [vmem:[%s8999_s26 + $0x150] sm:$0xff] %v321_v42   ;;  %326 = vst [vmem:[%s8999_s26 + $0x158] sm:$0xff] %v325_v43   ;;  %v333_v45 = vld [vmem:[%s8994_s25 + $0x168] sm:$0xff]   ;;  %v337_v46 = vld [vmem:[%s8994_s25 + $0x170] sm:$0xff]  }
  0x29   : > { %330 = vst [vmem:[%s8999_s26 + $0x160] sm:$0xff] %v329_v44   ;;  %v341_v47 = vld [vmem:[%s8994_s25 + $0x178] sm:$0xff]   ;;  %334 = vst [vmem:[%s8999_s26 + $0x168] sm:$0xff] %v333_v45   ;;  %v345_v48 = vld [vmem:[%s8994_s25 + $0x180] sm:$0xff]  }
  0x2a   : > { %338 = vst [vmem:[%s8999_s26 + $0x170] sm:$0xff] %v337_v46   ;;  %342 = vst [vmem:[%s8999_s26 + $0x178] sm:$0xff] %v341_v47   ;;  %v349_v49 = vld [vmem:[%s8994_s25 + $0x310] sm:$0xff]   ;;  %v353_v50 = vld [vmem:[%s8994_s25 + $0x318] sm:$0xff]  }
  0x2b   : > { %346 = vst [vmem:[%s8999_s26 + $0x180] sm:$0xff] %v345_v48   ;;  %350 = vst [vmem:[%s8999_s26 + $0x188] sm:$0xff] %v349_v49   ;;  %v357_v51 = vld [vmem:[%s8994_s25 + $0x320] sm:$0xff]   ;;  %v361_v52 = vld [vmem:[%s8994_s25 + $0x328] sm:$0xff]  }
  0x2c   : > { %354 = vst [vmem:[%s8999_s26 + $0x190] sm:$0xff] %v353_v50   ;;  %v365_v53 = vld [vmem:[%s8994_s25 + $0x330] sm:$0xff]   ;;  %358 = vst [vmem:[%s8999_s26 + $0x198] sm:$0xff] %v357_v51   ;;  %v369_v54 = vld [vmem:[%s8994_s25 + $0x338] sm:$0xff]  }
  0x2d   : > { %362 = vst [vmem:[%s8999_s26 + $0x1a0] sm:$0xff] %v361_v52   ;;  %366 = vst [vmem:[%s8999_s26 + $0x1a8] sm:$0xff] %v365_v53   ;;  %v373_v55 = vld [vmem:[%s8994_s25 + $0x340] sm:$0xff]   ;;  %v377_v56 = vld [vmem:[%s8994_s25 + $0x348] sm:$0xff]  }
  0x2e   : > { %370 = vst [vmem:[%s8999_s26 + $0x1b0] sm:$0xff] %v369_v54   ;;  %374 = vst [vmem:[%s8999_s26 + $0x1b8] sm:$0xff] %v373_v55   ;;  %v381_v57 = vld [vmem:[%s8994_s25 + $0x350] sm:$0xff]   ;;  %v385_v58 = vld [vmem:[%s8994_s25 + $0x358] sm:$0xff]  }
  0x2f   : > { %378 = vst [vmem:[%s8999_s26 + $0x1c0] sm:$0xff] %v377_v56   ;;  %v389_v59 = vld [vmem:[%s8994_s25 + $0x360] sm:$0xff]   ;;  %382 = vst [vmem:[%s8999_s26 + $0x1c8] sm:$0xff] %v381_v57   ;;  %v393_v60 = vld [vmem:[%s8994_s25 + $0x368] sm:$0xff]  }
  0x30   : > { %386 = vst [vmem:[%s8999_s26 + $0x1d0] sm:$0xff] %v385_v58   ;;  %390 = vst [vmem:[%s8999_s26 + $0x1d8] sm:$0xff] %v389_v59   ;;  %v397_v61 = vld [vmem:[%s8994_s25 + $0x370] sm:$0xff]   ;;  %v401_v62 = vld [vmem:[%s8994_s25 + $0x378] sm:$0xff]  }
  0x31   : > { %394 = vst [vmem:[%s8999_s26 + $0x1e0] sm:$0xff] %v393_v60   ;;  %398 = vst [vmem:[%s8999_s26 + $0x1e8] sm:$0xff] %v397_v61   ;;  %v405_v63 = vld [vmem:[%s8994_s25 + $0x380] sm:$0xff]   ;;  %v409_v0 = vld [vmem:[%s8994_s25 + $0x388] sm:$0xff]  }
  0x32   : > { %402 = vst [vmem:[%s8999_s26 + $0x1f0] sm:$0xff] %v401_v62   ;;  %v413_v1 = vld [vmem:[%s8994_s25 + $0x390] sm:$0xff]   ;;  %406 = vst [vmem:[%s8999_s26 + $0x1f8] sm:$0xff] %v405_v63   ;;  %v417_v2 = vld [vmem:[%s8994_s25 + $0x398] sm:$0xff]  }
  0x33   : > { %410 = vst [vmem:[%s8999_s26 + $0x200] sm:$0xff] %v409_v0   ;;  %414 = vst [vmem:[%s8999_s26 + $0x208] sm:$0xff] %v413_v1   ;;  %v421_v3 = vld [vmem:[%s8994_s25 + $0x3a0] sm:$0xff]   ;;  %v425_v4 = vld [vmem:[%s8994_s25 + $0x3a8] sm:$0xff]  }
  0x34   : > { %418 = vst [vmem:[%s8999_s26 + $0x210] sm:$0xff] %v417_v2   ;;  %422 = vst [vmem:[%s8999_s26 + $0x218] sm:$0xff] %v421_v3   ;;  %v429_v5 = vld [vmem:[%s8994_s25 + $0x3b0] sm:$0xff]   ;;  %v433_v6 = vld [vmem:[%s8994_s25 + $0x3b8] sm:$0xff]  }
  0x35   : > { %426 = vst [vmem:[%s8999_s26 + $0x220] sm:$0xff] %v425_v4   ;;  %v437_v7 = vld [vmem:[%s8994_s25 + $0x3c0] sm:$0xff]   ;;  %430 = vst [vmem:[%s8999_s26 + $0x228] sm:$0xff] %v429_v5   ;;  %v441_v8 = vld [vmem:[%s8994_s25 + $0x3c8] sm:$0xff]  }
  0x36   : > { %434 = vst [vmem:[%s8999_s26 + $0x230] sm:$0xff] %v433_v6   ;;  %438 = vst [vmem:[%s8999_s26 + $0x238] sm:$0xff] %v437_v7   ;;  %v445_v9 = vld [vmem:[%s8994_s25 + $0x3d0] sm:$0xff]   ;;  %v449_v10 = vld [vmem:[%s8994_s25 + $0x3d8] sm:$0xff]  }
  0x37   : > { %442 = vst [vmem:[%s8999_s26 + $0x240] sm:$0xff] %v441_v8   ;;  %446 = vst [vmem:[%s8999_s26 + $0x248] sm:$0xff] %v445_v9   ;;  %v453_v11 = vld [vmem:[%s8994_s25 + $0x3e0] sm:$0xff]   ;;  %v457_v12 = vld [vmem:[%s8994_s25 + $0x3e8] sm:$0xff]  }
  0x38   : > { %450 = vst [vmem:[%s8999_s26 + $0x250] sm:$0xff] %v449_v10   ;;  %v461_v13 = vld [vmem:[%s8994_s25 + $0x3f0] sm:$0xff]   ;;  %454 = vst [vmem:[%s8999_s26 + $0x258] sm:$0xff] %v453_v11   ;;  %v465_v14 = vld [vmem:[%s8994_s25 + $0x3f8] sm:$0xff]  }
  0x39   : > { %458 = vst [vmem:[%s8999_s26 + $0x260] sm:$0xff] %v457_v12   ;;  %462 = vst [vmem:[%s8999_s26 + $0x268] sm:$0xff] %v461_v13   ;;  %v469_v15 = vld [vmem:[%s8994_s25 + $0x400] sm:$0xff]   ;;  %v473_v16 = vld [vmem:[%s8994_s25 + $0x408] sm:$0xff]  }
  0x3a   : > { %466 = vst [vmem:[%s8999_s26 + $0x270] sm:$0xff] %v465_v14   ;;  %470 = vst [vmem:[%s8999_s26 + $0x278] sm:$0xff] %v469_v15   ;;  %v477_v17 = vld [vmem:[%s8994_s25 + $0x410] sm:$0xff]   ;;  %v481_v18 = vld [vmem:[%s8994_s25 + $0x418] sm:$0xff]  }
  0x3b   : > { %474 = vst [vmem:[%s8999_s26 + $0x280] sm:$0xff] %v473_v16   ;;  %v485_v19 = vld [vmem:[%s8994_s25 + $0x420] sm:$0xff]   ;;  %478 = vst [vmem:[%s8999_s26 + $0x288] sm:$0xff] %v477_v17   ;;  %v489_v20 = vld [vmem:[%s8994_s25 + $0x428] sm:$0xff]  }
  0x3c   : > { %482 = vst [vmem:[%s8999_s26 + $0x290] sm:$0xff] %v481_v18   ;;  %486 = vst [vmem:[%s8999_s26 + $0x298] sm:$0xff] %v485_v19   ;;  %v493_v21 = vld [vmem:[%s8994_s25 + $0x430] sm:$0xff]   ;;  %v497_v22 = vld [vmem:[%s8994_s25 + $0x438] sm:$0xff]  }
  0x3d   : > { %490 = vst [vmem:[%s8999_s26 + $0x2a0] sm:$0xff] %v489_v20   ;;  %494 = vst [vmem:[%s8999_s26 + $0x2a8] sm:$0xff] %v493_v21   ;;  %v501_v23 = vld [vmem:[%s8994_s25 + $0x440] sm:$0xff]   ;;  %v505_v24 = vld [vmem:[%s8994_s25 + $0x448] sm:$0xff]  }
  0x3e   : > { %498 = vst [vmem:[%s8999_s26 + $0x2b0] sm:$0xff] %v497_v22   ;;  %v509_v25 = vld [vmem:[%s8994_s25 + $0x450] sm:$0xff]   ;;  %502 = vst [vmem:[%s8999_s26 + $0x2b8] sm:$0xff] %v501_v23   ;;  %v513_v26 = vld [vmem:[%s8994_s25 + $0x458] sm:$0xff]  }
  0x3f   : > { %506 = vst [vmem:[%s8999_s26 + $0x2c0] sm:$0xff] %v505_v24   ;;  %510 = vst [vmem:[%s8999_s26 + $0x2c8] sm:$0xff] %v509_v25   ;;  %v517_v27 = vld [vmem:[%s8994_s25 + $0x460] sm:$0xff]   ;;  %v521_v28 = vld [vmem:[%s8994_s25 + $0x468] sm:$0xff]  }
  0x40   : > { %514 = vst [vmem:[%s8999_s26 + $0x2d0] sm:$0xff] %v513_v26   ;;  %518 = vst [vmem:[%s8999_s26 + $0x2d8] sm:$0xff] %v517_v27   ;;  %v525_v29 = vld [vmem:[%s8994_s25 + $0x470] sm:$0xff]   ;;  %v529_v30 = vld [vmem:[%s8994_s25 + $0x478] sm:$0xff]  }
  0x41   : > { %522 = vst [vmem:[%s8999_s26 + $0x2e0] sm:$0xff] %v521_v28   ;;  %v533_v31 = vld [vmem:[%s8994_s25 + $0x480] sm:$0xff]   ;;  %526 = vst [vmem:[%s8999_s26 + $0x2e8] sm:$0xff] %v525_v29   ;;  %v537_v32 = vld [vmem:[%s8994_s25 + $0x488] sm:$0xff]  }
  0x42   : > { %530 = vst [vmem:[%s8999_s26 + $0x2f0] sm:$0xff] %v529_v30   ;;  %534 = vst [vmem:[%s8999_s26 + $0x2f8] sm:$0xff] %v533_v31   ;;  %v541_v33 = vld [vmem:[%s8994_s25 + $0x490] sm:$0xff]   ;;  %v545_v34 = vld [vmem:[%s8994_s25 + $0x620] sm:$0xff]  }
  0x43   : > { %538 = vst [vmem:[%s8999_s26 + $0x300] sm:$0xff] %v537_v32   ;;  %542 = vst [vmem:[%s8999_s26 + $0x308] sm:$0xff] %v541_v33   ;;  %v549_v35 = vld [vmem:[%s8994_s25 + $0x628] sm:$0xff]   ;;  %v553_v36 = vld [vmem:[%s8994_s25 + $0x630] sm:$0xff]  }
  0x44   : > { %546 = vst [vmem:[%s8999_s26 + $0x310] sm:$0xff] %v545_v34   ;;  %v557_v37 = vld [vmem:[%s8994_s25 + $0x638] sm:$0xff]   ;;  %550 = vst [vmem:[%s8999_s26 + $0x318] sm:$0xff] %v549_v35   ;;  %v561_v38 = vld [vmem:[%s8994_s25 + $0x640] sm:$0xff]  }
  0x45   : > { %554 = vst [vmem:[%s8999_s26 + $0x320] sm:$0xff] %v553_v36   ;;  %558 = vst [vmem:[%s8999_s26 + $0x328] sm:$0xff] %v557_v37   ;;  %v565_v39 = vld [vmem:[%s8994_s25 + $0x648] sm:$0xff]   ;;  %v569_v40 = vld [vmem:[%s8994_s25 + $0x650] sm:$0xff]  }
  0x46   : > { %562 = vst [vmem:[%s8999_s26 + $0x330] sm:$0xff] %v561_v38   ;;  %566 = vst [vmem:[%s8999_s26 + $0x338] sm:$0xff] %v565_v39   ;;  %v573_v41 = vld [vmem:[%s8994_s25 + $0x658] sm:$0xff]   ;;  %v577_v42 = vld [vmem:[%s8994_s25 + $0x660] sm:$0xff]  }
  0x47   : > { %570 = vst [vmem:[%s8999_s26 + $0x340] sm:$0xff] %v569_v40   ;;  %v581_v43 = vld [vmem:[%s8994_s25 + $0x668] sm:$0xff]   ;;  %574 = vst [vmem:[%s8999_s26 + $0x348] sm:$0xff] %v573_v41   ;;  %v585_v44 = vld [vmem:[%s8994_s25 + $0x670] sm:$0xff]  }
  0x48   : > { %578 = vst [vmem:[%s8999_s26 + $0x350] sm:$0xff] %v577_v42   ;;  %582 = vst [vmem:[%s8999_s26 + $0x358] sm:$0xff] %v581_v43   ;;  %v589_v45 = vld [vmem:[%s8994_s25 + $0x678] sm:$0xff]   ;;  %v593_v46 = vld [vmem:[%s8994_s25 + $0x680] sm:$0xff]  }
  0x49   : > { %586 = vst [vmem:[%s8999_s26 + $0x360] sm:$0xff] %v585_v44   ;;  %590 = vst [vmem:[%s8999_s26 + $0x368] sm:$0xff] %v589_v45   ;;  %v597_v47 = vld [vmem:[%s8994_s25 + $0x688] sm:$0xff]   ;;  %v601_v48 = vld [vmem:[%s8994_s25 + $0x690] sm:$0xff]  }
  0x4a   : > { %594 = vst [vmem:[%s8999_s26 + $0x370] sm:$0xff] %v593_v46   ;;  %v605_v49 = vld [vmem:[%s8994_s25 + $0x698] sm:$0xff]   ;;  %598 = vst [vmem:[%s8999_s26 + $0x378] sm:$0xff] %v597_v47   ;;  %v609_v50 = vld [vmem:[%s8994_s25 + $0x6a0] sm:$0xff]  }
  0x4b   : > { %602 = vst [vmem:[%s8999_s26 + $0x380] sm:$0xff] %v601_v48   ;;  %606 = vst [vmem:[%s8999_s26 + $0x388] sm:$0xff] %v605_v49   ;;  %v613_v51 = vld [vmem:[%s8994_s25 + $0x6a8] sm:$0xff]   ;;  %v617_v52 = vld [vmem:[%s8994_s25 + $0x6b0] sm:$0xff]  }
  0x4c   : > { %610 = vst [vmem:[%s8999_s26 + $0x390] sm:$0xff] %v609_v50   ;;  %614 = vst [vmem:[%s8999_s26 + $0x398] sm:$0xff] %v613_v51   ;;  %v621_v53 = vld [vmem:[%s8994_s25 + $0x6b8] sm:$0xff]   ;;  %v625_v54 = vld [vmem:[%s8994_s25 + $0x6c0] sm:$0xff]  }
  0x4d   : > { %618 = vst [vmem:[%s8999_s26 + $0x3a0] sm:$0xff] %v617_v52   ;;  %v629_v55 = vld [vmem:[%s8994_s25 + $0x6c8] sm:$0xff]   ;;  %622 = vst [vmem:[%s8999_s26 + $0x3a8] sm:$0xff] %v621_v53   ;;  %v633_v56 = vld [vmem:[%s8994_s25 + $0x6d0] sm:$0xff]  }
  0x4e   : > { %626 = vst [vmem:[%s8999_s26 + $0x3b0] sm:$0xff] %v625_v54   ;;  %630 = vst [vmem:[%s8999_s26 + $0x3b8] sm:$0xff] %v629_v55   ;;  %v637_v57 = vld [vmem:[%s8994_s25 + $0x6d8] sm:$0xff]   ;;  %v641_v58 = vld [vmem:[%s8994_s25 + $0x6e0] sm:$0xff]  }
  0x4f   : > { %634 = vst [vmem:[%s8999_s26 + $0x3c0] sm:$0xff] %v633_v56   ;;  %638 = vst [vmem:[%s8999_s26 + $0x3c8] sm:$0xff] %v637_v57   ;;  %v645_v59 = vld [vmem:[%s8994_s25 + $0x6e8] sm:$0xff]   ;;  %v649_v60 = vld [vmem:[%s8994_s25 + $0x6f0] sm:$0xff]  }
  0x50   : > { %642 = vst [vmem:[%s8999_s26 + $0x3d0] sm:$0xff] %v641_v58   ;;  %v653_v61 = vld [vmem:[%s8994_s25 + $0x6f8] sm:$0xff]   ;;  %646 = vst [vmem:[%s8999_s26 + $0x3d8] sm:$0xff] %v645_v59   ;;  %v657_v62 = vld [vmem:[%s8994_s25 + $0x700] sm:$0xff]  }
  0x51   : > { %650 = vst [vmem:[%s8999_s26 + $0x3e0] sm:$0xff] %v649_v60   ;;  %654 = vst [vmem:[%s8999_s26 + $0x3e8] sm:$0xff] %v653_v61   ;;  %v661_v63 = vld [vmem:[%s8994_s25 + $0x708] sm:$0xff]   ;;  %v665_v0 = vld [vmem:[%s8994_s25 + $0x710] sm:$0xff]  }
  0x52   : > { %658 = vst [vmem:[%s8999_s26 + $0x3f0] sm:$0xff] %v657_v62   ;;  %662 = vst [vmem:[%s8999_s26 + $0x3f8] sm:$0xff] %v661_v63   ;;  %v669_v1 = vld [vmem:[%s8994_s25 + $0x718] sm:$0xff]   ;;  %v673_v2 = vld [vmem:[%s8994_s25 + $0x720] sm:$0xff]  }
  0x53   : > { %666 = vst [vmem:[%s8999_s26 + $0x400] sm:$0xff] %v665_v0   ;;  %v677_v3 = vld [vmem:[%s8994_s25 + $0x728] sm:$0xff]   ;;  %670 = vst [vmem:[%s8999_s26 + $0x408] sm:$0xff] %v669_v1   ;;  %v681_v4 = vld [vmem:[%s8994_s25 + $0x730] sm:$0xff]  }
  0x54   : > { %674 = vst [vmem:[%s8999_s26 + $0x410] sm:$0xff] %v673_v2   ;;  %678 = vst [vmem:[%s8999_s26 + $0x418] sm:$0xff] %v677_v3   ;;  %v685_v5 = vld [vmem:[%s8994_s25 + $0x738] sm:$0xff]   ;;  %v689_v6 = vld [vmem:[%s8994_s25 + $0x740] sm:$0xff]  }
  0x55   : > { %682 = vst [vmem:[%s8999_s26 + $0x420] sm:$0xff] %v681_v4   ;;  %686 = vst [vmem:[%s8999_s26 + $0x428] sm:$0xff] %v685_v5   ;;  %v693_v7 = vld [vmem:[%s8994_s25 + $0x748] sm:$0xff]   ;;  %v697_v8 = vld [vmem:[%s8994_s25 + $0x750] sm:$0xff]  }
  0x56   : > { %690 = vst [vmem:[%s8999_s26 + $0x430] sm:$0xff] %v689_v6   ;;  %v701_v9 = vld [vmem:[%s8994_s25 + $0x758] sm:$0xff]   ;;  %694 = vst [vmem:[%s8999_s26 + $0x438] sm:$0xff] %v693_v7   ;;  %v705_v10 = vld [vmem:[%s8994_s25 + $0x760] sm:$0xff]  }
  0x57   : > { %698 = vst [vmem:[%s8999_s26 + $0x440] sm:$0xff] %v697_v8   ;;  %702 = vst [vmem:[%s8999_s26 + $0x448] sm:$0xff] %v701_v9   ;;  %v709_v11 = vld [vmem:[%s8994_s25 + $0x768] sm:$0xff]   ;;  %v713_v12 = vld [vmem:[%s8994_s25 + $0x770] sm:$0xff]  }
  0x58   : > { %706 = vst [vmem:[%s8999_s26 + $0x450] sm:$0xff] %v705_v10   ;;  %710 = vst [vmem:[%s8999_s26 + $0x458] sm:$0xff] %v709_v11   ;;  %v717_v13 = vld [vmem:[%s8994_s25 + $0x778] sm:$0xff]   ;;  %v721_v14 = vld [vmem:[%s8994_s25 + $0x780] sm:$0xff]  }
  0x59   : > { %714 = vst [vmem:[%s8999_s26 + $0x460] sm:$0xff] %v713_v12   ;;  %v725_v15 = vld [vmem:[%s8994_s25 + $0x788] sm:$0xff]   ;;  %718 = vst [vmem:[%s8999_s26 + $0x468] sm:$0xff] %v717_v13   ;;  %v729_v16 = vld [vmem:[%s8994_s25 + $0x790] sm:$0xff]  }
  0x5a   : > { %722 = vst [vmem:[%s8999_s26 + $0x470] sm:$0xff] %v721_v14   ;;  %726 = vst [vmem:[%s8999_s26 + $0x478] sm:$0xff] %v725_v15   ;;  %v733_v17 = vld [vmem:[%s8994_s25 + $0x798] sm:$0xff]   ;;  %v737_v18 = vld [vmem:[%s8994_s25 + $0x7a0] sm:$0xff]  }
  0x5b   : > { %730 = vst [vmem:[%s8999_s26 + $0x480] sm:$0xff] %v729_v16   ;;  %734 = vst [vmem:[%s8999_s26 + $0x488] sm:$0xff] %v733_v17   ;;  %v741_v19 = vld [vmem:[%s8994_s25 + $0x930] sm:$0xff]   ;;  %v745_v20 = vld [vmem:[%s8994_s25 + $0x938] sm:$0xff]  }
  0x5c   : > { %738 = vst [vmem:[%s8999_s26 + $0x490] sm:$0xff] %v737_v18   ;;  %v749_v21 = vld [vmem:[%s8994_s25 + $0x940] sm:$0xff]   ;;  %742 = vst [vmem:[%s8999_s26 + $0x498] sm:$0xff] %v741_v19   ;;  %v753_v22 = vld [vmem:[%s8994_s25 + $0x948] sm:$0xff]  }
  0x5d   : > { %746 = vst [vmem:[%s8999_s26 + $0x4a0] sm:$0xff] %v745_v20   ;;  %750 = vst [vmem:[%s8999_s26 + $0x4a8] sm:$0xff] %v749_v21   ;;  %v757_v23 = vld [vmem:[%s8994_s25 + $0x950] sm:$0xff]   ;;  %v761_v24 = vld [vmem:[%s8994_s25 + $0x958] sm:$0xff]  }
  0x5e   : > { %754 = vst [vmem:[%s8999_s26 + $0x4b0] sm:$0xff] %v753_v22   ;;  %758 = vst [vmem:[%s8999_s26 + $0x4b8] sm:$0xff] %v757_v23   ;;  %v765_v25 = vld [vmem:[%s8994_s25 + $0x960] sm:$0xff]   ;;  %v769_v26 = vld [vmem:[%s8994_s25 + $0x968] sm:$0xff]  }
  0x5f   : > { %762 = vst [vmem:[%s8999_s26 + $0x4c0] sm:$0xff] %v761_v24   ;;  %v773_v27 = vld [vmem:[%s8994_s25 + $0x970] sm:$0xff]   ;;  %766 = vst [vmem:[%s8999_s26 + $0x4c8] sm:$0xff] %v765_v25   ;;  %v777_v28 = vld [vmem:[%s8994_s25 + $0x978] sm:$0xff]  }
  0x60   : > { %770 = vst [vmem:[%s8999_s26 + $0x4d0] sm:$0xff] %v769_v26   ;;  %774 = vst [vmem:[%s8999_s26 + $0x4d8] sm:$0xff] %v773_v27   ;;  %v781_v29 = vld [vmem:[%s8994_s25 + $0x980] sm:$0xff]   ;;  %v785_v30 = vld [vmem:[%s8994_s25 + $0x988] sm:$0xff]  }
  0x61   : > { %778 = vst [vmem:[%s8999_s26 + $0x4e0] sm:$0xff] %v777_v28   ;;  %782 = vst [vmem:[%s8999_s26 + $0x4e8] sm:$0xff] %v781_v29   ;;  %v789_v31 = vld [vmem:[%s8994_s25 + $0x990] sm:$0xff]   ;;  %v793_v32 = vld [vmem:[%s8994_s25 + $0x998] sm:$0xff]  }
  0x62   : > { %786 = vst [vmem:[%s8999_s26 + $0x4f0] sm:$0xff] %v785_v30   ;;  %v797_v33 = vld [vmem:[%s8994_s25 + $0x9a0] sm:$0xff]   ;;  %790 = vst [vmem:[%s8999_s26 + $0x4f8] sm:$0xff] %v789_v31   ;;  %v801_v34 = vld [vmem:[%s8994_s25 + $0x9a8] sm:$0xff]  }
  0x63   : > { %794 = vst [vmem:[%s8999_s26 + $0x500] sm:$0xff] %v793_v32   ;;  %798 = vst [vmem:[%s8999_s26 + $0x508] sm:$0xff] %v797_v33   ;;  %v805_v35 = vld [vmem:[%s8994_s25 + $0x9b0] sm:$0xff]   ;;  %v809_v36 = vld [vmem:[%s8994_s25 + $0x9b8] sm:$0xff]  }
  0x64   : > { %802 = vst [vmem:[%s8999_s26 + $0x510] sm:$0xff] %v801_v34   ;;  %806 = vst [vmem:[%s8999_s26 + $0x518] sm:$0xff] %v805_v35   ;;  %v813_v37 = vld [vmem:[%s8994_s25 + $0x9c0] sm:$0xff]   ;;  %v817_v38 = vld [vmem:[%s8994_s25 + $0x9c8] sm:$0xff]  }
  0x65   : > { %810 = vst [vmem:[%s8999_s26 + $0x520] sm:$0xff] %v809_v36   ;;  %v821_v39 = vld [vmem:[%s8994_s25 + $0x9d0] sm:$0xff]   ;;  %814 = vst [vmem:[%s8999_s26 + $0x528] sm:$0xff] %v813_v37   ;;  %v825_v40 = vld [vmem:[%s8994_s25 + $0x9d8] sm:$0xff]  }
  0x66   : > { %818 = vst [vmem:[%s8999_s26 + $0x530] sm:$0xff] %v817_v38   ;;  %822 = vst [vmem:[%s8999_s26 + $0x538] sm:$0xff] %v821_v39   ;;  %v829_v41 = vld [vmem:[%s8994_s25 + $0x9e0] sm:$0xff]   ;;  %v833_v42 = vld [vmem:[%s8994_s25 + $0x9e8] sm:$0xff]  }
  0x67   : > { %826 = vst [vmem:[%s8999_s26 + $0x540] sm:$0xff] %v825_v40   ;;  %830 = vst [vmem:[%s8999_s26 + $0x548] sm:$0xff] %v829_v41   ;;  %v837_v43 = vld [vmem:[%s8994_s25 + $0x9f0] sm:$0xff]   ;;  %v841_v44 = vld [vmem:[%s8994_s25 + $0x9f8] sm:$0xff]  }
  0x68   : > { %834 = vst [vmem:[%s8999_s26 + $0x550] sm:$0xff] %v833_v42   ;;  %v845_v45 = vld [vmem:[%s8994_s25 + $0xa00] sm:$0xff]   ;;  %838 = vst [vmem:[%s8999_s26 + $0x558] sm:$0xff] %v837_v43   ;;  %v849_v46 = vld [vmem:[%s8994_s25 + $0xa08] sm:$0xff]  }
  0x69   : > { %842 = vst [vmem:[%s8999_s26 + $0x560] sm:$0xff] %v841_v44   ;;  %846 = vst [vmem:[%s8999_s26 + $0x568] sm:$0xff] %v845_v45   ;;  %v853_v47 = vld [vmem:[%s8994_s25 + $0xa10] sm:$0xff]   ;;  %v857_v48 = vld [vmem:[%s8994_s25 + $0xa18] sm:$0xff]  }
  0x6a   : > { %850 = vst [vmem:[%s8999_s26 + $0x570] sm:$0xff] %v849_v46   ;;  %854 = vst [vmem:[%s8999_s26 + $0x578] sm:$0xff] %v853_v47   ;;  %v861_v49 = vld [vmem:[%s8994_s25 + $0xa20] sm:$0xff]   ;;  %v865_v50 = vld [vmem:[%s8994_s25 + $0xa28] sm:$0xff]  }
  0x6b   : > { %858 = vst [vmem:[%s8999_s26 + $0x580] sm:$0xff] %v857_v48   ;;  %v869_v51 = vld [vmem:[%s8994_s25 + $0xa30] sm:$0xff]   ;;  %862 = vst [vmem:[%s8999_s26 + $0x588] sm:$0xff] %v861_v49   ;;  %v873_v52 = vld [vmem:[%s8994_s25 + $0xa38] sm:$0xff]  }
  0x6c   : > { %866 = vst [vmem:[%s8999_s26 + $0x590] sm:$0xff] %v865_v50   ;;  %870 = vst [vmem:[%s8999_s26 + $0x598] sm:$0xff] %v869_v51   ;;  %v877_v53 = vld [vmem:[%s8994_s25 + $0xa40] sm:$0xff]   ;;  %v881_v54 = vld [vmem:[%s8994_s25 + $0xa48] sm:$0xff]  }
  0x6d   : > { %874 = vst [vmem:[%s8999_s26 + $0x5a0] sm:$0xff] %v873_v52   ;;  %878 = vst [vmem:[%s8999_s26 + $0x5a8] sm:$0xff] %v877_v53   ;;  %v885_v55 = vld [vmem:[%s8994_s25 + $0xa50] sm:$0xff]   ;;  %v889_v56 = vld [vmem:[%s8994_s25 + $0xa58] sm:$0xff]  }
  0x6e   : > { %882 = vst [vmem:[%s8999_s26 + $0x5b0] sm:$0xff] %v881_v54   ;;  %v893_v57 = vld [vmem:[%s8994_s25 + $0xa60] sm:$0xff]   ;;  %886 = vst [vmem:[%s8999_s26 + $0x5b8] sm:$0xff] %v885_v55   ;;  %v897_v58 = vld [vmem:[%s8994_s25 + $0xa68] sm:$0xff]  }
  0x6f   : > { %890 = vst [vmem:[%s8999_s26 + $0x5c0] sm:$0xff] %v889_v56   ;;  %894 = vst [vmem:[%s8999_s26 + $0x5c8] sm:$0xff] %v893_v57   ;;  %v901_v59 = vld [vmem:[%s8994_s25 + $0xa70] sm:$0xff]   ;;  %v905_v60 = vld [vmem:[%s8994_s25 + $0xa78] sm:$0xff]  }
  0x70   : > { %898 = vst [vmem:[%s8999_s26 + $0x5d0] sm:$0xff] %v897_v58   ;;  %902 = vst [vmem:[%s8999_s26 + $0x5d8] sm:$0xff] %v901_v59   ;;  %v909_v61 = vld [vmem:[%s8994_s25 + $0xa80] sm:$0xff]   ;;  %v913_v62 = vld [vmem:[%s8994_s25 + $0xa88] sm:$0xff]  }
  0x71   : > { %906 = vst [vmem:[%s8999_s26 + $0x5e0] sm:$0xff] %v905_v60   ;;  %v917_v63 = vld [vmem:[%s8994_s25 + $0xa90] sm:$0xff]   ;;  %910 = vst [vmem:[%s8999_s26 + $0x5e8] sm:$0xff] %v909_v61   ;;  %v921_v0 = vld [vmem:[%s8994_s25 + $0xa98] sm:$0xff]  }
  0x72   : > { %914 = vst [vmem:[%s8999_s26 + $0x5f0] sm:$0xff] %v913_v62   ;;  %918 = vst [vmem:[%s8999_s26 + $0x5f8] sm:$0xff] %v917_v63   ;;  %v925_v1 = vld [vmem:[%s8994_s25 + $0xaa0] sm:$0xff]   ;;  %v929_v2 = vld [vmem:[%s8994_s25 + $0xaa8] sm:$0xff]  }
  0x73   : > { %922 = vst [vmem:[%s8999_s26 + $0x600] sm:$0xff] %v921_v0   ;;  %926 = vst [vmem:[%s8999_s26 + $0x608] sm:$0xff] %v925_v1   ;;  %v933_v3 = vld [vmem:[%s8994_s25 + $0xab0] sm:$0xff]  }
  0x74   : > { %930 = vst [vmem:[%s8999_s26 + $0x610] sm:$0xff] %v929_v2   ;;  %934 = vst [vmem:[%s8999_s26 + $0x618] sm:$0xff] %v933_v3  }
  0x75 PF: > { %p6512_p5 = scmp.ge.s32.totalorder %s8935_s14, 1  ;;  %p1742_p6 = scmp.lt.s32.totalorder %s8935_s14, 3 }
  0x77   : > { %p1743_p7 = pnand %p6512_p5, %p1742_p6 }
  0x79   : > { %1746 = sbr.rel (%p1743_p7) target bundleno = 1138 (0x472), region = 69 }
  0x80   : > { %vm2278_vm0 = vcmask 1043456   ;;  %v11246_v4 = vmov 0.0   ;;  %v8715_v5 = vld [vmem:[%s11243_s1] sm:$0x1f]   ;;  %vm2279_vm1 = vcmask 1044480   ;;  %s1749_s29 = sand.u32 1, %s8927_s12  }
  0x81   : > { %7894 = vmatprep.subr.bf16.mxu0 %v11246_v4  ;;  %8092 = vmatprep.subr.bf16.mxu1 %v11246_v4  ;;  %v8938_v6 = vmov 65535   ;;  %vm8939_vm2 = vmmov 0   ;;  %s8687_s30 = smul.u32 1568, %s1749_s29  ;;  %vm2130_vm3 = vcmask 72704  }
  0x82   : > { %v2280_v7 = vsel %vm2278_vm0, 4294967295, %v8938_v6  ;;  %7896 = vmatprep.mubr.msk.bf16.mxu0 %vm8939_vm2, %v11246_v4  ;;  %8094 = vmatprep.mubr.msk.bf16.mxu1 %vm8939_vm2, %v11246_v4  ;;  %s1773_s5 = smul.u32 98, %s6507_s15 }
  0x83   : > { %v2281_v8 = vsel %vm2279_vm1, %v2280_v7, 0  ;;  %s9402_s4 = scalar_lea.vmem [#allocation2], %s8687_s30 }
  0x84   : > { %v2283_v9 = vand.u32 %v8715_v5, %v2281_v8  ;;  %v8716_v10 = vld [vmem:[%s9402_s4] sm:$0xff]   ;;  %v8717_v11 = vld [vmem:[%s9402_s4 + $0x188] sm:$0xff]   ;;  %v8719_v13 = vld [vmem:[%s9402_s4 + $0x190] sm:$0xff]   ;;  %p1774_p8 = scmp.lt.s32.totalorder %s1773_s5, 195 }
  0x85   : > { %v8718_v12 = vld [vmem:[%s9402_s4 + $0x8] sm:$0xff]   ;;  %v8720_v14 = vld [vmem:[%s9402_s4 + $0x10] sm:$0xff]   ;;  %v8721_v15 = vld [vmem:[%s9402_s4 + $0x198] sm:$0xff]  }
  0x86   : > { %7895 = vmatpush3.bf16.msra.mxu0 %v2283_v9  ;;  %8093 = vmatpush3.bf16.msra.mxu1 %v2283_v9  ;;  %v8722_v16 = vld [vmem:[%s9402_s4 + $0x18] sm:$0xff]   ;;  %v8723_v17 = vld [vmem:[%s9402_s4 + $0x1a0] sm:$0xff]   ;;  %v8725_v19 = vld [vmem:[%s9402_s4 + $0x1a8] sm:$0xff]   ;;  %s11795_s5 = smov (!%p1774_p8, %s1773_s5), 195 }
  0x87   : > { %8290 = vmatprep.subr.bf16.mxu0 %v11246_v4  ;;  %8488 = vmatprep.subr.bf16.mxu1 %v11246_v4  ;;  %v8724_v18 = vld [vmem:[%s9402_s4 + $0x20] sm:$0xff]   ;;  %v8726_v20 = vld [vmem:[%s9402_s4 + $0x28] sm:$0xff]   ;;  %v8727_v21 = vld [vmem:[%s9402_s4 + $0x1b0] sm:$0xff]   ;;  %s6513_s8 = sshll.u32 %s11795_s5, 2 }
  0x88   : > { %v8728_v22 = vld [vmem:[%s9402_s4 + $0x30] sm:$0xff]   ;;  %v8729_v23 = vld [vmem:[%s9402_s4 + $0x1b8] sm:$0xff]   ;;  %v8731_v25 = vld [vmem:[%s9402_s4 + $0x1c0] sm:$0xff]   ;;  %s10630_s11 = scalar_lea.vmem %s11245_s3, %s6513_s8 }
  0x89   : > { %7897 = vmatmul.mubr.msk.bf16.vlgmr.msra.gmra.mrb[0].mxu0 %vm2130_vm3, %v8716_v10  ;;  %8095 = vmatmul.mubr.msk.bf16.vlgmr.msra.gmra.mrb[0].mxu1 %vm2130_vm3, %v8717_v11  ;;  %v8730_v24 = vld [vmem:[%s9402_s4 + $0x38] sm:$0xff]   ;;  %v8732_v26 = vld [vmem:[%s9402_s4 + $0x40] sm:$0xff]   ;;  %v8733_v27 = vld [vmem:[%s9402_s4 + $0x1c8] sm:$0xff]  }
  0x8a   : > { %8291 = vmatpush3.bf16.msra.mxu0 %v2283_v9  ;;  %8489 = vmatpush3.bf16.msra.mxu1 %v2283_v9  ;;  %v8734_v28 = vld [vmem:[%s9402_s4 + $0x48] sm:$0xff]   ;;  %v8735_v29 = vld [vmem:[%s9402_s4 + $0x1d0] sm:$0xff]   ;;  %v8737_v31 = vld [vmem:[%s9402_s4 + $0x1d8] sm:$0xff]  }
  0x8b   : > { %7900 = vmatprep.mubr.msk.bf16.mxu0 %vm8939_vm2, %v11246_v4  ;;  %8098 = vmatprep.mubr.msk.bf16.mxu1 %vm8939_vm2, %v11246_v4  ;;  %v8736_v30 = vld [vmem:[%s9402_s4 + $0x50] sm:$0xff]   ;;  %v8738_v32 = vld [vmem:[%s9402_s4 + $0x58] sm:$0xff]   ;;  %v8739_v33 = vld [vmem:[%s9402_s4 + $0x1e0] sm:$0xff]  }
  0x8c   : > { %v8740_v34 = vld [vmem:[%s9402_s4 + $0x60] sm:$0xff]   ;;  %v8741_v35 = vld [vmem:[%s9402_s4 + $0x1e8] sm:$0xff]   ;;  %v8743_v37 = vld [vmem:[%s9402_s4 + $0x1f0] sm:$0xff]  }
  0x8d   : > { %v8742_v36 = vld [vmem:[%s9402_s4 + $0x68] sm:$0xff]   ;;  %v8744_v38 = vld [vmem:[%s9402_s4 + $0x70] sm:$0xff]   ;;  %v8745_v39 = vld [vmem:[%s9402_s4 + $0x1f8] sm:$0xff]  }
  0x8e   : > { %v8746_v40 = vld [vmem:[%s9402_s4 + $0x78] sm:$0xff]   ;;  %v8747_v41 = vld [vmem:[%s9402_s4 + $0x200] sm:$0xff]   ;;  %v8749_v43 = vld [vmem:[%s9402_s4 + $0x208] sm:$0xff]  }
  0x8f   : > { %v8748_v42 = vld [vmem:[%s9402_s4 + $0x80] sm:$0xff]   ;;  %v8750_v44 = vld [vmem:[%s9402_s4 + $0x88] sm:$0xff]   ;;  %v8751_v45 = vld [vmem:[%s9402_s4 + $0x210] sm:$0xff]  }
  0x90   : > { %v8752_v46 = vld [vmem:[%s9402_s4 + $0x90] sm:$0xff]   ;;  %v8753_v47 = vld [vmem:[%s9402_s4 + $0x218] sm:$0xff]   ;;  %v8755_v49 = vld [vmem:[%s9402_s4 + $0x220] sm:$0xff]  }
  0x91   : > { %7901 = vmatmul.mubr.msk.bf16.gmra.mrb[4].mxu0 %vm2130_vm3, %v8718_v12  ;;  %8099 = vmatmul.mubr.msk.bf16.gmra.mrb[4].mxu1 %vm2130_vm3, %v8719_v13  ;;  %v8754_v48 = vld [vmem:[%s9402_s4 + $0x98] sm:$0xff]   ;;  %v8756_v50 = vld [vmem:[%s9402_s4 + $0xa0] sm:$0xff]   ;;  %v8757_v51 = vld [vmem:[%s9402_s4 + $0x228] sm:$0xff]  }
  0x92   : > { %7904 = vmatprep.mubr.msk.bf16.mxu0 %vm8939_vm2, %v11246_v4  ;;  %8102 = vmatprep.mubr.msk.bf16.mxu1 %vm8939_vm2, %v11246_v4  ;;  %v8758_v52 = vld [vmem:[%s9402_s4 + $0xa8] sm:$0xff]   ;;  %v8759_v53 = vld [vmem:[%s9402_s4 + $0x230] sm:$0xff]   ;;  %v8761_v55 = vld [vmem:[%s9402_s4 + $0x238] sm:$0xff]  }
  0x93   : > { %v8760_v54 = vld [vmem:[%s9402_s4 + $0xb0] sm:$0xff]   ;;  %v8762_v56 = vld [vmem:[%s9402_s4 + $0xb8] sm:$0xff]   ;;  %v8763_v57 = vld [vmem:[%s9402_s4 + $0x240] sm:$0xff]  }
  0x94   : > { %v8764_v58 = vld [vmem:[%s9402_s4 + $0xc0] sm:$0xff]   ;;  %v8765_v59 = vld [vmem:[%s9402_s4 + $0x248] sm:$0xff]   ;;  %v8767_v61 = vld [vmem:[%s9402_s4 + $0x250] sm:$0xff]  }
  0x95   : > { %v8766_v60 = vld [vmem:[%s9402_s4 + $0xc8] sm:$0xff]   ;;  %v8768_v62 = vld [vmem:[%s9402_s4 + $0xd0] sm:$0xff]   ;;  %v8769_v63 = vld [vmem:[%s9402_s4 + $0x258] sm:$0xff]  }
  0x96   : > { %v8770_v6 = vld [vmem:[%s9402_s4 + $0xd8] sm:$0xff]   ;;  %v8771_v7 = vld [vmem:[%s9402_s4 + $0x260] sm:$0xff]  }
  0x99   : > { %7905 = vmatmul.mubr.msk.bf16.gmra.mrb[8].mxu0 %vm2130_vm3, %v8720_v14  ;;  %8103 = vmatmul.mubr.msk.bf16.gmra.mrb[8].mxu1 %vm2130_vm3, %v8721_v15 }
  0x9a   : > { %7908 = vmatprep.mubr.msk.bf16.mxu0 %vm8939_vm2, %v11246_v4  ;;  %8106 = vmatprep.mubr.msk.bf16.mxu1 %vm8939_vm2, %v11246_v4 }
  0xa1   : > { %7909 = vmatmul.mubr.msk.bf16.gmra.mrb[12].mxu0 %vm2130_vm3, %v8722_v16  ;;  %8107 = vmatmul.mubr.msk.bf16.gmra.mrb[12].mxu1 %vm2130_vm3, %v8723_v17 }
  0xa2   : > { %7912 = vmatprep.mubr.msk.bf16.mxu0 %vm8939_vm2, %v11246_v4  ;;  %8110 = vmatprep.mubr.msk.bf16.mxu1 %vm8939_vm2, %v11246_v4 }
  0xa9   : > { %7913 = vmatmul.mubr.msk.bf16.gmra.mrb[16].mxu0 %vm2130_vm3, %v8724_v18  ;;  %8111 = vmatmul.mubr.msk.bf16.gmra.mrb[16].mxu1 %vm2130_vm3, %v8725_v19  ;;  %v8772_v18 = vld [vmem:[%s9402_s4 + $0xe0] sm:$0xff]   ;;  %v8773_v19 = vld [vmem:[%s9402_s4 + $0x268] sm:$0xff]  }
  0xaa   : > { %7916 = vmatprep.mubr.msk.bf16.mxu0 %vm8939_vm2, %v11246_v4  ;;  %8114 = vmatprep.mubr.msk.bf16.mxu1 %vm8939_vm2, %v11246_v4 }
  0xb1   : > { %7917 = vmatmul.mubr.msk.bf16.gmra.mrb[20].mxu0 %vm2130_vm3, %v8726_v20  ;;  %8115 = vmatmul.mubr.msk.bf16.gmra.mrb[20].mxu1 %vm2130_vm3, %v8727_v21 }
  0xb2   : > { %7920 = vmatprep.mubr.msk.bf16.mxu0 %vm8939_vm2, %v11246_v4  ;;  %8118 = vmatprep.mubr.msk.bf16.mxu1 %vm8939_vm2, %v11246_v4 }
  0xb9   : > { %7921 = vmatmul.mubr.msk.bf16.gmra.mrb[24].mxu0 %vm2130_vm3, %v8728_v22  ;;  %8119 = vmatmul.mubr.msk.bf16.gmra.mrb[24].mxu1 %vm2130_vm3, %v8729_v23 }
  0xba   : > { %7924 = vmatprep.mubr.msk.bf16.mxu0 %vm8939_vm2, %v11246_v4  ;;  %8122 = vmatprep.mubr.msk.bf16.mxu1 %vm8939_vm2, %v11246_v4 }
  0xc1   : > { %7925 = vmatmul.mubr.msk.bf16.gmra.mrb[28].mxu0 %vm2130_vm3, %v8730_v24  ;;  %8123 = vmatmul.mubr.msk.bf16.gmra.mrb[28].mxu1 %vm2130_vm3, %v8731_v25 }
  0xc2   : > { %7928 = vmatprep.mubr.msk.bf16.mxu0 %vm8939_vm2, %v11246_v4  ;;  %8126 = vmatprep.mubr.msk.bf16.mxu1 %vm8939_vm2, %v11246_v4 }
  0xc9   : > { %7929 = vmatmul.mubr.msk.bf16.gmra.mrb[32].mxu0 %vm2130_vm3, %v8732_v26  ;;  %8127 = vmatmul.mubr.msk.bf16.gmra.mrb[32].mxu1 %vm2130_vm3, %v8733_v27 }
  0xca   : > { %7932 = vmatprep.mubr.msk.bf16.mxu0 %vm8939_vm2, %v11246_v4  ;;  %8130 = vmatprep.mubr.msk.bf16.mxu1 %vm8939_vm2, %v11246_v4 }
  0xd1   : > { %7933 = vmatmul.mubr.msk.bf16.gmra.mrb[36].mxu0 %vm2130_vm3, %v8734_v28  ;;  %8131 = vmatmul.mubr.msk.bf16.gmra.mrb[36].mxu1 %vm2130_vm3, %v8735_v29 }
  0xd2   : > { %7936 = vmatprep.mubr.msk.bf16.mxu0 %vm8939_vm2, %v11246_v4  ;;  %8134 = vmatprep.mubr.msk.bf16.mxu1 %vm8939_vm2, %v11246_v4 }
  0xd9   : > { %7937 = vmatmul.mubr.msk.bf16.gmra.mrb[40].mxu0 %vm2130_vm3, %v8736_v30  ;;  %8135 = vmatmul.mubr.msk.bf16.gmra.mrb[40].mxu1 %vm2130_vm3, %v8737_v31  ;;  %v8774_v30 = vld [vmem:[%s9402_s4 + $0xe8] sm:$0xff]   ;;  %v8775_v31 = vld [vmem:[%s9402_s4 + $0x270] sm:$0xff]  }
  0xda   : > { %7940 = vmatprep.mubr.msk.bf16.mxu0 %vm8939_vm2, %v11246_v4  ;;  %8138 = vmatprep.mubr.msk.bf16.mxu1 %vm8939_vm2, %v11246_v4 }
  0xe1   : > { %7941 = vmatmul.mubr.msk.bf16.gmra.mrb[44].mxu0 %vm2130_vm3, %v8738_v32  ;;  %8139 = vmatmul.mubr.msk.bf16.gmra.mrb[44].mxu1 %vm2130_vm3, %v8739_v33 }
  0xe2   : > { %7944 = vmatprep.mubr.msk.bf16.mxu0 %vm8939_vm2, %v11246_v4  ;;  %8142 = vmatprep.mubr.msk.bf16.mxu1 %vm8939_vm2, %v11246_v4 }
  0xe9   : > { %7945 = vmatmul.mubr.msk.bf16.gmra.mrb[48].mxu0 %vm2130_vm3, %v8740_v34  ;;  %8143 = vmatmul.mubr.msk.bf16.gmra.mrb[48].mxu1 %vm2130_vm3, %v8741_v35 }
  0xea   : > { %7948 = vmatprep.mubr.msk.bf16.mxu0 %vm8939_vm2, %v11246_v4  ;;  %8146 = vmatprep.mubr.msk.bf16.mxu1 %vm8939_vm2, %v11246_v4 }
  0xf1   : > { %7949 = vmatmul.mubr.msk.bf16.gmra.mrb[52].mxu0 %vm2130_vm3, %v8742_v36  ;;  %8147 = vmatmul.mubr.msk.bf16.gmra.mrb[52].mxu1 %vm2130_vm3, %v8743_v37 }
  0xf2   : > { %7952 = vmatprep.mubr.msk.bf16.mxu0 %vm8939_vm2, %v11246_v4  ;;  %8150 = vmatprep.mubr.msk.bf16.mxu1 %vm8939_vm2, %v11246_v4 }
  0xf9   : > { %7953 = vmatmul.mubr.msk.bf16.gmra.mrb[56].mxu0 %vm2130_vm3, %v8744_v38  ;;  %8151 = vmatmul.mubr.msk.bf16.gmra.mrb[56].mxu1 %vm2130_vm3, %v8745_v39 }
  0xfa   : > { %7956 = vmatprep.mubr.msk.bf16.mxu0 %vm8939_vm2, %v11246_v4  ;;  %8154 = vmatprep.mubr.msk.bf16.mxu1 %vm8939_vm2, %v11246_v4 }
 0x101   : > { %7957 = vmatmul.mubr.msk.bf16.gmra.mrb[60].mxu0 %vm2130_vm3, %v8746_v40  ;;  %8155 = vmatmul.mubr.msk.bf16.gmra.mrb[60].mxu1 %vm2130_vm3, %v8747_v41 }
 0x102   : > { %7960 = vmatprep.mubr.msk.bf16.mxu0 %vm8939_vm2, %v11246_v4  ;;  %8158 = vmatprep.mubr.msk.bf16.mxu1 %vm8939_vm2, %v11246_v4 }
 0x109   : > { %7961 = vmatmul.mubr.msk.bf16.gmra.mrb[64].mxu0 %vm2130_vm3, %v8748_v42  ;;  %8159 = vmatmul.mubr.msk.bf16.gmra.mrb[64].mxu1 %vm2130_vm3, %v8749_v43  ;;  %v8776_v42 = vld [vmem:[%s9402_s4 + $0xf0] sm:$0xff]   ;;  %v8777_v43 = vld [vmem:[%s9402_s4 + $0x278] sm:$0xff]  }
 0x10a   : > { %7964 = vmatprep.mubr.msk.bf16.mxu0 %vm8939_vm2, %v11246_v4  ;;  %8162 = vmatprep.mubr.msk.bf16.mxu1 %vm8939_vm2, %v11246_v4 }
 0x111   : > { %7965 = vmatmul.mubr.msk.bf16.gmra.mrb[68].mxu0 %vm2130_vm3, %v8750_v44  ;;  %8163 = vmatmul.mubr.msk.bf16.gmra.mrb[68].mxu1 %vm2130_vm3, %v8751_v45 }
 0x112   : > { %7968 = vmatprep.mubr.msk.bf16.mxu0 %vm8939_vm2, %v11246_v4  ;;  %8166 = vmatprep.mubr.msk.bf16.mxu1 %vm8939_vm2, %v11246_v4 }
 0x119   : > { %7969 = vmatmul.mubr.msk.bf16.gmra.mrb[72].mxu0 %vm2130_vm3, %v8752_v46  ;;  %8167 = vmatmul.mubr.msk.bf16.gmra.mrb[72].mxu1 %vm2130_vm3, %v8753_v47 }
 0x11a   : > { %7972 = vmatprep.mubr.msk.bf16.mxu0 %vm8939_vm2, %v11246_v4  ;;  %8170 = vmatprep.mubr.msk.bf16.mxu1 %vm8939_vm2, %v11246_v4 }
 0x121   : > { %7973 = vmatmul.mubr.msk.bf16.gmra.mrb[76].mxu0 %vm2130_vm3, %v8754_v48  ;;  %8171 = vmatmul.mubr.msk.bf16.gmra.mrb[76].mxu1 %vm2130_vm3, %v8755_v49 }
 0x122   : > { %7976 = vmatprep.mubr.msk.bf16.mxu0 %vm8939_vm2, %v11246_v4  ;;  %8174 = vmatprep.mubr.msk.bf16.mxu1 %vm8939_vm2, %v11246_v4 }
 0x129   : > { %7977 = vmatmul.mubr.msk.bf16.gmra.mrb[80].mxu0 %vm2130_vm3, %v8756_v50  ;;  %8175 = vmatmul.mubr.msk.bf16.gmra.mrb[80].mxu1 %vm2130_vm3, %v8757_v51 }
 0x12a   : > { %7980 = vmatprep.mubr.msk.bf16.mxu0 %vm8939_vm2, %v11246_v4  ;;  %8178 = vmatprep.mubr.msk.bf16.mxu1 %vm8939_vm2, %v11246_v4 }
 0x131   : > { %7981 = vmatmul.mubr.msk.bf16.gmra.mrb[84].mxu0 %vm2130_vm3, %v8758_v52  ;;  %8179 = vmatmul.mubr.msk.bf16.gmra.mrb[84].mxu1 %vm2130_vm3, %v8759_v53 }
 0x132   : > { %7984 = vmatprep.mubr.msk.bf16.mxu0 %vm8939_vm2, %v11246_v4  ;;  %8182 = vmatprep.mubr.msk.bf16.mxu1 %vm8939_vm2, %v11246_v4 }
 0x139   : > { %7985 = vmatmul.mubr.msk.bf16.gmra.mrb[88].mxu0 %vm2130_vm3, %v8760_v54  ;;  %8183 = vmatmul.mubr.msk.bf16.gmra.mrb[88].mxu1 %vm2130_vm3, %v8761_v55  ;;  %v8778_v54 = vld [vmem:[%s9402_s4 + $0xf8] sm:$0xff]   ;;  %v8779_v55 = vld [vmem:[%s9402_s4 + $0x280] sm:$0xff]  }
 0x13a   : > { %7988 = vmatprep.mubr.msk.bf16.mxu0 %vm8939_vm2, %v11246_v4  ;;  %8186 = vmatprep.mubr.msk.bf16.mxu1 %vm8939_vm2, %v11246_v4 }
 0x141   : > { %7989 = vmatmul.mubr.msk.bf16.gmra.mrb[92].mxu0 %vm2130_vm3, %v8762_v56  ;;  %8187 = vmatmul.mubr.msk.bf16.gmra.mrb[92].mxu1 %vm2130_vm3, %v8763_v57 }
 0x142   : > { %7992 = vmatprep.mubr.msk.bf16.mxu0 %vm8939_vm2, %v11246_v4  ;;  %8190 = vmatprep.mubr.msk.bf16.mxu1 %vm8939_vm2, %v11246_v4 }
 0x149   : > { %7993 = vmatmul.mubr.msk.bf16.gmra.mrb[96].mxu0 %vm2130_vm3, %v8764_v58  ;;  %8191 = vmatmul.mubr.msk.bf16.gmra.mrb[96].mxu1 %vm2130_vm3, %v8765_v59 }
 0x14a   : > { %7996 = vmatprep.mubr.msk.bf16.mxu0 %vm8939_vm2, %v11246_v4  ;;  %8194 = vmatprep.mubr.msk.bf16.mxu1 %vm8939_vm2, %v11246_v4 }
 0x151   : > { %7997 = vmatmul.mubr.msk.bf16.gmra.mrb[100].mxu0 %vm2130_vm3, %v8766_v60  ;;  %8195 = vmatmul.mubr.msk.bf16.gmra.mrb[100].mxu1 %vm2130_vm3, %v8767_v61 }
 0x152   : > { %8000 = vmatprep.mubr.msk.bf16.mxu0 %vm8939_vm2, %v11246_v4  ;;  %8198 = vmatprep.mubr.msk.bf16.mxu1 %vm8939_vm2, %v11246_v4 }
 0x159   : > { %8001 = vmatmul.mubr.msk.bf16.gmra.mrb[104].mxu0 %vm2130_vm3, %v8768_v62  ;;  %8199 = vmatmul.mubr.msk.bf16.gmra.mrb[104].mxu1 %vm2130_vm3, %v8769_v63 }
 0x15a   : > { %8004 = vmatprep.mubr.msk.bf16.mxu0 %vm8939_vm2, %v11246_v4  ;;  %8202 = vmatprep.mubr.msk.bf16.mxu1 %vm8939_vm2, %v11246_v4 }
 0x15c   : > { %v9622_v0 = vpop.f32.mrb[0].mxu0  ;;  %v9624_v1 = vpop.f32.mrb[0].mxu1 }
 0x15d   : > { %v7898_v3 = vpop.f32.mrb[1].mxu0  ;;  %v8096_v5 = vpop.f32.mrb[1].mxu1 }
 0x15e   : > { %v9630_v8 = vpop.f32.mrb[2].mxu0  ;;  %v9632_v9 = vpop.f32.mrb[2].mxu1 }
 0x15f   : > { %v7899_v11 = vpop.f32.mrb[3].mxu0  ;;  %v8097_v12 = vpop.f32.mrb[3].mxu1 }
 0x161   : > { %8005 = vmatmul.mubr.msk.bf16.gmra.mrb[108].mxu0 %vm2130_vm3, %v8770_v6  ;;  %8203 = vmatmul.mubr.msk.bf16.gmra.mrb[108].mxu1 %vm2130_vm3, %v8771_v7  ;;  %v8780_v6 = vld [vmem:[%s9402_s4 + $0x100] sm:$0xff]   ;;  %v8781_v7 = vld [vmem:[%s9402_s4 + $0x288] sm:$0xff]  }
 0x162   : > { %8008 = vmatprep.mubr.msk.bf16.mxu0 %vm8939_vm2, %v11246_v4  ;;  %8206 = vmatprep.mubr.msk.bf16.mxu1 %vm8939_vm2, %v11246_v4 }
 0x164   : > { %v9642_v13 = vpop.f32.mrb[4].mxu0  ;;  %v9644_v14 = vpop.f32.mrb[4].mxu1 }
 0x165   : > { %v7902_v16 = vpop.f32.mrb[5].mxu0  ;;  %v8100_v17 = vpop.f32.mrb[5].mxu1 }
 0x166   : > { %v9650_v20 = vpop.f32.mrb[6].mxu0  ;;  %v9652_v21 = vpop.f32.mrb[6].mxu1 }
 0x167   : > { %v7903_v23 = vpop.f32.mrb[7].mxu0  ;;  %v8101_v24 = vpop.f32.mrb[7].mxu1 }
 0x169   : > { %8009 = vmatmul.mubr.msk.bf16.gmra.mrb[112].mxu0 %vm2130_vm3, %v8772_v18  ;;  %8207 = vmatmul.mubr.msk.bf16.gmra.mrb[112].mxu1 %vm2130_vm3, %v8773_v19 }
 0x16a   : > { %8012 = vmatprep.mubr.msk.bf16.mxu0 %vm8939_vm2, %v11246_v4  ;;  %8210 = vmatprep.mubr.msk.bf16.mxu1 %vm8939_vm2, %v11246_v4 }
 0x16c   : > { %v9662_v25 = vpop.f32.mrb[8].mxu0  ;;  %v9664_v26 = vpop.f32.mrb[8].mxu1 }
 0x16d   : > { %v7906_v28 = vpop.f32.mrb[9].mxu0  ;;  %v8104_v29 = vpop.f32.mrb[9].mxu1 }
 0x16e   : > { %v9670_v32 = vpop.f32.mrb[10].mxu0  ;;  %v9672_v33 = vpop.f32.mrb[10].mxu1 }
 0x16f   : > { %v7907_v35 = vpop.f32.mrb[11].mxu0  ;;  %v8105_v36 = vpop.f32.mrb[11].mxu1 }
 0x171   : > { %8013 = vmatmul.mubr.msk.bf16.gmra.mrb[116].mxu0 %vm2130_vm3, %v8774_v30  ;;  %8211 = vmatmul.mubr.msk.bf16.gmra.mrb[116].mxu1 %vm2130_vm3, %v8775_v31  ;;  %v8782_v30 = vld [vmem:[%s9402_s4 + $0x108] sm:$0xff]   ;;  %v8783_v31 = vld [vmem:[%s9402_s4 + $0x290] sm:$0xff]  }
 0x172   : > { %8016 = vmatprep.mubr.msk.bf16.mxu0 %vm8939_vm2, %v11246_v4  ;;  %8214 = vmatprep.mubr.msk.bf16.mxu1 %vm8939_vm2, %v11246_v4 }
 0x174   : > { %v9682_v37 = vpop.f32.mrb[12].mxu0  ;;  %v9684_v38 = vpop.f32.mrb[12].mxu1 }
 0x175   : > { %v7910_v40 = vpop.f32.mrb[13].mxu0  ;;  %v8108_v41 = vpop.f32.mrb[13].mxu1 }
 0x176   : > { %v9690_v44 = vpop.f32.mrb[14].mxu0  ;;  %v9692_v45 = vpop.f32.mrb[14].mxu1 }
 0x177   : > { %v7911_v47 = vpop.f32.mrb[15].mxu0  ;;  %v8109_v48 = vpop.f32.mrb[15].mxu1 }
 0x179   : > { %8017 = vmatmul.mubr.msk.bf16.gmra.mrb[120].mxu0 %vm2130_vm3, %v8776_v42  ;;  %8215 = vmatmul.mubr.msk.bf16.gmra.mrb[120].mxu1 %vm2130_vm3, %v8777_v43 }
 0x17a   : > { %8020 = vmatprep.mubr.msk.bf16.mxu0 %vm8939_vm2, %v11246_v4  ;;  %8218 = vmatprep.mubr.msk.bf16.mxu1 %vm8939_vm2, %v11246_v4 }
 0x17c   : > { %v9702_v49 = vpop.f32.mrb[16].mxu0  ;;  %v9704_v50 = vpop.f32.mrb[16].mxu1 }
 0x17d   : > { %v7914_v52 = vpop.f32.mrb[17].mxu0  ;;  %v8112_v53 = vpop.f32.mrb[17].mxu1 }
 0x17e   : > { %v9710_v56 = vpop.f32.mrb[18].mxu0  ;;  %v9712_v57 = vpop.f32.mrb[18].mxu1 }
 0x17f   : > { %v7915_v59 = vpop.f32.mrb[19].mxu0  ;;  %v8113_v60 = vpop.f32.mrb[19].mxu1 }
 0x181   : > { %8021 = vmatmul.mubr.msk.bf16.gmra.mrb[124].mxu0 %vm2130_vm3, %v8778_v54  ;;  %8219 = vmatmul.mubr.msk.bf16.gmra.mrb[124].mxu1 %vm2130_vm3, %v8779_v55  ;;  %v8784_v54 = vld [vmem:[%s9402_s4 + $0x110] sm:$0xff]   ;;  %v8785_v55 = vld [vmem:[%s9402_s4 + $0x298] sm:$0xff]  }
 0x182   : > { %8024 = vmatprep.mubr.msk.bf16.mxu0 %vm8939_vm2, %v11246_v4  ;;  %8222 = vmatprep.mubr.msk.bf16.mxu1 %vm8939_vm2, %v11246_v4 }
 0x184   : > { %v9722_v61 = vpop.f32.mrb[20].mxu0  ;;  %v9724_v62 = vpop.f32.mrb[20].mxu1 }
 0x185   : > { %v7918_v3 = vpop.f32.mrb[21].mxu0  ;;  %v8116_v5 = vpop.f32.mrb[21].mxu1 }
 0x186   : > { %v9730_v11 = vpop.f32.mrb[22].mxu0  ;;  %v9732_v12 = vpop.f32.mrb[22].mxu1 }
 0x187   : > { %v7919_v17 = vpop.f32.mrb[23].mxu0  ;;  %v8117_v18 = vpop.f32.mrb[23].mxu1 }
 0x189   : > { %8025 = vmatmul.mubr.msk.bf16.gmra.mrb[128].mxu0 %vm2130_vm3, %v8780_v6  ;;  %8223 = vmatmul.mubr.msk.bf16.gmra.mrb[128].mxu1 %vm2130_vm3, %v8781_v7 }
 0x18a   : > { %8028 = vmatprep.mubr.msk.bf16.mxu0 %vm8939_vm2, %v11246_v4  ;;  %8226 = vmatprep.mubr.msk.bf16.mxu1 %vm8939_vm2, %v11246_v4 }
 0x18c   : > { %v9742_v19 = vpop.f32.mrb[24].mxu0  ;;  %v9744_v23 = vpop.f32.mrb[24].mxu1 }
 0x18d   : > { %v7922_v28 = vpop.f32.mrb[25].mxu0  ;;  %v8120_v29 = vpop.f32.mrb[25].mxu1 }
 0x18e   : > { %v9750_v35 = vpop.f32.mrb[26].mxu0  ;;  %v9752_v36 = vpop.f32.mrb[26].mxu1 }
 0x18f   : > { %v7923_v41 = vpop.f32.mrb[27].mxu0  ;;  %v8121_v42 = vpop.f32.mrb[27].mxu1 }
 0x191   : > { %8029 = vmatmul.mubr.msk.bf16.gmra.mrb[132].mxu0 %vm2130_vm3, %v8782_v30  ;;  %8227 = vmatmul.mubr.msk.bf16.gmra.mrb[132].mxu1 %vm2130_vm3, %v8783_v31  ;;  %v8786_v30 = vld [vmem:[%s9402_s4 + $0x118] sm:$0xff]   ;;  %v8787_v31 = vld [vmem:[%s9402_s4 + $0x2a0] sm:$0xff]  }
 0x192   : > { %8032 = vmatprep.mubr.msk.bf16.mxu0 %vm8939_vm2, %v11246_v4  ;;  %8230 = vmatprep.mubr.msk.bf16.mxu1 %vm8939_vm2, %v11246_v4 }
 0x194   : > { %v9762_v43 = vpop.f32.mrb[28].mxu0  ;;  %v9764_v47 = vpop.f32.mrb[28].mxu1 }
 0x195   : > { %v7926_v52 = vpop.f32.mrb[29].mxu0  ;;  %v8124_v53 = vpop.f32.mrb[29].mxu1 }
 0x196   : > { %v9770_v59 = vpop.f32.mrb[30].mxu0  ;;  %v9772_v60 = vpop.f32.mrb[30].mxu1 }
 0x197   : > { %v7927_v5 = vpop.f32.mrb[31].mxu0  ;;  %v8125_v6 = vpop.f32.mrb[31].mxu1 }
 0x198   : > { %v11404_v6 = vmov 0.0  }
 0x199   : > { %8033 = vmatmul.mubr.msk.bf16.gmra.mrb[136].mxu0 %vm2130_vm3, %v8784_v54  ;;  %8231 = vmatmul.mubr.msk.bf16.gmra.mrb[136].mxu1 %vm2130_vm3, %v8785_v55 }
 0x19a   : > { %8036 = vmatprep.mubr.msk.bf16.mxu0 %vm8939_vm2, %v11246_v4  ;;  %8234 = vmatprep.mubr.msk.bf16.mxu1 %vm8939_vm2, %v11246_v4 }
 0x19c   : > { %v9782_v7 = vpop.f32.mrb[32].mxu0  ;;  %v9784_v17 = vpop.f32.mrb[32].mxu1 }
 0x19d   : > { %v7930_v28 = vpop.f32.mrb[33].mxu0  ;;  %v8128_v29 = vpop.f32.mrb[33].mxu1 }
 0x19e   : > { %v9790_v41 = vpop.f32.mrb[34].mxu0  ;;  %v9792_v42 = vpop.f32.mrb[34].mxu1 }
 0x19f   : > { %v7931_v53 = vpop.f32.mrb[35].mxu0  ;;  %v8129_v54 = vpop.f32.mrb[35].mxu1 }
 0x1a0   : > { %v8788_v53 = vld [vmem:[%s9402_s4 + $0x120] sm:$0xff]  }
 0x1a1   : > { %8037 = vmatmul.mubr.msk.bf16.gmra.mrb[140].mxu0 %vm2130_vm3, %v8786_v30  ;;  %8235 = vmatmul.mubr.msk.bf16.gmra.mrb[140].mxu1 %vm2130_vm3, %v8787_v31  ;;  %v8789_v30 = vld [vmem:[%s9402_s4 + $0x2a8] sm:$0xff]  }
 0x1a2   : > { %8040 = vmatprep.mubr.msk.bf16.mxu0 %vm8939_vm2, %v11246_v4  ;;  %8238 = vmatprep.mubr.msk.bf16.mxu1 %vm8939_vm2, %v11246_v4 }
 0x1a4   : > { %v9802_v55 = vpop.f32.mrb[36].mxu0  ;;  %v9804_v5 = vpop.f32.mrb[36].mxu1 }
 0x1a5   : > { %v7934_v28 = vpop.f32.mrb[37].mxu0  ;;  %v8132_v29 = vpop.f32.mrb[37].mxu1 }
 0x1a6   : > { %v9810_v31 = vpop.f32.mrb[38].mxu0  ;;  %v9812_v54 = vpop.f32.mrb[38].mxu1 }
 0x1a7   : > { %v7935_v18 = vpop.f32.mrb[39].mxu0  ;;  %v8133_v3 = vpop.f32.mrb[39].mxu1 }
 0x1a8   : > { %v8790_v3 = vld [vmem:[%s9402_s4 + $0x128] sm:$0xff]  }
 0x1a9   : > { %8041 = vmatmul.mubr.msk.bf16.gmra.mrb[144].mxu0 %vm2130_vm3, %v8788_v53  ;;  %8239 = vmatmul.mubr.msk.bf16.gmra.mrb[144].mxu1 %vm2130_vm3, %v8789_v30  ;;  %v8791_v53 = vld [vmem:[%s9402_s4 + $0x2b0] sm:$0xff]  }
 0x1aa   : > { %8044 = vmatprep.mubr.msk.bf16.mxu0 %vm8939_vm2, %v11246_v4  ;;  %8242 = vmatprep.mubr.msk.bf16.mxu1 %vm8939_vm2, %v11246_v4 }
 0x1ac   : > { %v9822_v28 = vpop.f32.mrb[40].mxu0  ;;  %v9824_v29 = vpop.f32.mrb[40].mxu1 }
 0x1ad   : > { %v7938_v52 = vpop.f32.mrb[41].mxu0  ;;  %v8136_v18 = vpop.f32.mrb[41].mxu1 }
 0x1ae   : > { %v9830_v30 = vpop.f32.mrb[42].mxu0  ;;  %v9832_v48 = vpop.f32.mrb[42].mxu1 }
 0x1af   : > { %v7939_v24 = vpop.f32.mrb[43].mxu0  ;;  %v8137_v16 = vpop.f32.mrb[43].mxu1 }
 0x1b0   : > { %v8792_v16 = vld [vmem:[%s9402_s4 + $0x130] sm:$0xff]  }
 0x1b1   : > { %8045 = vmatmul.mubr.msk.bf16.gmra.mrb[148].mxu0 %vm2130_vm3, %v8790_v3  ;;  %8243 = vmatmul.mubr.msk.bf16.gmra.mrb[148].mxu1 %vm2130_vm3, %v8791_v53  ;;  %v8793_v3 = vld [vmem:[%s9402_s4 + $0x2b8] sm:$0xff]  }
 0x1b2   : > { %8048 = vmatprep.mubr.msk.bf16.mxu0 %vm8939_vm2, %v11246_v4  ;;  %8246 = vmatprep.mubr.msk.bf16.mxu1 %vm8939_vm2, %v11246_v4 }
 0x1b4   : > { %v9842_v52 = vpop.f32.mrb[44].mxu0  ;;  %v9844_v18 = vpop.f32.mrb[44].mxu1 }
 0x1b5   : > { %v7942_v40 = vpop.f32.mrb[45].mxu0  ;;  %v8140_v24 = vpop.f32.mrb[45].mxu1 }
 0x1b6   : > { %v9850_v53 = vpop.f32.mrb[46].mxu0  ;;  %v9852_v63 = vpop.f32.mrb[46].mxu1 }
 0x1b7   : > { %v7943_v51 = vpop.f32.mrb[47].mxu0  ;;  %v8141_v46 = vpop.f32.mrb[47].mxu1 }
 0x1b8   : > { %v8794_v46 = vld [vmem:[%s9402_s4 + $0x138] sm:$0xff]  }
 0x1b9   : > { %8049 = vmatmul.mubr.msk.bf16.gmra.mrb[152].mxu0 %vm2130_vm3, %v8792_v16  ;;  %8247 = vmatmul.mubr.msk.bf16.gmra.mrb[152].mxu1 %vm2130_vm3, %v8793_v3  ;;  %v8795_v16 = vld [vmem:[%s9402_s4 + $0x2c0] sm:$0xff]  }
 0x1ba   : > { %8052 = vmatprep.mubr.msk.bf16.mxu0 %vm8939_vm2, %v11246_v4  ;;  %8250 = vmatprep.mubr.msk.bf16.mxu1 %vm8939_vm2, %v11246_v4 }
 0x1bc   : > { %v9862_v40 = vpop.f32.mrb[48].mxu0  ;;  %v9864_v24 = vpop.f32.mrb[48].mxu1 }
 0x1bd   : > { %11396 = vst [vmem:[#allocation3_spill] sm:$0xff] %v9862_v40  ;;  %11397 = vst [vmem:[#allocation4_spill] sm:$0xff] %v9864_v24  ;;  %v7946_v58 = vpop.f32.mrb[49].mxu0  ;;  %v8144_v51 = vpop.f32.mrb[49].mxu1 }
 0x1be   : > { %v9870_v3 = vpop.f32.mrb[50].mxu0  ;;  %v9872_v39 = vpop.f32.mrb[50].mxu1 }
 0x1bf   : > { %11398 = vst [vmem:[#allocation5_spill] sm:$0xff] %v9870_v3  ;;  %11399 = vst [vmem:[#allocation6_spill] sm:$0xff] %v9872_v39  ;;  %v7947_v27 = vpop.f32.mrb[51].mxu0  ;;  %v8145_v22 = vpop.f32.mrb[51].mxu1 }
 0x1c0   : > { %v8796_v22 = vld [vmem:[%s9402_s4 + $0x140] sm:$0xff]  }
 0x1c1   : > { %8053 = vmatmul.mubr.msk.bf16.gmra.mrb[156].mxu0 %vm2130_vm3, %v8794_v46  ;;  %8251 = vmatmul.mubr.msk.bf16.gmra.mrb[156].mxu1 %vm2130_vm3, %v8795_v16  ;;  %v8797_v46 = vld [vmem:[%s9402_s4 + $0x2c8] sm:$0xff]  }
 0x1c2   : > { %8056 = vmatprep.mubr.msk.bf16.mxu0 %vm8939_vm2, %v11246_v4  ;;  %8254 = vmatprep.mubr.msk.bf16.mxu1 %vm8939_vm2, %v11246_v4 }
 0x1c4   : > { %v9882_v58 = vpop.f32.mrb[52].mxu0  ;;  %v9884_v51 = vpop.f32.mrb[52].mxu1 }
 0x1c5   : > { %11400 = vst [vmem:[#allocation7_spill] sm:$0xff] %v9882_v58  ;;  %11401 = vst [vmem:[#allocation8_spill] sm:$0xff] %v9884_v51  ;;  %v7950_v34 = vpop.f32.mrb[53].mxu0  ;;  %v8148_v27 = vpop.f32.mrb[53].mxu1  ;;  %v8866_v51 = vld [vmem:[%s9402_s4 + $0x3e0] sm:$0xff]  }
 0x1c6   : > { %v9890_v16 = vpop.f32.mrb[54].mxu0  ;;  %v9892_v15 = vpop.f32.mrb[54].mxu1 }
 0x1c7   : > { %11402 = vst [vmem:[#allocation9_spill] sm:$0xff] %v9890_v16  ;;  %11403 = vst [vmem:[#allocation10_spill] sm:$0xff] %v9892_v15  ;;  %v7951_v2 = vpop.f32.mrb[55].mxu0  ;;  %v8149_v4 = vpop.f32.mrb[55].mxu1 }
 0x1c8   : > { %v8798_v4 = vld [vmem:[%s9402_s4 + $0x148] sm:$0xff]  }
 0x1c9   : > { %8057 = vmatmul.mubr.msk.bf16.gmra.mrb[160].mxu0 %vm2130_vm3, %v8796_v22  ;;  %8255 = vmatmul.mubr.msk.bf16.gmra.mrb[160].mxu1 %vm2130_vm3, %v8797_v46  ;;  %v8799_v22 = vld [vmem:[%s9402_s4 + $0x2d0] sm:$0xff]  }
 0x1ca   : > { %8060 = vmatprep.mubr.msk.bf16.mxu0 %vm8939_vm2, %v11404_v6  ;;  %8258 = vmatprep.mubr.msk.bf16.mxu1 %vm8939_vm2, %v11404_v6 }
 0x1cc   : > { %v9902_v34 = vpop.f32.mrb[56].mxu0  ;;  %v9904_v27 = vpop.f32.mrb[56].mxu1 }
 0x1cd   : > { %11405 = vst [vmem:[#allocation11_spill] sm:$0xff] %v9902_v34  ;;  %11406 = vst [vmem:[#allocation12_spill] sm:$0xff] %v9904_v27  ;;  %v7954_v10 = vpop.f32.mrb[57].mxu0  ;;  %v8152_v2 = vpop.f32.mrb[57].mxu1 }
 0x1ce   : > { %v9910_v46 = vpop.f32.mrb[58].mxu0  ;;  %v9912_v15 = vpop.f32.mrb[58].mxu1 }
 0x1cf   : > { %11407 = vst [vmem:[#allocation13_spill] sm:$0xff] %v9910_v46  ;;  %11408 = vst [vmem:[#allocation14_spill] sm:$0xff] %v9912_v15  ;;  %v7955_v58 = vpop.f32.mrb[59].mxu0  ;;  %v8153_v39 = vpop.f32.mrb[59].mxu1 }
 0x1d0   : > { %v8800_v39 = vld [vmem:[%s9402_s4 + $0x150] sm:$0xff]  }
 0x1d1   : > { %8061 = vmatmul.mubr.msk.bf16.gmra.mrb[164].mxu0 %vm2130_vm3, %v8798_v4  ;;  %8259 = vmatmul.mubr.msk.bf16.gmra.mrb[164].mxu1 %vm2130_vm3, %v8799_v22  ;;  %v8801_v4 = vld [vmem:[%s9402_s4 + $0x2d8] sm:$0xff]  }
 0x1d2   : > { %8064 = vmatprep.mubr.msk.bf16.mxu0 %vm8939_vm2, %v11404_v6  ;;  %8262 = vmatprep.mubr.msk.bf16.mxu1 %vm8939_vm2, %v11404_v6 }
 0x1d4   : > { %v9922_v10 = vpop.f32.mrb[60].mxu0  ;;  %v9924_v2 = vpop.f32.mrb[60].mxu1 }
 0x1d5   : > { %11409 = vst [vmem:[#allocation15_spill] sm:$0xff] %v9922_v10  ;;  %11410 = vst [vmem:[#allocation16_spill] sm:$0xff] %v9924_v2  ;;  %v7958_v16 = vpop.f32.mrb[61].mxu0  ;;  %v8156_v58 = vpop.f32.mrb[61].mxu1 }
 0x1d6   : > { %v9930_v22 = vpop.f32.mrb[62].mxu0  ;;  %v9932_v15 = vpop.f32.mrb[62].mxu1 }
 0x1d7   : > { %11411 = vst [vmem:[#allocation17_spill] sm:$0xff] %v9930_v22  ;;  %11412 = vst [vmem:[#allocation18_spill] sm:$0xff] %v9932_v15  ;;  %v7959_v27 = vpop.f32.mrb[63].mxu0  ;;  %v8157_v34 = vpop.f32.mrb[63].mxu1 }
 0x1d8   : > { %v8802_v34 = vld [vmem:[%s9402_s4 + $0x158] sm:$0xff]  }
 0x1d9   : > { %8065 = vmatmul.mubr.msk.bf16.gmra.mrb[168].mxu0 %vm2130_vm3, %v8800_v39  ;;  %8263 = vmatmul.mubr.msk.bf16.gmra.mrb[168].mxu1 %vm2130_vm3, %v8801_v4  ;;  %v8803_v39 = vld [vmem:[%s9402_s4 + $0x2e0] sm:$0xff]  }
 0x1da   : > { %8068 = vmatprep.mubr.msk.bf16.mxu0 %vm8939_vm2, %v11404_v6  ;;  %8266 = vmatprep.mubr.msk.bf16.mxu1 %vm8939_vm2, %v11404_v6 }
 0x1dc   : > { %v9942_v16 = vpop.f32.mrb[64].mxu0  ;;  %v9944_v58 = vpop.f32.mrb[64].mxu1 }
 0x1dd   : > { %11413 = vst [vmem:[#allocation19_spill] sm:$0xff] %v9942_v16  ;;  %11414 = vst [vmem:[#allocation20_spill] sm:$0xff] %v9944_v58  ;;  %v7962_v46 = vpop.f32.mrb[65].mxu0  ;;  %v8160_v27 = vpop.f32.mrb[65].mxu1 }
 0x1de   : > { %v9950_v4 = vpop.f32.mrb[66].mxu0  ;;  %v9952_v15 = vpop.f32.mrb[66].mxu1 }
 0x1df   : > { %11415 = vst [vmem:[#allocation21_spill] sm:$0xff] %v9950_v4  ;;  %11416 = vst [vmem:[#allocation22_spill] sm:$0xff] %v9952_v15  ;;  %v7963_v2 = vpop.f32.mrb[67].mxu0  ;;  %v8161_v10 = vpop.f32.mrb[67].mxu1 }
 0x1e0   : > { %v8804_v10 = vld [vmem:[%s9402_s4 + $0x160] sm:$0xff]  }
 0x1e1   : > { %8069 = vmatmul.mubr.msk.bf16.gmra.mrb[172].mxu0 %vm2130_vm3, %v8802_v34  ;;  %8267 = vmatmul.mubr.msk.bf16.gmra.mrb[172].mxu1 %vm2130_vm3, %v8803_v39  ;;  %v8805_v34 = vld [vmem:[%s9402_s4 + $0x2e8] sm:$0xff]  }
 0x1e2   : > { %8072 = vmatprep.mubr.msk.bf16.mxu0 %vm8939_vm2, %v11404_v6  ;;  %8270 = vmatprep.mubr.msk.bf16.mxu1 %vm8939_vm2, %v11404_v6 }
 0x1e4   : > { %v9962_v46 = vpop.f32.mrb[68].mxu0  ;;  %v9964_v27 = vpop.f32.mrb[68].mxu1 }
 0x1e5   : > { %11417 = vst [vmem:[#allocation23_spill] sm:$0xff] %v9962_v46  ;;  %11418 = vst [vmem:[#allocation24_spill] sm:$0xff] %v9964_v27  ;;  %v7966_v22 = vpop.f32.mrb[69].mxu0  ;;  %v8164_v2 = vpop.f32.mrb[69].mxu1 }
 0x1e6   : > { %v9970_v39 = vpop.f32.mrb[70].mxu0  ;;  %v9972_v15 = vpop.f32.mrb[70].mxu1 }
 0x1e7   : > { %11419 = vst [vmem:[#allocation25_spill] sm:$0xff] %v9970_v39  ;;  %11420 = vst [vmem:[#allocation26_spill] sm:$0xff] %v9972_v15  ;;  %v7967_v58 = vpop.f32.mrb[71].mxu0  ;;  %v8165_v16 = vpop.f32.mrb[71].mxu1 }
 0x1e8   : > { %v8806_v16 = vld [vmem:[%s9402_s4 + $0x168] sm:$0xff]  }
 0x1e9   : > { %8073 = vmatmul.mubr.msk.bf16.gmra.mrb[176].mxu0 %vm2130_vm3, %v8804_v10  ;;  %8271 = vmatmul.mubr.msk.bf16.gmra.mrb[176].mxu1 %vm2130_vm3, %v8805_v34  ;;  %v8807_v10 = vld [vmem:[%s9402_s4 + $0x2f0] sm:$0xff]  }
 0x1ea   : > { %8076 = vmatprep.mubr.msk.bf16.mxu0 %vm8939_vm2, %v11404_v6  ;;  %8274 = vmatprep.mubr.msk.bf16.mxu1 %vm8939_vm2, %v11404_v6 }
 0x1ec   : > { %v9982_v22 = vpop.f32.mrb[72].mxu0  ;;  %v9984_v2 = vpop.f32.mrb[72].mxu1 }
 0x1ed   : > { %11421 = vst [vmem:[#allocation27_spill] sm:$0xff] %v9982_v22  ;;  %11422 = vst [vmem:[#allocation28_spill] sm:$0xff] %v9984_v2  ;;  %v7970_v4 = vpop.f32.mrb[73].mxu0  ;;  %v8168_v58 = vpop.f32.mrb[73].mxu1 }
 0x1ee   : > { %v9990_v34 = vpop.f32.mrb[74].mxu0  ;;  %v9992_v15 = vpop.f32.mrb[74].mxu1 }
 0x1ef   : > { %11423 = vst [vmem:[#allocation29_spill] sm:$0xff] %v9990_v34  ;;  %11424 = vst [vmem:[#allocation30_spill] sm:$0xff] %v9992_v15  ;;  %v7971_v27 = vpop.f32.mrb[75].mxu0  ;;  %v8169_v46 = vpop.f32.mrb[75].mxu1 }
 0x1f0   : > { %v8808_v46 = vld [vmem:[%s9402_s4 + $0x170] sm:$0xff]  }
 0x1f1   : > { %8077 = vmatmul.mubr.msk.bf16.gmra.mrb[180].mxu0 %vm2130_vm3, %v8806_v16  ;;  %8275 = vmatmul.mubr.msk.bf16.gmra.mrb[180].mxu1 %vm2130_vm3, %v8807_v10  ;;  %v8809_v16 = vld [vmem:[%s9402_s4 + $0x2f8] sm:$0xff]  }
 0x1f2   : > { %8080 = vmatprep.mubr.msk.bf16.mxu0 %vm8939_vm2, %v11404_v6  ;;  %8278 = vmatprep.mubr.msk.bf16.mxu1 %vm8939_vm2, %v11404_v6 }
 0x1f4   : > { %v10002_v4 = vpop.f32.mrb[76].mxu0  ;;  %v10004_v58 = vpop.f32.mrb[76].mxu1 }
 0x1f5   : > { %11425 = vst [vmem:[#allocation31_spill] sm:$0xff] %v10002_v4  ;;  %11426 = vst [vmem:[#allocation32_spill] sm:$0xff] %v10004_v58  ;;  %v7974_v39 = vpop.f32.mrb[77].mxu0  ;;  %v8172_v27 = vpop.f32.mrb[77].mxu1 }
 0x1f6   : > { %v10010_v10 = vpop.f32.mrb[78].mxu0  ;;  %v10012_v15 = vpop.f32.mrb[78].mxu1 }
 0x1f7   : > { %11427 = vst [vmem:[#allocation33_spill] sm:$0xff] %v10010_v10  ;;  %11428 = vst [vmem:[#allocation34_spill] sm:$0xff] %v10012_v15  ;;  %v7975_v2 = vpop.f32.mrb[79].mxu0  ;;  %v8173_v22 = vpop.f32.mrb[79].mxu1 }
 0x1f8   : > { %v8810_v22 = vld [vmem:[%s9402_s4 + $0x178] sm:$0xff]  }
 0x1f9   : > { %8081 = vmatmul.mubr.msk.bf16.gmra.mrb[184].mxu0 %vm2130_vm3, %v8808_v46  ;;  %8279 = vmatmul.mubr.msk.bf16.gmra.mrb[184].mxu1 %vm2130_vm3, %v8809_v16  ;;  %v8811_v46 = vld [vmem:[%s9402_s4 + $0x300] sm:$0xff]  }
 0x1fa   : > { %8084 = vmatprep.mubr.msk.bf16.mxu0 %vm8939_vm2, %v11404_v6  ;;  %8282 = vmatprep.mubr.msk.bf16.mxu1 %vm8939_vm2, %v11404_v6 }
 0x1fc   : > { %v10022_v39 = vpop.f32.mrb[80].mxu0  ;;  %v10024_v27 = vpop.f32.mrb[80].mxu1 }
 0x1fd   : > { %11429 = vst [vmem:[#allocation35_spill] sm:$0xff] %v10022_v39  ;;  %11430 = vst [vmem:[#allocation36_spill] sm:$0xff] %v10024_v27  ;;  %v7978_v34 = vpop.f32.mrb[81].mxu0  ;;  %v8176_v2 = vpop.f32.mrb[81].mxu1 }
 0x1fe   : > { %v10030_v16 = vpop.f32.mrb[82].mxu0  ;;  %v10032_v15 = vpop.f32.mrb[82].mxu1 }
 0x1ff   : > { %11431 = vst [vmem:[#allocation37_spill] sm:$0xff] %v10030_v16  ;;  %11432 = vst [vmem:[#allocation38_spill] sm:$0xff] %v10032_v15  ;;  %v7979_v58 = vpop.f32.mrb[83].mxu0  ;;  %v8177_v4 = vpop.f32.mrb[83].mxu1 }
 0x200   : > { %v8812_v4 = vld [vmem:[%s9402_s4 + $0x180] sm:$0xff]  }
 0x201   : > { %8085 = vmatmul.mubr.msk.bf16.gmra.mrb[188].mxu0 %vm2130_vm3, %v8810_v22  ;;  %8283 = vmatmul.mubr.msk.bf16.gmra.mrb[188].mxu1 %vm2130_vm3, %v8811_v46  ;;  %v8813_v22 = vld [vmem:[%s9402_s4 + $0x308] sm:$0xff]  }
 0x202   : > { %8088 = vmatprep.mubr.msk.bf16.mxu0 %vm8939_vm2, %v11404_v6  ;;  %8286 = vmatprep.mubr.msk.bf16.mxu1 %vm8939_vm2, %v11404_v6 }
 0x204   : > { %v10042_v34 = vpop.f32.mrb[84].mxu0  ;;  %v10044_v2 = vpop.f32.mrb[84].mxu1 }
 0x205   : > { %11433 = vst [vmem:[#allocation39_spill] sm:$0xff] %v10042_v34  ;;  %11434 = vst [vmem:[#allocation40_spill] sm:$0xff] %v10044_v2  ;;  %v7982_v10 = vpop.f32.mrb[85].mxu0  ;;  %v8180_v58 = vpop.f32.mrb[85].mxu1 }
 0x206   : > { %v10050_v46 = vpop.f32.mrb[86].mxu0  ;;  %v10052_v15 = vpop.f32.mrb[86].mxu1 }
 0x207   : > { %11435 = vst [vmem:[#allocation41_spill] sm:$0xff] %v10050_v46  ;;  %11436 = vst [vmem:[#allocation42_spill] sm:$0xff] %v10052_v15  ;;  %v7983_v27 = vpop.f32.mrb[87].mxu0  ;;  %v8181_v39 = vpop.f32.mrb[87].mxu1 }
 0x208   : > { %v8814_v39 = vld [vmem:[%s9402_s4 + $0x310] sm:$0xff]  }
 0x209   : > { %8089 = vmatmul.mubr.msk.bf16.gmra.mrb[192].mxu0 %vm2130_vm3, %v8812_v4  ;;  %8287 = vmatmul.mubr.msk.bf16.gmra.mrb[192].mxu1 %vm2130_vm3, %v8813_v22  ;;  %v8815_v4 = vld [vmem:[%s9402_s4 + $0x498] sm:$0xff]  }
 0x20a   : > { %8292 = vmatprep.mubr.msk.bf16.mxu0 %vm8939_vm2, %v11404_v6  ;;  %8490 = vmatprep.mubr.msk.bf16.mxu1 %vm8939_vm2, %v11404_v6 }
 0x20c   : > { %v10062_v10 = vpop.f32.mrb[88].mxu0  ;;  %v10064_v58 = vpop.f32.mrb[88].mxu1 }
 0x20d   : > { %11437 = vst [vmem:[#allocation43_spill] sm:$0xff] %v10062_v10  ;;  %11438 = vst [vmem:[#allocation44_spill] sm:$0xff] %v10064_v58  ;;  %v7986_v16 = vpop.f32.mrb[89].mxu0  ;;  %v8184_v27 = vpop.f32.mrb[89].mxu1 }
 0x20e   : > { %v10070_v22 = vpop.f32.mrb[90].mxu0  ;;  %v10072_v15 = vpop.f32.mrb[90].mxu1 }
 0x20f   : > { %11439 = vst [vmem:[#allocation45_spill] sm:$0xff] %v10070_v22  ;;  %11440 = vst [vmem:[#allocation46_spill] sm:$0xff] %v10072_v15  ;;  %v7987_v2 = vpop.f32.mrb[91].mxu0  ;;  %v8185_v34 = vpop.f32.mrb[91].mxu1 }
 0x210   : > { %v8816_v34 = vld [vmem:[%s9402_s4 + $0x318] sm:$0xff]  }
 0x211   : > { %8293 = vmatmul.mubr.msk.bf16.vlgmr.msra.gmra.mrb[196].mxu0 %vm2130_vm3, %v8814_v39  ;;  %8491 = vmatmul.mubr.msk.bf16.vlgmr.msra.gmra.mrb[196].mxu1 %vm2130_vm3, %v8815_v4  ;;  %v8817_v39 = vld [vmem:[%s9402_s4 + $0x4a0] sm:$0xff]  }
 0x212   : > { %8296 = vmatprep.mubr.msk.bf16.mxu0 %vm8939_vm2, %v11404_v6  ;;  %8494 = vmatprep.mubr.msk.bf16.mxu1 %vm8939_vm2, %v11404_v6 }
 0x214   : > { %v10082_v16 = vpop.f32.mrb[92].mxu0  ;;  %v10084_v27 = vpop.f32.mrb[92].mxu1 }
 0x215   : > { %11441 = vst [vmem:[#allocation47_spill] sm:$0xff] %v10082_v16  ;;  %11442 = vst [vmem:[#allocation48_spill] sm:$0xff] %v10084_v27  ;;  %v7990_v46 = vpop.f32.mrb[93].mxu0  ;;  %v8188_v2 = vpop.f32.mrb[93].mxu1 }
 0x216   : > { %v10090_v4 = vpop.f32.mrb[94].mxu0  ;;  %v10092_v15 = vpop.f32.mrb[94].mxu1 }
 0x217   : > { %11443 = vst [vmem:[#allocation49_spill] sm:$0xff] %v10090_v4  ;;  %11444 = vst [vmem:[#allocation50_spill] sm:$0xff] %v10092_v15  ;;  %v7991_v58 = vpop.f32.mrb[95].mxu0  ;;  %v8189_v10 = vpop.f32.mrb[95].mxu1 }
 0x218   : > { %v8818_v10 = vld [vmem:[%s9402_s4 + $0x320] sm:$0xff]  }
 0x219   : > { %8297 = vmatmul.mubr.msk.bf16.gmra.mrb[200].mxu0 %vm2130_vm3, %v8816_v34  ;;  %8495 = vmatmul.mubr.msk.bf16.gmra.mrb[200].mxu1 %vm2130_vm3, %v8817_v39  ;;  %v8819_v34 = vld [vmem:[%s9402_s4 + $0x4a8] sm:$0xff]  }
 0x21a   : > { %8300 = vmatprep.mubr.msk.bf16.mxu0 %vm8939_vm2, %v11404_v6  ;;  %8498 = vmatprep.mubr.msk.bf16.mxu1 %vm8939_vm2, %v11404_v6 }
 0x21c   : > { %v10102_v46 = vpop.f32.mrb[96].mxu0  ;;  %v10104_v2 = vpop.f32.mrb[96].mxu1 }
 0x21d   : > { %11445 = vst [vmem:[#allocation51_spill] sm:$0xff] %v10102_v46  ;;  %11446 = vst [vmem:[#allocation52_spill] sm:$0xff] %v10104_v2  ;;  %v7994_v22 = vpop.f32.mrb[97].mxu0  ;;  %v8192_v58 = vpop.f32.mrb[97].mxu1 }
 0x21e   : > { %v10110_v39 = vpop.f32.mrb[98].mxu0  ;;  %v10112_v15 = vpop.f32.mrb[98].mxu1 }
 0x21f   : > { %11447 = vst [vmem:[#allocation53_spill] sm:$0xff] %v10110_v39  ;;  %11448 = vst [vmem:[#allocation54_spill] sm:$0xff] %v10112_v15  ;;  %v7995_v27 = vpop.f32.mrb[99].mxu0  ;;  %v8193_v16 = vpop.f32.mrb[99].mxu1 }
 0x220   : > { %v8820_v16 = vld [vmem:[%s9402_s4 + $0x328] sm:$0xff]  }
 0x221   : > { %8301 = vmatmul.mubr.msk.bf16.gmra.mrb[204].mxu0 %vm2130_vm3, %v8818_v10  ;;  %8499 = vmatmul.mubr.msk.bf16.gmra.mrb[204].mxu1 %vm2130_vm3, %v8819_v34  ;;  %v8821_v10 = vld [vmem:[%s9402_s4 + $0x4b0] sm:$0xff]  }
 0x222   : > { %8304 = vmatprep.mubr.msk.bf16.mxu0 %vm8939_vm2, %v11404_v6  ;;  %8502 = vmatprep.mubr.msk.bf16.mxu1 %vm8939_vm2, %v11404_v6 }
 0x224   : > { %v10122_v22 = vpop.f32.mrb[100].mxu0  ;;  %v10124_v58 = vpop.f32.mrb[100].mxu1 }
 0x225   : > { %11449 = vst [vmem:[#allocation55_spill] sm:$0xff] %v10122_v22  ;;  %11450 = vst [vmem:[#allocation56_spill] sm:$0xff] %v10124_v58  ;;  %v7998_v4 = vpop.f32.mrb[101].mxu0  ;;  %v8196_v27 = vpop.f32.mrb[101].mxu1 }
 0x226   : > { %v10130_v34 = vpop.f32.mrb[102].mxu0  ;;  %v10132_v15 = vpop.f32.mrb[102].mxu1 }
 0x227   : > { %11451 = vst [vmem:[#allocation57_spill] sm:$0xff] %v10130_v34  ;;  %11452 = vst [vmem:[#allocation58_spill] sm:$0xff] %v10132_v15  ;;  %v7999_v2 = vpop.f32.mrb[103].mxu0  ;;  %v8197_v46 = vpop.f32.mrb[103].mxu1 }
 0x228   : > { %v8822_v46 = vld [vmem:[%s9402_s4 + $0x330] sm:$0xff]  }
 0x229   : > { %8305 = vmatmul.mubr.msk.bf16.gmra.mrb[208].mxu0 %vm2130_vm3, %v8820_v16  ;;  %8503 = vmatmul.mubr.msk.bf16.gmra.mrb[208].mxu1 %vm2130_vm3, %v8821_v10  ;;  %v8823_v16 = vld [vmem:[%s9402_s4 + $0x4b8] sm:$0xff]  }
 0x22a   : > { %8308 = vmatprep.mubr.msk.bf16.mxu0 %vm8939_vm2, %v11404_v6  ;;  %8506 = vmatprep.mubr.msk.bf16.mxu1 %vm8939_vm2, %v11404_v6 }
 0x22c   : > { %v10142_v4 = vpop.f32.mrb[104].mxu0  ;;  %v10144_v27 = vpop.f32.mrb[104].mxu1 }
 0x22d   : > { %11453 = vst [vmem:[#allocation59_spill] sm:$0xff] %v10142_v4  ;;  %11454 = vst [vmem:[#allocation60_spill] sm:$0xff] %v10144_v27  ;;  %v8002_v39 = vpop.f32.mrb[105].mxu0  ;;  %v8200_v2 = vpop.f32.mrb[105].mxu1 }
 0x22e   : > { %v10150_v10 = vpop.f32.mrb[106].mxu0  ;;  %v10152_v15 = vpop.f32.mrb[106].mxu1 }
 0x22f   : > { %11455 = vst [vmem:[#allocation61_spill] sm:$0xff] %v10150_v10  ;;  %11456 = vst [vmem:[#allocation62_spill] sm:$0xff] %v10152_v15  ;;  %v8003_v58 = vpop.f32.mrb[107].mxu0  ;;  %v8201_v22 = vpop.f32.mrb[107].mxu1 }
 0x230   : > { %v8824_v22 = vld [vmem:[%s9402_s4 + $0x338] sm:$0xff]  }
 0x231   : > { %8309 = vmatmul.mubr.msk.bf16.gmra.mrb[212].mxu0 %vm2130_vm3, %v8822_v46  ;;  %8507 = vmatmul.mubr.msk.bf16.gmra.mrb[212].mxu1 %vm2130_vm3, %v8823_v16  ;;  %v8825_v46 = vld [vmem:[%s9402_s4 + $0x4c0] sm:$0xff]  }
 0x232   : > { %8312 = vmatprep.mubr.msk.bf16.mxu0 %vm8939_vm2, %v11404_v6  ;;  %8510 = vmatprep.mubr.msk.bf16.mxu1 %vm8939_vm2, %v11404_v6 }
 0x234   : > { %v10162_v39 = vpop.f32.mrb[108].mxu0  ;;  %v10164_v2 = vpop.f32.mrb[108].mxu1 }
 0x235   : > { %11457 = vst [vmem:[#allocation63_spill] sm:$0xff] %v10162_v39  ;;  %11458 = vst [vmem:[#allocation64_spill] sm:$0xff] %v10164_v2  ;;  %v8006_v34 = vpop.f32.mrb[109].mxu0  ;;  %v8204_v58 = vpop.f32.mrb[109].mxu1 }
 0x236   : > { %v10170_v16 = vpop.f32.mrb[110].mxu0  ;;  %v10172_v15 = vpop.f32.mrb[110].mxu1 }
 0x237   : > { %11459 = vst [vmem:[#allocation65_spill] sm:$0xff] %v10170_v16  ;;  %11460 = vst [vmem:[#allocation66_spill] sm:$0xff] %v10172_v15  ;;  %v8007_v27 = vpop.f32.mrb[111].mxu0  ;;  %v8205_v4 = vpop.f32.mrb[111].mxu1 }
 0x238   : > { %v8826_v4 = vld [vmem:[%s9402_s4 + $0x340] sm:$0xff]  }
 0x239   : > { %8313 = vmatmul.mubr.msk.bf16.gmra.mrb[216].mxu0 %vm2130_vm3, %v8824_v22  ;;  %8511 = vmatmul.mubr.msk.bf16.gmra.mrb[216].mxu1 %vm2130_vm3, %v8825_v46  ;;  %v8827_v22 = vld [vmem:[%s9402_s4 + $0x4c8] sm:$0xff]  }
 0x23a   : > { %8316 = vmatprep.mubr.msk.bf16.mxu0 %vm8939_vm2, %v11404_v6  ;;  %8514 = vmatprep.mubr.msk.bf16.mxu1 %vm8939_vm2, %v11404_v6 }
 0x23c   : > { %v10182_v34 = vpop.f32.mrb[112].mxu0  ;;  %v10184_v58 = vpop.f32.mrb[112].mxu1 }
 0x23d   : > { %11461 = vst [vmem:[#allocation67_spill] sm:$0xff] %v10182_v34  ;;  %11462 = vst [vmem:[#allocation68_spill] sm:$0xff] %v10184_v58  ;;  %v8010_v10 = vpop.f32.mrb[113].mxu0  ;;  %v8208_v27 = vpop.f32.mrb[113].mxu1 }
 0x23e   : > { %v10190_v46 = vpop.f32.mrb[114].mxu0  ;;  %v10192_v15 = vpop.f32.mrb[114].mxu1 }
 0x23f   : > { %11463 = vst [vmem:[#allocation69_spill] sm:$0xff] %v10190_v46  ;;  %11464 = vst [vmem:[#allocation70_spill] sm:$0xff] %v10192_v15  ;;  %v8011_v2 = vpop.f32.mrb[115].mxu0  ;;  %v8209_v39 = vpop.f32.mrb[115].mxu1 }
 0x240   : > { %v8828_v39 = vld [vmem:[%s9402_s4 + $0x348] sm:$0xff]  }
 0x241   : > { %8317 = vmatmul.mubr.msk.bf16.gmra.mrb[220].mxu0 %vm2130_vm3, %v8826_v4  ;;  %8515 = vmatmul.mubr.msk.bf16.gmra.mrb[220].mxu1 %vm2130_vm3, %v8827_v22  ;;  %v8829_v4 = vld [vmem:[%s9402_s4 + $0x4d0] sm:$0xff]  }
 0x242   : > { %8320 = vmatprep.mubr.msk.bf16.mxu0 %vm8939_vm2, %v11404_v6  ;;  %8518 = vmatprep.mubr.msk.bf16.mxu1 %vm8939_vm2, %v11404_v6 }
 0x244   : > { %v10202_v10 = vpop.f32.mrb[116].mxu0  ;;  %v10204_v27 = vpop.f32.mrb[116].mxu1 }
 0x245   : > { %11465 = vst [vmem:[#allocation71_spill] sm:$0xff] %v10202_v10  ;;  %11466 = vst [vmem:[#allocation72_spill] sm:$0xff] %v10204_v27  ;;  %v8014_v16 = vpop.f32.mrb[117].mxu0  ;;  %v8212_v2 = vpop.f32.mrb[117].mxu1 }
 0x246   : > { %v10210_v22 = vpop.f32.mrb[118].mxu0  ;;  %v10212_v15 = vpop.f32.mrb[118].mxu1 }
 0x247   : > { %11467 = vst [vmem:[#allocation73_spill] sm:$0xff] %v10210_v22  ;;  %11468 = vst [vmem:[#allocation74_spill] sm:$0xff] %v10212_v15  ;;  %v8015_v58 = vpop.f32.mrb[119].mxu0  ;;  %v8213_v34 = vpop.f32.mrb[119].mxu1 }
 0x248   : > { %v8830_v34 = vld [vmem:[%s9402_s4 + $0x350] sm:$0xff]  }
 0x249   : > { %8321 = vmatmul.mubr.msk.bf16.gmra.mrb[224].mxu0 %vm2130_vm3, %v8828_v39  ;;  %8519 = vmatmul.mubr.msk.bf16.gmra.mrb[224].mxu1 %vm2130_vm3, %v8829_v4  ;;  %v8831_v39 = vld [vmem:[%s9402_s4 + $0x4d8] sm:$0xff]  }
 0x24a   : > { %8324 = vmatprep.mubr.msk.bf16.mxu0 %vm8939_vm2, %v11404_v6  ;;  %8522 = vmatprep.mubr.msk.bf16.mxu1 %vm8939_vm2, %v11404_v6 }
 0x24c   : > { %v10222_v16 = vpop.f32.mrb[120].mxu0  ;;  %v10224_v2 = vpop.f32.mrb[120].mxu1 }
 0x24d   : > { %11469 = vst [vmem:[#allocation75_spill] sm:$0xff] %v10222_v16  ;;  %11470 = vst [vmem:[#allocation76_spill] sm:$0xff] %v10224_v2  ;;  %v8018_v46 = vpop.f32.mrb[121].mxu0  ;;  %v8216_v58 = vpop.f32.mrb[121].mxu1 }
 0x24e   : > { %v10230_v4 = vpop.f32.mrb[122].mxu0  ;;  %v10232_v15 = vpop.f32.mrb[122].mxu1 }
 0x24f   : > { %11471 = vst [vmem:[#allocation77_spill] sm:$0xff] %v10230_v4  ;;  %11472 = vst [vmem:[#allocation78_spill] sm:$0xff] %v10232_v15  ;;  %v8019_v27 = vpop.f32.mrb[123].mxu0  ;;  %v8217_v10 = vpop.f32.mrb[123].mxu1 }
 0x250   : > { %v8832_v10 = vld [vmem:[%s9402_s4 + $0x358] sm:$0xff]  }
 0x251   : > { %8325 = vmatmul.mubr.msk.bf16.gmra.mrb[228].mxu0 %vm2130_vm3, %v8830_v34  ;;  %8523 = vmatmul.mubr.msk.bf16.gmra.mrb[228].mxu1 %vm2130_vm3, %v8831_v39  ;;  %v8833_v34 = vld [vmem:[%s9402_s4 + $0x4e0] sm:$0xff]  }
 0x252   : > { %8328 = vmatprep.mubr.msk.bf16.mxu0 %vm8939_vm2, %v11404_v6  ;;  %8526 = vmatprep.mubr.msk.bf16.mxu1 %vm8939_vm2, %v11404_v6 }
 0x254   : > { %v10242_v46 = vpop.f32.mrb[124].mxu0  ;;  %v10244_v58 = vpop.f32.mrb[124].mxu1 }
 0x255   : > { %11473 = vst [vmem:[#allocation79_spill] sm:$0xff] %v10242_v46  ;;  %11474 = vst [vmem:[#allocation80_spill] sm:$0xff] %v10244_v58  ;;  %v8022_v22 = vpop.f32.mrb[125].mxu0  ;;  %v8220_v27 = vpop.f32.mrb[125].mxu1 }
 0x256   : > { %v10250_v39 = vpop.f32.mrb[126].mxu0  ;;  %v10252_v15 = vpop.f32.mrb[126].mxu1 }
 0x257   : > { %11475 = vst [vmem:[#allocation81_spill] sm:$0xff] %v10250_v39  ;;  %11476 = vst [vmem:[#allocation82_spill] sm:$0xff] %v10252_v15  ;;  %v8023_v2 = vpop.f32.mrb[127].mxu0  ;;  %v8221_v16 = vpop.f32.mrb[127].mxu1 }
 0x258   : > { %v8834_v16 = vld [vmem:[%s9402_s4 + $0x360] sm:$0xff]  }
 0x259   : > { %8329 = vmatmul.mubr.msk.bf16.gmra.mrb[232].mxu0 %vm2130_vm3, %v8832_v10  ;;  %8527 = vmatmul.mubr.msk.bf16.gmra.mrb[232].mxu1 %vm2130_vm3, %v8833_v34  ;;  %v8835_v10 = vld [vmem:[%s9402_s4 + $0x4e8] sm:$0xff]  }
 0x25a   : > { %8332 = vmatprep.mubr.msk.bf16.mxu0 %vm8939_vm2, %v11404_v6  ;;  %8530 = vmatprep.mubr.msk.bf16.mxu1 %vm8939_vm2, %v11404_v6 }
 0x25c   : > { %v10262_v22 = vpop.f32.mrb[128].mxu0  ;;  %v10264_v27 = vpop.f32.mrb[128].mxu1 }
 0x25d   : > { %11477 = vst [vmem:[#allocation83_spill] sm:$0xff] %v10262_v22  ;;  %11478 = vst [vmem:[#allocation84_spill] sm:$0xff] %v10264_v27  ;;  %v8026_v4 = vpop.f32.mrb[129].mxu0  ;;  %v8224_v2 = vpop.f32.mrb[129].mxu1 }
 0x25e   : > { %v10270_v34 = vpop.f32.mrb[130].mxu0  ;;  %v10272_v15 = vpop.f32.mrb[130].mxu1 }
 0x25f   : > { %11479 = vst [vmem:[#allocation85_spill] sm:$0xff] %v10270_v34  ;;  %11480 = vst [vmem:[#allocation86_spill] sm:$0xff] %v10272_v15  ;;  %v8027_v58 = vpop.f32.mrb[131].mxu0  ;;  %v8225_v46 = vpop.f32.mrb[131].mxu1 }
 0x260   : > { %v8836_v46 = vld [vmem:[%s9402_s4 + $0x368] sm:$0xff]  }
 0x261   : > { %8333 = vmatmul.mubr.msk.bf16.gmra.mrb[236].mxu0 %vm2130_vm3, %v8834_v16  ;;  %8531 = vmatmul.mubr.msk.bf16.gmra.mrb[236].mxu1 %vm2130_vm3, %v8835_v10  ;;  %v8837_v16 = vld [vmem:[%s9402_s4 + $0x4f0] sm:$0xff]  }
 0x262   : > { %8336 = vmatprep.mubr.msk.bf16.mxu0 %vm8939_vm2, %v11404_v6  ;;  %8534 = vmatprep.mubr.msk.bf16.mxu1 %vm8939_vm2, %v11404_v6 }
 0x264   : > { %v10282_v4 = vpop.f32.mrb[132].mxu0  ;;  %v10284_v2 = vpop.f32.mrb[132].mxu1 }
 0x265   : > { %11481 = vst [vmem:[#allocation87_spill] sm:$0xff] %v10282_v4  ;;  %11482 = vst [vmem:[#allocation88_spill] sm:$0xff] %v10284_v2  ;;  %v8030_v39 = vpop.f32.mrb[133].mxu0  ;;  %v8228_v58 = vpop.f32.mrb[133].mxu1 }
 0x266   : > { %v10290_v10 = vpop.f32.mrb[134].mxu0  ;;  %v10292_v15 = vpop.f32.mrb[134].mxu1 }
 0x267   : > { %11483 = vst [vmem:[#allocation89_spill] sm:$0xff] %v10290_v10  ;;  %11484 = vst [vmem:[#allocation90_spill] sm:$0xff] %v10292_v15  ;;  %v8031_v27 = vpop.f32.mrb[135].mxu0  ;;  %v8229_v22 = vpop.f32.mrb[135].mxu1 }
 0x268   : > { %v8838_v22 = vld [vmem:[%s9402_s4 + $0x370] sm:$0xff]  }
 0x269   : > { %8337 = vmatmul.mubr.msk.bf16.gmra.mrb[240].mxu0 %vm2130_vm3, %v8836_v46  ;;  %8535 = vmatmul.mubr.msk.bf16.gmra.mrb[240].mxu1 %vm2130_vm3, %v8837_v16  ;;  %v8839_v46 = vld [vmem:[%s9402_s4 + $0x4f8] sm:$0xff]  }
 0x26a   : > { %8340 = vmatprep.mubr.msk.bf16.mxu0 %vm8939_vm2, %v11404_v6  ;;  %8538 = vmatprep.mubr.msk.bf16.mxu1 %vm8939_vm2, %v11404_v6 }
 0x26c   : > { %v10302_v39 = vpop.f32.mrb[136].mxu0  ;;  %v10304_v58 = vpop.f32.mrb[136].mxu1 }
 0x26d   : > { %11485 = vst [vmem:[#allocation91_spill] sm:$0xff] %v10302_v39  ;;  %11486 = vst [vmem:[#allocation92_spill] sm:$0xff] %v10304_v58  ;;  %v8034_v34 = vpop.f32.mrb[137].mxu0  ;;  %v8232_v27 = vpop.f32.mrb[137].mxu1 }
 0x26e   : > { %v10310_v16 = vpop.f32.mrb[138].mxu0  ;;  %v10312_v15 = vpop.f32.mrb[138].mxu1 }
 0x26f   : > { %11487 = vst [vmem:[#allocation93_spill] sm:$0xff] %v10310_v16  ;;  %11488 = vst [vmem:[#allocation94_spill] sm:$0xff] %v10312_v15  ;;  %v8035_v2 = vpop.f32.mrb[139].mxu0  ;;  %v8233_v4 = vpop.f32.mrb[139].mxu1 }
 0x270   : > { %v8840_v4 = vld [vmem:[%s9402_s4 + $0x378] sm:$0xff]  }
 0x271   : > { %8341 = vmatmul.mubr.msk.bf16.gmra.mrb[244].mxu0 %vm2130_vm3, %v8838_v22  ;;  %8539 = vmatmul.mubr.msk.bf16.gmra.mrb[244].mxu1 %vm2130_vm3, %v8839_v46  ;;  %v8841_v22 = vld [vmem:[%s9402_s4 + $0x500] sm:$0xff]  }
 0x272   : > { %8344 = vmatprep.mubr.msk.bf16.mxu0 %vm8939_vm2, %v11404_v6  ;;  %8542 = vmatprep.mubr.msk.bf16.mxu1 %vm8939_vm2, %v11404_v6 }
 0x274   : > { %v10322_v34 = vpop.f32.mrb[140].mxu0  ;;  %v10324_v27 = vpop.f32.mrb[140].mxu1 }
 0x275   : > { %11489 = vst [vmem:[#allocation95_spill] sm:$0xff] %v10322_v34  ;;  %11490 = vst [vmem:[#allocation96_spill] sm:$0xff] %v10324_v27  ;;  %v8038_v10 = vpop.f32.mrb[141].mxu0  ;;  %v8236_v2 = vpop.f32.mrb[141].mxu1 }
 0x276   : > { %v10330_v46 = vpop.f32.mrb[142].mxu0  ;;  %v10332_v15 = vpop.f32.mrb[142].mxu1 }
 0x277   : > { %11491 = vst [vmem:[#allocation97_spill] sm:$0xff] %v10330_v46  ;;  %11492 = vst [vmem:[#allocation98_spill] sm:$0xff] %v10332_v15  ;;  %v8039_v58 = vpop.f32.mrb[143].mxu0  ;;  %v8237_v39 = vpop.f32.mrb[143].mxu1 }
 0x278   : > { %v8842_v39 = vld [vmem:[%s9402_s4 + $0x380] sm:$0xff]  }
 0x279   : > { %8345 = vmatmul.mubr.msk.bf16.gmra.mrb[248].mxu0 %vm2130_vm3, %v8840_v4  ;;  %8543 = vmatmul.mubr.msk.bf16.gmra.mrb[248].mxu1 %vm2130_vm3, %v8841_v22  ;;  %v8843_v4 = vld [vmem:[%s9402_s4 + $0x508] sm:$0xff]  }
 0x27a   : > { %8348 = vmatprep.mubr.msk.bf16.mxu0 %vm8939_vm2, %v11404_v6  ;;  %8546 = vmatprep.mubr.msk.bf16.mxu1 %vm8939_vm2, %v11404_v6 }
 0x27c   : > { %v10342_v10 = vpop.f32.mrb[144].mxu0  ;;  %v10344_v2 = vpop.f32.mrb[144].mxu1 }
 0x27d   : > { %11493 = vst [vmem:[#allocation99_spill] sm:$0xff] %v10342_v10  ;;  %11494 = vst [vmem:[#allocation100_spill] sm:$0xff] %v10344_v2  ;;  %v8042_v16 = vpop.f32.mrb[145].mxu0  ;;  %v8240_v58 = vpop.f32.mrb[145].mxu1 }
 0x27e   : > { %v10350_v22 = vpop.f32.mrb[146].mxu0  ;;  %v10352_v15 = vpop.f32.mrb[146].mxu1 }
 0x27f   : > { %11495 = vst [vmem:[#allocation101_spill] sm:$0xff] %v10350_v22  ;;  %11496 = vst [vmem:[#allocation102_spill] sm:$0xff] %v10352_v15  ;;  %v8043_v27 = vpop.f32.mrb[147].mxu0  ;;  %v8241_v34 = vpop.f32.mrb[147].mxu1 }
 0x280   : > { %v8844_v34 = vld [vmem:[%s9402_s4 + $0x388] sm:$0xff]  }
 0x281   : > { %8349 = vmatmul.mubr.msk.bf16.gmra.mrb[252].mxu0 %vm2130_vm3, %v8842_v39  ;;  %8547 = vmatmul.mubr.msk.bf16.gmra.mrb[252].mxu1 %vm2130_vm3, %v8843_v4  ;;  %v8845_v39 = vld [vmem:[%s9402_s4 + $0x510] sm:$0xff]  }
 0x282   : > { %8352 = vmatprep.mubr.msk.bf16.mxu0 %vm8939_vm2, %v11404_v6  ;;  %8550 = vmatprep.mubr.msk.bf16.mxu1 %vm8939_vm2, %v11404_v6 }
 0x284   : > { %v10362_v16 = vpop.f32.mrb[148].mxu0  ;;  %v10364_v58 = vpop.f32.mrb[148].mxu1 }
 0x285   : > { %11497 = vst [vmem:[#allocation103_spill] sm:$0xff] %v10362_v16  ;;  %11498 = vst [vmem:[#allocation104_spill] sm:$0xff] %v10364_v58  ;;  %v8046_v46 = vpop.f32.mrb[149].mxu0  ;;  %v8244_v27 = vpop.f32.mrb[149].mxu1 }
 0x286   : > { %v10370_v4 = vpop.f32.mrb[150].mxu0  ;;  %v10372_v15 = vpop.f32.mrb[150].mxu1 }
 0x287   : > { %11499 = vst [vmem:[#allocation105_spill] sm:$0xff] %v10370_v4  ;;  %11500 = vst [vmem:[#allocation106_spill] sm:$0xff] %v10372_v15  ;;  %v8047_v2 = vpop.f32.mrb[151].mxu0  ;;  %v8245_v10 = vpop.f32.mrb[151].mxu1 }
 0x288   : > { %v8846_v10 = vld [vmem:[%s9402_s4 + $0x390] sm:$0xff]  }
 0x289   : > { %8353 = vmatmul.mubr.msk.bf16.gmra.mrb[0].mxu0 %vm2130_vm3, %v8844_v34  ;;  %8551 = vmatmul.mubr.msk.bf16.gmra.mrb[0].mxu1 %vm2130_vm3, %v8845_v39  ;;  %v8847_v34 = vld [vmem:[%s9402_s4 + $0x518] sm:$0xff]  }
 0x28a   : > { %8356 = vmatprep.mubr.msk.bf16.mxu0 %vm8939_vm2, %v11404_v6  ;;  %8554 = vmatprep.mubr.msk.bf16.mxu1 %vm8939_vm2, %v11404_v6 }
 0x28c   : > { %v10382_v46 = vpop.f32.mrb[152].mxu0  ;;  %v10384_v27 = vpop.f32.mrb[152].mxu1 }
 0x28d   : > { %11501 = vst [vmem:[#allocation107_spill] sm:$0xff] %v10382_v46  ;;  %11502 = vst [vmem:[#allocation108_spill] sm:$0xff] %v10384_v27  ;;  %v8050_v22 = vpop.f32.mrb[153].mxu0  ;;  %v8248_v2 = vpop.f32.mrb[153].mxu1 }
 0x28e   : > { %v10390_v39 = vpop.f32.mrb[154].mxu0  ;;  %v10392_v15 = vpop.f32.mrb[154].mxu1 }
 0x28f   : > { %11503 = vst [vmem:[#allocation109_spill] sm:$0xff] %v10390_v39  ;;  %11504 = vst [vmem:[#allocation110_spill] sm:$0xff] %v10392_v15  ;;  %v8051_v58 = vpop.f32.mrb[155].mxu0  ;;  %v8249_v16 = vpop.f32.mrb[155].mxu1 }
 0x290   : > { %v8848_v16 = vld [vmem:[%s9402_s4 + $0x398] sm:$0xff]  }
 0x291   : > { %8357 = vmatmul.mubr.msk.bf16.gmra.mrb[4].mxu0 %vm2130_vm3, %v8846_v10  ;;  %8555 = vmatmul.mubr.msk.bf16.gmra.mrb[4].mxu1 %vm2130_vm3, %v8847_v34  ;;  %v8849_v10 = vld [vmem:[%s9402_s4 + $0x520] sm:$0xff]  }
 0x292   : > { %8360 = vmatprep.mubr.msk.bf16.mxu0 %vm8939_vm2, %v11404_v6  ;;  %8558 = vmatprep.mubr.msk.bf16.mxu1 %vm8939_vm2, %v11404_v6 }
 0x294   : > { %v10402_v22 = vpop.f32.mrb[156].mxu0  ;;  %v10404_v2 = vpop.f32.mrb[156].mxu1 }
 0x295   : > { %11505 = vst [vmem:[#allocation111_spill] sm:$0xff] %v10402_v22  ;;  %11506 = vst [vmem:[#allocation112_spill] sm:$0xff] %v10404_v2  ;;  %v8054_v4 = vpop.f32.mrb[157].mxu0  ;;  %v8252_v58 = vpop.f32.mrb[157].mxu1 }
 0x296   : > { %v10410_v34 = vpop.f32.mrb[158].mxu0  ;;  %v10412_v15 = vpop.f32.mrb[158].mxu1 }
 0x297   : > { %11507 = vst [vmem:[#allocation113_spill] sm:$0xff] %v10410_v34  ;;  %11508 = vst [vmem:[#allocation114_spill] sm:$0xff] %v10412_v15  ;;  %v8055_v27 = vpop.f32.mrb[159].mxu0  ;;  %v8253_v46 = vpop.f32.mrb[159].mxu1 }
 0x298   : > { %v8850_v46 = vld [vmem:[%s9402_s4 + $0x3a0] sm:$0xff]  }
 0x299   : > { %8361 = vmatmul.mubr.msk.bf16.gmra.mrb[8].mxu0 %vm2130_vm3, %v8848_v16  ;;  %8559 = vmatmul.mubr.msk.bf16.gmra.mrb[8].mxu1 %vm2130_vm3, %v8849_v10  ;;  %v8851_v16 = vld [vmem:[%s9402_s4 + $0x528] sm:$0xff]  }
 0x29a   : > { %8364 = vmatprep.mubr.msk.bf16.mxu0 %vm8939_vm2, %v11404_v6  ;;  %8562 = vmatprep.mubr.msk.bf16.mxu1 %vm8939_vm2, %v11404_v6 }
 0x29c   : > { %v10422_v4 = vpop.f32.mrb[160].mxu0  ;;  %v10424_v58 = vpop.f32.mrb[160].mxu1 }
 0x29d   : > { %11509 = vst [vmem:[#allocation115_spill] sm:$0xff] %v10422_v4  ;;  %11510 = vst [vmem:[#allocation116_spill] sm:$0xff] %v10424_v58  ;;  %v8058_v39 = vpop.f32.mrb[161].mxu0  ;;  %v8256_v27 = vpop.f32.mrb[161].mxu1 }
 0x29e   : > { %v10430_v10 = vpop.f32.mrb[162].mxu0  ;;  %v10432_v15 = vpop.f32.mrb[162].mxu1 }
 0x29f   : > { %11511 = vst [vmem:[#allocation117_spill] sm:$0xff] %v10430_v10  ;;  %11512 = vst [vmem:[#allocation118_spill] sm:$0xff] %v10432_v15  ;;  %v8059_v2 = vpop.f32.mrb[163].mxu0  ;;  %v8257_v22 = vpop.f32.mrb[163].mxu1 }
 0x2a0   : > { %v8852_v22 = vld [vmem:[%s9402_s4 + $0x3a8] sm:$0xff]  }
 0x2a1   : > { %8365 = vmatmul.mubr.msk.bf16.gmra.mrb[12].mxu0 %vm2130_vm3, %v8850_v46  ;;  %8563 = vmatmul.mubr.msk.bf16.gmra.mrb[12].mxu1 %vm2130_vm3, %v8851_v16  ;;  %v8853_v46 = vld [vmem:[%s9402_s4 + $0x530] sm:$0xff]  }
 0x2a2   : > { %8368 = vmatprep.mubr.msk.bf16.mxu0 %vm8939_vm2, %v11404_v6  ;;  %8566 = vmatprep.mubr.msk.bf16.mxu1 %vm8939_vm2, %v11404_v6 }
 0x2a4   : > { %v10442_v39 = vpop.f32.mrb[164].mxu0  ;;  %v10444_v27 = vpop.f32.mrb[164].mxu1 }
 0x2a5   : > { %11513 = vst [vmem:[#allocation119_spill] sm:$0xff] %v10442_v39  ;;  %11514 = vst [vmem:[#allocation120_spill] sm:$0xff] %v10444_v27  ;;  %v8062_v34 = vpop.f32.mrb[165].mxu0  ;;  %v8260_v2 = vpop.f32.mrb[165].mxu1 }
 0x2a6   : > { %v10450_v16 = vpop.f32.mrb[166].mxu0  ;;  %v10452_v15 = vpop.f32.mrb[166].mxu1 }
 0x2a7   : > { %11515 = vst [vmem:[#allocation121_spill] sm:$0xff] %v10450_v16  ;;  %11516 = vst [vmem:[#allocation122_spill] sm:$0xff] %v10452_v15  ;;  %v8063_v58 = vpop.f32.mrb[167].mxu0  ;;  %v8261_v4 = vpop.f32.mrb[167].mxu1 }
 0x2a8   : > { %v8854_v4 = vld [vmem:[%s9402_s4 + $0x3b0] sm:$0xff]  }
 0x2a9   : > { %8369 = vmatmul.mubr.msk.bf16.gmra.mrb[16].mxu0 %vm2130_vm3, %v8852_v22  ;;  %8567 = vmatmul.mubr.msk.bf16.gmra.mrb[16].mxu1 %vm2130_vm3, %v8853_v46  ;;  %v8855_v22 = vld [vmem:[%s9402_s4 + $0x538] sm:$0xff]  }
 0x2aa   : > { %8372 = vmatprep.mubr.msk.bf16.mxu0 %vm8939_vm2, %v11404_v6  ;;  %8570 = vmatprep.mubr.msk.bf16.mxu1 %vm8939_vm2, %v11404_v6 }
 0x2ac   : > { %v10462_v34 = vpop.f32.mrb[168].mxu0  ;;  %v10464_v2 = vpop.f32.mrb[168].mxu1 }
 0x2ad   : > { %11517 = vst [vmem:[#allocation123_spill] sm:$0xff] %v10462_v34  ;;  %11518 = vst [vmem:[#allocation124_spill] sm:$0xff] %v10464_v2  ;;  %v8066_v10 = vpop.f32.mrb[169].mxu0  ;;  %v8264_v58 = vpop.f32.mrb[169].mxu1 }
 0x2ae   : > { %v10470_v46 = vpop.f32.mrb[170].mxu0  ;;  %v10472_v15 = vpop.f32.mrb[170].mxu1 }
 0x2af   : > { %11519 = vst [vmem:[#allocation125_spill] sm:$0xff] %v10470_v46  ;;  %11520 = vst [vmem:[#allocation126_spill] sm:$0xff] %v10472_v15  ;;  %v8067_v27 = vpop.f32.mrb[171].mxu0  ;;  %v8265_v39 = vpop.f32.mrb[171].mxu1 }
 0x2b0   : > { %v8856_v39 = vld [vmem:[%s9402_s4 + $0x3b8] sm:$0xff]  }
 0x2b1   : > { %8373 = vmatmul.mubr.msk.bf16.gmra.mrb[20].mxu0 %vm2130_vm3, %v8854_v4  ;;  %8571 = vmatmul.mubr.msk.bf16.gmra.mrb[20].mxu1 %vm2130_vm3, %v8855_v22  ;;  %v8857_v4 = vld [vmem:[%s9402_s4 + $0x540] sm:$0xff]  }
 0x2b2   : > { %8376 = vmatprep.mubr.msk.bf16.mxu0 %vm8939_vm2, %v11404_v6  ;;  %8574 = vmatprep.mubr.msk.bf16.mxu1 %vm8939_vm2, %v11404_v6 }
 0x2b4   : > { %v10482_v10 = vpop.f32.mrb[172].mxu0  ;;  %v10484_v58 = vpop.f32.mrb[172].mxu1 }
 0x2b5   : > { %11521 = vst [vmem:[#allocation127_spill] sm:$0xff] %v10482_v10  ;;  %11522 = vst [vmem:[#allocation128_spill] sm:$0xff] %v10484_v58  ;;  %v8070_v16 = vpop.f32.mrb[173].mxu0  ;;  %v8268_v27 = vpop.f32.mrb[173].mxu1 }
 0x2b6   : > { %v10490_v22 = vpop.f32.mrb[174].mxu0  ;;  %v10492_v15 = vpop.f32.mrb[174].mxu1 }
 0x2b7   : > { %11523 = vst [vmem:[#allocation129_spill] sm:$0xff] %v10490_v22  ;;  %11524 = vst [vmem:[#allocation130_spill] sm:$0xff] %v10492_v15  ;;  %v8071_v2 = vpop.f32.mrb[175].mxu0  ;;  %v8269_v34 = vpop.f32.mrb[175].mxu1 }
 0x2b8   : > { %v8858_v34 = vld [vmem:[%s9402_s4 + $0x3c0] sm:$0xff]  }
 0x2b9   : > { %8377 = vmatmul.mubr.msk.bf16.gmra.mrb[24].mxu0 %vm2130_vm3, %v8856_v39  ;;  %8575 = vmatmul.mubr.msk.bf16.gmra.mrb[24].mxu1 %vm2130_vm3, %v8857_v4  ;;  %v8859_v39 = vld [vmem:[%s9402_s4 + $0x548] sm:$0xff]  }
 0x2ba   : > { %8380 = vmatprep.mubr.msk.bf16.mxu0 %vm8939_vm2, %v11404_v6  ;;  %8578 = vmatprep.mubr.msk.bf16.mxu1 %vm8939_vm2, %v11404_v6 }
 0x2bc   : > { %v10502_v16 = vpop.f32.mrb[176].mxu0  ;;  %v10504_v27 = vpop.f32.mrb[176].mxu1 }
 0x2bd   : > { %11525 = vst [vmem:[#allocation131_spill] sm:$0xff] %v10502_v16  ;;  %11526 = vst [vmem:[#allocation132_spill] sm:$0xff] %v10504_v27  ;;  %v8074_v46 = vpop.f32.mrb[177].mxu0  ;;  %v8272_v2 = vpop.f32.mrb[177].mxu1 }
 0x2be   : > { %v10510_v4 = vpop.f32.mrb[178].mxu0  ;;  %v10512_v15 = vpop.f32.mrb[178].mxu1 }
 0x2bf   : > { %11527 = vst [vmem:[#allocation133_spill] sm:$0xff] %v10510_v4  ;;  %11528 = vst [vmem:[#allocation134_spill] sm:$0xff] %v10512_v15  ;;  %v8075_v58 = vpop.f32.mrb[179].mxu0  ;;  %v8273_v10 = vpop.f32.mrb[179].mxu1 }
 0x2c0   : > { %v8860_v10 = vld [vmem:[%s9402_s4 + $0x3c8] sm:$0xff]  }
 0x2c1   : > { %8381 = vmatmul.mubr.msk.bf16.gmra.mrb[28].mxu0 %vm2130_vm3, %v8858_v34  ;;  %8579 = vmatmul.mubr.msk.bf16.gmra.mrb[28].mxu1 %vm2130_vm3, %v8859_v39  ;;  %v8861_v34 = vld [vmem:[%s9402_s4 + $0x550] sm:$0xff]  }
 0x2c2   : > { %8384 = vmatprep.mubr.msk.bf16.mxu0 %vm8939_vm2, %v11404_v6  ;;  %8582 = vmatprep.mubr.msk.bf16.mxu1 %vm8939_vm2, %v11404_v6 }
 0x2c4   : > { %v10522_v46 = vpop.f32.mrb[180].mxu0  ;;  %v10524_v2 = vpop.f32.mrb[180].mxu1 }
 0x2c5   : > { %11529 = vst [vmem:[#allocation135_spill] sm:$0xff] %v10522_v46  ;;  %11530 = vst [vmem:[#allocation136_spill] sm:$0xff] %v10524_v2  ;;  %v8078_v22 = vpop.f32.mrb[181].mxu0  ;;  %v8276_v58 = vpop.f32.mrb[181].mxu1 }
 0x2c6   : > { %v10530_v39 = vpop.f32.mrb[182].mxu0  ;;  %v10532_v15 = vpop.f32.mrb[182].mxu1 }
 0x2c7   : > { %11531 = vst [vmem:[#allocation137_spill] sm:$0xff] %v10530_v39  ;;  %11532 = vst [vmem:[#allocation138_spill] sm:$0xff] %v10532_v15  ;;  %v8079_v27 = vpop.f32.mrb[183].mxu0  ;;  %v8277_v16 = vpop.f32.mrb[183].mxu1 }
 0x2c8   : > { %v8862_v16 = vld [vmem:[%s9402_s4 + $0x3d0] sm:$0xff]  }
 0x2c9   : > { %8385 = vmatmul.mubr.msk.bf16.gmra.mrb[32].mxu0 %vm2130_vm3, %v8860_v10  ;;  %8583 = vmatmul.mubr.msk.bf16.gmra.mrb[32].mxu1 %vm2130_vm3, %v8861_v34  ;;  %v8863_v10 = vld [vmem:[%s9402_s4 + $0x558] sm:$0xff]  }
 0x2ca   : > { %8388 = vmatprep.mubr.msk.bf16.mxu0 %vm8939_vm2, %v11404_v6  ;;  %8586 = vmatprep.mubr.msk.bf16.mxu1 %vm8939_vm2, %v11404_v6 }
 0x2cc   : > { %v10542_v22 = vpop.f32.mrb[184].mxu0  ;;  %v10544_v58 = vpop.f32.mrb[184].mxu1 }
 0x2cd   : > { %11533 = vst [vmem:[#allocation139_spill] sm:$0xff] %v10542_v22  ;;  %11534 = vst [vmem:[#allocation140_spill] sm:$0xff] %v10544_v58  ;;  %v8082_v4 = vpop.f32.mrb[185].mxu0  ;;  %v8280_v27 = vpop.f32.mrb[185].mxu1 }
 0x2ce   : > { %v10550_v34 = vpop.f32.mrb[186].mxu0  ;;  %v10552_v15 = vpop.f32.mrb[186].mxu1 }
 0x2cf   : > { %11535 = vst [vmem:[#allocation141_spill] sm:$0xff] %v10550_v34  ;;  %11536 = vst [vmem:[#allocation142_spill] sm:$0xff] %v10552_v15  ;;  %v8083_v2 = vpop.f32.mrb[187].mxu0  ;;  %v8281_v46 = vpop.f32.mrb[187].mxu1 }
 0x2d0   : > { %v8864_v46 = vld [vmem:[%s9402_s4 + $0x3d8] sm:$0xff]  }
 0x2d1   : > { %8389 = vmatmul.mubr.msk.bf16.gmra.mrb[36].mxu0 %vm2130_vm3, %v8862_v16  ;;  %8587 = vmatmul.mubr.msk.bf16.gmra.mrb[36].mxu1 %vm2130_vm3, %v8863_v10  ;;  %v8865_v16 = vld [vmem:[%s9402_s4 + $0x560] sm:$0xff]  }
 0x2d2   : > { %8392 = vmatprep.mubr.msk.bf16.mxu0 %vm8939_vm2, %v11404_v6  ;;  %8590 = vmatprep.mubr.msk.bf16.mxu1 %vm8939_vm2, %v11404_v6 }
 0x2d4   : > { %v10562_v4 = vpop.f32.mrb[188].mxu0  ;;  %v10564_v27 = vpop.f32.mrb[188].mxu1 }
 0x2d5   : > { %11537 = vst [vmem:[#allocation143_spill] sm:$0xff] %v10562_v4  ;;  %11538 = vst [vmem:[#allocation144_spill] sm:$0xff] %v10564_v27  ;;  %v8086_v39 = vpop.f32.mrb[189].mxu0  ;;  %v8284_v2 = vpop.f32.mrb[189].mxu1 }
 0x2d6   : > { %v10570_v10 = vpop.f32.mrb[190].mxu0  ;;  %v10572_v15 = vpop.f32.mrb[190].mxu1 }
 0x2d7   : > { %11539 = vst [vmem:[#allocation145_spill] sm:$0xff] %v10570_v10  ;;  %11540 = vst [vmem:[#allocation146_spill] sm:$0xff] %v10572_v15  ;;  %v8087_v58 = vpop.f32.mrb[191].mxu0  ;;  %v8285_v22 = vpop.f32.mrb[191].mxu1 }
 0x2d9   : > { %8393 = vmatmul.mubr.msk.bf16.gmra.mrb[40].mxu0 %vm2130_vm3, %v8864_v46  ;;  %8591 = vmatmul.mubr.msk.bf16.gmra.mrb[40].mxu1 %vm2130_vm3, %v8865_v16  ;;  %v8867_v46 = vld [vmem:[%s9402_s4 + $0x568] sm:$0xff]  }
 0x2da   : > { %8396 = vmatprep.mubr.msk.bf16.mxu0 %vm8939_vm2, %v11404_v6  ;;  %8594 = vmatprep.mubr.msk.bf16.mxu1 %vm8939_vm2, %v11404_v6 }
 0x2dc   : > { %v10582_v39 = vpop.f32.mrb[192].mxu0  ;;  %v10584_v2 = vpop.f32.mrb[192].mxu1 }
 0x2dd   : > { %11541 = vst [vmem:[#allocation147_spill] sm:$0xff] %v10582_v39  ;;  %11542 = vst [vmem:[#allocation148_spill] sm:$0xff] %v10584_v2  ;;  %v8090_v58 = vpop.f32.mrb[193].mxu0  ;;  %v8288_v22 = vpop.f32.mrb[193].mxu1 }
 0x2de   : > { %v10590_v15 = vpop.f32.mrb[194].mxu0  ;;  %v10592_v16 = vpop.f32.mrb[194].mxu1 }
 0x2df   : > { %11543 = vst [vmem:[#allocation149_spill] sm:$0xff] %v10590_v15  ;;  %11544 = vst [vmem:[#allocation150_spill] sm:$0xff] %v10592_v16  ;;  %v8091_v27 = vpop.f32.mrb[195].mxu0  ;;  %v8289_v4 = vpop.f32.mrb[195].mxu1  ;;  %v11545_v15 = vmax.f32 %v9622_v0, %v9624_v1 }
 0x2e0   : > { %v8868_v27 = vld [vmem:[%s9402_s4 + $0x3e8] sm:$0xff]   ;;  %v8869_v4 = vld [vmem:[%s9402_s4 + $0x570] sm:$0xff]  }
 0x2e1   : > { %8397 = vmatmul.mubr.msk.bf16.gmra.mrb[44].mxu0 %vm2130_vm3, %v8866_v51  ;;  %8595 = vmatmul.mubr.msk.bf16.gmra.mrb[44].mxu1 %vm2130_vm3, %v8867_v46  ;;  %v10609_v51 = vld [vmem:[%s11244_s2] ss:$0 sm:$0xff] }
 0x2e2   : > { %8400 = vmatprep.mubr.msk.bf16.mxu0 %vm8939_vm2, %v11404_v6  ;;  %8598 = vmatprep.mubr.msk.bf16.mxu1 %vm8939_vm2, %v11404_v6 }
 0x2e4   : > { %v4249_v58 = vpop.f32.mrb[196].mxu0  ;;  %v5165_v22 = vpop.f32.mrb[196].mxu1 }
 0x2e5   : > { %v5556_v34 = vmax.f32 %v4249_v58, %v5165_v22  ;;  %v8294_v2 = vpop.f32.mrb[197].mxu0  ;;  %v8492_v10 = vpop.f32.mrb[197].mxu1 }
 0x2e6   : > { %v4252_v46 = vpop.f32.mrb[198].mxu0  ;;  %v5168_v16 = vpop.f32.mrb[198].mxu1  ;;  %v11546_v2 = vmax.f32 %v9630_v8, %v9632_v9 }
 0x2e7   : > { %v5654_v39 = vmax.f32 %v11545_v15, %v5556_v34  ;;  %v5557_v3 = vmax.f32 %v4252_v46, %v5168_v16  ;;  %v8295_v24 = vpop.f32.mrb[199].mxu0  ;;  %v8493_v40 = vpop.f32.mrb[199].mxu1  ;;  %v8870_v34 = vld [vmem:[%s9402_s4 + $0x3f0] sm:$0xff]  }
 0x2e9   : > { %v5759_v10 = vadd.f32 %v10609_v51, %v5654_v39  ;;  %v5655_v58 = vmax.f32 %v11546_v2, %v5557_v3  ;;  %8401 = vmatmul.mubr.msk.bf16.gmra.mrb[48].mxu0 %vm2130_vm3, %v8868_v27  ;;  %8599 = vmatmul.mubr.msk.bf16.gmra.mrb[48].mxu1 %vm2130_vm3, %v8869_v4  ;;  %v8871_v39 = vld [vmem:[%s9402_s4 + $0x578] sm:$0xff]   ;;  %v11547_v4 = vmax.f32 %v9642_v13, %v9644_v14 }
 0x2ea   : > { %8404 = vmatprep.mubr.msk.bf16.mxu0 %vm8939_vm2, %v11404_v6  ;;  %8602 = vmatprep.mubr.msk.bf16.mxu1 %vm8939_vm2, %v11404_v6 }
 0x2eb   : > { %v5760_v0 = vadd.f32 %v10609_v51, %v5655_v58  ;;  %v5857_v40 = vmax.f32 %v5759_v10, 0.0 }
 0x2ec   : > { %v4257_v1 = vpop.f32.mrb[200].mxu0  ;;  %v5173_v15 = vpop.f32.mrb[200].mxu1 }
 0x2ed   : > { %v5858_v24 = vmax.f32 %v5760_v0, 0.0  ;;  %v5558_v8 = vmax.f32 %v4257_v1, %v5173_v15  ;;  %v8298_v9 = vpop.f32.mrb[201].mxu0  ;;  %v8496_v3 = vpop.f32.mrb[201].mxu1  ;;  %v11548_v1 = vmax.f32 %v9650_v20, %v9652_v21 }
 0x2ee   : > { %v4260_v16 = vpop.f32.mrb[202].mxu0  ;;  %v5176_v22 = vpop.f32.mrb[202].mxu1  ;;  %v8872_v3 = vld [vmem:[%s9402_s4 + $0x3f8] sm:$0xff]  }
 0x2ef   : > { %v7404_v27 = vpack.c.bf16 %v5858_v24, %v5857_v40  ;;  %v5656_v46 = vmax.f32 %v11547_v4, %v5558_v8  ;;  %v5559_v10 = vmax.f32 %v4260_v16, %v5176_v22  ;;  %v8299_v2 = vpop.f32.mrb[203].mxu0  ;;  %v8497_v58 = vpop.f32.mrb[203].mxu1 }
 0x2f1   : > { %7405 = vst [vmem:[%s10630_s11] sm:$0xff] %v7404_v27   ;;  %v5761_v0 = vadd.f32 %v10609_v51, %v5656_v46  ;;  %v5657_v15 = vmax.f32 %v11548_v1, %v5559_v10  ;;  %8405 = vmatmul.mubr.msk.bf16.gmra.mrb[52].mxu0 %vm2130_vm3, %v8870_v34  ;;  %8603 = vmatmul.mubr.msk.bf16.gmra.mrb[52].mxu1 %vm2130_vm3, %v8871_v39  ;;  %v8873_v34 = vld [vmem:[%s9402_s4 + $0x580] sm:$0xff]  }
 0x2f2   : > { %8408 = vmatprep.mubr.msk.bf16.mxu0 %vm8939_vm2, %v11404_v6  ;;  %8606 = vmatprep.mubr.msk.bf16.mxu1 %vm8939_vm2, %v11404_v6  ;;  %v11549_v27 = vmax.f32 %v9662_v25, %v9664_v26 }
 0x2f3   : > { %v5762_v13 = vadd.f32 %v10609_v51, %v5657_v15  ;;  %v5859_v24 = vmax.f32 %v5761_v0, 0.0  ;;  %v11550_v0 = vmax.f32 %v9670_v32, %v9672_v33 }
 0x2f4   : > { %v4265_v14 = vpop.f32.mrb[204].mxu0  ;;  %v5181_v40 = vpop.f32.mrb[204].mxu1 }
 0x2f5   : > { %v5860_v8 = vmax.f32 %v5762_v13, 0.0  ;;  %v5560_v9 = vmax.f32 %v4265_v14, %v5181_v40  ;;  %v8302_v20 = vpop.f32.mrb[205].mxu0  ;;  %v8500_v21 = vpop.f32.mrb[205].mxu1 }
 0x2f6   : > { %v4268_v16 = vpop.f32.mrb[206].mxu0  ;;  %v5184_v39 = vpop.f32.mrb[206].mxu1 }
 0x2f7   : > { %v7409_v22 = vpack.c.bf16 %v5860_v8, %v5859_v24  ;;  %v5658_v4 = vmax.f32 %v11549_v27, %v5560_v9  ;;  %v5561_v46 = vmax.f32 %v4268_v16, %v5184_v39  ;;  %v8303_v10 = vpop.f32.mrb[207].mxu0  ;;  %v8501_v2 = vpop.f32.mrb[207].mxu1  ;;  %v8874_v24 = vld [vmem:[%s9402_s4 + $0x400] sm:$0xff]   ;;  %v8875_v8 = vld [vmem:[%s9402_s4 + $0x588] sm:$0xff]  }
 0x2f9   : > { %7646 = vst [vmem:[%s10630_s11 + $0x8] sm:$0xff] %v7409_v22   ;;  %v5763_v58 = vadd.f32 %v10609_v51, %v5658_v4  ;;  %v5659_v1 = vmax.f32 %v11550_v0, %v5561_v46  ;;  %8409 = vmatmul.mubr.msk.bf16.gmra.mrb[56].mxu0 %vm2130_vm3, %v8872_v3  ;;  %8607 = vmatmul.mubr.msk.bf16.gmra.mrb[56].mxu1 %vm2130_vm3, %v8873_v34 }
 0x2fa   : > { %8412 = vmatprep.mubr.msk.bf16.mxu0 %vm8939_vm2, %v11404_v6  ;;  %8610 = vmatprep.mubr.msk.bf16.mxu1 %vm8939_vm2, %v11404_v6  ;;  %v11551_v3 = vmax.f32 %v9682_v37, %v9684_v38  ;;  %v11552_v4 = vmax.f32 %v9690_v44, %v9692_v45 }
 0x2fb   : > { %v5764_v25 = vadd.f32 %v10609_v51, %v5659_v1  ;;  %v5861_v13 = vmax.f32 %v5763_v58, 0.0  ;;  %v8876_v1 = vld [vmem:[%s9402_s4 + $0x408] sm:$0xff]  }
 0x2fc   : > { %v4273_v26 = vpop.f32.mrb[208].mxu0  ;;  %v5189_v15 = vpop.f32.mrb[208].mxu1 }
 0x2fd   : > { %v5862_v14 = vmax.f32 %v5764_v25, 0.0  ;;  %v5562_v40 = vmax.f32 %v4273_v26, %v5189_v15  ;;  %v8306_v32 = vpop.f32.mrb[209].mxu0  ;;  %v8504_v33 = vpop.f32.mrb[209].mxu1  ;;  %v8877_v25 = vld [vmem:[%s9402_s4 + $0x590] sm:$0xff]  }
 0x2fe   : > { %v4276_v9 = vpop.f32.mrb[210].mxu0  ;;  %v5192_v20 = vpop.f32.mrb[210].mxu1 }
 0x2ff   : > { %v7414_v21 = vpack.c.bf16 %v5862_v14, %v5861_v13  ;;  %v5660_v34 = vmax.f32 %v11551_v3, %v5562_v40  ;;  %v5563_v16 = vmax.f32 %v4276_v9, %v5192_v20  ;;  %v8307_v39 = vpop.f32.mrb[211].mxu0  ;;  %v8505_v22 = vpop.f32.mrb[211].mxu1  ;;  %v11553_v14 = vmax.f32 %v9702_v49, %v9704_v50 }
 0x300   : > { %v11554_v9 = vmax.f32 %v9710_v56, %v9712_v57  ;;  %v8878_v39 = vld [vmem:[%s9402_s4 + $0x410] sm:$0xff]   ;;  %v8879_v22 = vld [vmem:[%s9402_s4 + $0x598] sm:$0xff]  }
 0x301   : > { %7647 = vst [vmem:[%s10630_s11 + $0x10] sm:$0xff] %v7414_v21   ;;  %v5765_v27 = vadd.f32 %v10609_v51, %v5660_v34  ;;  %v5661_v46 = vmax.f32 %v11552_v4, %v5563_v16  ;;  %8413 = vmatmul.mubr.msk.bf16.gmra.mrb[60].mxu0 %vm2130_vm3, %v8874_v24  ;;  %8611 = vmatmul.mubr.msk.bf16.gmra.mrb[60].mxu1 %vm2130_vm3, %v8875_v8 }
 0x302   : > { %8416 = vmatprep.mubr.msk.bf16.mxu0 %vm8939_vm2, %v11404_v6  ;;  %8614 = vmatprep.mubr.msk.bf16.mxu1 %vm8939_vm2, %v11404_v6 }
 0x303   : > { %v5766_v37 = vadd.f32 %v10609_v51, %v5661_v46  ;;  %v5863_v2 = vmax.f32 %v5765_v27, 0.0 }
 0x304   : > { %v4281_v38 = vpop.f32.mrb[212].mxu0  ;;  %v5197_v10 = vpop.f32.mrb[212].mxu1 }
 0x305   : > { %v5864_v58 = vmax.f32 %v5766_v37, 0.0  ;;  %v5564_v0 = vmax.f32 %v4281_v38, %v5197_v10  ;;  %v8310_v44 = vpop.f32.mrb[213].mxu0  ;;  %v8508_v45 = vpop.f32.mrb[213].mxu1  ;;  %v11555_v37 = vmax.f32 %v9722_v61, %v9724_v62 }
 0x306   : > { %v4284_v26 = vpop.f32.mrb[214].mxu0  ;;  %v5200_v15 = vpop.f32.mrb[214].mxu1  ;;  %v11556_v44 = vmax.f32 %v9730_v11, %v9732_v12 }
 0x307   : > { %v7419_v13 = vpack.c.bf16 %v5864_v58, %v5863_v2  ;;  %v5662_v40 = vmax.f32 %v11553_v14, %v5564_v0  ;;  %v5565_v32 = vmax.f32 %v4284_v26, %v5200_v15  ;;  %v8311_v33 = vpop.f32.mrb[215].mxu0  ;;  %v8509_v24 = vpop.f32.mrb[215].mxu1  ;;  %v8881_v14 = vld [vmem:[%s9402_s4 + $0x5a0] sm:$0xff]  }
 0x308   : > { %v11557_v24 = vmax.f32 %v9742_v19, %v9744_v23 }
 0x309   : > { %7648 = vst [vmem:[%s10630_s11 + $0x18] sm:$0xff] %v7419_v13   ;;  %v5767_v8 = vadd.f32 %v10609_v51, %v5662_v40  ;;  %v5663_v20 = vmax.f32 %v11554_v9, %v5565_v32  ;;  %8417 = vmatmul.mubr.msk.bf16.gmra.mrb[64].mxu0 %vm2130_vm3, %v8876_v1  ;;  %8615 = vmatmul.mubr.msk.bf16.gmra.mrb[64].mxu1 %vm2130_vm3, %v8877_v25  ;;  %v8880_v13 = vld [vmem:[%s9402_s4 + $0x418] sm:$0xff]  }
 0x30a   : > { %8420 = vmatprep.mubr.msk.bf16.mxu0 %vm8939_vm2, %v11404_v6  ;;  %8618 = vmatprep.mubr.msk.bf16.mxu1 %vm8939_vm2, %v11404_v6 }
 0x30b   : > { %v5768_v49 = vadd.f32 %v10609_v51, %v5663_v20  ;;  %v5865_v3 = vmax.f32 %v5767_v8, 0.0 }
 0x30c   : > { %v4289_v50 = vpop.f32.mrb[216].mxu0  ;;  %v5205_v21 = vpop.f32.mrb[216].mxu1 }
 0x30d   : > { %v5866_v34 = vmax.f32 %v5768_v49, 0.0  ;;  %v5566_v16 = vmax.f32 %v4289_v50, %v5205_v21  ;;  %v8314_v56 = vpop.f32.mrb[217].mxu0  ;;  %v8512_v57 = vpop.f32.mrb[217].mxu1  ;;  %v11558_v21 = vmax.f32 %v9750_v35, %v9752_v36 }
 0x30e   : > { %v4292_v27 = vpop.f32.mrb[218].mxu0  ;;  %v5208_v4 = vpop.f32.mrb[218].mxu1 }
 0x30f   : > { %v7424_v46 = vpack.c.bf16 %v5866_v34, %v5865_v3  ;;  %v5664_v38 = vmax.f32 %v11555_v37, %v5566_v16  ;;  %v5567_v10 = vmax.f32 %v4292_v27, %v5208_v4  ;;  %v8315_v2 = vpop.f32.mrb[219].mxu0  ;;  %v8513_v58 = vpop.f32.mrb[219].mxu1  ;;  %v11559_v37 = vmax.f32 %v9762_v43, %v9764_v47 }
 0x311   : > { %7649 = vst [vmem:[%s10630_s11 + $0x20] sm:$0xff] %v7424_v46   ;;  %v5769_v0 = vadd.f32 %v10609_v51, %v5664_v38  ;;  %v5665_v45 = vmax.f32 %v11556_v44, %v5567_v10  ;;  %8421 = vmatmul.mubr.msk.bf16.gmra.mrb[68].mxu0 %vm2130_vm3, %v8878_v39  ;;  %8619 = vmatmul.mubr.msk.bf16.gmra.mrb[68].mxu1 %vm2130_vm3, %v8879_v22  ;;  %v8882_v39 = vld [vmem:[%s9402_s4 + $0x420] sm:$0xff]   ;;  %v8883_v22 = vld [vmem:[%s9402_s4 + $0x5a8] sm:$0xff]  }
 0x312   : > { %8424 = vmatprep.mubr.msk.bf16.mxu0 %vm8939_vm2, %v11404_v6  ;;  %8622 = vmatprep.mubr.msk.bf16.mxu1 %vm8939_vm2, %v11404_v6  ;;  %v11560_v44 = vmax.f32 %v9770_v59, %v9772_v60 }
 0x313   : > { %v5770_v61 = vadd.f32 %v10609_v51, %v5665_v45  ;;  %v5867_v25 = vmax.f32 %v5769_v0, 0.0 }
 0x314   : > { %v4297_v62 = vpop.f32.mrb[220].mxu0  ;;  %v5213_v1 = vpop.f32.mrb[220].mxu1 }
 0x315   : > { %v5868_v26 = vmax.f32 %v5770_v61, 0.0  ;;  %v5568_v15 = vmax.f32 %v4297_v62, %v5213_v1  ;;  %v8318_v11 = vpop.f32.mrb[221].mxu0  ;;  %v8516_v12 = vpop.f32.mrb[221].mxu1 }
 0x316   : > { %v4300_v40 = vpop.f32.mrb[222].mxu0  ;;  %v5216_v32 = vpop.f32.mrb[222].mxu1 }
 0x317   : > { %v7429_v33 = vpack.c.bf16 %v5868_v26, %v5867_v25  ;;  %v5666_v8 = vmax.f32 %v11557_v24, %v5568_v15  ;;  %v5569_v9 = vmax.f32 %v4300_v40, %v5216_v32  ;;  %v8319_v20 = vpop.f32.mrb[223].mxu0  ;;  %v8517_v49 = vpop.f32.mrb[223].mxu1  ;;  %v8884_v26 = vld [vmem:[%s9402_s4 + $0x428] sm:$0xff]   ;;  %v8885_v15 = vld [vmem:[%s9402_s4 + $0x5b0] sm:$0xff]  }
 0x319   : > { %7650 = vst [vmem:[%s10630_s11 + $0x28] sm:$0xff] %v7429_v33   ;;  %v5771_v50 = vadd.f32 %v10609_v51, %v5666_v8  ;;  %v5667_v3 = vmax.f32 %v11558_v21, %v5569_v9  ;;  %8425 = vmatmul.mubr.msk.bf16.gmra.mrb[72].mxu0 %vm2130_vm3, %v8880_v13  ;;  %8623 = vmatmul.mubr.msk.bf16.gmra.mrb[72].mxu1 %vm2130_vm3, %v8881_v14 }
 0x31a   : > { %8428 = vmatprep.mubr.msk.bf16.mxu0 %vm8939_vm2, %v11404_v6  ;;  %8626 = vmatprep.mubr.msk.bf16.mxu1 %vm8939_vm2, %v11404_v6  ;;  %v11561_v14 = vmax.f32 %v9782_v7, %v9784_v17  ;;  %v11562_v9 = vmax.f32 %v9790_v41, %v9792_v42 }
 0x31b   : > { %v5772_v19 = vadd.f32 %v10609_v51, %v5667_v3  ;;  %v5869_v16 = vmax.f32 %v5771_v50, 0.0 }
 0x31c   : > { %v4305_v23 = vpop.f32.mrb[224].mxu0  ;;  %v5221_v34 = vpop.f32.mrb[224].mxu1 }
 0x31d   : > { %v5870_v56 = vmax.f32 %v5772_v19, 0.0  ;;  %v5570_v57 = vmax.f32 %v4305_v23, %v5221_v34  ;;  %v8322_v35 = vpop.f32.mrb[225].mxu0  ;;  %v8520_v36 = vpop.f32.mrb[225].mxu1  ;;  %v8886_v19 = vld [vmem:[%s9402_s4 + $0x430] sm:$0xff]   ;;  %v8887_v23 = vld [vmem:[%s9402_s4 + $0x5b8] sm:$0xff]  }
 0x31e   : > { %v4308_v27 = vpop.f32.mrb[226].mxu0  ;;  %v5224_v4 = vpop.f32.mrb[226].mxu1 }
 0x31f   : > { %v7434_v46 = vpack.c.bf16 %v5870_v56, %v5869_v16  ;;  %v5668_v38 = vmax.f32 %v11559_v37, %v5570_v57  ;;  %v5571_v10 = vmax.f32 %v4308_v27, %v5224_v4  ;;  %v8323_v2 = vpop.f32.mrb[227].mxu0  ;;  %v8521_v58 = vpop.f32.mrb[227].mxu1  ;;  %v11563_v57 = vmax.f32 %v9802_v55, %v9804_v5 }
 0x320   : > { %v11564_v4 = vmax.f32 %v9810_v31, %v9812_v54  ;;  %v8888_v58 = vld [vmem:[%s9402_s4 + $0x438] sm:$0xff]  }
 0x321   : > { %7651 = vst [vmem:[%s10630_s11 + $0x30] sm:$0xff] %v7434_v46   ;;  %v5773_v0 = vadd.f32 %v10609_v51, %v5668_v38  ;;  %v5669_v45 = vmax.f32 %v11560_v44, %v5571_v10  ;;  %8429 = vmatmul.mubr.msk.bf16.gmra.mrb[76].mxu0 %vm2130_vm3, %v8882_v39  ;;  %8627 = vmatmul.mubr.msk.bf16.gmra.mrb[76].mxu1 %vm2130_vm3, %v8883_v22 }
 0x322   : > { %8432 = vmatprep.mubr.msk.bf16.mxu0 %vm8939_vm2, %v11404_v6  ;;  %8630 = vmatprep.mubr.msk.bf16.mxu1 %vm8939_vm2, %v11404_v6 }
 0x323   : > { %v5774_v43 = vadd.f32 %v10609_v51, %v5669_v45  ;;  %v5871_v62 = vmax.f32 %v5773_v0, 0.0  ;;  %v8889_v0 = vld [vmem:[%s9402_s4 + $0x5c0] sm:$0xff]  }
 0x324   : > { %v4313_v47 = vpop.f32.mrb[228].mxu0  ;;  %v5229_v61 = vpop.f32.mrb[228].mxu1 }
 0x325   : > { %v5872_v1 = vmax.f32 %v5774_v43, 0.0  ;;  %v5572_v25 = vmax.f32 %v4313_v47, %v5229_v61  ;;  %v8326_v59 = vpop.f32.mrb[229].mxu0  ;;  %v8524_v60 = vpop.f32.mrb[229].mxu1  ;;  %v11565_v47 = vmax.f32 %v9822_v28, %v9824_v29 }
 0x326   : > { %v4316_v11 = vpop.f32.mrb[230].mxu0  ;;  %v5232_v12 = vpop.f32.mrb[230].mxu1  ;;  %v11566_v60 = vmax.f32 %v9830_v30, %v9832_v48 }
 0x327   : > { %v7439_v13 = vpack.c.bf16 %v5872_v1, %v5871_v62  ;;  %v5670_v40 = vmax.f32 %v11561_v14, %v5572_v25  ;;  %v5573_v32 = vmax.f32 %v4316_v11, %v5232_v12  ;;  %v8327_v33 = vpop.f32.mrb[231].mxu0  ;;  %v8525_v24 = vpop.f32.mrb[231].mxu1  ;;  %v8890_v14 = vld [vmem:[%s9402_s4 + $0x440] sm:$0xff]  }
 0x329   : > { %7652 = vst [vmem:[%s10630_s11 + $0x38] sm:$0xff] %v7439_v13   ;;  %v5775_v8 = vadd.f32 %v10609_v51, %v5670_v40  ;;  %v5671_v20 = vmax.f32 %v11562_v9, %v5573_v32  ;;  %8433 = vmatmul.mubr.msk.bf16.gmra.mrb[80].mxu0 %vm2130_vm3, %v8884_v26  ;;  %8631 = vmatmul.mubr.msk.bf16.gmra.mrb[80].mxu1 %vm2130_vm3, %v8885_v15  ;;  %v8891_v40 = vld [vmem:[%s9402_s4 + $0x5c8] sm:$0xff]  }
 0x32a   : > { %8436 = vmatprep.mubr.msk.bf16.mxu0 %vm8939_vm2, %v11404_v6  ;;  %8634 = vmatprep.mubr.msk.bf16.mxu1 %vm8939_vm2, %v11404_v6 }
 0x32b   : > { %v5776_v7 = vadd.f32 %v10609_v51, %v5671_v20  ;;  %v5873_v50 = vmax.f32 %v5775_v8, 0.0  ;;  %v11567_v8 = vmax.f32 %v9842_v52, %v9844_v18 }
 0x32c   : > { %v4321_v17 = vpop.f32.mrb[232].mxu0  ;;  %v5237_v49 = vpop.f32.mrb[232].mxu1 }
 0x32d   : > { %v5874_v21 = vmax.f32 %v5776_v7, 0.0  ;;  %v5574_v3 = vmax.f32 %v4321_v17, %v5237_v49  ;;  %v8330_v41 = vpop.f32.mrb[233].mxu0  ;;  %v8528_v42 = vpop.f32.mrb[233].mxu1 }
 0x32e   : > { %v4324_v34 = vpop.f32.mrb[234].mxu0  ;;  %v5240_v16 = vpop.f32.mrb[234].mxu1 }
 0x32f   : > { %v7444_v56 = vpack.c.bf16 %v5874_v21, %v5873_v50  ;;  %v5672_v35 = vmax.f32 %v11563_v57, %v5574_v3  ;;  %v5575_v36 = vmax.f32 %v4324_v34, %v5240_v16  ;;  %v8331_v39 = vpop.f32.mrb[235].mxu0  ;;  %v8529_v22 = vpop.f32.mrb[235].mxu1  ;;  %v11568_v50 = vmax.f32 %v9850_v53, %v9852_v63  ;;  %v8893_v34 = vld [vmem:[%s9402_s4 + $0x5d0] sm:$0xff]  }
 0x331   : > { %7653 = vst [vmem:[%s10630_s11 + $0x40] sm:$0xff] %v7444_v56   ;;  %v5777_v27 = vadd.f32 %v10609_v51, %v5672_v35  ;;  %v5673_v46 = vmax.f32 %v11564_v4, %v5575_v36  ;;  %8437 = vmatmul.mubr.msk.bf16.gmra.mrb[84].mxu0 %vm2130_vm3, %v8886_v19  ;;  %8635 = vmatmul.mubr.msk.bf16.gmra.mrb[84].mxu1 %vm2130_vm3, %v8887_v23  ;;  %v8892_v23 = vld [vmem:[%s9402_s4 + $0x448] sm:$0xff]   ;;  %v11569_v35 = vld [vmem:[#allocation3_spill] sm:$0xff] }
 0x332   : > { %8440 = vmatprep.mubr.msk.bf16.mxu0 %vm8939_vm2, %v11404_v6  ;;  %8638 = vmatprep.mubr.msk.bf16.mxu1 %vm8939_vm2, %v11404_v6  ;;  %v11570_v36 = vld [vmem:[#allocation4_spill] sm:$0xff] }
 0x333   : > { %v5778_v55 = vadd.f32 %v10609_v51, %v5673_v46  ;;  %v5875_v38 = vmax.f32 %v5777_v27, 0.0  ;;  %v11571_v39 = vmax.f32 %v11569_v35, %v11570_v36 }
 0x334   : > { %v4329_v5 = vpop.f32.mrb[236].mxu0  ;;  %v5245_v37 = vpop.f32.mrb[236].mxu1 }
 0x335   : > { %v5876_v10 = vmax.f32 %v5778_v55, 0.0  ;;  %v5576_v2 = vmax.f32 %v4329_v5, %v5245_v37  ;;  %v8334_v31 = vpop.f32.mrb[237].mxu0  ;;  %v8532_v54 = vpop.f32.mrb[237].mxu1  ;;  %v11572_v5 = vld [vmem:[#allocation5_spill] sm:$0xff]  ;;  %v11573_v37 = vld [vmem:[#allocation6_spill] sm:$0xff] }
 0x336   : > { %v4332_v44 = vpop.f32.mrb[238].mxu0  ;;  %v5248_v45 = vpop.f32.mrb[238].mxu1 }
 0x337   : > { %v7449_v43 = vpack.c.bf16 %v5876_v10, %v5875_v38  ;;  %v5674_v61 = vmax.f32 %v11565_v47, %v5576_v2  ;;  %v5577_v62 = vmax.f32 %v4332_v44, %v5248_v45  ;;  %v8335_v1 = vpop.f32.mrb[239].mxu0  ;;  %v8533_v25 = vpop.f32.mrb[239].mxu1  ;;  %v11574_v38 = vmax.f32 %v11572_v5, %v11573_v37  ;;  %v8894_v47 = vld [vmem:[%s9402_s4 + $0x450] sm:$0xff]   ;;  %v8898_v5 = vld [vmem:[%s9402_s4 + $0x460] sm:$0xff]   ;;  %v8899_v37 = vld [vmem:[%s9402_s4 + $0x5e8] sm:$0xff]  }
 0x339   : > { %7654 = vst [vmem:[%s10630_s11 + $0x48] sm:$0xff] %v7449_v43   ;;  %v5779_v59 = vadd.f32 %v10609_v51, %v5674_v61  ;;  %v5675_v26 = vmax.f32 %v11566_v60, %v5577_v62  ;;  %8441 = vmatmul.mubr.msk.bf16.gmra.mrb[88].mxu0 %vm2130_vm3, %v8888_v58  ;;  %8639 = vmatmul.mubr.msk.bf16.gmra.mrb[88].mxu1 %vm2130_vm3, %v8889_v0  ;;  %v8895_v61 = vld [vmem:[%s9402_s4 + $0x5d8] sm:$0xff]   ;;  %v11576_v60 = vld [vmem:[#allocation8_spill] sm:$0xff] }
 0x33a   : > { %8444 = vmatprep.mubr.msk.bf16.mxu0 %vm8939_vm2, %v11404_v6  ;;  %8642 = vmatprep.mubr.msk.bf16.mxu1 %vm8939_vm2, %v11404_v6 }
 0x33b   : > { %v5780_v28 = vadd.f32 %v10609_v51, %v5675_v26  ;;  %v5877_v11 = vmax.f32 %v5779_v59, 0.0  ;;  %v11575_v59 = vld [vmem:[#allocation7_spill] sm:$0xff] }
 0x33c   : > { %v4337_v29 = vpop.f32.mrb[240].mxu0  ;;  %v5253_v15 = vpop.f32.mrb[240].mxu1  ;;  %v11577_v26 = vmax.f32 %v11575_v59, %v11576_v60 }
 0x33d   : > { %v5878_v12 = vmax.f32 %v5780_v28, 0.0  ;;  %v5578_v13 = vmax.f32 %v4337_v29, %v5253_v15  ;;  %v8338_v48 = vpop.f32.mrb[241].mxu0  ;;  %v8536_v30 = vpop.f32.mrb[241].mxu1 }
 0x33e   : > { %v4340_v32 = vpop.f32.mrb[242].mxu0  ;;  %v5256_v33 = vpop.f32.mrb[242].mxu1  ;;  %v11579_v48 = vld [vmem:[#allocation10_spill] sm:$0xff] }
 0x33f   : > { %v7454_v24 = vpack.c.bf16 %v5878_v12, %v5877_v11  ;;  %v5676_v9 = vmax.f32 %v11567_v8, %v5578_v13  ;;  %v5579_v20 = vmax.f32 %v4340_v32, %v5256_v33  ;;  %v8339_v7 = vpop.f32.mrb[243].mxu0  ;;  %v8537_v17 = vpop.f32.mrb[243].mxu1  ;;  %v11578_v13 = vld [vmem:[#allocation9_spill] sm:$0xff] }
 0x340   : > { %v11580_v30 = vmax.f32 %v11578_v13, %v11579_v48  ;;  %v8896_v17 = vld [vmem:[%s9402_s4 + $0x458] sm:$0xff]   ;;  %v8900_v13 = vld [vmem:[%s9402_s4 + $0x468] sm:$0xff]   ;;  %v8901_v48 = vld [vmem:[%s9402_s4 + $0x5f0] sm:$0xff]  }
 0x341   : > { %7655 = vst [vmem:[%s10630_s11 + $0x50] sm:$0xff] %v7454_v24   ;;  %v5781_v49 = vadd.f32 %v10609_v51, %v5676_v9  ;;  %v5677_v21 = vmax.f32 %v11568_v50, %v5579_v20  ;;  %8445 = vmatmul.mubr.msk.bf16.gmra.mrb[92].mxu0 %vm2130_vm3, %v8890_v14  ;;  %8643 = vmatmul.mubr.msk.bf16.gmra.mrb[92].mxu1 %vm2130_vm3, %v8891_v40 }
 0x342   : > { %8448 = vmatprep.mubr.msk.bf16.mxu0 %vm8939_vm2, %v11404_v6  ;;  %8646 = vmatprep.mubr.msk.bf16.mxu1 %vm8939_vm2, %v11404_v6 }
 0x343   : > { %v5782_v52 = vadd.f32 %v10609_v51, %v5677_v21  ;;  %v5879_v41 = vmax.f32 %v5781_v49, 0.0  ;;  %v8897_v49 = vld [vmem:[%s9402_s4 + $0x5e0] sm:$0xff]  }
 0x344   : > { %v4345_v18 = vpop.f32.mrb[244].mxu0  ;;  %v5261_v3 = vpop.f32.mrb[244].mxu1 }
 0x345   : > { %v5880_v42 = vmax.f32 %v5782_v52, 0.0  ;;  %v5580_v19 = vmax.f32 %v4345_v18, %v5261_v3  ;;  %v8342_v63 = vpop.f32.mrb[245].mxu0  ;;  %v8540_v53 = vpop.f32.mrb[245].mxu1  ;;  %v11581_v18 = vld [vmem:[#allocation11_spill] sm:$0xff]  ;;  %v11582_v3 = vld [vmem:[#allocation12_spill] sm:$0xff] }
 0x346   : > { %v4348_v16 = vpop.f32.mrb[246].mxu0  ;;  %v5264_v56 = vpop.f32.mrb[246].mxu1 }
 0x347   : > { %v7459_v57 = vpack.c.bf16 %v5880_v42, %v5879_v41  ;;  %v5678_v22 = vmax.f32 %v11571_v39, %v5580_v19  ;;  %v5581_v27 = vmax.f32 %v4348_v16, %v5264_v56  ;;  %v8343_v4 = vpop.f32.mrb[247].mxu0  ;;  %v8541_v46 = vpop.f32.mrb[247].mxu1  ;;  %v11583_v41 = vmax.f32 %v11581_v18, %v11582_v3  ;;  %v11585_v16 = vld [vmem:[#allocation14_spill] sm:$0xff] }
 0x349   : > { %7656 = vst [vmem:[%s10630_s11 + $0x58] sm:$0xff] %v7459_v57   ;;  %v5783_v55 = vadd.f32 %v10609_v51, %v5678_v22  ;;  %v5679_v10 = vmax.f32 %v11574_v38, %v5581_v27  ;;  %8449 = vmatmul.mubr.msk.bf16.gmra.mrb[96].mxu0 %vm2130_vm3, %v8892_v23  ;;  %8647 = vmatmul.mubr.msk.bf16.gmra.mrb[96].mxu1 %vm2130_vm3, %v8893_v34  ;;  %v11584_v34 = vld [vmem:[#allocation13_spill] sm:$0xff] }
 0x34a   : > { %8452 = vmatprep.mubr.msk.bf16.mxu0 %vm8939_vm2, %v11404_v6  ;;  %8650 = vmatprep.mubr.msk.bf16.mxu1 %vm8939_vm2, %v11404_v6  ;;  %v11586_v56 = vmax.f32 %v11584_v34, %v11585_v16  ;;  %v8902_v34 = vld [vmem:[%s9402_s4 + $0x470] sm:$0xff]   ;;  %v8903_v16 = vld [vmem:[%s9402_s4 + $0x5f8] sm:$0xff]  }
 0x34b   : > { %v5784_v2 = vadd.f32 %v10609_v51, %v5679_v10  ;;  %v5881_v58 = vmax.f32 %v5783_v55, 0.0 }
 0x34c   : > { %v4353_v31 = vpop.f32.mrb[248].mxu0  ;;  %v5269_v54 = vpop.f32.mrb[248].mxu1 }
 0x34d   : > { %v5882_v0 = vmax.f32 %v5784_v2, 0.0  ;;  %v5582_v44 = vmax.f32 %v4353_v31, %v5269_v54  ;;  %v8346_v45 = vpop.f32.mrb[249].mxu0  ;;  %v8544_v43 = vpop.f32.mrb[249].mxu1  ;;  %v11587_v31 = vld [vmem:[#allocation15_spill] sm:$0xff]  ;;  %v11588_v54 = vld [vmem:[#allocation16_spill] sm:$0xff] }
 0x34e   : > { %v4356_v62 = vpop.f32.mrb[250].mxu0  ;;  %v5272_v1 = vpop.f32.mrb[250].mxu1 }
 0x34f   : > { %v7464_v25 = vpack.c.bf16 %v5882_v0, %v5881_v58  ;;  %v5680_v28 = vmax.f32 %v11577_v26, %v5582_v44  ;;  %v5583_v29 = vmax.f32 %v4356_v62, %v5272_v1  ;;  %v8347_v15 = vpop.f32.mrb[251].mxu0  ;;  %v8545_v11 = vpop.f32.mrb[251].mxu1  ;;  %v11589_v58 = vmax.f32 %v11587_v31, %v11588_v54  ;;  %v11591_v62 = vld [vmem:[#allocation18_spill] sm:$0xff] }
 0x351   : > { %7657 = vst [vmem:[%s10630_s11 + $0x60] sm:$0xff] %v7464_v25   ;;  %v5785_v12 = vadd.f32 %v10609_v51, %v5680_v28  ;;  %v5681_v14 = vmax.f32 %v11580_v30, %v5583_v29  ;;  %8453 = vmatmul.mubr.msk.bf16.gmra.mrb[100].mxu0 %vm2130_vm3, %v8894_v47  ;;  %8651 = vmatmul.mubr.msk.bf16.gmra.mrb[100].mxu1 %vm2130_vm3, %v8895_v61  ;;  %v11590_v61 = vld [vmem:[#allocation17_spill] sm:$0xff] }
 0x352   : > { %8456 = vmatprep.mubr.msk.bf16.mxu0 %vm8939_vm2, %v11404_v6  ;;  %8654 = vmatprep.mubr.msk.bf16.mxu1 %vm8939_vm2, %v11404_v6  ;;  %v11592_v1 = vmax.f32 %v11590_v61, %v11591_v62  ;;  %v8904_v61 = vld [vmem:[%s9402_s4 + $0x478] sm:$0xff]   ;;  %v8905_v62 = vld [vmem:[%s9402_s4 + $0x600] sm:$0xff]  }
 0x353   : > { %v5786_v40 = vadd.f32 %v10609_v51, %v5681_v14  ;;  %v5883_v24 = vmax.f32 %v5785_v12, 0.0 }
 0x354   : > { %v4361_v32 = vpop.f32.mrb[252].mxu0  ;;  %v5277_v33 = vpop.f32.mrb[252].mxu1 }
 0x355   : > { %v5884_v8 = vmax.f32 %v5786_v40, 0.0  ;;  %v5584_v9 = vmax.f32 %v4361_v32, %v5277_v33  ;;  %v8350_v20 = vpop.f32.mrb[253].mxu0  ;;  %v8548_v7 = vpop.f32.mrb[253].mxu1  ;;  %v11593_v32 = vld [vmem:[#allocation19_spill] sm:$0xff]  ;;  %v11594_v33 = vld [vmem:[#allocation20_spill] sm:$0xff] }
 0x356   : > { %v4364_v50 = vpop.f32.mrb[254].mxu0  ;;  %v5280_v21 = vpop.f32.mrb[254].mxu1 }
 0x357   : > { %v7469_v52 = vpack.c.bf16 %v5884_v8, %v5883_v24  ;;  %v5682_v42 = vmax.f32 %v11583_v41, %v5584_v9  ;;  %v5585_v19 = vmax.f32 %v4364_v50, %v5280_v21  ;;  %v8351_v63 = vpop.f32.mrb[255].mxu0  ;;  %v8549_v53 = vpop.f32.mrb[255].mxu1  ;;  %v11595_v24 = vmax.f32 %v11593_v32, %v11594_v33  ;;  %v11597_v50 = vld [vmem:[#allocation22_spill] sm:$0xff] }
 0x359   : > { %7658 = vst [vmem:[%s10630_s11 + $0x68] sm:$0xff] %v7469_v52   ;;  %v5787_v23 = vadd.f32 %v10609_v51, %v5682_v42  ;;  %v5683_v57 = vmax.f32 %v11586_v56, %v5585_v19  ;;  %8457 = vmatmul.mubr.msk.bf16.gmra.mrb[104].mxu0 %vm2130_vm3, %v8896_v17  ;;  %8655 = vmatmul.mubr.msk.bf16.gmra.mrb[104].mxu1 %vm2130_vm3, %v8897_v49  ;;  %v11596_v49 = vld [vmem:[#allocation21_spill] sm:$0xff] }
 0x35a   : > { %8460 = vmatprep.mubr.msk.bf16.mxu0 %vm8939_vm2, %v11404_v6  ;;  %8658 = vmatprep.mubr.msk.bf16.mxu1 %vm8939_vm2, %v11404_v6  ;;  %v11598_v21 = vmax.f32 %v11596_v49, %v11597_v50  ;;  %v8906_v49 = vld [vmem:[%s9402_s4 + $0x480] sm:$0xff]   ;;  %v8907_v50 = vld [vmem:[%s9402_s4 + $0x608] sm:$0xff]  }
 0x35b   : > { %v5788_v35 = vadd.f32 %v10609_v51, %v5683_v57  ;;  %v5885_v22 = vmax.f32 %v5787_v23, 0.0 }
 0x35c   : > { %v4369_v36 = vpop.f32.mrb[0].mxu0  ;;  %v5285_v39 = vpop.f32.mrb[0].mxu1 }
 0x35d   : > { %v5886_v27 = vmax.f32 %v5788_v35, 0.0  ;;  %v5586_v4 = vmax.f32 %v4369_v36, %v5285_v39  ;;  %v8354_v46 = vpop.f32.mrb[1].mxu0  ;;  %v8552_v55 = vpop.f32.mrb[1].mxu1  ;;  %v11599_v36 = vld [vmem:[#allocation23_spill] sm:$0xff]  ;;  %v11600_v39 = vld [vmem:[#allocation24_spill] sm:$0xff] }
 0x35e   : > { %v4372_v38 = vpop.f32.mrb[2].mxu0  ;;  %v5288_v10 = vpop.f32.mrb[2].mxu1 }
 0x35f   : > { %v7474_v2 = vpack.c.bf16 %v5886_v27, %v5885_v22  ;;  %v5684_v0 = vmax.f32 %v11589_v58, %v5586_v4  ;;  %v5587_v44 = vmax.f32 %v4372_v38, %v5288_v10  ;;  %v8355_v45 = vpop.f32.mrb[3].mxu0  ;;  %v8553_v43 = vpop.f32.mrb[3].mxu1  ;;  %v11601_v22 = vmax.f32 %v11599_v36, %v11600_v39  ;;  %v11603_v38 = vld [vmem:[#allocation26_spill] sm:$0xff] }
 0x361   : > { %7659 = vst [vmem:[%s10630_s11 + $0x70] sm:$0xff] %v7474_v2   ;;  %v5789_v47 = vadd.f32 %v10609_v51, %v5684_v0  ;;  %v5685_v25 = vmax.f32 %v11592_v1, %v5587_v44  ;;  %8461 = vmatmul.mubr.msk.bf16.gmra.mrb[108].mxu0 %vm2130_vm3, %v8898_v5  ;;  %8659 = vmatmul.mubr.msk.bf16.gmra.mrb[108].mxu1 %vm2130_vm3, %v8899_v37  ;;  %v11602_v37 = vld [vmem:[#allocation25_spill] sm:$0xff] }
 0x362   : > { %8464 = vmatprep.mubr.msk.bf16.mxu0 %vm8939_vm2, %v11404_v6  ;;  %8662 = vmatprep.mubr.msk.bf16.mxu1 %vm8939_vm2, %v11404_v6  ;;  %v11604_v10 = vmax.f32 %v11602_v37, %v11603_v38  ;;  %v8908_v37 = vld [vmem:[%s9402_s4 + $0x488] sm:$0xff]   ;;  %v8909_v38 = vld [vmem:[%s9402_s4 + $0x610] sm:$0xff]  }
 0x363   : > { %v5790_v59 = vadd.f32 %v10609_v51, %v5685_v25  ;;  %v5887_v28 = vmax.f32 %v5789_v47, 0.0 }
 0x364   : > { %v4377_v60 = vpop.f32.mrb[4].mxu0  ;;  %v5293_v26 = vpop.f32.mrb[4].mxu1 }
 0x365   : > { %v5888_v29 = vmax.f32 %v5790_v59, 0.0  ;;  %v5588_v15 = vmax.f32 %v4377_v60, %v5293_v26  ;;  %v8358_v11 = vpop.f32.mrb[5].mxu0  ;;  %v8556_v12 = vpop.f32.mrb[5].mxu1  ;;  %v11605_v60 = vld [vmem:[#allocation27_spill] sm:$0xff]  ;;  %v11606_v26 = vld [vmem:[#allocation28_spill] sm:$0xff] }
 0x366   : > { %v4380_v30 = vpop.f32.mrb[6].mxu0  ;;  %v5296_v14 = vpop.f32.mrb[6].mxu1 }
 0x367   : > { %v7479_v40 = vpack.c.bf16 %v5888_v29, %v5887_v28  ;;  %v5686_v8 = vmax.f32 %v11595_v24, %v5588_v15  ;;  %v5589_v9 = vmax.f32 %v4380_v30, %v5296_v14  ;;  %v8359_v20 = vpop.f32.mrb[7].mxu0  ;;  %v8557_v7 = vpop.f32.mrb[7].mxu1  ;;  %v11607_v28 = vmax.f32 %v11605_v60, %v11606_v26  ;;  %v11609_v30 = vld [vmem:[#allocation30_spill] sm:$0xff] }
 0x369   : > { %7660 = vst [vmem:[%s10630_s11 + $0x78] sm:$0xff] %v7479_v40   ;;  %v5791_v17 = vadd.f32 %v10609_v51, %v5686_v8  ;;  %v5687_v52 = vmax.f32 %v11598_v21, %v5589_v9  ;;  %8465 = vmatmul.mubr.msk.bf16.gmra.mrb[112].mxu0 %vm2130_vm3, %v8900_v13  ;;  %8663 = vmatmul.mubr.msk.bf16.gmra.mrb[112].mxu1 %vm2130_vm3, %v8901_v48  ;;  %v11608_v48 = vld [vmem:[#allocation29_spill] sm:$0xff] }
 0x36a   : > { %8468 = vmatprep.mubr.msk.bf16.mxu0 %vm8939_vm2, %v11404_v6  ;;  %8666 = vmatprep.mubr.msk.bf16.mxu1 %vm8939_vm2, %v11404_v6  ;;  %v11610_v14 = vmax.f32 %v11608_v48, %v11609_v30  ;;  %v8910_v48 = vld [vmem:[%s9402_s4 + $0x490] sm:$0xff]   ;;  %v8911_v30 = vld [vmem:[%s9402_s4 + $0x618] sm:$0xff]  }
 0x36b   : > { %v5792_v18 = vadd.f32 %v10609_v51, %v5687_v52  ;;  %v5889_v42 = vmax.f32 %v5791_v17, 0.0 }
 0x36c   : > { %v4385_v3 = vpop.f32.mrb[8].mxu0  ;;  %v5301_v41 = vpop.f32.mrb[8].mxu1 }
 0x36d   : > { %v5890_v19 = vmax.f32 %v5792_v18, 0.0  ;;  %v5590_v63 = vmax.f32 %v4385_v3, %v5301_v41  ;;  %v8362_v53 = vpop.f32.mrb[9].mxu0  ;;  %v8560_v23 = vpop.f32.mrb[9].mxu1  ;;  %v11611_v3 = vld [vmem:[#allocation31_spill] sm:$0xff]  ;;  %v11612_v41 = vld [vmem:[#allocation32_spill] sm:$0xff] }
 0x36e   : > { %v4388_v56 = vpop.f32.mrb[10].mxu0  ;;  %v5304_v57 = vpop.f32.mrb[10].mxu1 }
 0x36f   : > { %v7484_v35 = vpack.c.bf16 %v5890_v19, %v5889_v42  ;;  %v5688_v27 = vmax.f32 %v11601_v22, %v5590_v63  ;;  %v5591_v4 = vmax.f32 %v4388_v56, %v5304_v57  ;;  %v8363_v46 = vpop.f32.mrb[11].mxu0  ;;  %v8561_v55 = vpop.f32.mrb[11].mxu1  ;;  %v11613_v42 = vmax.f32 %v11611_v3, %v11612_v41  ;;  %v11615_v56 = vld [vmem:[#allocation34_spill] sm:$0xff] }
 0x371   : > { %7661 = vst [vmem:[%s10630_s11 + $0x80] sm:$0xff] %v7484_v35   ;;  %v5793_v5 = vadd.f32 %v10609_v51, %v5688_v27  ;;  %v5689_v2 = vmax.f32 %v11604_v10, %v5591_v4  ;;  %8469 = vmatmul.mubr.msk.bf16.gmra.mrb[116].mxu0 %vm2130_vm3, %v8902_v34  ;;  %8667 = vmatmul.mubr.msk.bf16.gmra.mrb[116].mxu1 %vm2130_vm3, %v8903_v16  ;;  %v11614_v16 = vld [vmem:[#allocation33_spill] sm:$0xff] }
 0x372   : > { %8472 = vmatprep.mubr.msk.bf16.mxu0 %vm8939_vm2, %v11404_v6  ;;  %8670 = vmatprep.mubr.msk.bf16.mxu1 %vm8939_vm2, %v11404_v6  ;;  %v11616_v57 = vmax.f32 %v11614_v16, %v11615_v56 }
 0x373   : > { %v5794_v31 = vadd.f32 %v10609_v51, %v5689_v2  ;;  %v5891_v0 = vmax.f32 %v5793_v5, 0.0 }
 0x374   : > { %v4393_v54 = vpop.f32.mrb[12].mxu0  ;;  %v5309_v58 = vpop.f32.mrb[12].mxu1 }
 0x375   : > { %v5892_v44 = vmax.f32 %v5794_v31, 0.0  ;;  %v5592_v45 = vmax.f32 %v4393_v54, %v5309_v58  ;;  %v8366_v43 = vpop.f32.mrb[13].mxu0  ;;  %v8564_v47 = vpop.f32.mrb[13].mxu1  ;;  %v11617_v54 = vld [vmem:[#allocation35_spill] sm:$0xff]  ;;  %v11618_v58 = vld [vmem:[#allocation36_spill] sm:$0xff] }
 0x376   : > { %v4396_v1 = vpop.f32.mrb[14].mxu0  ;;  %v5312_v25 = vpop.f32.mrb[14].mxu1 }
 0x377   : > { %v7489_v59 = vpack.c.bf16 %v5892_v44, %v5891_v0  ;;  %v5690_v29 = vmax.f32 %v11607_v28, %v5592_v45  ;;  %v5593_v15 = vmax.f32 %v4396_v1, %v5312_v25  ;;  %v8367_v11 = vpop.f32.mrb[15].mxu0  ;;  %v8565_v12 = vpop.f32.mrb[15].mxu1  ;;  %v11619_v0 = vmax.f32 %v11617_v54, %v11618_v58  ;;  %v11621_v1 = vld [vmem:[#allocation38_spill] sm:$0xff] }
 0x379   : > { %7662 = vst [vmem:[%s10630_s11 + $0x88] sm:$0xff] %v7489_v59   ;;  %v5795_v13 = vadd.f32 %v10609_v51, %v5690_v29  ;;  %v5691_v40 = vmax.f32 %v11610_v14, %v5593_v15  ;;  %8473 = vmatmul.mubr.msk.bf16.gmra.mrb[120].mxu0 %vm2130_vm3, %v8904_v61  ;;  %8671 = vmatmul.mubr.msk.bf16.gmra.mrb[120].mxu1 %vm2130_vm3, %v8905_v62  ;;  %v11620_v62 = vld [vmem:[#allocation37_spill] sm:$0xff] }
 0x37a   : > { %8476 = vmatprep.mubr.msk.bf16.mxu0 %vm8939_vm2, %v11404_v6  ;;  %8674 = vmatprep.mubr.msk.bf16.mxu1 %vm8939_vm2, %v11404_v6  ;;  %v11622_v25 = vmax.f32 %v11620_v62, %v11621_v1  ;;  %v11635_v62 = vld [vmem:[#allocation47_spill] sm:$0xff]  ;;  %v11636_v1 = vld [vmem:[#allocation48_spill] sm:$0xff] }
 0x37b   : > { %v5796_v32 = vadd.f32 %v10609_v51, %v5691_v40  ;;  %v5893_v8 = vmax.f32 %v5795_v13, 0.0 }
 0x37c   : > { %v4401_v33 = vpop.f32.mrb[16].mxu0  ;;  %v5317_v24 = vpop.f32.mrb[16].mxu1 }
 0x37d   : > { %v5894_v9 = vmax.f32 %v5796_v32, 0.0  ;;  %v5594_v20 = vmax.f32 %v4401_v33, %v5317_v24  ;;  %v8370_v7 = vpop.f32.mrb[17].mxu0  ;;  %v8568_v17 = vpop.f32.mrb[17].mxu1  ;;  %v11623_v33 = vld [vmem:[#allocation39_spill] sm:$0xff]  ;;  %v11624_v24 = vld [vmem:[#allocation40_spill] sm:$0xff] }
 0x37e   : > { %v4404_v21 = vpop.f32.mrb[18].mxu0  ;;  %v5320_v52 = vpop.f32.mrb[18].mxu1  ;;  %v10979_v7 = vld [vmem:[%s11244_s2] ss:$0 sm:$0xff] }
 0x37f   : > { %v7494_v18 = vpack.c.bf16 %v5894_v9, %v5893_v8  ;;  %v5692_v19 = vmax.f32 %v11613_v42, %v5594_v20  ;;  %v5595_v63 = vmax.f32 %v4404_v21, %v5320_v52  ;;  %v8371_v53 = vpop.f32.mrb[19].mxu0  ;;  %v8569_v23 = vpop.f32.mrb[19].mxu1  ;;  %v11625_v8 = vmax.f32 %v11623_v33, %v11624_v24 }
 0x381   : > { %7663 = vst [vmem:[%s10630_s11 + $0x90] sm:$0xff] %v7494_v18   ;;  %v5797_v34 = vadd.f32 %v10609_v51, %v5692_v19  ;;  %v5693_v35 = vmax.f32 %v11616_v57, %v5595_v63  ;;  %8477 = vmatmul.mubr.msk.bf16.gmra.mrb[124].mxu0 %vm2130_vm3, %v8906_v49  ;;  %8675 = vmatmul.mubr.msk.bf16.gmra.mrb[124].mxu1 %vm2130_vm3, %v8907_v50  ;;  %v11626_v49 = vld [vmem:[#allocation41_spill] sm:$0xff]  ;;  %v11627_v50 = vld [vmem:[#allocation42_spill] sm:$0xff]  ;;  %v11629_v57 = vld [vmem:[#allocation43_spill] sm:$0xff] }
 0x382   : > { %8480 = vmatprep.mubr.msk.bf16.mxu0 %vm8939_vm2, %v11404_v6  ;;  %8678 = vmatprep.mubr.msk.bf16.mxu1 %vm8939_vm2, %v11404_v6  ;;  %v11628_v21 = vmax.f32 %v11626_v49, %v11627_v50 }
 0x383   : > { %v5798_v36 = vadd.f32 %v10609_v51, %v5693_v35  ;;  %v5895_v27 = vmax.f32 %v5797_v34, 0.0  ;;  %v11630_v35 = vld [vmem:[#allocation44_spill] sm:$0xff] }
 0x384   : > { %v4409_v39 = vpop.f32.mrb[20].mxu0  ;;  %v5325_v22 = vpop.f32.mrb[20].mxu1 }
 0x385   : > { %v5896_v4 = vmax.f32 %v5798_v36, 0.0  ;;  %v5596_v46 = vmax.f32 %v4409_v39, %v5325_v22  ;;  %v8374_v55 = vpop.f32.mrb[21].mxu0  ;;  %v8572_v5 = vpop.f32.mrb[21].mxu1  ;;  %v11631_v36 = vmax.f32 %v11629_v57, %v11630_v35 }
 0x386   : > { %v4412_v10 = vpop.f32.mrb[22].mxu0  ;;  %v5328_v2 = vpop.f32.mrb[22].mxu1  ;;  %v11632_v55 = vld [vmem:[#allocation45_spill] sm:$0xff]  ;;  %v11633_v5 = vld [vmem:[#allocation46_spill] sm:$0xff] }
 0x387   : > { %v7499_v31 = vpack.c.bf16 %v5896_v4, %v5895_v27  ;;  %v5694_v44 = vmax.f32 %v11619_v0, %v5596_v46  ;;  %v5597_v45 = vmax.f32 %v4412_v10, %v5328_v2  ;;  %v8375_v43 = vpop.f32.mrb[23].mxu0  ;;  %v8573_v47 = vpop.f32.mrb[23].mxu1 }
 0x389   : > { %7664 = vst [vmem:[%s10630_s11 + $0x98] sm:$0xff] %v7499_v31   ;;  %v5799_v61 = vadd.f32 %v10609_v51, %v5694_v44  ;;  %v5695_v59 = vmax.f32 %v11622_v25, %v5597_v45  ;;  %8481 = vmatmul.mubr.msk.bf16.gmra.mrb[128].mxu0 %vm2130_vm3, %v8908_v37  ;;  %8679 = vmatmul.mubr.msk.bf16.gmra.mrb[128].mxu1 %vm2130_vm3, %v8909_v38 }
 0x38a   : > { %8484 = vmatprep.mubr.msk.bf16.mxu0 %vm8939_vm2, %v11404_v6  ;;  %8682 = vmatprep.mubr.msk.bf16.mxu1 %vm8939_vm2, %v11404_v6  ;;  %v11634_v37 = vmax.f32 %v11632_v55, %v11633_v5  ;;  %v11637_v25 = vmax.f32 %v11635_v62, %v11636_v1 }
 0x38b   : > { %v5800_v60 = vadd.f32 %v10609_v51, %v5695_v59  ;;  %v5897_v29 = vmax.f32 %v5799_v61, 0.0 }
 0x38c   : > { %v4417_v26 = vpop.f32.mrb[24].mxu0  ;;  %v5333_v28 = vpop.f32.mrb[24].mxu1 }
 0x38d   : > { %v5898_v15 = vmax.f32 %v5800_v60, 0.0  ;;  %v5598_v11 = vmax.f32 %v4417_v26, %v5333_v28  ;;  %v8378_v12 = vpop.f32.mrb[25].mxu0  ;;  %v8576_v13 = vpop.f32.mrb[25].mxu1 }
 0x38e   : > { %v4420_v14 = vpop.f32.mrb[26].mxu0  ;;  %v5336_v40 = vpop.f32.mrb[26].mxu1 }
 0x38f   : > { %v7504_v32 = vpack.c.bf16 %v5898_v15, %v5897_v29  ;;  %v5696_v9 = vmax.f32 %v11625_v8, %v5598_v11  ;;  %v5599_v6 = vmax.f32 %v4420_v14, %v5336_v40  ;;  %v8379_v20 = vpop.f32.mrb[27].mxu0  ;;  %v8577_v51 = vpop.f32.mrb[27].mxu1  ;;  %v11638_v15 = vld [vmem:[#allocation49_spill] sm:$0xff]  ;;  %v11639_v11 = vld [vmem:[#allocation50_spill] sm:$0xff] }
 0x390   : > { %v11640_v12 = vmax.f32 %v11638_v15, %v11639_v11  ;;  %v11641_v51 = vld [vmem:[#allocation51_spill] sm:$0xff] }
 0x391   : > { %7665 = vst [vmem:[%s10630_s11 + $0xa0] sm:$0xff] %v7504_v32   ;;  %v5801_v17 = vadd.f32 %v10979_v7, %v5696_v9  ;;  %v5697_v52 = vmax.f32 %v11628_v21, %v5599_v6  ;;  %8485 = vmatmul.mubr.msk.bf16.gmra.mrb[132].mxu0 %vm2130_vm3, %v8910_v48  ;;  %8683 = vmatmul.mubr.msk.bf16.gmra.mrb[132].mxu1 %vm2130_vm3, %v8911_v30 }
 0x393   : > { %v5802_v18 = vadd.f32 %v10979_v7, %v5697_v52  ;;  %v5899_v42 = vmax.f32 %v5801_v17, 0.0  ;;  %v11642_v17 = vld [vmem:[#allocation52_spill] sm:$0xff] }
 0x394   : > { %v4425_v3 = vpop.f32.mrb[28].mxu0  ;;  %v5341_v41 = vpop.f32.mrb[28].mxu1  ;;  %v11643_v49 = vmax.f32 %v11641_v51, %v11642_v17 }
 0x395   : > { %v5900_v19 = vmax.f32 %v5802_v18, 0.0  ;;  %v5600_v63 = vmax.f32 %v4425_v3, %v5341_v41  ;;  %v8382_v53 = vpop.f32.mrb[29].mxu0  ;;  %v8580_v23 = vpop.f32.mrb[29].mxu1  ;;  %v11644_v41 = vld [vmem:[#allocation53_spill] sm:$0xff] }
 0x396   : > { %v4428_v34 = vpop.f32.mrb[30].mxu0  ;;  %v5344_v16 = vpop.f32.mrb[30].mxu1 }
 0x397   : > { %v7509_v56 = vpack.c.bf16 %v5900_v19, %v5899_v42  ;;  %v5698_v39 = vmax.f32 %v11631_v36, %v5600_v63  ;;  %v5601_v22 = vmax.f32 %v4428_v34, %v5344_v16  ;;  %v8383_v27 = vpop.f32.mrb[31].mxu0  ;;  %v8581_v4 = vpop.f32.mrb[31].mxu1  ;;  %v11645_v42 = vld [vmem:[#allocation54_spill] sm:$0xff] }
 0x398   : > { %v11646_v19 = vmax.f32 %v11644_v41, %v11645_v42  ;;  %v11647_v4 = vld [vmem:[#allocation55_spill] sm:$0xff] }
 0x399   : > { %7666 = vst [vmem:[%s10630_s11 + $0xa8] sm:$0xff] %v7509_v56   ;;  %v5803_v46 = vadd.f32 %v10979_v7, %v5698_v39  ;;  %v5699_v38 = vmax.f32 %v11634_v37, %v5601_v22 }
 0x39b   : > { %v5804_v10 = vadd.f32 %v10979_v7, %v5699_v38  ;;  %v5901_v54 = vmax.f32 %v5803_v46, 0.0  ;;  %v11648_v46 = vld [vmem:[#allocation56_spill] sm:$0xff] }
 0x39c   : > { %v4433_v2 = vpop.f32.mrb[32].mxu0  ;;  %v5349_v31 = vpop.f32.mrb[32].mxu1  ;;  %v11649_v55 = vmax.f32 %v11647_v4, %v11648_v46 }
 0x39d   : > { %v5902_v58 = vmax.f32 %v5804_v10, 0.0  ;;  %v5602_v0 = vmax.f32 %v4433_v2, %v5349_v31  ;;  %v8386_v44 = vpop.f32.mrb[33].mxu0  ;;  %v8584_v45 = vpop.f32.mrb[33].mxu1  ;;  %v11650_v31 = vld [vmem:[#allocation57_spill] sm:$0xff] }
 0x39e   : > { %v4436_v43 = vpop.f32.mrb[34].mxu0  ;;  %v5352_v47 = vpop.f32.mrb[34].mxu1 }
 0x39f   : > { %v7514_v61 = vpack.c.bf16 %v5902_v58, %v5901_v54  ;;  %v5700_v59 = vmax.f32 %v11637_v25, %v5602_v0  ;;  %v5603_v60 = vmax.f32 %v4436_v43, %v5352_v47  ;;  %v8387_v26 = vpop.f32.mrb[35].mxu0  ;;  %v8585_v28 = vpop.f32.mrb[35].mxu1  ;;  %v11651_v54 = vld [vmem:[#allocation58_spill] sm:$0xff] }
 0x3a0   : > { %v11652_v58 = vmax.f32 %v11650_v31, %v11651_v54  ;;  %v11653_v28 = vld [vmem:[#allocation59_spill] sm:$0xff] }
 0x3a1   : > { %7667 = vst [vmem:[%s10630_s11 + $0xb0] sm:$0xff] %v7514_v61   ;;  %v5805_v29 = vadd.f32 %v10979_v7, %v5700_v59  ;;  %v5701_v13 = vmax.f32 %v11640_v12, %v5603_v60 }
 0x3a3   : > { %v5806_v48 = vadd.f32 %v10979_v7, %v5701_v13  ;;  %v5903_v40 = vmax.f32 %v5805_v29, 0.0  ;;  %v11654_v29 = vld [vmem:[#allocation60_spill] sm:$0xff] }
 0x3a4   : > { %v4441_v30 = vpop.f32.mrb[36].mxu0  ;;  %v5357_v14 = vpop.f32.mrb[36].mxu1  ;;  %v11655_v15 = vmax.f32 %v11653_v28, %v11654_v29 }
 0x3a5   : > { %v5904_v32 = vmax.f32 %v5806_v48, 0.0  ;;  %v5604_v33 = vmax.f32 %v4441_v30, %v5357_v14  ;;  %v8390_v24 = vpop.f32.mrb[37].mxu0  ;;  %v8588_v8 = vpop.f32.mrb[37].mxu1  ;;  %v11656_v14 = vld [vmem:[#allocation61_spill] sm:$0xff] }
 0x3a6   : > { %v4444_v9 = vpop.f32.mrb[38].mxu0  ;;  %v5360_v6 = vpop.f32.mrb[38].mxu1 }
 0x3a7   : > { %v7519_v20 = vpack.c.bf16 %v5904_v32, %v5903_v40  ;;  %v5702_v50 = vmax.f32 %v11643_v49, %v5604_v33  ;;  %v5605_v21 = vmax.f32 %v4444_v9, %v5360_v6  ;;  %v8391_v52 = vpop.f32.mrb[39].mxu0  ;;  %v8589_v18 = vpop.f32.mrb[39].mxu1  ;;  %v11657_v40 = vld [vmem:[#allocation62_spill] sm:$0xff] }
 0x3a8   : > { %v11658_v32 = vmax.f32 %v11656_v14, %v11657_v40  ;;  %v11659_v18 = vld [vmem:[#allocation63_spill] sm:$0xff] }
 0x3a9   : > { %7668 = vst [vmem:[%s10630_s11 + $0xb8] sm:$0xff] %v7519_v20   ;;  %v5807_v3 = vadd.f32 %v10979_v7, %v5702_v50  ;;  %v5703_v63 = vmax.f32 %v11646_v19, %v5605_v21 }
 0x3ab   : > { %v5808_v53 = vadd.f32 %v10979_v7, %v5703_v63  ;;  %v5905_v16 = vmax.f32 %v5807_v3, 0.0  ;;  %v11660_v3 = vld [vmem:[#allocation64_spill] sm:$0xff] }
 0x3ac   : > { %v4449_v23 = vpop.f32.mrb[40].mxu0  ;;  %v5365_v34 = vpop.f32.mrb[40].mxu1  ;;  %v11661_v41 = vmax.f32 %v11659_v18, %v11660_v3 }
 0x3ad   : > { %v5906_v56 = vmax.f32 %v5808_v53, 0.0  ;;  %v5606_v57 = vmax.f32 %v4449_v23, %v5365_v34  ;;  %v8394_v35 = vpop.f32.mrb[41].mxu0  ;;  %v8592_v36 = vpop.f32.mrb[41].mxu1  ;;  %v11662_v34 = vld [vmem:[#allocation65_spill] sm:$0xff] }
 0x3ae   : > { %v4452_v39 = vpop.f32.mrb[42].mxu0  ;;  %v5368_v22 = vpop.f32.mrb[42].mxu1 }
 0x3af   : > { %v7524_v27 = vpack.c.bf16 %v5906_v56, %v5905_v16  ;;  %v5704_v5 = vmax.f32 %v11649_v55, %v5606_v57  ;;  %v5607_v37 = vmax.f32 %v4452_v39, %v5368_v22  ;;  %v8395_v38 = vpop.f32.mrb[43].mxu0  ;;  %v8593_v10 = vpop.f32.mrb[43].mxu1  ;;  %v11663_v16 = vld [vmem:[#allocation66_spill] sm:$0xff] }
 0x3b0   : > { %v11664_v56 = vmax.f32 %v11662_v34, %v11663_v16  ;;  %v11665_v10 = vld [vmem:[#allocation67_spill] sm:$0xff] }
 0x3b1   : > { %7669 = vst [vmem:[%s10630_s11 + $0xc0] sm:$0xff] %v7524_v27   ;;  %v5809_v2 = vadd.f32 %v10979_v7, %v5704_v5  ;;  %v5705_v0 = vmax.f32 %v11652_v58, %v5607_v37 }
 0x3b3   : > { %v5810_v44 = vadd.f32 %v10979_v7, %v5705_v0  ;;  %v5907_v47 = vmax.f32 %v5809_v2, 0.0  ;;  %v11666_v2 = vld [vmem:[#allocation68_spill] sm:$0xff] }
 0x3b4   : > { %v4457_v45 = vpop.f32.mrb[44].mxu0  ;;  %v5373_v43 = vpop.f32.mrb[44].mxu1  ;;  %v11667_v31 = vmax.f32 %v11665_v10, %v11666_v2 }
 0x3b5   : > { %v5908_v61 = vmax.f32 %v5810_v44, 0.0  ;;  %v5608_v62 = vmax.f32 %v4457_v45, %v5373_v43  ;;  %v8398_v1 = vpop.f32.mrb[45].mxu0  ;;  %v8596_v25 = vpop.f32.mrb[45].mxu1  ;;  %v11668_v43 = vld [vmem:[#allocation69_spill] sm:$0xff] }
 0x3b6   : > { %v4460_v59 = vpop.f32.mrb[46].mxu0  ;;  %v5376_v60 = vpop.f32.mrb[46].mxu1 }
 0x3b7   : > { %v7529_v26 = vpack.c.bf16 %v5908_v61, %v5907_v47  ;;  %v5706_v11 = vmax.f32 %v11655_v15, %v5608_v62  ;;  %v5609_v12 = vmax.f32 %v4460_v59, %v5376_v60  ;;  %v8399_v13 = vpop.f32.mrb[47].mxu0  ;;  %v8597_v48 = vpop.f32.mrb[47].mxu1  ;;  %v11669_v47 = vld [vmem:[#allocation70_spill] sm:$0xff] }
 0x3b8   : > { %v11670_v61 = vmax.f32 %v11668_v43, %v11669_v47  ;;  %v11671_v48 = vld [vmem:[#allocation71_spill] sm:$0xff] }
 0x3b9   : > { %7670 = vst [vmem:[%s10630_s11 + $0xc8] sm:$0xff] %v7529_v26   ;;  %v5811_v30 = vadd.f32 %v10979_v7, %v5706_v11  ;;  %v5707_v33 = vmax.f32 %v11658_v32, %v5609_v12 }
 0x3bb   : > { %v5812_v24 = vadd.f32 %v10979_v7, %v5707_v33  ;;  %v5909_v6 = vmax.f32 %v5811_v30, 0.0  ;;  %v11672_v30 = vld [vmem:[#allocation72_spill] sm:$0xff] }
 0x3bc   : > { %v4465_v8 = vpop.f32.mrb[48].mxu0  ;;  %v5381_v9 = vpop.f32.mrb[48].mxu1  ;;  %v11673_v14 = vmax.f32 %v11671_v48, %v11672_v30 }
 0x3bd   : > { %v5910_v20 = vmax.f32 %v5812_v24, 0.0  ;;  %v5610_v51 = vmax.f32 %v4465_v8, %v5381_v9  ;;  %v8402_v17 = vpop.f32.mrb[49].mxu0  ;;  %v8600_v49 = vpop.f32.mrb[49].mxu1  ;;  %v11674_v9 = vld [vmem:[#allocation73_spill] sm:$0xff] }
 0x3be   : > { %v4468_v50 = vpop.f32.mrb[50].mxu0  ;;  %v5384_v21 = vpop.f32.mrb[50].mxu1 }
 0x3bf   : > { %v7534_v52 = vpack.c.bf16 %v5910_v20, %v5909_v6  ;;  %v5708_v42 = vmax.f32 %v11661_v41, %v5610_v51  ;;  %v5611_v19 = vmax.f32 %v4468_v50, %v5384_v21  ;;  %v8403_v63 = vpop.f32.mrb[51].mxu0  ;;  %v8601_v53 = vpop.f32.mrb[51].mxu1  ;;  %v11675_v6 = vld [vmem:[#allocation74_spill] sm:$0xff] }
 0x3c0   : > { %v11676_v20 = vmax.f32 %v11674_v9, %v11675_v6  ;;  %v11677_v53 = vld [vmem:[#allocation75_spill] sm:$0xff] }
 0x3c1   : > { %7671 = vst [vmem:[%s10630_s11 + $0xd0] sm:$0xff] %v7534_v52   ;;  %v5813_v23 = vadd.f32 %v10979_v7, %v5708_v42  ;;  %v5709_v57 = vmax.f32 %v11664_v56, %v5611_v19 }
 0x3c3   : > { %v5814_v35 = vadd.f32 %v10979_v7, %v5709_v57  ;;  %v5911_v22 = vmax.f32 %v5813_v23, 0.0  ;;  %v11678_v23 = vld [vmem:[#allocation76_spill] sm:$0xff] }
 0x3c4   : > { %v4473_v36 = vpop.f32.mrb[52].mxu0  ;;  %v5389_v39 = vpop.f32.mrb[52].mxu1  ;;  %v11679_v34 = vmax.f32 %v11677_v53, %v11678_v23 }
 0x3c5   : > { %v5912_v27 = vmax.f32 %v5814_v35, 0.0  ;;  %v5612_v4 = vmax.f32 %v4473_v36, %v5389_v39  ;;  %v8406_v46 = vpop.f32.mrb[53].mxu0  ;;  %v8604_v55 = vpop.f32.mrb[53].mxu1  ;;  %v11680_v39 = vld [vmem:[#allocation77_spill] sm:$0xff] }
 0x3c6   : > { %v4476_v5 = vpop.f32.mrb[54].mxu0  ;;  %v5392_v37 = vpop.f32.mrb[54].mxu1 }
 0x3c7   : > { %v7539_v38 = vpack.c.bf16 %v5912_v27, %v5911_v22  ;;  %v5710_v54 = vmax.f32 %v11667_v31, %v5612_v4  ;;  %v5613_v58 = vmax.f32 %v4476_v5, %v5392_v37  ;;  %v8407_v0 = vpop.f32.mrb[55].mxu0  ;;  %v8605_v44 = vpop.f32.mrb[55].mxu1  ;;  %v11681_v22 = vld [vmem:[#allocation78_spill] sm:$0xff] }
 0x3c8   : > { %v11682_v27 = vmax.f32 %v11680_v39, %v11681_v22  ;;  %v11683_v44 = vld [vmem:[#allocation79_spill] sm:$0xff] }
 0x3c9   : > { %7672 = vst [vmem:[%s10630_s11 + $0xd8] sm:$0xff] %v7539_v38   ;;  %v5815_v45 = vadd.f32 %v10979_v7, %v5710_v54  ;;  %v5711_v62 = vmax.f32 %v11670_v61, %v5613_v58 }
 0x3cb   : > { %v5816_v1 = vadd.f32 %v10979_v7, %v5711_v62  ;;  %v5913_v60 = vmax.f32 %v5815_v45, 0.0  ;;  %v11684_v45 = vld [vmem:[#allocation80_spill] sm:$0xff] }
 0x3cc   : > { %v4481_v25 = vpop.f32.mrb[56].mxu0  ;;  %v5397_v59 = vpop.f32.mrb[56].mxu1  ;;  %v11685_v43 = vmax.f32 %v11683_v44, %v11684_v45 }
 0x3cd   : > { %v5914_v26 = vmax.f32 %v5816_v1, 0.0  ;;  %v5614_v28 = vmax.f32 %v4481_v25, %v5397_v59  ;;  %v8410_v29 = vpop.f32.mrb[57].mxu0  ;;  %v8608_v15 = vpop.f32.mrb[57].mxu1  ;;  %v11686_v59 = vld [vmem:[#allocation81_spill] sm:$0xff] }
 0x3ce   : > { %v4484_v11 = vpop.f32.mrb[58].mxu0  ;;  %v5400_v12 = vpop.f32.mrb[58].mxu1 }
 0x3cf   : > { %v7544_v13 = vpack.c.bf16 %v5914_v26, %v5913_v60  ;;  %v5712_v40 = vmax.f32 %v11673_v14, %v5614_v28  ;;  %v5615_v32 = vmax.f32 %v4484_v11, %v5400_v12  ;;  %v8411_v33 = vpop.f32.mrb[59].mxu0  ;;  %v8609_v24 = vpop.f32.mrb[59].mxu1  ;;  %v11687_v60 = vld [vmem:[#allocation82_spill] sm:$0xff] }
 0x3d0   : > { %v11688_v26 = vmax.f32 %v11686_v59, %v11687_v60  ;;  %v11689_v24 = vld [vmem:[#allocation83_spill] sm:$0xff] }
 0x3d1   : > { %7673 = vst [vmem:[%s10630_s11 + $0xe0] sm:$0xff] %v7544_v13   ;;  %v5817_v8 = vadd.f32 %v10979_v7, %v5712_v40  ;;  %v5713_v51 = vmax.f32 %v11676_v20, %v5615_v32 }
 0x3d3   : > { %v5818_v17 = vadd.f32 %v10979_v7, %v5713_v51  ;;  %v5915_v21 = vmax.f32 %v5817_v8, 0.0  ;;  %v11690_v8 = vld [vmem:[#allocation84_spill] sm:$0xff] }
 0x3d4   : > { %v4489_v49 = vpop.f32.mrb[60].mxu0  ;;  %v5405_v50 = vpop.f32.mrb[60].mxu1  ;;  %v11691_v9 = vmax.f32 %v11689_v24, %v11690_v8 }
 0x3d5   : > { %v5916_v52 = vmax.f32 %v5818_v17, 0.0  ;;  %v5616_v18 = vmax.f32 %v4489_v49, %v5405_v50  ;;  %v8414_v3 = vpop.f32.mrb[61].mxu0  ;;  %v8612_v41 = vpop.f32.mrb[61].mxu1  ;;  %v11692_v50 = vld [vmem:[#allocation85_spill] sm:$0xff] }
 0x3d6   : > { %v4492_v42 = vpop.f32.mrb[62].mxu0  ;;  %v5408_v19 = vpop.f32.mrb[62].mxu1 }
 0x3d7   : > { %v7549_v63 = vpack.c.bf16 %v5916_v52, %v5915_v21  ;;  %v5714_v16 = vmax.f32 %v11679_v34, %v5616_v18  ;;  %v5617_v56 = vmax.f32 %v4492_v42, %v5408_v19  ;;  %v8415_v57 = vpop.f32.mrb[63].mxu0  ;;  %v8613_v35 = vpop.f32.mrb[63].mxu1  ;;  %v11693_v21 = vld [vmem:[#allocation86_spill] sm:$0xff] }
 0x3d8   : > { %v11694_v52 = vmax.f32 %v11692_v50, %v11693_v21  ;;  %v11695_v35 = vld [vmem:[#allocation87_spill] sm:$0xff] }
 0x3d9   : > { %7674 = vst [vmem:[%s10630_s11 + $0xe8] sm:$0xff] %v7549_v63   ;;  %v5819_v36 = vadd.f32 %v10979_v7, %v5714_v16  ;;  %v5715_v4 = vmax.f32 %v11682_v27, %v5617_v56 }
 0x3db   : > { %v5820_v46 = vadd.f32 %v10979_v7, %v5715_v4  ;;  %v5917_v37 = vmax.f32 %v5819_v36, 0.0  ;;  %v11696_v36 = vld [vmem:[#allocation88_spill] sm:$0xff] }
 0x3dc   : > { %v4497_v55 = vpop.f32.mrb[64].mxu0  ;;  %v5413_v5 = vpop.f32.mrb[64].mxu1  ;;  %v11697_v39 = vmax.f32 %v11695_v35, %v11696_v36 }
 0x3dd   : > { %v5918_v38 = vmax.f32 %v5820_v46, 0.0  ;;  %v5618_v10 = vmax.f32 %v4497_v55, %v5413_v5  ;;  %v8418_v2 = vpop.f32.mrb[65].mxu0  ;;  %v8616_v31 = vpop.f32.mrb[65].mxu1  ;;  %v11698_v5 = vld [vmem:[#allocation89_spill] sm:$0xff] }
 0x3de   : > { %v4500_v54 = vpop.f32.mrb[66].mxu0  ;;  %v5416_v58 = vpop.f32.mrb[66].mxu1 }
 0x3df   : > { %v7554_v0 = vpack.c.bf16 %v5918_v38, %v5917_v37  ;;  %v5716_v47 = vmax.f32 %v11685_v43, %v5618_v10  ;;  %v5619_v61 = vmax.f32 %v4500_v54, %v5416_v58  ;;  %v8419_v62 = vpop.f32.mrb[67].mxu0  ;;  %v8617_v1 = vpop.f32.mrb[67].mxu1  ;;  %v11699_v37 = vld [vmem:[#allocation90_spill] sm:$0xff] }
 0x3e0   : > { %v11700_v38 = vmax.f32 %v11698_v5, %v11699_v37  ;;  %v11701_v1 = vld [vmem:[#allocation91_spill] sm:$0xff] }
 0x3e1   : > { %7675 = vst [vmem:[%s10630_s11 + $0xf0] sm:$0xff] %v7554_v0   ;;  %v5821_v25 = vadd.f32 %v10979_v7, %v5716_v47  ;;  %v5717_v28 = vmax.f32 %v11688_v26, %v5619_v61 }
 0x3e3   : > { %v5822_v29 = vadd.f32 %v10979_v7, %v5717_v28  ;;  %v5919_v12 = vmax.f32 %v5821_v25, 0.0  ;;  %v11702_v25 = vld [vmem:[#allocation92_spill] sm:$0xff] }
 0x3e4   : > { %v4505_v15 = vpop.f32.mrb[68].mxu0  ;;  %v5421_v11 = vpop.f32.mrb[68].mxu1  ;;  %v11703_v59 = vmax.f32 %v11701_v1, %v11702_v25 }
 0x3e5   : > { %v5920_v13 = vmax.f32 %v5822_v29, 0.0  ;;  %v5620_v48 = vmax.f32 %v4505_v15, %v5421_v11  ;;  %v8422_v30 = vpop.f32.mrb[69].mxu0  ;;  %v8620_v14 = vpop.f32.mrb[69].mxu1  ;;  %v11704_v11 = vld [vmem:[#allocation93_spill] sm:$0xff] }
 0x3e6   : > { %v4508_v40 = vpop.f32.mrb[70].mxu0  ;;  %v5424_v32 = vpop.f32.mrb[70].mxu1 }
 0x3e7   : > { %v7559_v33 = vpack.c.bf16 %v5920_v13, %v5919_v12  ;;  %v5718_v6 = vmax.f32 %v11691_v9, %v5620_v48  ;;  %v5621_v20 = vmax.f32 %v4508_v40, %v5424_v32  ;;  %v8423_v51 = vpop.f32.mrb[71].mxu0  ;;  %v8621_v17 = vpop.f32.mrb[71].mxu1  ;;  %v11705_v12 = vld [vmem:[#allocation94_spill] sm:$0xff] }
 0x3e8   : > { %v11706_v13 = vmax.f32 %v11704_v11, %v11705_v12  ;;  %v11707_v17 = vld [vmem:[#allocation95_spill] sm:$0xff] }
 0x3e9   : > { %7676 = vst [vmem:[%s10630_s11 + $0xf8] sm:$0xff] %v7559_v33   ;;  %v5823_v49 = vadd.f32 %v10979_v7, %v5718_v6  ;;  %v5719_v18 = vmax.f32 %v11694_v52, %v5621_v20 }
 0x3eb   : > { %v5824_v3 = vadd.f32 %v10979_v7, %v5719_v18  ;;  %v5921_v19 = vmax.f32 %v5823_v49, 0.0  ;;  %v11708_v49 = vld [vmem:[#allocation96_spill] sm:$0xff] }
 0x3ec   : > { %v4513_v41 = vpop.f32.mrb[72].mxu0  ;;  %v5429_v42 = vpop.f32.mrb[72].mxu1  ;;  %v11709_v50 = vmax.f32 %v11707_v17, %v11708_v49 }
 0x3ed   : > { %v5922_v63 = vmax.f32 %v5824_v3, 0.0  ;;  %v5622_v53 = vmax.f32 %v4513_v41, %v5429_v42  ;;  %v8426_v23 = vpop.f32.mrb[73].mxu0  ;;  %v8624_v34 = vpop.f32.mrb[73].mxu1  ;;  %v11710_v42 = vld [vmem:[#allocation97_spill] sm:$0xff] }
 0x3ee   : > { %v4516_v16 = vpop.f32.mrb[74].mxu0  ;;  %v5432_v56 = vpop.f32.mrb[74].mxu1 }
 0x3ef   : > { %v7564_v57 = vpack.c.bf16 %v5922_v63, %v5921_v19  ;;  %v5720_v22 = vmax.f32 %v11697_v39, %v5622_v53  ;;  %v5623_v27 = vmax.f32 %v4516_v16, %v5432_v56  ;;  %v8427_v4 = vpop.f32.mrb[75].mxu0  ;;  %v8625_v46 = vpop.f32.mrb[75].mxu1  ;;  %v11711_v19 = vld [vmem:[#allocation98_spill] sm:$0xff] }
 0x3f0   : > { %v11712_v63 = vmax.f32 %v11710_v42, %v11711_v19  ;;  %v11713_v46 = vld [vmem:[#allocation99_spill] sm:$0xff] }
 0x3f1   : > { %7677 = vst [vmem:[%s10630_s11 + $0x100] sm:$0xff] %v7564_v57   ;;  %v5825_v55 = vadd.f32 %v10979_v7, %v5720_v22  ;;  %v5721_v10 = vmax.f32 %v11700_v38, %v5623_v27 }
 0x3f3   : > { %v5826_v2 = vadd.f32 %v10979_v7, %v5721_v10  ;;  %v5923_v58 = vmax.f32 %v5825_v55, 0.0  ;;  %v11714_v55 = vld [vmem:[#allocation100_spill] sm:$0xff] }
 0x3f4   : > { %v4521_v31 = vpop.f32.mrb[76].mxu0  ;;  %v5437_v54 = vpop.f32.mrb[76].mxu1  ;;  %v11715_v5 = vmax.f32 %v11713_v46, %v11714_v55 }
 0x3f5   : > { %v5924_v0 = vmax.f32 %v5826_v2, 0.0  ;;  %v5624_v44 = vmax.f32 %v4521_v31, %v5437_v54  ;;  %v8430_v45 = vpop.f32.mrb[77].mxu0  ;;  %v8628_v43 = vpop.f32.mrb[77].mxu1  ;;  %v11716_v54 = vld [vmem:[#allocation101_spill] sm:$0xff] }
 0x3f6   : > { %v4524_v47 = vpop.f32.mrb[78].mxu0  ;;  %v5440_v61 = vpop.f32.mrb[78].mxu1 }
 0x3f7   : > { %v7569_v62 = vpack.c.bf16 %v5924_v0, %v5923_v58  ;;  %v5722_v60 = vmax.f32 %v11703_v59, %v5624_v44  ;;  %v5625_v26 = vmax.f32 %v4524_v47, %v5440_v61  ;;  %v8431_v28 = vpop.f32.mrb[79].mxu0  ;;  %v8629_v29 = vpop.f32.mrb[79].mxu1  ;;  %v11717_v58 = vld [vmem:[#allocation102_spill] sm:$0xff] }
 0x3f8   : > { %v11718_v0 = vmax.f32 %v11716_v54, %v11717_v58  ;;  %v11719_v29 = vld [vmem:[#allocation103_spill] sm:$0xff] }
 0x3f9   : > { %7678 = vst [vmem:[%s10630_s11 + $0x108] sm:$0xff] %v7569_v62   ;;  %v5827_v15 = vadd.f32 %v10979_v7, %v5722_v60  ;;  %v5723_v48 = vmax.f32 %v11706_v13, %v5625_v26 }
 0x3fb   : > { %v5828_v30 = vadd.f32 %v10979_v7, %v5723_v48  ;;  %v5925_v32 = vmax.f32 %v5827_v15, 0.0  ;;  %v11720_v15 = vld [vmem:[#allocation104_spill] sm:$0xff] }
 0x3fc   : > { %v4529_v14 = vpop.f32.mrb[80].mxu0  ;;  %v5445_v40 = vpop.f32.mrb[80].mxu1  ;;  %v11721_v11 = vmax.f32 %v11719_v29, %v11720_v15 }
 0x3fd   : > { %v5926_v33 = vmax.f32 %v5828_v30, 0.0  ;;  %v5626_v24 = vmax.f32 %v4529_v14, %v5445_v40  ;;  %v8434_v8 = vpop.f32.mrb[81].mxu0  ;;  %v8632_v9 = vpop.f32.mrb[81].mxu1  ;;  %v11722_v40 = vld [vmem:[#allocation105_spill] sm:$0xff] }
 0x3fe   : > { %v4532_v6 = vpop.f32.mrb[82].mxu0  ;;  %v5448_v20 = vpop.f32.mrb[82].mxu1 }
 0x3ff   : > { %v7574_v51 = vpack.c.bf16 %v5926_v33, %v5925_v32  ;;  %v5724_v21 = vmax.f32 %v11709_v50, %v5626_v24  ;;  %v5627_v52 = vmax.f32 %v4532_v6, %v5448_v20  ;;  %v8435_v18 = vpop.f32.mrb[83].mxu0  ;;  %v8633_v3 = vpop.f32.mrb[83].mxu1  ;;  %v11723_v32 = vld [vmem:[#allocation106_spill] sm:$0xff] }
 0x400   : > { %v11724_v33 = vmax.f32 %v11722_v40, %v11723_v32  ;;  %v11725_v3 = vld [vmem:[#allocation107_spill] sm:$0xff] }
 0x401   : > { %7679 = vst [vmem:[%s10630_s11 + $0x110] sm:$0xff] %v7574_v51   ;;  %v5829_v41 = vadd.f32 %v10979_v7, %v5724_v21  ;;  %v5725_v53 = vmax.f32 %v11712_v63, %v5627_v52 }
 0x403   : > { %v5830_v23 = vadd.f32 %v10979_v7, %v5725_v53  ;;  %v5927_v56 = vmax.f32 %v5829_v41, 0.0  ;;  %v11726_v41 = vld [vmem:[#allocation108_spill] sm:$0xff] }
 0x404   : > { %v4537_v34 = vpop.f32.mrb[84].mxu0  ;;  %v5453_v16 = vpop.f32.mrb[84].mxu1  ;;  %v11727_v42 = vmax.f32 %v11725_v3, %v11726_v41 }
 0x405   : > { %v5928_v57 = vmax.f32 %v5830_v23, 0.0  ;;  %v5628_v35 = vmax.f32 %v4537_v34, %v5453_v16  ;;  %v8438_v36 = vpop.f32.mrb[85].mxu0  ;;  %v8636_v39 = vpop.f32.mrb[85].mxu1  ;;  %v11728_v16 = vld [vmem:[#allocation109_spill] sm:$0xff] }
 0x406   : > { %v4540_v22 = vpop.f32.mrb[86].mxu0  ;;  %v5456_v27 = vpop.f32.mrb[86].mxu1 }
 0x407   : > { %v7579_v4 = vpack.c.bf16 %v5928_v57, %v5927_v56  ;;  %v5726_v37 = vmax.f32 %v11715_v5, %v5628_v35  ;;  %v5629_v38 = vmax.f32 %v4540_v22, %v5456_v27  ;;  %v8439_v10 = vpop.f32.mrb[87].mxu0  ;;  %v8637_v2 = vpop.f32.mrb[87].mxu1  ;;  %v11729_v56 = vld [vmem:[#allocation110_spill] sm:$0xff] }
 0x408   : > { %v11730_v57 = vmax.f32 %v11728_v16, %v11729_v56  ;;  %v11731_v2 = vld [vmem:[#allocation111_spill] sm:$0xff] }
 0x409   : > { %7680 = vst [vmem:[%s10630_s11 + $0x118] sm:$0xff] %v7579_v4   ;;  %v5831_v31 = vadd.f32 %v10979_v7, %v5726_v37  ;;  %v5727_v44 = vmax.f32 %v11718_v0, %v5629_v38 }
 0x40b   : > { %v5832_v45 = vadd.f32 %v10979_v7, %v5727_v44  ;;  %v5929_v61 = vmax.f32 %v5831_v31, 0.0  ;;  %v11732_v31 = vld [vmem:[#allocation112_spill] sm:$0xff] }
 0x40c   : > { %v4545_v43 = vpop.f32.mrb[88].mxu0  ;;  %v5461_v47 = vpop.f32.mrb[88].mxu1  ;;  %v11733_v54 = vmax.f32 %v11731_v2, %v11732_v31 }
 0x40d   : > { %v5930_v62 = vmax.f32 %v5832_v45, 0.0  ;;  %v5630_v1 = vmax.f32 %v4545_v43, %v5461_v47  ;;  %v8442_v25 = vpop.f32.mrb[89].mxu0  ;;  %v8640_v59 = vpop.f32.mrb[89].mxu1  ;;  %v11734_v47 = vld [vmem:[#allocation113_spill] sm:$0xff] }
 0x40e   : > { %v4548_v60 = vpop.f32.mrb[90].mxu0  ;;  %v5464_v26 = vpop.f32.mrb[90].mxu1 }
 0x40f   : > { %v7584_v28 = vpack.c.bf16 %v5930_v62, %v5929_v61  ;;  %v5728_v12 = vmax.f32 %v11721_v11, %v5630_v1  ;;  %v5631_v13 = vmax.f32 %v4548_v60, %v5464_v26  ;;  %v8443_v48 = vpop.f32.mrb[91].mxu0  ;;  %v8641_v30 = vpop.f32.mrb[91].mxu1  ;;  %v11735_v61 = vld [vmem:[#allocation114_spill] sm:$0xff] }
 0x410   : > { %v11736_v62 = vmax.f32 %v11734_v47, %v11735_v61  ;;  %v11737_v30 = vld [vmem:[#allocation115_spill] sm:$0xff] }
 0x411   : > { %7681 = vst [vmem:[%s10630_s11 + $0x120] sm:$0xff] %v7584_v28   ;;  %v5833_v14 = vadd.f32 %v10979_v7, %v5728_v12  ;;  %v5729_v24 = vmax.f32 %v11724_v33, %v5631_v13 }
 0x413   : > { %v5834_v8 = vadd.f32 %v10979_v7, %v5729_v24  ;;  %v5931_v20 = vmax.f32 %v5833_v14, 0.0  ;;  %v11738_v14 = vld [vmem:[#allocation116_spill] sm:$0xff] }
 0x414   : > { %v4553_v9 = vpop.f32.mrb[92].mxu0  ;;  %v5469_v6 = vpop.f32.mrb[92].mxu1  ;;  %v11739_v40 = vmax.f32 %v11737_v30, %v11738_v14 }
 0x415   : > { %v5932_v51 = vmax.f32 %v5834_v8, 0.0  ;;  %v5632_v17 = vmax.f32 %v4553_v9, %v5469_v6  ;;  %v8446_v49 = vpop.f32.mrb[93].mxu0  ;;  %v8644_v50 = vpop.f32.mrb[93].mxu1  ;;  %v11740_v6 = vld [vmem:[#allocation117_spill] sm:$0xff] }
 0x416   : > { %v4556_v21 = vpop.f32.mrb[94].mxu0  ;;  %v5472_v52 = vpop.f32.mrb[94].mxu1 }
 0x417   : > { %v7589_v18 = vpack.c.bf16 %v5932_v51, %v5931_v20  ;;  %v5730_v19 = vmax.f32 %v11727_v42, %v5632_v17  ;;  %v5633_v63 = vmax.f32 %v4556_v21, %v5472_v52  ;;  %v8447_v53 = vpop.f32.mrb[95].mxu0  ;;  %v8645_v23 = vpop.f32.mrb[95].mxu1  ;;  %v11741_v20 = vld [vmem:[#allocation118_spill] sm:$0xff] }
 0x418   : > { %v11742_v51 = vmax.f32 %v11740_v6, %v11741_v20  ;;  %v11743_v23 = vld [vmem:[#allocation119_spill] sm:$0xff] }
 0x419   : > { %7682 = vst [vmem:[%s10630_s11 + $0x128] sm:$0xff] %v7589_v18   ;;  %v5835_v34 = vadd.f32 %v10979_v7, %v5730_v19  ;;  %v5731_v35 = vmax.f32 %v11730_v57, %v5633_v63 }
 0x41b   : > { %v5836_v36 = vadd.f32 %v10979_v7, %v5731_v35  ;;  %v5933_v27 = vmax.f32 %v5835_v34, 0.0  ;;  %v11744_v34 = vld [vmem:[#allocation120_spill] sm:$0xff] }
 0x41c   : > { %v4561_v39 = vpop.f32.mrb[96].mxu0  ;;  %v5477_v22 = vpop.f32.mrb[96].mxu1  ;;  %v11745_v16 = vmax.f32 %v11743_v23, %v11744_v34 }
 0x41d   : > { %v5934_v4 = vmax.f32 %v5836_v36, 0.0  ;;  %v5634_v46 = vmax.f32 %v4561_v39, %v5477_v22  ;;  %v8450_v55 = vpop.f32.mrb[97].mxu0  ;;  %v8648_v5 = vpop.f32.mrb[97].mxu1  ;;  %v11746_v22 = vld [vmem:[#allocation121_spill] sm:$0xff] }
 0x41e   : > { %v4564_v37 = vpop.f32.mrb[98].mxu0  ;;  %v5480_v38 = vpop.f32.mrb[98].mxu1 }
 0x41f   : > { %v7594_v10 = vpack.c.bf16 %v5934_v4, %v5933_v27  ;;  %v5732_v58 = vmax.f32 %v11733_v54, %v5634_v46  ;;  %v5635_v0 = vmax.f32 %v4564_v37, %v5480_v38  ;;  %v8451_v44 = vpop.f32.mrb[99].mxu0  ;;  %v8649_v45 = vpop.f32.mrb[99].mxu1  ;;  %v11747_v27 = vld [vmem:[#allocation122_spill] sm:$0xff] }
 0x420   : > { %v11748_v4 = vmax.f32 %v11746_v22, %v11747_v27  ;;  %v11749_v45 = vld [vmem:[#allocation123_spill] sm:$0xff] }
 0x421   : > { %7683 = vst [vmem:[%s10630_s11 + $0x130] sm:$0xff] %v7594_v10   ;;  %v5837_v43 = vadd.f32 %v10979_v7, %v5732_v58  ;;  %v5733_v1 = vmax.f32 %v11736_v62, %v5635_v0 }
 0x423   : > { %v5838_v25 = vadd.f32 %v10979_v7, %v5733_v1  ;;  %v5935_v26 = vmax.f32 %v5837_v43, 0.0  ;;  %v11750_v43 = vld [vmem:[#allocation124_spill] sm:$0xff] }
 0x424   : > { %v4569_v59 = vpop.f32.mrb[100].mxu0  ;;  %v5485_v60 = vpop.f32.mrb[100].mxu1  ;;  %v11751_v47 = vmax.f32 %v11749_v45, %v11750_v43 }
 0x425   : > { %v5936_v28 = vmax.f32 %v5838_v25, 0.0  ;;  %v5636_v29 = vmax.f32 %v4569_v59, %v5485_v60  ;;  %v8454_v15 = vpop.f32.mrb[101].mxu0  ;;  %v8652_v11 = vpop.f32.mrb[101].mxu1  ;;  %v11752_v60 = vld [vmem:[#allocation125_spill] sm:$0xff] }
 0x426   : > { %v4572_v12 = vpop.f32.mrb[102].mxu0  ;;  %v5488_v13 = vpop.f32.mrb[102].mxu1 }
 0x427   : > { %v7599_v48 = vpack.c.bf16 %v5936_v28, %v5935_v26  ;;  %v5734_v32 = vmax.f32 %v11739_v40, %v5636_v29  ;;  %v5637_v33 = vmax.f32 %v4572_v12, %v5488_v13  ;;  %v8455_v24 = vpop.f32.mrb[103].mxu0  ;;  %v8653_v8 = vpop.f32.mrb[103].mxu1  ;;  %v11753_v26 = vld [vmem:[#allocation126_spill] sm:$0xff] }
 0x428   : > { %v11754_v28 = vmax.f32 %v11752_v60, %v11753_v26  ;;  %v11755_v8 = vld [vmem:[#allocation127_spill] sm:$0xff] }
 0x429   : > { %7684 = vst [vmem:[%s10630_s11 + $0x138] sm:$0xff] %v7599_v48   ;;  %v5839_v9 = vadd.f32 %v10979_v7, %v5734_v32  ;;  %v5735_v17 = vmax.f32 %v11742_v51, %v5637_v33 }
 0x42b   : > { %v5840_v49 = vadd.f32 %v10979_v7, %v5735_v17  ;;  %v5937_v52 = vmax.f32 %v5839_v9, 0.0  ;;  %v11756_v9 = vld [vmem:[#allocation128_spill] sm:$0xff] }
 0x42c   : > { %v4577_v50 = vpop.f32.mrb[104].mxu0  ;;  %v5493_v21 = vpop.f32.mrb[104].mxu1  ;;  %v11757_v6 = vmax.f32 %v11755_v8, %v11756_v9 }
 0x42d   : > { %v5938_v18 = vmax.f32 %v5840_v49, 0.0  ;;  %v5638_v3 = vmax.f32 %v4577_v50, %v5493_v21  ;;  %v8458_v41 = vpop.f32.mrb[105].mxu0  ;;  %v8656_v42 = vpop.f32.mrb[105].mxu1  ;;  %v11758_v21 = vld [vmem:[#allocation129_spill] sm:$0xff] }
 0x42e   : > { %v4580_v19 = vpop.f32.mrb[106].mxu0  ;;  %v5496_v63 = vpop.f32.mrb[106].mxu1 }
 0x42f   : > { %v7604_v53 = vpack.c.bf16 %v5938_v18, %v5937_v52  ;;  %v5736_v56 = vmax.f32 %v11745_v16, %v5638_v3  ;;  %v5639_v57 = vmax.f32 %v4580_v19, %v5496_v63  ;;  %v8459_v35 = vpop.f32.mrb[107].mxu0  ;;  %v8657_v36 = vpop.f32.mrb[107].mxu1  ;;  %v11759_v52 = vld [vmem:[#allocation130_spill] sm:$0xff] }
 0x430   : > { %v11760_v18 = vmax.f32 %v11758_v21, %v11759_v52  ;;  %v11761_v36 = vld [vmem:[#allocation131_spill] sm:$0xff] }
 0x431   : > { %7685 = vst [vmem:[%s10630_s11 + $0x140] sm:$0xff] %v7604_v53   ;;  %v5841_v39 = vadd.f32 %v10979_v7, %v5736_v56  ;;  %v5737_v46 = vmax.f32 %v11748_v4, %v5639_v57 }
 0x433   : > { %v5842_v55 = vadd.f32 %v10979_v7, %v5737_v46  ;;  %v5939_v38 = vmax.f32 %v5841_v39, 0.0  ;;  %v11762_v39 = vld [vmem:[#allocation132_spill] sm:$0xff] }
 0x434   : > { %v4585_v5 = vpop.f32.mrb[108].mxu0  ;;  %v5501_v37 = vpop.f32.mrb[108].mxu1  ;;  %v11763_v22 = vmax.f32 %v11761_v36, %v11762_v39 }
 0x435   : > { %v5940_v10 = vmax.f32 %v5842_v55, 0.0  ;;  %v5640_v2 = vmax.f32 %v4585_v5, %v5501_v37  ;;  %v8462_v31 = vpop.f32.mrb[109].mxu0  ;;  %v8660_v54 = vpop.f32.mrb[109].mxu1  ;;  %v11764_v37 = vld [vmem:[#allocation133_spill] sm:$0xff] }
 0x436   : > { %v4588_v58 = vpop.f32.mrb[110].mxu0  ;;  %v5504_v0 = vpop.f32.mrb[110].mxu1 }
 0x437   : > { %v7609_v44 = vpack.c.bf16 %v5940_v10, %v5939_v38  ;;  %v5738_v61 = vmax.f32 %v11751_v47, %v5640_v2  ;;  %v5641_v62 = vmax.f32 %v4588_v58, %v5504_v0  ;;  %v8463_v1 = vpop.f32.mrb[111].mxu0  ;;  %v8661_v25 = vpop.f32.mrb[111].mxu1  ;;  %v11765_v38 = vld [vmem:[#allocation134_spill] sm:$0xff] }
 0x438   : > { %v11766_v10 = vmax.f32 %v11764_v37, %v11765_v38  ;;  %v11767_v25 = vld [vmem:[#allocation135_spill] sm:$0xff] }
 0x439   : > { %7686 = vst [vmem:[%s10630_s11 + $0x148] sm:$0xff] %v7609_v44   ;;  %v5843_v59 = vadd.f32 %v10979_v7, %v5738_v61  ;;  %v5739_v29 = vmax.f32 %v11754_v28, %v5641_v62 }
 0x43b   : > { %v5844_v15 = vadd.f32 %v10979_v7, %v5739_v29  ;;  %v5941_v13 = vmax.f32 %v5843_v59, 0.0  ;;  %v11768_v59 = vld [vmem:[#allocation136_spill] sm:$0xff] }
 0x43c   : > { %v4593_v11 = vpop.f32.mrb[112].mxu0  ;;  %v5509_v12 = vpop.f32.mrb[112].mxu1  ;;  %v11769_v60 = vmax.f32 %v11767_v25, %v11768_v59 }
 0x43d   : > { %v5942_v48 = vmax.f32 %v5844_v15, 0.0  ;;  %v5642_v30 = vmax.f32 %v4593_v11, %v5509_v12  ;;  %v8466_v14 = vpop.f32.mrb[113].mxu0  ;;  %v8664_v40 = vpop.f32.mrb[113].mxu1  ;;  %v11770_v12 = vld [vmem:[#allocation137_spill] sm:$0xff] }
 0x43e   : > { %v4596_v32 = vpop.f32.mrb[114].mxu0  ;;  %v5512_v33 = vpop.f32.mrb[114].mxu1 }
 0x43f   : > { %v7614_v24 = vpack.c.bf16 %v5942_v48, %v5941_v13  ;;  %v5740_v20 = vmax.f32 %v11757_v6, %v5642_v30  ;;  %v5643_v51 = vmax.f32 %v4596_v32, %v5512_v33  ;;  %v8467_v17 = vpop.f32.mrb[115].mxu0  ;;  %v8665_v49 = vpop.f32.mrb[115].mxu1  ;;  %v11771_v13 = vld [vmem:[#allocation138_spill] sm:$0xff] }
 0x440   : > { %v11772_v48 = vmax.f32 %v11770_v12, %v11771_v13  ;;  %v11773_v49 = vld [vmem:[#allocation139_spill] sm:$0xff] }
 0x441   : > { %7687 = vst [vmem:[%s10630_s11 + $0x150] sm:$0xff] %v7614_v24   ;;  %v5845_v50 = vadd.f32 %v10979_v7, %v5740_v20  ;;  %v5741_v3 = vmax.f32 %v11760_v18, %v5643_v51 }
 0x443   : > { %v5846_v41 = vadd.f32 %v10979_v7, %v5741_v3  ;;  %v5943_v63 = vmax.f32 %v5845_v50, 0.0  ;;  %v11774_v50 = vld [vmem:[#allocation140_spill] sm:$0xff] }
 0x444   : > { %v4601_v42 = vpop.f32.mrb[116].mxu0  ;;  %v5517_v19 = vpop.f32.mrb[116].mxu1  ;;  %v11775_v21 = vmax.f32 %v11773_v49, %v11774_v50 }
 0x445   : > { %v5944_v53 = vmax.f32 %v5846_v41, 0.0  ;;  %v5644_v23 = vmax.f32 %v4601_v42, %v5517_v19  ;;  %v8470_v34 = vpop.f32.mrb[117].mxu0  ;;  %v8668_v16 = vpop.f32.mrb[117].mxu1  ;;  %v11776_v19 = vld [vmem:[#allocation141_spill] sm:$0xff] }
 0x446   : > { %v4604_v56 = vpop.f32.mrb[118].mxu0  ;;  %v5520_v57 = vpop.f32.mrb[118].mxu1 }
 0x447   : > { %v7619_v35 = vpack.c.bf16 %v5944_v53, %v5943_v63  ;;  %v5742_v27 = vmax.f32 %v11763_v22, %v5644_v23  ;;  %v5645_v4 = vmax.f32 %v4604_v56, %v5520_v57  ;;  %v8471_v46 = vpop.f32.mrb[119].mxu0  ;;  %v8669_v55 = vpop.f32.mrb[119].mxu1  ;;  %v11777_v63 = vld [vmem:[#allocation142_spill] sm:$0xff] }
 0x448   : > { %v11778_v53 = vmax.f32 %v11776_v19, %v11777_v63  ;;  %v11779_v55 = vld [vmem:[#allocation143_spill] sm:$0xff] }
 0x449   : > { %7688 = vst [vmem:[%s10630_s11 + $0x158] sm:$0xff] %v7619_v35   ;;  %v5847_v5 = vadd.f32 %v10979_v7, %v5742_v27  ;;  %v5743_v2 = vmax.f32 %v11766_v10, %v5645_v4 }
 0x44b   : > { %v5848_v31 = vadd.f32 %v10979_v7, %v5743_v2  ;;  %v5945_v0 = vmax.f32 %v5847_v5, 0.0  ;;  %v11780_v5 = vld [vmem:[#allocation144_spill] sm:$0xff] }
 0x44c   : > { %v4609_v54 = vpop.f32.mrb[120].mxu0  ;;  %v5525_v58 = vpop.f32.mrb[120].mxu1  ;;  %v11781_v37 = vmax.f32 %v11779_v55, %v11780_v5 }
 0x44d   : > { %v5946_v44 = vmax.f32 %v5848_v31, 0.0  ;;  %v5646_v45 = vmax.f32 %v4609_v54, %v5525_v58  ;;  %v8474_v43 = vpop.f32.mrb[121].mxu0  ;;  %v8672_v47 = vpop.f32.mrb[121].mxu1  ;;  %v11782_v58 = vld [vmem:[#allocation145_spill] sm:$0xff] }
 0x44e   : > { %v4612_v61 = vpop.f32.mrb[122].mxu0  ;;  %v5528_v62 = vpop.f32.mrb[122].mxu1 }
 0x44f   : > { %v7624_v1 = vpack.c.bf16 %v5946_v44, %v5945_v0  ;;  %v5744_v26 = vmax.f32 %v11769_v60, %v5646_v45  ;;  %v5647_v28 = vmax.f32 %v4612_v61, %v5528_v62  ;;  %v8475_v29 = vpop.f32.mrb[123].mxu0  ;;  %v8673_v15 = vpop.f32.mrb[123].mxu1  ;;  %v11783_v0 = vld [vmem:[#allocation146_spill] sm:$0xff] }
 0x450   : > { %v11784_v44 = vmax.f32 %v11782_v58, %v11783_v0  ;;  %v11785_v15 = vld [vmem:[#allocation147_spill] sm:$0xff] }
 0x451   : > { %7689 = vst [vmem:[%s10630_s11 + $0x160] sm:$0xff] %v7624_v1   ;;  %v5849_v11 = vadd.f32 %v10979_v7, %v5744_v26  ;;  %v5745_v30 = vmax.f32 %v11772_v48, %v5647_v28 }
 0x453   : > { %v5850_v14 = vadd.f32 %v10979_v7, %v5745_v30  ;;  %v5947_v33 = vmax.f32 %v5849_v11, 0.0  ;;  %v11786_v11 = vld [vmem:[#allocation148_spill] sm:$0xff] }
 0x454   : > { %v4617_v40 = vpop.f32.mrb[124].mxu0  ;;  %v5533_v32 = vpop.f32.mrb[124].mxu1  ;;  %v11787_v12 = vmax.f32 %v11785_v15, %v11786_v11 }
 0x455   : > { %v5948_v24 = vmax.f32 %v5850_v14, 0.0  ;;  %v5648_v8 = vmax.f32 %v4617_v40, %v5533_v32  ;;  %v8478_v9 = vpop.f32.mrb[125].mxu0  ;;  %v8676_v6 = vpop.f32.mrb[125].mxu1  ;;  %v11788_v32 = vld [vmem:[#allocation149_spill] sm:$0xff] }
 0x456   : > { %v4620_v20 = vpop.f32.mrb[126].mxu0  ;;  %v5536_v51 = vpop.f32.mrb[126].mxu1 }
 0x457   : > { %v7629_v17 = vpack.c.bf16 %v5948_v24, %v5947_v33  ;;  %v5746_v52 = vmax.f32 %v11775_v21, %v5648_v8  ;;  %v5649_v18 = vmax.f32 %v4620_v20, %v5536_v51  ;;  %v8479_v3 = vpop.f32.mrb[127].mxu0  ;;  %v8677_v41 = vpop.f32.mrb[127].mxu1  ;;  %v11789_v33 = vld [vmem:[#allocation150_spill] sm:$0xff] }
 0x458   : > { %v11790_v24 = vmax.f32 %v11788_v32, %v11789_v33 }
 0x459   : > { %7690 = vst [vmem:[%s10630_s11 + $0x168] sm:$0xff] %v7629_v17   ;;  %v5851_v42 = vadd.f32 %v10979_v7, %v5746_v52  ;;  %v5747_v23 = vmax.f32 %v11778_v53, %v5649_v18 }
 0x45b   : > { %v5852_v34 = vadd.f32 %v10979_v7, %v5747_v23  ;;  %v5949_v57 = vmax.f32 %v5851_v42, 0.0 }
 0x45c   : > { %v4625_v16 = vpop.f32.mrb[128].mxu0  ;;  %v5541_v56 = vpop.f32.mrb[128].mxu1 }
 0x45d   : > { %v5950_v35 = vmax.f32 %v5852_v34, 0.0  ;;  %v5650_v36 = vmax.f32 %v4625_v16, %v5541_v56  ;;  %v8482_v39 = vpop.f32.mrb[129].mxu0  ;;  %v8680_v22 = vpop.f32.mrb[129].mxu1 }
 0x45e   : > { %v4628_v27 = vpop.f32.mrb[130].mxu0  ;;  %v5544_v4 = vpop.f32.mrb[130].mxu1 }
 0x45f   : > { %v7634_v46 = vpack.c.bf16 %v5950_v35, %v5949_v57  ;;  %v5748_v38 = vmax.f32 %v11781_v37, %v5650_v36  ;;  %v5651_v10 = vmax.f32 %v4628_v27, %v5544_v4  ;;  %v8483_v2 = vpop.f32.mrb[131].mxu0  ;;  %v8681_v31 = vpop.f32.mrb[131].mxu1 }
 0x461   : > { %7691 = vst [vmem:[%s10630_s11 + $0x170] sm:$0xff] %v7634_v46   ;;  %v5853_v54 = vadd.f32 %v10979_v7, %v5748_v38  ;;  %v5749_v45 = vmax.f32 %v11784_v44, %v5651_v10 }
 0x463   : > { %v5854_v43 = vadd.f32 %v10979_v7, %v5749_v45  ;;  %v5951_v62 = vmax.f32 %v5853_v54, 0.0 }
 0x464   : > { %v4633_v47 = vpop.f32.mrb[132].mxu0  ;;  %v5549_v61 = vpop.f32.mrb[132].mxu1 }
 0x465   : > { %v5952_v1 = vmax.f32 %v5854_v43, 0.0  ;;  %v5652_v25 = vmax.f32 %v4633_v47, %v5549_v61  ;;  %v8486_v59 = vpop.f32.mrb[133].mxu0  ;;  %v8684_v60 = vpop.f32.mrb[133].mxu1 }
 0x466   : > { %v4636_v26 = vpop.f32.mrb[134].mxu0  ;;  %v5552_v28 = vpop.f32.mrb[134].mxu1 }
 0x467   : > { %v7639_v29 = vpack.c.bf16 %v5952_v1, %v5951_v62  ;;  %v5750_v13 = vmax.f32 %v11787_v12, %v5652_v25  ;;  %v5653_v48 = vmax.f32 %v4636_v26, %v5552_v28  ;;  %v8487_v30 = vpop.f32.mrb[135].mxu0  ;;  %v8685_v14 = vpop.f32.mrb[135].mxu1 }
 0x469   : > { %7692 = vst [vmem:[%s10630_s11 + $0x178] sm:$0xff] %v7639_v29   ;;  %v5855_v40 = vadd.f32 %v10979_v7, %v5750_v13  ;;  %v5751_v8 = vmax.f32 %v11790_v24, %v5653_v48 }
 0x46b   : > { %v5856_v9 = vadd.f32 %v10979_v7, %v5751_v8  ;;  %v5953_v6 = vmax.f32 %v5855_v40, 0.0 }
 0x46d   : > { %v5954_v20 = vmax.f32 %v5856_v9, 0.0 }
 0x46f   : > { %v7644_v51 = vpack.c.bf16 %v5954_v20, %v5953_v6 }
 0x471   : > { %7693 = vst [vmem:[%s10630_s11 + $0x180] sm:$0xff] %v7644_v51  }
 0x472 PF: > { %p10_p9 = scmp.ge.s32.totalorder %s8977_s16, 4   ;;  %s11791_s12 = smov %s8931_s13 }
 0x473   : > { %s11792_s13 = smov %s8986_s19  ;;  %s11793_s14 = smov %s8977_s16 }
 0x474   :  { %12 = sbr.rel (!%p10_p9) target bundleno = 2 (0x2), region = 111 }

// kernel: _lambda_.4
= control target key start
LH: loop header
LB: loop body
LE: loop exit
PB: predicated region body
PF: predicated region fallthrough
CT: control target
= control target key end

     0   :  { %v4986_v0 = vmov 0.0   ;;  %vm3753_vm0 = vmmov 0   ;;  %vm294_vm1 = vcmask 1042432   ;;  %vm218_vm2 = vcmask 441344   ;;  %s4982_s1 = inlined_call_operand.vmem [shape: bf16[54,128], index: 1, kind: input, shape index: {}]   ;;  %s4983_s0 = inlined_call_operand.vmem [shape: bf16[4,400,54], index: 0, kind: input, shape index: {}]   ;;  %s4984_s2 = inlined_call_operand.vmem [shape: f32[1,128], index: 2, kind: input, shape index: {}]   ;;  %s4985_s3 = inlined_call_operand.vmem [shape: bf16[400,128], index: 3, kind: output, shape index: {}]  }
   0x1   :  { %3214 = vmatprep.subr.bf16.mxu0 %v4986_v0  ;;  %3322 = vmatprep.subr.bf16.mxu1 %v4986_v0  ;;  %v3648_v1 = vld [vmem:[%s4982_s1] sm:$0xff]   ;;  %v3649_v2 = vld [vmem:[%s4982_s1 + $0x8] sm:$0xff]   ;;  %v3651_v3 = vld [vmem:[%s4982_s1 + $0x18] ss:$0 sps:$4 sm:$0x77]  }
   0x2   :  { %3222 = vmatprep.mubr.msk.bf16.mxu0 %vm3753_vm0, %v4986_v0  ;;  %3330 = vmatprep.mubr.msk.bf16.mxu1 %vm3753_vm0, %v4986_v0  ;;  %v3650_v4 = vld [vmem:[%s4982_s1 + $0x10] sm:$0xff]   ;;  %v296_v5 = vsel %vm294_vm1, %v3651_v3, 0  ;;  %v3652_v6 = vld [vmem:[%s4983_s0] sm:$0xff]   ;;  %v3653_v7 = vld [vmem:[%s4983_s0 + $0xc8] sm:$0xff]  }
   0x3   :  { %3215 = vmatpush3.bf16.msra.mxu0 %v3648_v1  ;;  %3323 = vmatpush3.bf16.msra.mxu1 %v3648_v1  ;;  %v3654_v8 = vld [vmem:[%s4983_s0 + $0x8] sm:$0xff]   ;;  %v3655_v9 = vld [vmem:[%s4983_s0 + $0xd0] sm:$0xff]   ;;  %v3657_v11 = vld [vmem:[%s4983_s0 + $0xd8] sm:$0xff]  }
   0x4   :  { %3216 = vmatprep.subr.bf16.mxu0 %v4986_v0  ;;  %3324 = vmatprep.subr.bf16.mxu1 %v4986_v0  ;;  %v3656_v10 = vld [vmem:[%s4983_s0 + $0x10] sm:$0xff]   ;;  %v3658_v12 = vld [vmem:[%s4983_s0 + $0x18] sm:$0xff]   ;;  %v3659_v13 = vld [vmem:[%s4983_s0 + $0xe0] sm:$0xff]  }
   0x5   :  { %v3660_v14 = vld [vmem:[%s4983_s0 + $0x20] sm:$0xff]   ;;  %v3661_v15 = vld [vmem:[%s4983_s0 + $0xe8] sm:$0xff]   ;;  %v3663_v17 = vld [vmem:[%s4983_s0 + $0xf0] sm:$0xff]  }
   0x6   :  { %v3662_v16 = vld [vmem:[%s4983_s0 + $0x28] sm:$0xff]   ;;  %v3664_v18 = vld [vmem:[%s4983_s0 + $0x30] sm:$0xff]   ;;  %v3665_v19 = vld [vmem:[%s4983_s0 + $0xf8] sm:$0xff]  }
   0x7   :  { %3217 = vmatpush3.bf16.msra.mxu0 %v3649_v2  ;;  %3325 = vmatpush3.bf16.msra.mxu1 %v3649_v2  ;;  %v3666_v20 = vld [vmem:[%s4983_s0 + $0x38] sm:$0xff]   ;;  %v3667_v21 = vld [vmem:[%s4983_s0 + $0x100] sm:$0xff]   ;;  %v3669_v23 = vld [vmem:[%s4983_s0 + $0x108] sm:$0xff]  }
   0x8   :  { %3218 = vmatprep.subr.bf16.mxu0 %v4986_v0  ;;  %3326 = vmatprep.subr.bf16.mxu1 %v4986_v0  ;;  %v3668_v22 = vld [vmem:[%s4983_s0 + $0x40] sm:$0xff]   ;;  %v3670_v24 = vld [vmem:[%s4983_s0 + $0x48] sm:$0xff]   ;;  %v3671_v25 = vld [vmem:[%s4983_s0 + $0x110] sm:$0xff]  }
   0x9   :  { %v3672_v26 = vld [vmem:[%s4983_s0 + $0x50] sm:$0xff]   ;;  %v3673_v27 = vld [vmem:[%s4983_s0 + $0x118] sm:$0xff]   ;;  %v3675_v29 = vld [vmem:[%s4983_s0 + $0x120] sm:$0xff]  }
   0xa   :  { %v3674_v28 = vld [vmem:[%s4983_s0 + $0x58] sm:$0xff]   ;;  %v3676_v30 = vld [vmem:[%s4983_s0 + $0x60] sm:$0xff]   ;;  %v3677_v31 = vld [vmem:[%s4983_s0 + $0x128] sm:$0xff]  }
   0xb   :  { %3219 = vmatpush3.bf16.msra.mxu0 %v3650_v4  ;;  %3327 = vmatpush3.bf16.msra.mxu1 %v3650_v4  ;;  %v3678_v32 = vld [vmem:[%s4983_s0 + $0x68] sm:$0xff]   ;;  %v3679_v33 = vld [vmem:[%s4983_s0 + $0x130] sm:$0xff]   ;;  %v3681_v35 = vld [vmem:[%s4983_s0 + $0x138] sm:$0xff]  }
   0xc   :  { %3220 = vmatprep.subr.bf16.mxu0 %v4986_v0  ;;  %3328 = vmatprep.subr.bf16.mxu1 %v4986_v0  ;;  %v3680_v34 = vld [vmem:[%s4983_s0 + $0x70] sm:$0xff]   ;;  %v3682_v36 = vld [vmem:[%s4983_s0 + $0x78] sm:$0xff]   ;;  %v3683_v37 = vld [vmem:[%s4983_s0 + $0x140] sm:$0xff]  }
   0xd   :  { %v3684_v38 = vld [vmem:[%s4983_s0 + $0x80] sm:$0xff]   ;;  %v3685_v39 = vld [vmem:[%s4983_s0 + $0x148] sm:$0xff]   ;;  %v3687_v41 = vld [vmem:[%s4983_s0 + $0x150] sm:$0xff]  }
   0xe   :  { %v3686_v40 = vld [vmem:[%s4983_s0 + $0x88] sm:$0xff]   ;;  %v3688_v42 = vld [vmem:[%s4983_s0 + $0x90] sm:$0xff]   ;;  %v3689_v43 = vld [vmem:[%s4983_s0 + $0x158] sm:$0xff]  }
   0xf   :  { %3221 = vmatpush3.bf16.msra.mxu0 %v296_v5  ;;  %3329 = vmatpush3.bf16.msra.mxu1 %v296_v5  ;;  %v3690_v44 = vld [vmem:[%s4983_s0 + $0x98] sm:$0xff]   ;;  %v3691_v45 = vld [vmem:[%s4983_s0 + $0x160] sm:$0xff]   ;;  %v3693_v47 = vld [vmem:[%s4983_s0 + $0x168] sm:$0xff]  }
  0x10   :  { %3430 = vmatprep.subr.bf16.mxu0 %v4986_v0  ;;  %3538 = vmatprep.subr.bf16.mxu1 %v4986_v0  ;;  %v3692_v46 = vld [vmem:[%s4983_s0 + $0xa0] sm:$0xff]   ;;  %v3694_v48 = vld [vmem:[%s4983_s0 + $0xa8] sm:$0xff]   ;;  %v3695_v49 = vld [vmem:[%s4983_s0 + $0x170] sm:$0xff]  }
  0x11   :  { %v3696_v50 = vld [vmem:[%s4983_s0 + $0xb0] sm:$0xff]   ;;  %v3697_v51 = vld [vmem:[%s4983_s0 + $0x178] sm:$0xff]   ;;  %v3699_v53 = vld [vmem:[%s4983_s0 + $0x180] sm:$0xff]  }
  0x12   :  { %3223 = vmatmul.mubr.msk.bf16.vlgmr.msra.gmra.mrb[0].mxu0 %vm218_vm2, %v3652_v6  ;;  %3331 = vmatmul.mubr.msk.bf16.vlgmr.msra.gmra.mrb[0].mxu1 %vm218_vm2, %v3653_v7  ;;  %v3698_v52 = vld [vmem:[%s4983_s0 + $0xb8] sm:$0xff]   ;;  %v3700_v54 = vld [vmem:[%s4983_s0 + $0xc0] sm:$0xff]   ;;  %v3701_v55 = vld [vmem:[%s4983_s0 + $0x188] sm:$0xff]  }
  0x13   :  { %3431 = vmatpush3.bf16.msra.mxu0 %v3648_v1  ;;  %3539 = vmatpush3.bf16.msra.mxu1 %v3648_v1  ;;  %v3702_v56 = vld [vmem:[%s4983_s0 + $0x190] sm:$0xff]   ;;  %v3703_v57 = vld [vmem:[%s4983_s0 + $0x258] sm:$0xff]   ;;  %v3705_v59 = vld [vmem:[%s4983_s0 + $0x260] sm:$0xff]  }
  0x14   :  { %3226 = vmatprep.mubr.msk.bf16.mxu0 %vm3753_vm0, %v4986_v0  ;;  %3334 = vmatprep.mubr.msk.bf16.mxu1 %vm3753_vm0, %v4986_v0  ;;  %v3704_v58 = vld [vmem:[%s4983_s0 + $0x198] sm:$0xff]   ;;  %v3707_v3 = vld [vmem:[%s4983_s0 + $0x268] sm:$0xff]  }
  0x15   :  { %3432 = vmatprep.subr.bf16.mxu0 %v4986_v0  ;;  %3540 = vmatprep.subr.bf16.mxu1 %v4986_v0 }
  0x17   :  { %3433 = vmatpush3.bf16.msra.mxu0 %v3649_v2  ;;  %3541 = vmatpush3.bf16.msra.mxu1 %v3649_v2  ;;  %v3706_v2 = vld [vmem:[%s4983_s0 + $0x1a0] sm:$0xff]  }
  0x18   :  { %3434 = vmatprep.subr.bf16.mxu0 %v4986_v0  ;;  %3542 = vmatprep.subr.bf16.mxu1 %v4986_v0 }
  0x1a   :  { %3227 = vmatmul.mubr.msk.bf16.gmra.mrb[4].mxu0 %vm218_vm2, %v3654_v8  ;;  %3335 = vmatmul.mubr.msk.bf16.gmra.mrb[4].mxu1 %vm218_vm2, %v3655_v9 }
  0x1b   :  { %3230 = vmatprep.mubr.msk.bf16.mxu0 %vm3753_vm0, %v4986_v0  ;;  %3338 = vmatprep.mubr.msk.bf16.mxu1 %vm3753_vm0, %v4986_v0 }
  0x1c   :  { %3435 = vmatpush3.bf16.msra.mxu0 %v3650_v4  ;;  %3543 = vmatpush3.bf16.msra.mxu1 %v3650_v4 }
  0x1d   :  { %3436 = vmatprep.subr.bf16.mxu0 %v4986_v0  ;;  %3544 = vmatprep.subr.bf16.mxu1 %v4986_v0 }
  0x20   :  { %3437 = vmatpush3.bf16.msra.mxu0 %v296_v5  ;;  %3545 = vmatpush3.bf16.msra.mxu1 %v296_v5 }
  0x22   :  { %3231 = vmatmul.mubr.msk.bf16.gmra.mrb[8].mxu0 %vm218_vm2, %v3656_v10  ;;  %3339 = vmatmul.mubr.msk.bf16.gmra.mrb[8].mxu1 %vm218_vm2, %v3657_v11 }
  0x23   :  { %3234 = vmatprep.mubr.msk.bf16.mxu0 %vm3753_vm0, %v4986_v0  ;;  %3342 = vmatprep.mubr.msk.bf16.mxu1 %vm3753_vm0, %v4986_v0 }
  0x2a   :  { %3235 = vmatmul.mubr.msk.bf16.gmra.mrb[12].mxu0 %vm218_vm2, %v3658_v12  ;;  %3343 = vmatmul.mubr.msk.bf16.gmra.mrb[12].mxu1 %vm218_vm2, %v3659_v13 }
  0x2b   :  { %3238 = vmatprep.mubr.msk.bf16.mxu0 %vm3753_vm0, %v4986_v0  ;;  %3346 = vmatprep.mubr.msk.bf16.mxu1 %vm3753_vm0, %v4986_v0 }
  0x32   :  { %3239 = vmatmul.mubr.msk.bf16.gmra.mrb[16].mxu0 %vm218_vm2, %v3660_v14  ;;  %3347 = vmatmul.mubr.msk.bf16.gmra.mrb[16].mxu1 %vm218_vm2, %v3661_v15  ;;  %v3708_v14 = vld [vmem:[%s4983_s0 + $0x1a8] sm:$0xff]   ;;  %v3709_v15 = vld [vmem:[%s4983_s0 + $0x270] sm:$0xff]  }
  0x33   :  { %3242 = vmatprep.mubr.msk.bf16.mxu0 %vm3753_vm0, %v4986_v0  ;;  %3350 = vmatprep.mubr.msk.bf16.mxu1 %vm3753_vm0, %v4986_v0 }
  0x3a   :  { %3243 = vmatmul.mubr.msk.bf16.gmra.mrb[20].mxu0 %vm218_vm2, %v3662_v16  ;;  %3351 = vmatmul.mubr.msk.bf16.gmra.mrb[20].mxu1 %vm218_vm2, %v3663_v17 }
  0x3b   :  { %3246 = vmatprep.mubr.msk.bf16.mxu0 %vm3753_vm0, %v4986_v0  ;;  %3354 = vmatprep.mubr.msk.bf16.mxu1 %vm3753_vm0, %v4986_v0 }
  0x42   :  { %3247 = vmatmul.mubr.msk.bf16.gmra.mrb[24].mxu0 %vm218_vm2, %v3664_v18  ;;  %3355 = vmatmul.mubr.msk.bf16.gmra.mrb[24].mxu1 %vm218_vm2, %v3665_v19 }
  0x43   :  { %3250 = vmatprep.mubr.msk.bf16.mxu0 %vm3753_vm0, %v4986_v0  ;;  %3358 = vmatprep.mubr.msk.bf16.mxu1 %vm3753_vm0, %v4986_v0 }
  0x4a   :  { %3251 = vmatmul.mubr.msk.bf16.gmra.mrb[28].mxu0 %vm218_vm2, %v3666_v20  ;;  %3359 = vmatmul.mubr.msk.bf16.gmra.mrb[28].mxu1 %vm218_vm2, %v3667_v21 }
  0x4b   :  { %3254 = vmatprep.mubr.msk.bf16.mxu0 %vm3753_vm0, %v4986_v0  ;;  %3362 = vmatprep.mubr.msk.bf16.mxu1 %vm3753_vm0, %v4986_v0 }
  0x52   :  { %3255 = vmatmul.mubr.msk.bf16.gmra.mrb[32].mxu0 %vm218_vm2, %v3668_v22  ;;  %3363 = vmatmul.mubr.msk.bf16.gmra.mrb[32].mxu1 %vm218_vm2, %v3669_v23 }
  0x53   :  { %3258 = vmatprep.mubr.msk.bf16.mxu0 %vm3753_vm0, %v4986_v0  ;;  %3366 = vmatprep.mubr.msk.bf16.mxu1 %vm3753_vm0, %v4986_v0 }
  0x5a   :  { %3259 = vmatmul.mubr.msk.bf16.gmra.mrb[36].mxu0 %vm218_vm2, %v3670_v24  ;;  %3367 = vmatmul.mubr.msk.bf16.gmra.mrb[36].mxu1 %vm218_vm2, %v3671_v25 }
  0x5b   :  { %3262 = vmatprep.mubr.msk.bf16.mxu0 %vm3753_vm0, %v4986_v0  ;;  %3370 = vmatprep.mubr.msk.bf16.mxu1 %vm3753_vm0, %v4986_v0 }
  0x62   :  { %3263 = vmatmul.mubr.msk.bf16.gmra.mrb[40].mxu0 %vm218_vm2, %v3672_v26  ;;  %3371 = vmatmul.mubr.msk.bf16.gmra.mrb[40].mxu1 %vm218_vm2, %v3673_v27  ;;  %v3710_v26 = vld [vmem:[%s4983_s0 + $0x1b0] sm:$0xff]   ;;  %v3711_v27 = vld [vmem:[%s4983_s0 + $0x278] sm:$0xff]  }
  0x63   :  { %3266 = vmatprep.mubr.msk.bf16.mxu0 %vm3753_vm0, %v4986_v0  ;;  %3374 = vmatprep.mubr.msk.bf16.mxu1 %vm3753_vm0, %v4986_v0 }
  0x6a   :  { %3267 = vmatmul.mubr.msk.bf16.gmra.mrb[44].mxu0 %vm218_vm2, %v3674_v28  ;;  %3375 = vmatmul.mubr.msk.bf16.gmra.mrb[44].mxu1 %vm218_vm2, %v3675_v29 }
  0x6b   :  { %3270 = vmatprep.mubr.msk.bf16.mxu0 %vm3753_vm0, %v4986_v0  ;;  %3378 = vmatprep.mubr.msk.bf16.mxu1 %vm3753_vm0, %v4986_v0 }
  0x72   :  { %3271 = vmatmul.mubr.msk.bf16.gmra.mrb[48].mxu0 %vm218_vm2, %v3676_v30  ;;  %3379 = vmatmul.mubr.msk.bf16.gmra.mrb[48].mxu1 %vm218_vm2, %v3677_v31 }
  0x73   :  { %3274 = vmatprep.mubr.msk.bf16.mxu0 %vm3753_vm0, %v4986_v0  ;;  %3382 = vmatprep.mubr.msk.bf16.mxu1 %vm3753_vm0, %v4986_v0 }
  0x7a   :  { %3275 = vmatmul.mubr.msk.bf16.gmra.mrb[52].mxu0 %vm218_vm2, %v3678_v32  ;;  %3383 = vmatmul.mubr.msk.bf16.gmra.mrb[52].mxu1 %vm218_vm2, %v3679_v33 }
  0x7b   :  { %3278 = vmatprep.mubr.msk.bf16.mxu0 %vm3753_vm0, %v4986_v0  ;;  %3386 = vmatprep.mubr.msk.bf16.mxu1 %vm3753_vm0, %v4986_v0 }
  0x82   :  { %3279 = vmatmul.mubr.msk.bf16.gmra.mrb[56].mxu0 %vm218_vm2, %v3680_v34  ;;  %3387 = vmatmul.mubr.msk.bf16.gmra.mrb[56].mxu1 %vm218_vm2, %v3681_v35 }
  0x83   :  { %3282 = vmatprep.mubr.msk.bf16.mxu0 %vm3753_vm0, %v4986_v0  ;;  %3390 = vmatprep.mubr.msk.bf16.mxu1 %vm3753_vm0, %v4986_v0 }
  0x8a   :  { %3283 = vmatmul.mubr.msk.bf16.gmra.mrb[60].mxu0 %vm218_vm2, %v3682_v36  ;;  %3391 = vmatmul.mubr.msk.bf16.gmra.mrb[60].mxu1 %vm218_vm2, %v3683_v37 }
  0x8b   :  { %3286 = vmatprep.mubr.msk.bf16.mxu0 %vm3753_vm0, %v4986_v0  ;;  %3394 = vmatprep.mubr.msk.bf16.mxu1 %vm3753_vm0, %v4986_v0 }
  0x92   :  { %3287 = vmatmul.mubr.msk.bf16.gmra.mrb[64].mxu0 %vm218_vm2, %v3684_v38  ;;  %3395 = vmatmul.mubr.msk.bf16.gmra.mrb[64].mxu1 %vm218_vm2, %v3685_v39  ;;  %v3712_v38 = vld [vmem:[%s4983_s0 + $0x1b8] sm:$0xff]   ;;  %v3713_v39 = vld [vmem:[%s4983_s0 + $0x280] sm:$0xff]  }
  0x93   :  { %3290 = vmatprep.mubr.msk.bf16.mxu0 %vm3753_vm0, %v4986_v0  ;;  %3398 = vmatprep.mubr.msk.bf16.mxu1 %vm3753_vm0, %v4986_v0 }
  0x9a   :  { %3291 = vmatmul.mubr.msk.bf16.gmra.mrb[68].mxu0 %vm218_vm2, %v3686_v40  ;;  %3399 = vmatmul.mubr.msk.bf16.gmra.mrb[68].mxu1 %vm218_vm2, %v3687_v41 }
  0x9b   :  { %3294 = vmatprep.mubr.msk.bf16.mxu0 %vm3753_vm0, %v4986_v0  ;;  %3402 = vmatprep.mubr.msk.bf16.mxu1 %vm3753_vm0, %v4986_v0 }
  0xa2   :  { %3295 = vmatmul.mubr.msk.bf16.gmra.mrb[72].mxu0 %vm218_vm2, %v3688_v42  ;;  %3403 = vmatmul.mubr.msk.bf16.gmra.mrb[72].mxu1 %vm218_vm2, %v3689_v43 }
  0xa3   :  { %3298 = vmatprep.mubr.msk.bf16.mxu0 %vm3753_vm0, %v4986_v0  ;;  %3406 = vmatprep.mubr.msk.bf16.mxu1 %vm3753_vm0, %v4986_v0 }
  0xaa   :  { %3299 = vmatmul.mubr.msk.bf16.gmra.mrb[76].mxu0 %vm218_vm2, %v3690_v44  ;;  %3407 = vmatmul.mubr.msk.bf16.gmra.mrb[76].mxu1 %vm218_vm2, %v3691_v45 }
  0xab   :  { %3302 = vmatprep.mubr.msk.bf16.mxu0 %vm3753_vm0, %v4986_v0  ;;  %3410 = vmatprep.mubr.msk.bf16.mxu1 %vm3753_vm0, %v4986_v0 }
  0xb2   :  { %3303 = vmatmul.mubr.msk.bf16.gmra.mrb[80].mxu0 %vm218_vm2, %v3692_v46  ;;  %3411 = vmatmul.mubr.msk.bf16.gmra.mrb[80].mxu1 %vm218_vm2, %v3693_v47 }
  0xb3   :  { %3306 = vmatprep.mubr.msk.bf16.mxu0 %vm3753_vm0, %v4986_v0  ;;  %3414 = vmatprep.mubr.msk.bf16.mxu1 %vm3753_vm0, %v4986_v0 }
  0xba   :  { %3307 = vmatmul.mubr.msk.bf16.gmra.mrb[84].mxu0 %vm218_vm2, %v3694_v48  ;;  %3415 = vmatmul.mubr.msk.bf16.gmra.mrb[84].mxu1 %vm218_vm2, %v3695_v49 }
  0xbb   :  { %3310 = vmatprep.mubr.msk.bf16.mxu0 %vm3753_vm0, %v4986_v0  ;;  %3418 = vmatprep.mubr.msk.bf16.mxu1 %vm3753_vm0, %v4986_v0 }
  0xc2   :  { %3311 = vmatmul.mubr.msk.bf16.gmra.mrb[88].mxu0 %vm218_vm2, %v3696_v50  ;;  %3419 = vmatmul.mubr.msk.bf16.gmra.mrb[88].mxu1 %vm218_vm2, %v3697_v51  ;;  %v3714_v50 = vld [vmem:[%s4983_s0 + $0x1c0] sm:$0xff]   ;;  %v3715_v51 = vld [vmem:[%s4983_s0 + $0x288] sm:$0xff]  }
  0xc3   :  { %3314 = vmatprep.mubr.msk.bf16.mxu0 %vm3753_vm0, %v4986_v0  ;;  %3422 = vmatprep.mubr.msk.bf16.mxu1 %vm3753_vm0, %v4986_v0 }
  0xca   :  { %3315 = vmatmul.mubr.msk.bf16.gmra.mrb[92].mxu0 %vm218_vm2, %v3698_v52  ;;  %3423 = vmatmul.mubr.msk.bf16.gmra.mrb[92].mxu1 %vm218_vm2, %v3699_v53 }
  0xcb   :  { %3318 = vmatprep.mubr.msk.bf16.mxu0 %vm3753_vm0, %v4986_v0  ;;  %3426 = vmatprep.mubr.msk.bf16.mxu1 %vm3753_vm0, %v4986_v0 }
  0xd2   :  { %3319 = vmatmul.mubr.msk.bf16.gmra.mrb[96].mxu0 %vm218_vm2, %v3700_v54  ;;  %3427 = vmatmul.mubr.msk.bf16.gmra.mrb[96].mxu1 %vm218_vm2, %v3701_v55 }
  0xd3   :  { %3438 = vmatprep.mubr.msk.bf16.mxu0 %vm3753_vm0, %v4986_v0  ;;  %3546 = vmatprep.mubr.msk.bf16.mxu1 %vm3753_vm0, %v4986_v0 }
  0xda   :  { %3439 = vmatmul.mubr.msk.bf16.vlgmr.msra.gmra.mrb[100].mxu0 %vm218_vm2, %v3702_v56  ;;  %3547 = vmatmul.mubr.msk.bf16.vlgmr.msra.gmra.mrb[100].mxu1 %vm218_vm2, %v3703_v57 }
  0xdb   :  { %3442 = vmatprep.mubr.msk.bf16.mxu0 %vm3753_vm0, %v4986_v0  ;;  %3550 = vmatprep.mubr.msk.bf16.mxu1 %vm3753_vm0, %v4986_v0 }
  0xe2   :  { %3443 = vmatmul.mubr.msk.bf16.gmra.mrb[104].mxu0 %vm218_vm2, %v3704_v58  ;;  %3551 = vmatmul.mubr.msk.bf16.gmra.mrb[104].mxu1 %vm218_vm2, %v3705_v59 }
  0xe3   :  { %3446 = vmatprep.mubr.msk.bf16.mxu0 %vm3753_vm0, %v4986_v0  ;;  %3554 = vmatprep.mubr.msk.bf16.mxu1 %vm3753_vm0, %v4986_v0 }
  0xe5   :  { %v4130_v60 = vpop.f32.mrb[0].mxu0  ;;  %v4132_v61 = vpop.f32.mrb[0].mxu1 }
  0xe6   :  { %v3224_v63 = vpop.f32.mrb[1].mxu0  ;;  %v3332_v1 = vpop.f32.mrb[1].mxu1 }
  0xe7   :  { %v4142_v4 = vpop.f32.mrb[2].mxu0  ;;  %v4144_v5 = vpop.f32.mrb[2].mxu1 }
  0xe8   :  { %v3225_v7 = vpop.f32.mrb[3].mxu0  ;;  %v3333_v8 = vpop.f32.mrb[3].mxu1 }
  0xea   :  { %3447 = vmatmul.mubr.msk.bf16.gmra.mrb[108].mxu0 %vm218_vm2, %v3706_v2  ;;  %3555 = vmatmul.mubr.msk.bf16.gmra.mrb[108].mxu1 %vm218_vm2, %v3707_v3  ;;  %v3716_v2 = vld [vmem:[%s4983_s0 + $0x1c8] sm:$0xff]   ;;  %v3717_v3 = vld [vmem:[%s4983_s0 + $0x290] sm:$0xff]  }
  0xeb   :  { %3450 = vmatprep.mubr.msk.bf16.mxu0 %vm3753_vm0, %v4986_v0  ;;  %3558 = vmatprep.mubr.msk.bf16.mxu1 %vm3753_vm0, %v4986_v0 }
  0xed   :  { %v4154_v9 = vpop.f32.mrb[4].mxu0  ;;  %v4156_v10 = vpop.f32.mrb[4].mxu1 }
  0xee   :  { %v3228_v12 = vpop.f32.mrb[5].mxu0  ;;  %v3336_v13 = vpop.f32.mrb[5].mxu1 }
  0xef   :  { %v4166_v16 = vpop.f32.mrb[6].mxu0  ;;  %v4168_v17 = vpop.f32.mrb[6].mxu1 }
  0xf0   :  { %v3229_v19 = vpop.f32.mrb[7].mxu0  ;;  %v3337_v20 = vpop.f32.mrb[7].mxu1 }
  0xf2   :  { %3451 = vmatmul.mubr.msk.bf16.gmra.mrb[112].mxu0 %vm218_vm2, %v3708_v14  ;;  %3559 = vmatmul.mubr.msk.bf16.gmra.mrb[112].mxu1 %vm218_vm2, %v3709_v15 }
  0xf3   :  { %3454 = vmatprep.mubr.msk.bf16.mxu0 %vm3753_vm0, %v4986_v0  ;;  %3562 = vmatprep.mubr.msk.bf16.mxu1 %vm3753_vm0, %v4986_v0 }
  0xf5   :  { %v4178_v21 = vpop.f32.mrb[8].mxu0  ;;  %v4180_v22 = vpop.f32.mrb[8].mxu1 }
  0xf6   :  { %v3232_v24 = vpop.f32.mrb[9].mxu0  ;;  %v3340_v25 = vpop.f32.mrb[9].mxu1 }
  0xf7   :  { %v4190_v28 = vpop.f32.mrb[10].mxu0  ;;  %v4192_v29 = vpop.f32.mrb[10].mxu1 }
  0xf8   :  { %v3233_v31 = vpop.f32.mrb[11].mxu0  ;;  %v3341_v32 = vpop.f32.mrb[11].mxu1 }
  0xfa   :  { %3455 = vmatmul.mubr.msk.bf16.gmra.mrb[116].mxu0 %vm218_vm2, %v3710_v26  ;;  %3563 = vmatmul.mubr.msk.bf16.gmra.mrb[116].mxu1 %vm218_vm2, %v3711_v27  ;;  %v3718_v26 = vld [vmem:[%s4983_s0 + $0x1d0] sm:$0xff]   ;;  %v3719_v27 = vld [vmem:[%s4983_s0 + $0x298] sm:$0xff]  }
  0xfb   :  { %3458 = vmatprep.mubr.msk.bf16.mxu0 %vm3753_vm0, %v4986_v0  ;;  %3566 = vmatprep.mubr.msk.bf16.mxu1 %vm3753_vm0, %v4986_v0 }
  0xfd   :  { %v4202_v33 = vpop.f32.mrb[12].mxu0  ;;  %v4204_v34 = vpop.f32.mrb[12].mxu1 }
  0xfe   :  { %v3236_v36 = vpop.f32.mrb[13].mxu0  ;;  %v3344_v37 = vpop.f32.mrb[13].mxu1 }
  0xff   :  { %v4214_v40 = vpop.f32.mrb[14].mxu0  ;;  %v4216_v41 = vpop.f32.mrb[14].mxu1 }
 0x100   :  { %v3237_v43 = vpop.f32.mrb[15].mxu0  ;;  %v3345_v44 = vpop.f32.mrb[15].mxu1 }
 0x102   :  { %3459 = vmatmul.mubr.msk.bf16.gmra.mrb[120].mxu0 %vm218_vm2, %v3712_v38  ;;  %3567 = vmatmul.mubr.msk.bf16.gmra.mrb[120].mxu1 %vm218_vm2, %v3713_v39 }
 0x103   :  { %3462 = vmatprep.mubr.msk.bf16.mxu0 %vm3753_vm0, %v4986_v0  ;;  %3570 = vmatprep.mubr.msk.bf16.mxu1 %vm3753_vm0, %v4986_v0 }
 0x105   :  { %v4226_v45 = vpop.f32.mrb[16].mxu0  ;;  %v4228_v46 = vpop.f32.mrb[16].mxu1 }
 0x106   :  { %v3240_v48 = vpop.f32.mrb[17].mxu0  ;;  %v3348_v49 = vpop.f32.mrb[17].mxu1 }
 0x107   :  { %v4238_v52 = vpop.f32.mrb[18].mxu0  ;;  %v4240_v53 = vpop.f32.mrb[18].mxu1 }
 0x108   :  { %v3241_v55 = vpop.f32.mrb[19].mxu0  ;;  %v3349_v56 = vpop.f32.mrb[19].mxu1 }
 0x10a   :  { %3463 = vmatmul.mubr.msk.bf16.gmra.mrb[124].mxu0 %vm218_vm2, %v3714_v50  ;;  %3571 = vmatmul.mubr.msk.bf16.gmra.mrb[124].mxu1 %vm218_vm2, %v3715_v51  ;;  %v3720_v50 = vld [vmem:[%s4983_s0 + $0x1d8] sm:$0xff]   ;;  %v3721_v51 = vld [vmem:[%s4983_s0 + $0x2a0] sm:$0xff]  }
 0x10b   :  { %3466 = vmatprep.mubr.msk.bf16.mxu0 %vm3753_vm0, %v4986_v0  ;;  %3574 = vmatprep.mubr.msk.bf16.mxu1 %vm3753_vm0, %v4986_v0 }
 0x10d   :  { %v4250_v57 = vpop.f32.mrb[20].mxu0  ;;  %v4252_v58 = vpop.f32.mrb[20].mxu1 }
 0x10e   :  { %v3244_v63 = vpop.f32.mrb[21].mxu0  ;;  %v3352_v1 = vpop.f32.mrb[21].mxu1 }
 0x10f   :  { %v4262_v7 = vpop.f32.mrb[22].mxu0  ;;  %v4264_v8 = vpop.f32.mrb[22].mxu1 }
 0x110   :  { %v3245_v13 = vpop.f32.mrb[23].mxu0  ;;  %v3353_v14 = vpop.f32.mrb[23].mxu1 }
 0x112   :  { %3467 = vmatmul.mubr.msk.bf16.gmra.mrb[128].mxu0 %vm218_vm2, %v3716_v2  ;;  %3575 = vmatmul.mubr.msk.bf16.gmra.mrb[128].mxu1 %vm218_vm2, %v3717_v3 }
 0x113   :  { %3470 = vmatprep.mubr.msk.bf16.mxu0 %vm3753_vm0, %v4986_v0  ;;  %3578 = vmatprep.mubr.msk.bf16.mxu1 %vm3753_vm0, %v4986_v0 }
 0x115   :  { %v4274_v15 = vpop.f32.mrb[24].mxu0  ;;  %v4276_v19 = vpop.f32.mrb[24].mxu1 }
 0x116   :  { %v3248_v24 = vpop.f32.mrb[25].mxu0  ;;  %v3356_v25 = vpop.f32.mrb[25].mxu1 }
 0x117   :  { %v4286_v31 = vpop.f32.mrb[26].mxu0  ;;  %v4288_v32 = vpop.f32.mrb[26].mxu1 }
 0x118   :  { %v3249_v37 = vpop.f32.mrb[27].mxu0  ;;  %v3357_v38 = vpop.f32.mrb[27].mxu1 }
 0x11a   :  { %3471 = vmatmul.mubr.msk.bf16.gmra.mrb[132].mxu0 %vm218_vm2, %v3718_v26  ;;  %3579 = vmatmul.mubr.msk.bf16.gmra.mrb[132].mxu1 %vm218_vm2, %v3719_v27  ;;  %v3722_v26 = vld [vmem:[%s4983_s0 + $0x1e0] sm:$0xff]   ;;  %v3723_v27 = vld [vmem:[%s4983_s0 + $0x2a8] sm:$0xff]  }
 0x11b   :  { %3474 = vmatprep.mubr.msk.bf16.mxu0 %vm3753_vm0, %v4986_v0  ;;  %3582 = vmatprep.mubr.msk.bf16.mxu1 %vm3753_vm0, %v4986_v0 }
 0x11d   :  { %v4298_v39 = vpop.f32.mrb[28].mxu0  ;;  %v4300_v43 = vpop.f32.mrb[28].mxu1 }
 0x11e   :  { %v3252_v48 = vpop.f32.mrb[29].mxu0  ;;  %v3360_v49 = vpop.f32.mrb[29].mxu1 }
 0x11f   :  { %v4310_v55 = vpop.f32.mrb[30].mxu0  ;;  %v4312_v56 = vpop.f32.mrb[30].mxu1 }
 0x120   :  { %v3253_v1 = vpop.f32.mrb[31].mxu0  ;;  %v3361_v2 = vpop.f32.mrb[31].mxu1 }
 0x122   :  { %3475 = vmatmul.mubr.msk.bf16.gmra.mrb[136].mxu0 %vm218_vm2, %v3720_v50  ;;  %3583 = vmatmul.mubr.msk.bf16.gmra.mrb[136].mxu1 %vm218_vm2, %v3721_v51 }
 0x123   :  { %3478 = vmatprep.mubr.msk.bf16.mxu0 %vm3753_vm0, %v4986_v0  ;;  %3586 = vmatprep.mubr.msk.bf16.mxu1 %vm3753_vm0, %v4986_v0 }
 0x125   :  { %v4322_v3 = vpop.f32.mrb[32].mxu0  ;;  %v4324_v13 = vpop.f32.mrb[32].mxu1 }
 0x126   :  { %v3256_v24 = vpop.f32.mrb[33].mxu0  ;;  %v3364_v25 = vpop.f32.mrb[33].mxu1 }
 0x127   :  { %v4334_v37 = vpop.f32.mrb[34].mxu0  ;;  %v4336_v38 = vpop.f32.mrb[34].mxu1 }
 0x128   :  { %v3257_v49 = vpop.f32.mrb[35].mxu0  ;;  %v3365_v50 = vpop.f32.mrb[35].mxu1 }
 0x12a   :  { %3479 = vmatmul.mubr.msk.bf16.gmra.mrb[140].mxu0 %vm218_vm2, %v3722_v26  ;;  %3587 = vmatmul.mubr.msk.bf16.gmra.mrb[140].mxu1 %vm218_vm2, %v3723_v27  ;;  %v3724_v26 = vld [vmem:[%s4983_s0 + $0x1e8] sm:$0xff]   ;;  %v3725_v27 = vld [vmem:[%s4983_s0 + $0x2b0] sm:$0xff]  }
 0x12b   :  { %3482 = vmatprep.mubr.msk.bf16.mxu0 %vm3753_vm0, %v4986_v0  ;;  %3590 = vmatprep.mubr.msk.bf16.mxu1 %vm3753_vm0, %v4986_v0 }
 0x12d   :  { %v4346_v51 = vpop.f32.mrb[36].mxu0  ;;  %v4348_v1 = vpop.f32.mrb[36].mxu1 }
 0x12e   :  { %v3260_v24 = vpop.f32.mrb[37].mxu0  ;;  %v3368_v25 = vpop.f32.mrb[37].mxu1 }
 0x12f   :  { %v4358_v49 = vpop.f32.mrb[38].mxu0  ;;  %v4360_v50 = vpop.f32.mrb[38].mxu1 }
 0x130   :  { %v3261_v14 = vpop.f32.mrb[39].mxu0  ;;  %v3369_v63 = vpop.f32.mrb[39].mxu1 }
 0x131   :  { %v3726_v63 = vld [vmem:[%s4983_s0 + $0x1f0] sm:$0xff]  }
 0x132   :  { %3483 = vmatmul.mubr.msk.bf16.gmra.mrb[144].mxu0 %vm218_vm2, %v3724_v26  ;;  %3591 = vmatmul.mubr.msk.bf16.gmra.mrb[144].mxu1 %vm218_vm2, %v3725_v27  ;;  %v3727_v26 = vld [vmem:[%s4983_s0 + $0x2b8] sm:$0xff]  }
 0x133   :  { %3486 = vmatprep.mubr.msk.bf16.mxu0 %vm3753_vm0, %v4986_v0  ;;  %3594 = vmatprep.mubr.msk.bf16.mxu1 %vm3753_vm0, %v4986_v0 }
 0x135   :  { %v4370_v24 = vpop.f32.mrb[40].mxu0  ;;  %v4372_v25 = vpop.f32.mrb[40].mxu1 }
 0x136   :  { %v3264_v48 = vpop.f32.mrb[41].mxu0  ;;  %v3372_v14 = vpop.f32.mrb[41].mxu1 }
 0x137   :  { %v4382_v27 = vpop.f32.mrb[42].mxu0  ;;  %v4384_v44 = vpop.f32.mrb[42].mxu1 }
 0x138   :  { %v3265_v20 = vpop.f32.mrb[43].mxu0  ;;  %v3373_v12 = vpop.f32.mrb[43].mxu1 }
 0x139   :  { %v3728_v12 = vld [vmem:[%s4983_s0 + $0x1f8] sm:$0xff]  }
 0x13a   :  { %3487 = vmatmul.mubr.msk.bf16.gmra.mrb[148].mxu0 %vm218_vm2, %v3726_v63  ;;  %3595 = vmatmul.mubr.msk.bf16.gmra.mrb[148].mxu1 %vm218_vm2, %v3727_v26  ;;  %v3729_v63 = vld [vmem:[%s4983_s0 + $0x2c0] sm:$0xff]  }
 0x13b   :  { %3490 = vmatprep.mubr.msk.bf16.mxu0 %vm3753_vm0, %v4986_v0  ;;  %3598 = vmatprep.mubr.msk.bf16.mxu1 %vm3753_vm0, %v4986_v0 }
 0x13d   :  { %v4394_v48 = vpop.f32.mrb[44].mxu0  ;;  %v4396_v14 = vpop.f32.mrb[44].mxu1 }
 0x13e   :  { %5044 = vst [vmem:[#allocation2_spill] sm:$0xff] %v4394_v48  ;;  %5045 = vst [vmem:[#allocation3_spill] sm:$0xff] %v4396_v14  ;;  %v3268_v36 = vpop.f32.mrb[45].mxu0  ;;  %v3376_v20 = vpop.f32.mrb[45].mxu1 }
 0x13f   :  { %v4406_v26 = vpop.f32.mrb[46].mxu0  ;;  %v4408_v59 = vpop.f32.mrb[46].mxu1 }
 0x140   :  { %5046 = vst [vmem:[#allocation4_spill] sm:$0xff] %v4406_v26  ;;  %5047 = vst [vmem:[#allocation5_spill] sm:$0xff] %v4408_v59  ;;  %v3269_v47 = vpop.f32.mrb[47].mxu0  ;;  %v3377_v42 = vpop.f32.mrb[47].mxu1 }
 0x141   :  { %v3730_v42 = vld [vmem:[%s4983_s0 + $0x200] sm:$0xff]  }
 0x142   :  { %3491 = vmatmul.mubr.msk.bf16.gmra.mrb[152].mxu0 %vm218_vm2, %v3728_v12  ;;  %3599 = vmatmul.mubr.msk.bf16.gmra.mrb[152].mxu1 %vm218_vm2, %v3729_v63  ;;  %v3731_v12 = vld [vmem:[%s4983_s0 + $0x2c8] sm:$0xff]  }
 0x143   :  { %3494 = vmatprep.mubr.msk.bf16.mxu0 %vm3753_vm0, %v4986_v0  ;;  %3602 = vmatprep.mubr.msk.bf16.mxu1 %vm3753_vm0, %v4986_v0 }
 0x145   :  { %v4418_v36 = vpop.f32.mrb[48].mxu0  ;;  %v4420_v20 = vpop.f32.mrb[48].mxu1 }
 0x146   :  { %5048 = vst [vmem:[#allocation6_spill] sm:$0xff] %v4418_v36  ;;  %5049 = vst [vmem:[#allocation7_spill] sm:$0xff] %v4420_v20  ;;  %v3272_v54 = vpop.f32.mrb[49].mxu0  ;;  %v3380_v47 = vpop.f32.mrb[49].mxu1 }
 0x147   :  { %v4430_v63 = vpop.f32.mrb[50].mxu0  ;;  %v4432_v35 = vpop.f32.mrb[50].mxu1 }
 0x148   :  { %5050 = vst [vmem:[#allocation8_spill] sm:$0xff] %v4430_v63  ;;  %5051 = vst [vmem:[#allocation9_spill] sm:$0xff] %v4432_v35  ;;  %v3273_v23 = vpop.f32.mrb[51].mxu0  ;;  %v3381_v18 = vpop.f32.mrb[51].mxu1 }
 0x149   :  { %v3732_v18 = vld [vmem:[%s4983_s0 + $0x208] sm:$0xff]  }
 0x14a   :  { %3495 = vmatmul.mubr.msk.bf16.gmra.mrb[156].mxu0 %vm218_vm2, %v3730_v42  ;;  %3603 = vmatmul.mubr.msk.bf16.gmra.mrb[156].mxu1 %vm218_vm2, %v3731_v12  ;;  %v3733_v42 = vld [vmem:[%s4983_s0 + $0x2d0] sm:$0xff]  }
 0x14b   :  { %3498 = vmatprep.mubr.msk.bf16.mxu0 %vm3753_vm0, %v4986_v0  ;;  %3606 = vmatprep.mubr.msk.bf16.mxu1 %vm3753_vm0, %v4986_v0 }
 0x14d   :  { %v4442_v54 = vpop.f32.mrb[52].mxu0  ;;  %v4444_v47 = vpop.f32.mrb[52].mxu1 }
 0x14e   :  { %5052 = vst [vmem:[#allocation10_spill] sm:$0xff] %v4442_v54  ;;  %5053 = vst [vmem:[#allocation11_spill] sm:$0xff] %v4444_v47  ;;  %v3276_v30 = vpop.f32.mrb[53].mxu0  ;;  %v3384_v23 = vpop.f32.mrb[53].mxu1 }
 0x14f   :  { %v4454_v12 = vpop.f32.mrb[54].mxu0  ;;  %v4456_v11 = vpop.f32.mrb[54].mxu1  ;;  %v5056_v30 = vmov 0.0  }
 0x150   :  { %5054 = vst [vmem:[#allocation12_spill] sm:$0xff] %v4454_v12  ;;  %5055 = vst [vmem:[#allocation13_spill] sm:$0xff] %v4456_v11  ;;  %v3277_v62 = vpop.f32.mrb[55].mxu0  ;;  %v3385_v0 = vpop.f32.mrb[55].mxu1 }
 0x151   :  { %v3734_v0 = vld [vmem:[%s4983_s0 + $0x210] sm:$0xff]  }
 0x152   :  { %3499 = vmatmul.mubr.msk.bf16.gmra.mrb[160].mxu0 %vm218_vm2, %v3732_v18  ;;  %3607 = vmatmul.mubr.msk.bf16.gmra.mrb[160].mxu1 %vm218_vm2, %v3733_v42  ;;  %v3735_v18 = vld [vmem:[%s4983_s0 + $0x2d8] sm:$0xff]  }
 0x153   :  { %3502 = vmatprep.mubr.msk.bf16.mxu0 %vm3753_vm0, %v5056_v30  ;;  %3610 = vmatprep.mubr.msk.bf16.mxu1 %vm3753_vm0, %v5056_v30 }
 0x155   :  { %v4466_v23 = vpop.f32.mrb[56].mxu0  ;;  %v4468_v2 = vpop.f32.mrb[56].mxu1 }
 0x156   :  { %5057 = vst [vmem:[#allocation14_spill] sm:$0xff] %v4466_v23  ;;  %5058 = vst [vmem:[#allocation15_spill] sm:$0xff] %v4468_v2  ;;  %v3280_v6 = vpop.f32.mrb[57].mxu0  ;;  %v3388_v62 = vpop.f32.mrb[57].mxu1 }
 0x157   :  { %v4478_v42 = vpop.f32.mrb[58].mxu0  ;;  %v4480_v11 = vpop.f32.mrb[58].mxu1 }
 0x158   :  { %5059 = vst [vmem:[#allocation16_spill] sm:$0xff] %v4478_v42  ;;  %5060 = vst [vmem:[#allocation17_spill] sm:$0xff] %v4480_v11  ;;  %v3281_v54 = vpop.f32.mrb[59].mxu0  ;;  %v3389_v35 = vpop.f32.mrb[59].mxu1 }
 0x159   :  { %v3736_v35 = vld [vmem:[%s4983_s0 + $0x218] sm:$0xff]  }
 0x15a   :  { %3503 = vmatmul.mubr.msk.bf16.gmra.mrb[164].mxu0 %vm218_vm2, %v3734_v0  ;;  %3611 = vmatmul.mubr.msk.bf16.gmra.mrb[164].mxu1 %vm218_vm2, %v3735_v18  ;;  %v3737_v0 = vld [vmem:[%s4983_s0 + $0x2e0] sm:$0xff]  }
 0x15b   :  { %3506 = vmatprep.mubr.msk.bf16.mxu0 %vm3753_vm0, %v5056_v30  ;;  %3614 = vmatprep.mubr.msk.bf16.mxu1 %vm3753_vm0, %v5056_v30 }
 0x15d   :  { %v4490_v6 = vpop.f32.mrb[60].mxu0  ;;  %v4492_v62 = vpop.f32.mrb[60].mxu1 }
 0x15e   :  { %5061 = vst [vmem:[#allocation18_spill] sm:$0xff] %v4490_v6  ;;  %5062 = vst [vmem:[#allocation19_spill] sm:$0xff] %v4492_v62  ;;  %v3284_v12 = vpop.f32.mrb[61].mxu0  ;;  %v3392_v54 = vpop.f32.mrb[61].mxu1 }
 0x15f   :  { %v4502_v18 = vpop.f32.mrb[62].mxu0  ;;  %v4504_v11 = vpop.f32.mrb[62].mxu1 }
 0x160   :  { %5063 = vst [vmem:[#allocation20_spill] sm:$0xff] %v4502_v18  ;;  %5064 = vst [vmem:[#allocation21_spill] sm:$0xff] %v4504_v11  ;;  %v3285_v2 = vpop.f32.mrb[63].mxu0  ;;  %v3393_v23 = vpop.f32.mrb[63].mxu1 }
 0x161   :  { %v3738_v23 = vld [vmem:[%s4983_s0 + $0x220] sm:$0xff]  }
 0x162   :  { %3507 = vmatmul.mubr.msk.bf16.gmra.mrb[168].mxu0 %vm218_vm2, %v3736_v35  ;;  %3615 = vmatmul.mubr.msk.bf16.gmra.mrb[168].mxu1 %vm218_vm2, %v3737_v0  ;;  %v3739_v35 = vld [vmem:[%s4983_s0 + $0x2e8] sm:$0xff]  }
 0x163   :  { %3510 = vmatprep.mubr.msk.bf16.mxu0 %vm3753_vm0, %v5056_v30  ;;  %3618 = vmatprep.mubr.msk.bf16.mxu1 %vm3753_vm0, %v5056_v30 }
 0x165   :  { %v4514_v12 = vpop.f32.mrb[64].mxu0  ;;  %v4516_v54 = vpop.f32.mrb[64].mxu1 }
 0x166   :  { %5065 = vst [vmem:[#allocation22_spill] sm:$0xff] %v4514_v12  ;;  %5066 = vst [vmem:[#allocation23_spill] sm:$0xff] %v4516_v54  ;;  %v3288_v42 = vpop.f32.mrb[65].mxu0  ;;  %v3396_v2 = vpop.f32.mrb[65].mxu1 }
 0x167   :  { %v4526_v0 = vpop.f32.mrb[66].mxu0  ;;  %v4528_v11 = vpop.f32.mrb[66].mxu1 }
 0x168   :  { %5067 = vst [vmem:[#allocation24_spill] sm:$0xff] %v4526_v0  ;;  %5068 = vst [vmem:[#allocation25_spill] sm:$0xff] %v4528_v11  ;;  %v3289_v62 = vpop.f32.mrb[67].mxu0  ;;  %v3397_v6 = vpop.f32.mrb[67].mxu1 }
 0x169   :  { %v3740_v6 = vld [vmem:[%s4983_s0 + $0x228] sm:$0xff]  }
 0x16a   :  { %3511 = vmatmul.mubr.msk.bf16.gmra.mrb[172].mxu0 %vm218_vm2, %v3738_v23  ;;  %3619 = vmatmul.mubr.msk.bf16.gmra.mrb[172].mxu1 %vm218_vm2, %v3739_v35  ;;  %v3741_v23 = vld [vmem:[%s4983_s0 + $0x2f0] sm:$0xff]  }
 0x16b   :  { %3514 = vmatprep.mubr.msk.bf16.mxu0 %vm3753_vm0, %v5056_v30  ;;  %3622 = vmatprep.mubr.msk.bf16.mxu1 %vm3753_vm0, %v5056_v30 }
 0x16d   :  { %v4538_v42 = vpop.f32.mrb[68].mxu0  ;;  %v4540_v2 = vpop.f32.mrb[68].mxu1 }
 0x16e   :  { %5069 = vst [vmem:[#allocation26_spill] sm:$0xff] %v4538_v42  ;;  %5070 = vst [vmem:[#allocation27_spill] sm:$0xff] %v4540_v2  ;;  %v3292_v18 = vpop.f32.mrb[69].mxu0  ;;  %v3400_v62 = vpop.f32.mrb[69].mxu1 }
 0x16f   :  { %v4550_v35 = vpop.f32.mrb[70].mxu0  ;;  %v4552_v11 = vpop.f32.mrb[70].mxu1 }
 0x170   :  { %5071 = vst [vmem:[#allocation28_spill] sm:$0xff] %v4550_v35  ;;  %5072 = vst [vmem:[#allocation29_spill] sm:$0xff] %v4552_v11  ;;  %v3293_v54 = vpop.f32.mrb[71].mxu0  ;;  %v3401_v12 = vpop.f32.mrb[71].mxu1 }
 0x171   :  { %v3742_v12 = vld [vmem:[%s4983_s0 + $0x230] sm:$0xff]  }
 0x172   :  { %3515 = vmatmul.mubr.msk.bf16.gmra.mrb[176].mxu0 %vm218_vm2, %v3740_v6  ;;  %3623 = vmatmul.mubr.msk.bf16.gmra.mrb[176].mxu1 %vm218_vm2, %v3741_v23  ;;  %v3743_v6 = vld [vmem:[%s4983_s0 + $0x2f8] sm:$0xff]  }
 0x173   :  { %3518 = vmatprep.mubr.msk.bf16.mxu0 %vm3753_vm0, %v5056_v30  ;;  %3626 = vmatprep.mubr.msk.bf16.mxu1 %vm3753_vm0, %v5056_v30 }
 0x175   :  { %v4562_v18 = vpop.f32.mrb[72].mxu0  ;;  %v4564_v62 = vpop.f32.mrb[72].mxu1 }
 0x176   :  { %5073 = vst [vmem:[#allocation30_spill] sm:$0xff] %v4562_v18  ;;  %5074 = vst [vmem:[#allocation31_spill] sm:$0xff] %v4564_v62  ;;  %v3296_v0 = vpop.f32.mrb[73].mxu0  ;;  %v3404_v54 = vpop.f32.mrb[73].mxu1 }
 0x177   :  { %v4574_v23 = vpop.f32.mrb[74].mxu0  ;;  %v4576_v11 = vpop.f32.mrb[74].mxu1 }
 0x178   :  { %5075 = vst [vmem:[#allocation32_spill] sm:$0xff] %v4574_v23  ;;  %5076 = vst [vmem:[#allocation33_spill] sm:$0xff] %v4576_v11  ;;  %v3297_v2 = vpop.f32.mrb[75].mxu0  ;;  %v3405_v42 = vpop.f32.mrb[75].mxu1 }
 0x179   :  { %v3744_v42 = vld [vmem:[%s4983_s0 + $0x238] sm:$0xff]  }
 0x17a   :  { %3519 = vmatmul.mubr.msk.bf16.gmra.mrb[180].mxu0 %vm218_vm2, %v3742_v12  ;;  %3627 = vmatmul.mubr.msk.bf16.gmra.mrb[180].mxu1 %vm218_vm2, %v3743_v6  ;;  %v3745_v12 = vld [vmem:[%s4983_s0 + $0x300] sm:$0xff]  }
 0x17b   :  { %3522 = vmatprep.mubr.msk.bf16.mxu0 %vm3753_vm0, %v5056_v30  ;;  %3630 = vmatprep.mubr.msk.bf16.mxu1 %vm3753_vm0, %v5056_v30 }
 0x17d   :  { %v4586_v0 = vpop.f32.mrb[76].mxu0  ;;  %v4588_v54 = vpop.f32.mrb[76].mxu1 }
 0x17e   :  { %5077 = vst [vmem:[#allocation34_spill] sm:$0xff] %v4586_v0  ;;  %5078 = vst [vmem:[#allocation35_spill] sm:$0xff] %v4588_v54  ;;  %v3300_v35 = vpop.f32.mrb[77].mxu0  ;;  %v3408_v2 = vpop.f32.mrb[77].mxu1 }
 0x17f   :  { %v4598_v6 = vpop.f32.mrb[78].mxu0  ;;  %v4600_v11 = vpop.f32.mrb[78].mxu1 }
 0x180   :  { %5079 = vst [vmem:[#allocation36_spill] sm:$0xff] %v4598_v6  ;;  %5080 = vst [vmem:[#allocation37_spill] sm:$0xff] %v4600_v11  ;;  %v3301_v62 = vpop.f32.mrb[79].mxu0  ;;  %v3409_v18 = vpop.f32.mrb[79].mxu1 }
 0x181   :  { %v3746_v18 = vld [vmem:[%s4983_s0 + $0x240] sm:$0xff]  }
 0x182   :  { %3523 = vmatmul.mubr.msk.bf16.gmra.mrb[184].mxu0 %vm218_vm2, %v3744_v42  ;;  %3631 = vmatmul.mubr.msk.bf16.gmra.mrb[184].mxu1 %vm218_vm2, %v3745_v12  ;;  %v3747_v42 = vld [vmem:[%s4983_s0 + $0x308] sm:$0xff]  }
 0x183   :  { %3526 = vmatprep.mubr.msk.bf16.mxu0 %vm3753_vm0, %v5056_v30  ;;  %3634 = vmatprep.mubr.msk.bf16.mxu1 %vm3753_vm0, %v5056_v30 }
 0x185   :  { %v4610_v35 = vpop.f32.mrb[80].mxu0  ;;  %v4612_v2 = vpop.f32.mrb[80].mxu1 }
 0x186   :  { %5081 = vst [vmem:[#allocation38_spill] sm:$0xff] %v4610_v35  ;;  %5082 = vst [vmem:[#allocation39_spill] sm:$0xff] %v4612_v2  ;;  %v3304_v23 = vpop.f32.mrb[81].mxu0  ;;  %v3412_v62 = vpop.f32.mrb[81].mxu1 }
 0x187   :  { %v4622_v12 = vpop.f32.mrb[82].mxu0  ;;  %v4624_v11 = vpop.f32.mrb[82].mxu1 }
 0x188   :  { %5083 = vst [vmem:[#allocation40_spill] sm:$0xff] %v4622_v12  ;;  %5084 = vst [vmem:[#allocation41_spill] sm:$0xff] %v4624_v11  ;;  %v3305_v54 = vpop.f32.mrb[83].mxu0  ;;  %v3413_v0 = vpop.f32.mrb[83].mxu1 }
 0x189   :  { %v3748_v0 = vld [vmem:[%s4983_s0 + $0x248] sm:$0xff]  }
 0x18a   :  { %3527 = vmatmul.mubr.msk.bf16.gmra.mrb[188].mxu0 %vm218_vm2, %v3746_v18  ;;  %3635 = vmatmul.mubr.msk.bf16.gmra.mrb[188].mxu1 %vm218_vm2, %v3747_v42  ;;  %v3749_v18 = vld [vmem:[%s4983_s0 + $0x310] sm:$0xff]  }
 0x18b   :  { %3530 = vmatprep.mubr.msk.bf16.mxu0 %vm3753_vm0, %v5056_v30  ;;  %3638 = vmatprep.mubr.msk.bf16.mxu1 %vm3753_vm0, %v5056_v30 }
 0x18d   :  { %v4634_v23 = vpop.f32.mrb[84].mxu0  ;;  %v4636_v62 = vpop.f32.mrb[84].mxu1 }
 0x18e   :  { %5085 = vst [vmem:[#allocation42_spill] sm:$0xff] %v4634_v23  ;;  %5086 = vst [vmem:[#allocation43_spill] sm:$0xff] %v4636_v62  ;;  %v3308_v6 = vpop.f32.mrb[85].mxu0  ;;  %v3416_v54 = vpop.f32.mrb[85].mxu1 }
 0x18f   :  { %v4646_v42 = vpop.f32.mrb[86].mxu0  ;;  %v4648_v11 = vpop.f32.mrb[86].mxu1 }
 0x190   :  { %5087 = vst [vmem:[#allocation44_spill] sm:$0xff] %v4646_v42  ;;  %5088 = vst [vmem:[#allocation45_spill] sm:$0xff] %v4648_v11  ;;  %v3309_v2 = vpop.f32.mrb[87].mxu0  ;;  %v3417_v35 = vpop.f32.mrb[87].mxu1 }
 0x191   :  { %v3750_v35 = vld [vmem:[%s4983_s0 + $0x250] sm:$0xff]  }
 0x192   :  { %3531 = vmatmul.mubr.msk.bf16.gmra.mrb[192].mxu0 %vm218_vm2, %v3748_v0  ;;  %3639 = vmatmul.mubr.msk.bf16.gmra.mrb[192].mxu1 %vm218_vm2, %v3749_v18  ;;  %v3751_v0 = vld [vmem:[%s4983_s0 + $0x318] sm:$0xff]  }
 0x193   :  { %3534 = vmatprep.mubr.msk.bf16.mxu0 %vm3753_vm0, %v5056_v30  ;;  %3642 = vmatprep.mubr.msk.bf16.mxu1 %vm3753_vm0, %v5056_v30 }
 0x195   :  { %v4658_v6 = vpop.f32.mrb[88].mxu0  ;;  %v4660_v54 = vpop.f32.mrb[88].mxu1 }
 0x196   :  { %5089 = vst [vmem:[#allocation46_spill] sm:$0xff] %v4658_v6  ;;  %5090 = vst [vmem:[#allocation47_spill] sm:$0xff] %v4660_v54  ;;  %v3312_v12 = vpop.f32.mrb[89].mxu0  ;;  %v3420_v2 = vpop.f32.mrb[89].mxu1 }
 0x197   :  { %v4670_v18 = vpop.f32.mrb[90].mxu0  ;;  %v4672_v30 = vpop.f32.mrb[90].mxu1 }
 0x198   :  { %5091 = vst [vmem:[#allocation48_spill] sm:$0xff] %v4670_v18  ;;  %5092 = vst [vmem:[#allocation49_spill] sm:$0xff] %v4672_v30  ;;  %v3313_v42 = vpop.f32.mrb[91].mxu0  ;;  %v3421_v62 = vpop.f32.mrb[91].mxu1  ;;  %v4705_v30 = vld [vmem:[%s4984_s2] ss:$0 sm:$0xff] }
 0x19a   :  { %3535 = vmatmul.mubr.msk.bf16.gmra.mrb[196].mxu0 %vm218_vm2, %v3750_v35  ;;  %3643 = vmatmul.mubr.msk.bf16.gmra.mrb[196].mxu1 %vm218_vm2, %v3751_v0 }
 0x19d   :  { %v4678_v12 = vpop.f32.mrb[92].mxu0  ;;  %v4680_v2 = vpop.f32.mrb[92].mxu1 }
 0x19e   :  { %5093 = vst [vmem:[#allocation50_spill] sm:$0xff] %v4678_v12  ;;  %5094 = vst [vmem:[#allocation51_spill] sm:$0xff] %v4680_v2  ;;  %v3316_v54 = vpop.f32.mrb[93].mxu0  ;;  %v3424_v6 = vpop.f32.mrb[93].mxu1 }
 0x19f   :  { %v4684_v23 = vpop.f32.mrb[94].mxu0  ;;  %v4686_v63 = vpop.f32.mrb[94].mxu1 }
 0x1a0   :  { %5095 = vst [vmem:[#allocation52_spill] sm:$0xff] %v4684_v23  ;;  %5096 = vst [vmem:[#allocation53_spill] sm:$0xff] %v4686_v63  ;;  %v3317_v42 = vpop.f32.mrb[95].mxu0  ;;  %v3425_v35 = vpop.f32.mrb[95].mxu1 }
 0x1a5   :  { %v4690_v11 = vpop.f32.mrb[96].mxu0  ;;  %v4692_v0 = vpop.f32.mrb[96].mxu1 }
 0x1a6   :  { %5097 = vst [vmem:[#allocation54_spill] sm:$0xff] %v4690_v11  ;;  %5098 = vst [vmem:[#allocation55_spill] sm:$0xff] %v4692_v0  ;;  %v3320_v18 = vpop.f32.mrb[97].mxu0  ;;  %v3428_v47 = vpop.f32.mrb[97].mxu1  ;;  %v5101_v0 = vmax.f32 %v4130_v60, %v4132_v61 }
 0x1a7   :  { %v4696_v54 = vpop.f32.mrb[98].mxu0  ;;  %v4698_v6 = vpop.f32.mrb[98].mxu1 }
 0x1a8   :  { %5099 = vst [vmem:[#allocation56_spill] sm:$0xff] %v4696_v54  ;;  %5100 = vst [vmem:[#allocation57_spill] sm:$0xff] %v4698_v6  ;;  %v3321_v12 = vpop.f32.mrb[99].mxu0  ;;  %v3429_v62 = vpop.f32.mrb[99].mxu1 }
 0x1ad   :  { %v1350_v42 = vpop.f32.mrb[100].mxu0  ;;  %v1834_v35 = vpop.f32.mrb[100].mxu1 }
 0x1ae   :  { %v2033_v63 = vmax.f32 %v1350_v42, %v1834_v35  ;;  %v3440_v23 = vpop.f32.mrb[101].mxu0  ;;  %v3548_v20 = vpop.f32.mrb[101].mxu1 }
 0x1af   :  { %v1353_v47 = vpop.f32.mrb[102].mxu0  ;;  %v1837_v18 = vpop.f32.mrb[102].mxu1  ;;  %v5102_v23 = vmax.f32 %v4142_v4, %v4144_v5 }
 0x1b0   :  { %v2083_v11 = vmax.f32 %v5101_v0, %v2033_v63  ;;  %v2034_v36 = vmax.f32 %v1353_v47, %v1837_v18  ;;  %v3441_v2 = vpop.f32.mrb[103].mxu0  ;;  %v3549_v12 = vpop.f32.mrb[103].mxu1 }
 0x1b1   :  { %v5103_v2 = vmax.f32 %v4154_v9, %v4156_v10 }
 0x1b2   :  { %v2140_v62 = vadd.f32 %v4705_v30, %v2083_v11  ;;  %v2084_v20 = vmax.f32 %v5102_v23, %v2034_v36 }
 0x1b4   :  { %v2141_v42 = vadd.f32 %v4705_v30, %v2084_v20  ;;  %v2190_v54 = vmax.f32 %v2140_v62, 0.0  ;;  %v5105_v20 = vmax.f32 %v4178_v21, %v4180_v22 }
 0x1b5   :  { %v1358_v35 = vpop.f32.mrb[104].mxu0  ;;  %v1842_v6 = vpop.f32.mrb[104].mxu1 }
 0x1b6   :  { %v2191_v59 = vmax.f32 %v2141_v42, 0.0  ;;  %v2035_v26 = vmax.f32 %v1358_v35, %v1842_v6  ;;  %v3444_v14 = vpop.f32.mrb[105].mxu0  ;;  %v3552_v48 = vpop.f32.mrb[105].mxu1 }
 0x1b7   :  { %v1361_v60 = vpop.f32.mrb[106].mxu0  ;;  %v1845_v61 = vpop.f32.mrb[106].mxu1  ;;  %v5104_v14 = vmax.f32 %v4166_v16, %v4168_v17 }
 0x1b8   :  { %v2952_v63 = vpack.c.bf16 %v2191_v59, %v2190_v54  ;;  %v2085_v11 = vmax.f32 %v5103_v2, %v2035_v26  ;;  %v2036_v0 = vmax.f32 %v1361_v60, %v1845_v61  ;;  %v3445_v47 = vpop.f32.mrb[107].mxu0  ;;  %v3553_v4 = vpop.f32.mrb[107].mxu1  ;;  %v5106_v61 = vmax.f32 %v4190_v28, %v4192_v29 }
 0x1ba   :  { %2953 = vst [vmem:[%s4985_s3] sm:$0xff] %v2952_v63   ;;  %v2142_v5 = vadd.f32 %v4705_v30, %v2085_v11  ;;  %v2086_v48 = vmax.f32 %v5104_v14, %v2036_v0 }
 0x1bc   :  { %v2143_v36 = vadd.f32 %v4705_v30, %v2086_v48  ;;  %v2192_v6 = vmax.f32 %v2142_v5, 0.0 }
 0x1bd   :  { %v1366_v59 = vpop.f32.mrb[108].mxu0  ;;  %v1850_v54 = vpop.f32.mrb[108].mxu1 }
 0x1be   :  { %v2193_v9 = vmax.f32 %v2143_v36, 0.0  ;;  %v2037_v10 = vmax.f32 %v1366_v59, %v1850_v54  ;;  %v3448_v26 = vpop.f32.mrb[109].mxu0  ;;  %v3556_v18 = vpop.f32.mrb[109].mxu1  ;;  %v5107_v59 = vmax.f32 %v4202_v33, %v4204_v34 }
 0x1bf   :  { %v1369_v12 = vpop.f32.mrb[110].mxu0  ;;  %v1853_v62 = vpop.f32.mrb[110].mxu1 }
 0x1c0   :  { %v2957_v23 = vpack.c.bf16 %v2193_v9, %v2192_v6  ;;  %v2087_v42 = vmax.f32 %v5105_v20, %v2037_v10  ;;  %v2038_v35 = vmax.f32 %v1369_v12, %v1853_v62  ;;  %v3449_v60 = vpop.f32.mrb[111].mxu0  ;;  %v3557_v16 = vpop.f32.mrb[111].mxu1  ;;  %v5108_v10 = vmax.f32 %v4214_v40, %v4216_v41 }
 0x1c2   :  { %3074 = vst [vmem:[%s4985_s3 + $0x8] sm:$0xff] %v2957_v23   ;;  %v2144_v17 = vadd.f32 %v4705_v30, %v2087_v42  ;;  %v2088_v63 = vmax.f32 %v5106_v61, %v2038_v35 }
 0x1c4   :  { %v2145_v2 = vadd.f32 %v4705_v30, %v2088_v63  ;;  %v2194_v47 = vmax.f32 %v2144_v17, 0.0  ;;  %v5109_v17 = vmax.f32 %v4226_v45, %v4228_v46 }
 0x1c5   :  { %v1374_v11 = vpop.f32.mrb[112].mxu0  ;;  %v1858_v0 = vpop.f32.mrb[112].mxu1 }
 0x1c6   :  { %v2195_v21 = vmax.f32 %v2145_v2, 0.0  ;;  %v2039_v22 = vmax.f32 %v1374_v11, %v1858_v0  ;;  %v3452_v4 = vpop.f32.mrb[113].mxu0  ;;  %v3560_v5 = vpop.f32.mrb[113].mxu1  ;;  %v5110_v11 = vmax.f32 %v4238_v52, %v4240_v53 }
 0x1c7   :  { %v1377_v14 = vpop.f32.mrb[114].mxu0  ;;  %v1861_v48 = vpop.f32.mrb[114].mxu1 }
 0x1c8   :  { %v2962_v36 = vpack.c.bf16 %v2195_v21, %v2194_v47  ;;  %v2089_v54 = vmax.f32 %v5107_v59, %v2039_v22  ;;  %v2040_v6 = vmax.f32 %v1377_v14, %v1861_v48  ;;  %v3453_v9 = vpop.f32.mrb[115].mxu0  ;;  %v3561_v28 = vpop.f32.mrb[115].mxu1 }
 0x1ca   :  { %3075 = vst [vmem:[%s4985_s3 + $0x10] sm:$0xff] %v2962_v36   ;;  %v2146_v29 = vadd.f32 %v4705_v30, %v2089_v54  ;;  %v2090_v26 = vmax.f32 %v5108_v10, %v2040_v6  ;;  %v5111_v54 = vmax.f32 %v4250_v57, %v4252_v58 }
 0x1cc   :  { %v2147_v18 = vadd.f32 %v4705_v30, %v2090_v26  ;;  %v2196_v23 = vmax.f32 %v2146_v29, 0.0  ;;  %v5112_v29 = vmax.f32 %v4262_v7, %v4264_v8 }
 0x1cd   :  { %v1382_v12 = vpop.f32.mrb[116].mxu0  ;;  %v1866_v62 = vpop.f32.mrb[116].mxu1 }
 0x1ce   :  { %v2197_v33 = vmax.f32 %v2147_v18, 0.0  ;;  %v2041_v34 = vmax.f32 %v1382_v12, %v1866_v62  ;;  %v3456_v20 = vpop.f32.mrb[117].mxu0  ;;  %v3564_v42 = vpop.f32.mrb[117].mxu1 }
 0x1cf   :  { %v1385_v35 = vpop.f32.mrb[118].mxu0  ;;  %v1869_v60 = vpop.f32.mrb[118].mxu1 }
 0x1d0   :  { %v2967_v16 = vpack.c.bf16 %v2197_v33, %v2196_v23  ;;  %v2091_v61 = vmax.f32 %v5109_v17, %v2041_v34  ;;  %v2042_v63 = vmax.f32 %v1385_v35, %v1869_v60  ;;  %v3457_v2 = vpop.f32.mrb[119].mxu0  ;;  %v3565_v40 = vpop.f32.mrb[119].mxu1  ;;  %v5113_v35 = vmax.f32 %v4274_v15, %v4276_v19 }
 0x1d2   :  { %3076 = vst [vmem:[%s4985_s3 + $0x18] sm:$0xff] %v2967_v16   ;;  %v2148_v41 = vadd.f32 %v4705_v30, %v2091_v61  ;;  %v2092_v0 = vmax.f32 %v5110_v11, %v2042_v63  ;;  %v5114_v61 = vmax.f32 %v4286_v31, %v4288_v32 }
 0x1d4   :  { %v2149_v47 = vadd.f32 %v4705_v30, %v2092_v0  ;;  %v2198_v4 = vmax.f32 %v2148_v41, 0.0 }
 0x1d5   :  { %v1390_v21 = vpop.f32.mrb[120].mxu0  ;;  %v1874_v22 = vpop.f32.mrb[120].mxu1 }
 0x1d6   :  { %v2199_v45 = vmax.f32 %v2149_v47, 0.0  ;;  %v2043_v46 = vmax.f32 %v1390_v21, %v1874_v22  ;;  %v3460_v5 = vpop.f32.mrb[121].mxu0  ;;  %v3568_v14 = vpop.f32.mrb[121].mxu1 }
 0x1d7   :  { %v1393_v48 = vpop.f32.mrb[122].mxu0  ;;  %v1877_v36 = vpop.f32.mrb[122].mxu1 }
 0x1d8   :  { %v2972_v59 = vpack.c.bf16 %v2199_v45, %v2198_v4  ;;  %v2093_v6 = vmax.f32 %v5111_v54, %v2043_v46  ;;  %v2044_v9 = vmax.f32 %v1393_v48, %v1877_v36  ;;  %v3461_v28 = vpop.f32.mrb[123].mxu0  ;;  %v3569_v52 = vpop.f32.mrb[123].mxu1  ;;  %v5115_v45 = vmax.f32 %v4298_v39, %v4300_v43 }
 0x1d9   :  { %v5116_v48 = vmax.f32 %v4310_v55, %v4312_v56 }
 0x1da   :  { %3077 = vst [vmem:[%s4985_s3 + $0x20] sm:$0xff] %v2972_v59   ;;  %v2150_v53 = vadd.f32 %v4705_v30, %v2093_v6  ;;  %v2094_v10 = vmax.f32 %v5112_v29, %v2044_v9 }
 0x1dc   :  { %v2151_v26 = vadd.f32 %v4705_v30, %v2094_v10  ;;  %v2200_v62 = vmax.f32 %v2150_v53, 0.0 }
 0x1dd   :  { %v1398_v18 = vpop.f32.mrb[124].mxu0  ;;  %v1882_v12 = vpop.f32.mrb[124].mxu1 }
 0x1de   :  { %v2201_v57 = vmax.f32 %v2151_v26, 0.0  ;;  %v2045_v58 = vmax.f32 %v1398_v18, %v1882_v12  ;;  %v3464_v23 = vpop.f32.mrb[125].mxu0  ;;  %v3572_v33 = vpop.f32.mrb[125].mxu1  ;;  %v5117_v26 = vmax.f32 %v4322_v3, %v4324_v13 }
 0x1df   :  { %v1401_v34 = vpop.f32.mrb[126].mxu0  ;;  %v1885_v20 = vpop.f32.mrb[126].mxu1 }
 0x1e0   :  { %v2977_v42 = vpack.c.bf16 %v2201_v57, %v2200_v62  ;;  %v2095_v60 = vmax.f32 %v5113_v35, %v2045_v58  ;;  %v2046_v16 = vmax.f32 %v1401_v34, %v1885_v20  ;;  %v3465_v17 = vpop.f32.mrb[127].mxu0  ;;  %v3573_v7 = vpop.f32.mrb[127].mxu1  ;;  %v5118_v57 = vmax.f32 %v4334_v37, %v4336_v38 }
 0x1e1   :  { %v5119_v7 = vmax.f32 %v4346_v51, %v4348_v1 }
 0x1e2   :  { %3078 = vst [vmem:[%s4985_s3 + $0x28] sm:$0xff] %v2977_v42   ;;  %v2152_v8 = vadd.f32 %v4705_v30, %v2095_v60  ;;  %v2096_v63 = vmax.f32 %v5114_v61, %v2046_v16 }
 0x1e4   :  { %v2153_v2 = vadd.f32 %v4705_v30, %v2096_v63  ;;  %v2202_v11 = vmax.f32 %v2152_v8, 0.0 }
 0x1e5   :  { %v1406_v40 = vpop.f32.mrb[128].mxu0  ;;  %v1890_v41 = vpop.f32.mrb[128].mxu1 }
 0x1e6   :  { %v2203_v15 = vmax.f32 %v2153_v2, 0.0  ;;  %v2047_v19 = vmax.f32 %v1406_v40, %v1890_v41  ;;  %v3468_v0 = vpop.f32.mrb[129].mxu0  ;;  %v3576_v47 = vpop.f32.mrb[129].mxu1  ;;  %v5120_v2 = vmax.f32 %v4358_v49, %v4360_v50 }
 0x1e7   :  { %v1409_v21 = vpop.f32.mrb[130].mxu0  ;;  %v1893_v22 = vpop.f32.mrb[130].mxu1 }
 0x1e8   :  { %v2982_v4 = vpack.c.bf16 %v2203_v15, %v2202_v11  ;;  %v2097_v46 = vmax.f32 %v5115_v45, %v2047_v19  ;;  %v2048_v5 = vmax.f32 %v1409_v21, %v1893_v22  ;;  %v3469_v14 = vpop.f32.mrb[131].mxu0  ;;  %v3577_v31 = vpop.f32.mrb[131].mxu1  ;;  %v5121_v45 = vmax.f32 %v4370_v24, %v4372_v25 }
 0x1e9   :  { %v5122_v31 = vmax.f32 %v4382_v27, %v4384_v44 }
 0x1ea   :  { %3079 = vst [vmem:[%s4985_s3 + $0x30] sm:$0xff] %v2982_v4   ;;  %v2154_v32 = vadd.f32 %v4705_v30, %v2097_v46  ;;  %v2098_v36 = vmax.f32 %v5116_v48, %v2048_v5 }
 0x1ec   :  { %v2155_v59 = vadd.f32 %v4705_v30, %v2098_v36  ;;  %v2204_v9 = vmax.f32 %v2154_v32, 0.0 }
 0x1ed   :  { %v1414_v54 = vpop.f32.mrb[132].mxu0  ;;  %v1898_v6 = vpop.f32.mrb[132].mxu1 }
 0x1ee   :  { %v2205_v39 = vmax.f32 %v2155_v59, 0.0  ;;  %v2049_v43 = vmax.f32 %v1414_v54, %v1898_v6  ;;  %v3472_v28 = vpop.f32.mrb[133].mxu0  ;;  %v3580_v52 = vpop.f32.mrb[133].mxu1 }
 0x1ef   :  { %v1417_v53 = vpop.f32.mrb[134].mxu0  ;;  %v1901_v29 = vpop.f32.mrb[134].mxu1  ;;  %v5123_v52 = vld [vmem:[#allocation2_spill] sm:$0xff] }
 0x1f0   :  { %v2987_v10 = vpack.c.bf16 %v2205_v39, %v2204_v9  ;;  %v2099_v18 = vmax.f32 %v5117_v26, %v2049_v43  ;;  %v2050_v12 = vmax.f32 %v1417_v53, %v1901_v29  ;;  %v3473_v62 = vpop.f32.mrb[135].mxu0  ;;  %v3581_v55 = vpop.f32.mrb[135].mxu1  ;;  %v5124_v53 = vld [vmem:[#allocation3_spill] sm:$0xff] }
 0x1f1   :  { %v5125_v29 = vmax.f32 %v5123_v52, %v5124_v53  ;;  %v5127_v62 = vld [vmem:[#allocation5_spill] sm:$0xff] }
 0x1f2   :  { %3080 = vst [vmem:[%s4985_s3 + $0x38] sm:$0xff] %v2987_v10   ;;  %v2156_v56 = vadd.f32 %v4705_v30, %v2099_v18  ;;  %v2100_v58 = vmax.f32 %v5118_v57, %v2050_v12  ;;  %v5126_v12 = vld [vmem:[#allocation4_spill] sm:$0xff] }
 0x1f3   :  { %v5128_v55 = vmax.f32 %v5126_v12, %v5127_v62 }
 0x1f4   :  { %v2157_v23 = vadd.f32 %v4705_v30, %v2100_v58  ;;  %v2206_v20 = vmax.f32 %v2156_v56, 0.0 }
 0x1f5   :  { %v1422_v33 = vpop.f32.mrb[136].mxu0  ;;  %v1906_v34 = vpop.f32.mrb[136].mxu1 }
 0x1f6   :  { %v2207_v3 = vmax.f32 %v2157_v23, 0.0  ;;  %v2051_v13 = vmax.f32 %v1422_v33, %v1906_v34  ;;  %v3476_v42 = vpop.f32.mrb[137].mxu0  ;;  %v3584_v35 = vpop.f32.mrb[137].mxu1 }
 0x1f7   :  { %v1425_v60 = vpop.f32.mrb[138].mxu0  ;;  %v1909_v16 = vpop.f32.mrb[138].mxu1 }
 0x1f8   :  { %v2992_v17 = vpack.c.bf16 %v2207_v3, %v2206_v20  ;;  %v2101_v8 = vmax.f32 %v5119_v7, %v2051_v13  ;;  %v2052_v61 = vmax.f32 %v1425_v60, %v1909_v16  ;;  %v3477_v63 = vpop.f32.mrb[139].mxu0  ;;  %v3585_v37 = vpop.f32.mrb[139].mxu1  ;;  %v5129_v16 = vld [vmem:[#allocation6_spill] sm:$0xff] }
 0x1fa   :  { %3081 = vst [vmem:[%s4985_s3 + $0x40] sm:$0xff] %v2992_v17   ;;  %v2158_v38 = vadd.f32 %v4705_v30, %v2101_v8  ;;  %v2102_v40 = vmax.f32 %v5120_v2, %v2052_v61  ;;  %v5130_v17 = vld [vmem:[#allocation7_spill] sm:$0xff]  ;;  %v5132_v2 = vld [vmem:[#allocation8_spill] sm:$0xff] }
 0x1fb   :  { %v5131_v7 = vmax.f32 %v5129_v16, %v5130_v17 }
 0x1fc   :  { %v2159_v41 = vadd.f32 %v4705_v30, %v2102_v40  ;;  %v2208_v19 = vmax.f32 %v2158_v38, 0.0  ;;  %v5133_v40 = vld [vmem:[#allocation9_spill] sm:$0xff] }
 0x1fd   :  { %v1430_v11 = vpop.f32.mrb[140].mxu0  ;;  %v1914_v15 = vpop.f32.mrb[140].mxu1 }
 0x1fe   :  { %v2209_v51 = vmax.f32 %v2159_v41, 0.0  ;;  %v2053_v1 = vmax.f32 %v1430_v11, %v1914_v15  ;;  %v3480_v0 = vpop.f32.mrb[141].mxu0  ;;  %v3588_v47 = vpop.f32.mrb[141].mxu1  ;;  %v5134_v41 = vmax.f32 %v5132_v2, %v5133_v40 }
 0x1ff   :  { %v1433_v21 = vpop.f32.mrb[142].mxu0  ;;  %v1917_v22 = vpop.f32.mrb[142].mxu1 }
 0x200   :  { %v2997_v4 = vpack.c.bf16 %v2209_v51, %v2208_v19  ;;  %v2103_v46 = vmax.f32 %v5121_v45, %v2053_v1  ;;  %v2054_v5 = vmax.f32 %v1433_v21, %v1917_v22  ;;  %v3481_v14 = vpop.f32.mrb[143].mxu0  ;;  %v3589_v49 = vpop.f32.mrb[143].mxu1 }
 0x201   :  { %v5136_v14 = vld [vmem:[#allocation11_spill] sm:$0xff] }
 0x202   :  { %3082 = vst [vmem:[%s4985_s3 + $0x48] sm:$0xff] %v2997_v4   ;;  %v2160_v50 = vadd.f32 %v4705_v30, %v2103_v46  ;;  %v2104_v32 = vmax.f32 %v5122_v31, %v2054_v5  ;;  %v5135_v5 = vld [vmem:[#allocation10_spill] sm:$0xff] }
 0x203   :  { %v5137_v49 = vmax.f32 %v5135_v5, %v5136_v14 }
 0x204   :  { %v2161_v48 = vadd.f32 %v4705_v30, %v2104_v32  ;;  %v2210_v54 = vmax.f32 %v2160_v50, 0.0 }
 0x205   :  { %v1438_v36 = vpop.f32.mrb[144].mxu0  ;;  %v1922_v59 = vpop.f32.mrb[144].mxu1 }
 0x206   :  { %v2211_v24 = vmax.f32 %v2161_v48, 0.0  ;;  %v2055_v25 = vmax.f32 %v1438_v36, %v1922_v59  ;;  %v3484_v6 = vpop.f32.mrb[145].mxu0  ;;  %v3592_v9 = vpop.f32.mrb[145].mxu1  ;;  %v5138_v59 = vld [vmem:[#allocation12_spill] sm:$0xff] }
 0x207   :  { %v1441_v39 = vpop.f32.mrb[146].mxu0  ;;  %v1925_v43 = vpop.f32.mrb[146].mxu1 }
 0x208   :  { %v3002_v28 = vpack.c.bf16 %v2211_v24, %v2210_v54  ;;  %v2105_v10 = vmax.f32 %v5125_v29, %v2055_v25  ;;  %v2056_v26 = vmax.f32 %v1441_v39, %v1925_v43  ;;  %v3485_v18 = vpop.f32.mrb[147].mxu0  ;;  %v3593_v44 = vpop.f32.mrb[147].mxu1  ;;  %v5139_v54 = vld [vmem:[#allocation13_spill] sm:$0xff] }
 0x209   :  { %v5140_v24 = vmax.f32 %v5138_v59, %v5139_v54  ;;  %v5141_v44 = vld [vmem:[#allocation14_spill] sm:$0xff] }
 0x20a   :  { %3083 = vst [vmem:[%s4985_s3 + $0x50] sm:$0xff] %v3002_v28   ;;  %v2162_v27 = vadd.f32 %v4705_v30, %v2105_v10  ;;  %v2106_v56 = vmax.f32 %v5128_v55, %v2056_v26 }
 0x20c   :  { %v2163_v57 = vadd.f32 %v4705_v30, %v2106_v56  ;;  %v2212_v33 = vmax.f32 %v2162_v27, 0.0  ;;  %v5142_v27 = vld [vmem:[#allocation15_spill] sm:$0xff] }
 0x20d   :  { %v1446_v58 = vpop.f32.mrb[148].mxu0  ;;  %v1930_v23 = vpop.f32.mrb[148].mxu1  ;;  %v5143_v12 = vmax.f32 %v5141_v44, %v5142_v27 }
 0x20e   :  { %v2213_v34 = vmax.f32 %v2163_v57, 0.0  ;;  %v2057_v20 = vmax.f32 %v1446_v58, %v1930_v23  ;;  %v3488_v3 = vpop.f32.mrb[149].mxu0  ;;  %v3596_v13 = vpop.f32.mrb[149].mxu1  ;;  %v5144_v23 = vld [vmem:[#allocation16_spill] sm:$0xff] }
 0x20f   :  { %v1449_v42 = vpop.f32.mrb[150].mxu0  ;;  %v1933_v35 = vpop.f32.mrb[150].mxu1 }
 0x210   :  { %v3007_v60 = vpack.c.bf16 %v2213_v34, %v2212_v33  ;;  %v2107_v8 = vmax.f32 %v5131_v7, %v2057_v20  ;;  %v2058_v61 = vmax.f32 %v1449_v42, %v1933_v35  ;;  %v3489_v63 = vpop.f32.mrb[151].mxu0  ;;  %v3597_v37 = vpop.f32.mrb[151].mxu1  ;;  %v5145_v33 = vld [vmem:[#allocation17_spill] sm:$0xff] }
 0x211   :  { %v5146_v34 = vmax.f32 %v5144_v23, %v5145_v33  ;;  %v5147_v37 = vld [vmem:[#allocation18_spill] sm:$0xff] }
 0x212   :  { %3084 = vst [vmem:[%s4985_s3 + $0x58] sm:$0xff] %v3007_v60   ;;  %v2164_v38 = vadd.f32 %v4705_v30, %v2107_v8  ;;  %v2108_v11 = vmax.f32 %v5134_v41, %v2058_v61 }
 0x214   :  { %v2165_v15 = vadd.f32 %v4705_v30, %v2108_v11  ;;  %v2214_v1 = vmax.f32 %v2164_v38, 0.0  ;;  %v5148_v38 = vld [vmem:[#allocation19_spill] sm:$0xff] }
 0x215   :  { %v1454_v19 = vpop.f32.mrb[152].mxu0  ;;  %v1938_v51 = vpop.f32.mrb[152].mxu1  ;;  %v5149_v2 = vmax.f32 %v5147_v37, %v5148_v38 }
 0x216   :  { %v2215_v0 = vmax.f32 %v2165_v15, 0.0  ;;  %v2059_v47 = vmax.f32 %v1454_v19, %v1938_v51  ;;  %v3492_v21 = vpop.f32.mrb[153].mxu0  ;;  %v3600_v22 = vpop.f32.mrb[153].mxu1  ;;  %v5150_v51 = vld [vmem:[#allocation20_spill] sm:$0xff] }
 0x217   :  { %v1457_v4 = vpop.f32.mrb[154].mxu0  ;;  %v1941_v45 = vpop.f32.mrb[154].mxu1 }
 0x218   :  { %v3012_v46 = vpack.c.bf16 %v2215_v0, %v2214_v1  ;;  %v2109_v50 = vmax.f32 %v5137_v49, %v2059_v47  ;;  %v2060_v31 = vmax.f32 %v1457_v4, %v1941_v45  ;;  %v3493_v32 = vpop.f32.mrb[155].mxu0  ;;  %v3601_v48 = vpop.f32.mrb[155].mxu1  ;;  %v5151_v1 = vld [vmem:[#allocation21_spill] sm:$0xff] }
 0x219   :  { %v5152_v0 = vmax.f32 %v5150_v51, %v5151_v1  ;;  %v5153_v48 = vld [vmem:[#allocation22_spill] sm:$0xff] }
 0x21a   :  { %3085 = vst [vmem:[%s4985_s3 + $0x60] sm:$0xff] %v3012_v46   ;;  %v2166_v36 = vadd.f32 %v4705_v30, %v2109_v50  ;;  %v2110_v25 = vmax.f32 %v5140_v24, %v2060_v31 }
 0x21c   :  { %v2167_v6 = vadd.f32 %v4705_v30, %v2110_v25  ;;  %v2216_v43 = vmax.f32 %v2166_v36, 0.0  ;;  %v5154_v36 = vld [vmem:[#allocation23_spill] sm:$0xff] }
 0x21d   :  { %v1462_v9 = vpop.f32.mrb[156].mxu0  ;;  %v1946_v39 = vpop.f32.mrb[156].mxu1  ;;  %v5155_v59 = vmax.f32 %v5153_v48, %v5154_v36 }
 0x21e   :  { %v2217_v28 = vmax.f32 %v2167_v6, 0.0  ;;  %v2061_v52 = vmax.f32 %v1462_v9, %v1946_v39  ;;  %v3496_v53 = vpop.f32.mrb[157].mxu0  ;;  %v3604_v29 = vpop.f32.mrb[157].mxu1  ;;  %v5156_v39 = vld [vmem:[#allocation24_spill] sm:$0xff] }
 0x21f   :  { %v1465_v10 = vpop.f32.mrb[158].mxu0  ;;  %v1949_v26 = vpop.f32.mrb[158].mxu1 }
 0x220   :  { %v3017_v18 = vpack.c.bf16 %v2217_v28, %v2216_v43  ;;  %v2111_v62 = vmax.f32 %v5143_v12, %v2061_v52  ;;  %v2062_v55 = vmax.f32 %v1465_v10, %v1949_v26  ;;  %v3497_v56 = vpop.f32.mrb[159].mxu0  ;;  %v3605_v57 = vpop.f32.mrb[159].mxu1  ;;  %v5157_v43 = vld [vmem:[#allocation25_spill] sm:$0xff] }
 0x221   :  { %v5158_v28 = vmax.f32 %v5156_v39, %v5157_v43  ;;  %v5159_v57 = vld [vmem:[#allocation26_spill] sm:$0xff] }
 0x222   :  { %3086 = vst [vmem:[%s4985_s3 + $0x68] sm:$0xff] %v3017_v18   ;;  %v2168_v58 = vadd.f32 %v4705_v30, %v2111_v62  ;;  %v2112_v20 = vmax.f32 %v5146_v34, %v2062_v55 }
 0x224   :  { %v2169_v3 = vadd.f32 %v4705_v30, %v2112_v20  ;;  %v2218_v35 = vmax.f32 %v2168_v58, 0.0  ;;  %v5160_v58 = vld [vmem:[#allocation27_spill] sm:$0xff] }
 0x225   :  { %v1470_v13 = vpop.f32.mrb[160].mxu0  ;;  %v1954_v42 = vpop.f32.mrb[160].mxu1  ;;  %v5161_v23 = vmax.f32 %v5159_v57, %v5160_v58 }
 0x226   :  { %v2219_v60 = vmax.f32 %v2169_v3, 0.0  ;;  %v2063_v16 = vmax.f32 %v1470_v13, %v1954_v42  ;;  %v3500_v17 = vpop.f32.mrb[161].mxu0  ;;  %v3608_v7 = vpop.f32.mrb[161].mxu1  ;;  %v5162_v42 = vld [vmem:[#allocation28_spill] sm:$0xff] }
 0x227   :  { %v1473_v8 = vpop.f32.mrb[162].mxu0  ;;  %v1957_v61 = vpop.f32.mrb[162].mxu1 }
 0x228   :  { %v3022_v63 = vpack.c.bf16 %v2219_v60, %v2218_v35  ;;  %v2113_v40 = vmax.f32 %v5149_v2, %v2063_v16  ;;  %v2064_v41 = vmax.f32 %v1473_v8, %v1957_v61  ;;  %v3501_v11 = vpop.f32.mrb[163].mxu0  ;;  %v3609_v15 = vpop.f32.mrb[163].mxu1  ;;  %v5163_v35 = vld [vmem:[#allocation29_spill] sm:$0xff] }
 0x229   :  { %v5164_v60 = vmax.f32 %v5162_v42, %v5163_v35  ;;  %v5165_v15 = vld [vmem:[#allocation30_spill] sm:$0xff] }
 0x22a   :  { %3087 = vst [vmem:[%s4985_s3 + $0x70] sm:$0xff] %v3022_v63   ;;  %v2170_v19 = vadd.f32 %v4705_v30, %v2113_v40  ;;  %v2114_v47 = vmax.f32 %v5152_v0, %v2064_v41 }
 0x22c   :  { %v2171_v21 = vadd.f32 %v4705_v30, %v2114_v47  ;;  %v2220_v45 = vmax.f32 %v2170_v19, 0.0  ;;  %v5166_v19 = vld [vmem:[#allocation31_spill] sm:$0xff] }
 0x22d   :  { %v1478_v22 = vpop.f32.mrb[164].mxu0  ;;  %v1962_v4 = vpop.f32.mrb[164].mxu1  ;;  %v5167_v51 = vmax.f32 %v5165_v15, %v5166_v19 }
 0x22e   :  { %v2221_v46 = vmax.f32 %v2171_v21, 0.0  ;;  %v2065_v5 = vmax.f32 %v1478_v22, %v1962_v4  ;;  %v3504_v14 = vpop.f32.mrb[165].mxu0  ;;  %v3612_v49 = vpop.f32.mrb[165].mxu1  ;;  %v5168_v4 = vld [vmem:[#allocation32_spill] sm:$0xff] }
 0x22f   :  { %v1481_v50 = vpop.f32.mrb[166].mxu0  ;;  %v1965_v31 = vpop.f32.mrb[166].mxu1 }
 0x230   :  { %v3027_v32 = vpack.c.bf16 %v2221_v46, %v2220_v45  ;;  %v2115_v54 = vmax.f32 %v5155_v59, %v2065_v5  ;;  %v2066_v24 = vmax.f32 %v1481_v50, %v1965_v31  ;;  %v3505_v25 = vpop.f32.mrb[167].mxu0  ;;  %v3613_v6 = vpop.f32.mrb[167].mxu1  ;;  %v5169_v45 = vld [vmem:[#allocation33_spill] sm:$0xff] }
 0x231   :  { %v5170_v46 = vmax.f32 %v5168_v4, %v5169_v45  ;;  %v5171_v6 = vld [vmem:[#allocation34_spill] sm:$0xff] }
 0x232   :  { %3088 = vst [vmem:[%s4985_s3 + $0x78] sm:$0xff] %v3027_v32   ;;  %v2172_v9 = vadd.f32 %v4705_v30, %v2115_v54  ;;  %v2116_v52 = vmax.f32 %v5158_v28, %v2066_v24 }
 0x234   :  { %v2173_v53 = vadd.f32 %v4705_v30, %v2116_v52  ;;  %v2222_v26 = vmax.f32 %v2172_v9, 0.0  ;;  %v5172_v9 = vld [vmem:[#allocation35_spill] sm:$0xff] }
 0x235   :  { %v1486_v29 = vpop.f32.mrb[168].mxu0  ;;  %v1970_v10 = vpop.f32.mrb[168].mxu1  ;;  %v5173_v39 = vmax.f32 %v5171_v6, %v5172_v9 }
 0x236   :  { %v2223_v18 = vmax.f32 %v2173_v53, 0.0  ;;  %v2067_v44 = vmax.f32 %v1486_v29, %v1970_v10  ;;  %v3508_v27 = vpop.f32.mrb[169].mxu0  ;;  %v3616_v12 = vpop.f32.mrb[169].mxu1  ;;  %v5174_v10 = vld [vmem:[#allocation36_spill] sm:$0xff] }
 0x237   :  { %v1489_v62 = vpop.f32.mrb[170].mxu0  ;;  %v1973_v55 = vpop.f32.mrb[170].mxu1 }
 0x238   :  { %v3032_v56 = vpack.c.bf16 %v2223_v18, %v2222_v26  ;;  %v2117_v33 = vmax.f32 %v5161_v23, %v2067_v44  ;;  %v2068_v34 = vmax.f32 %v1489_v62, %v1973_v55  ;;  %v3509_v20 = vpop.f32.mrb[171].mxu0  ;;  %v3617_v3 = vpop.f32.mrb[171].mxu1  ;;  %v5175_v26 = vld [vmem:[#allocation37_spill] sm:$0xff] }
 0x239   :  { %v5176_v18 = vmax.f32 %v5174_v10, %v5175_v26  ;;  %v5177_v3 = vld [vmem:[#allocation38_spill] sm:$0xff] }
 0x23a   :  { %3089 = vst [vmem:[%s4985_s3 + $0x80] sm:$0xff] %v3032_v56   ;;  %v2174_v13 = vadd.f32 %v4705_v30, %v2117_v33  ;;  %v2118_v16 = vmax.f32 %v5164_v60, %v2068_v34 }
 0x23c   :  { %v2175_v17 = vadd.f32 %v4705_v30, %v2118_v16  ;;  %v2224_v61 = vmax.f32 %v2174_v13, 0.0  ;;  %v5178_v13 = vld [vmem:[#allocation39_spill] sm:$0xff] }
 0x23d   :  { %v1494_v7 = vpop.f32.mrb[172].mxu0  ;;  %v1978_v8 = vpop.f32.mrb[172].mxu1  ;;  %v5179_v42 = vmax.f32 %v5177_v3, %v5178_v13 }
 0x23e   :  { %v2225_v63 = vmax.f32 %v2175_v17, 0.0  ;;  %v2069_v37 = vmax.f32 %v1494_v7, %v1978_v8  ;;  %v3512_v38 = vpop.f32.mrb[173].mxu0  ;;  %v3620_v2 = vpop.f32.mrb[173].mxu1  ;;  %v5180_v8 = vld [vmem:[#allocation40_spill] sm:$0xff] }
 0x23f   :  { %v1497_v40 = vpop.f32.mrb[174].mxu0  ;;  %v1981_v41 = vpop.f32.mrb[174].mxu1 }
 0x240   :  { %v3037_v11 = vpack.c.bf16 %v2225_v63, %v2224_v61  ;;  %v2119_v1 = vmax.f32 %v5167_v51, %v2069_v37  ;;  %v2070_v0 = vmax.f32 %v1497_v40, %v1981_v41  ;;  %v3513_v47 = vpop.f32.mrb[175].mxu0  ;;  %v3621_v21 = vpop.f32.mrb[175].mxu1  ;;  %v5181_v61 = vld [vmem:[#allocation41_spill] sm:$0xff] }
 0x241   :  { %v5182_v63 = vmax.f32 %v5180_v8, %v5181_v61  ;;  %v5183_v21 = vld [vmem:[#allocation42_spill] sm:$0xff] }
 0x242   :  { %3090 = vst [vmem:[%s4985_s3 + $0x88] sm:$0xff] %v3037_v11   ;;  %v2176_v22 = vadd.f32 %v4705_v30, %v2119_v1  ;;  %v2120_v5 = vmax.f32 %v5170_v46, %v2070_v0 }
 0x244   :  { %v2177_v14 = vadd.f32 %v4705_v30, %v2120_v5  ;;  %v2226_v31 = vmax.f32 %v2176_v22, 0.0  ;;  %v5184_v22 = vld [vmem:[#allocation43_spill] sm:$0xff] }
 0x245   :  { %v1502_v49 = vpop.f32.mrb[176].mxu0  ;;  %v1986_v50 = vpop.f32.mrb[176].mxu1  ;;  %v5185_v4 = vmax.f32 %v5183_v21, %v5184_v22 }
 0x246   :  { %v2227_v32 = vmax.f32 %v2177_v14, 0.0  ;;  %v2071_v48 = vmax.f32 %v1502_v49, %v1986_v50  ;;  %v3516_v36 = vpop.f32.mrb[177].mxu0  ;;  %v3624_v59 = vpop.f32.mrb[177].mxu1  ;;  %v5186_v50 = vld [vmem:[#allocation44_spill] sm:$0xff] }
 0x247   :  { %v1505_v54 = vpop.f32.mrb[178].mxu0  ;;  %v1989_v24 = vpop.f32.mrb[178].mxu1 }
 0x248   :  { %v3042_v25 = vpack.c.bf16 %v2227_v32, %v2226_v31  ;;  %v2121_v43 = vmax.f32 %v5173_v39, %v2071_v48  ;;  %v2072_v28 = vmax.f32 %v1505_v54, %v1989_v24  ;;  %v3517_v52 = vpop.f32.mrb[179].mxu0  ;;  %v3625_v53 = vpop.f32.mrb[179].mxu1  ;;  %v5187_v31 = vld [vmem:[#allocation45_spill] sm:$0xff] }
 0x249   :  { %v5188_v32 = vmax.f32 %v5186_v50, %v5187_v31  ;;  %v5189_v53 = vld [vmem:[#allocation46_spill] sm:$0xff] }
 0x24a   :  { %3091 = vst [vmem:[%s4985_s3 + $0x90] sm:$0xff] %v3042_v25   ;;  %v2178_v29 = vadd.f32 %v4705_v30, %v2121_v43  ;;  %v2122_v44 = vmax.f32 %v5176_v18, %v2072_v28 }
 0x24c   :  { %v2179_v27 = vadd.f32 %v4705_v30, %v2122_v44  ;;  %v2228_v55 = vmax.f32 %v2178_v29, 0.0  ;;  %v5190_v29 = vld [vmem:[#allocation47_spill] sm:$0xff] }
 0x24d   :  { %v1510_v12 = vpop.f32.mrb[180].mxu0  ;;  %v1994_v62 = vpop.f32.mrb[180].mxu1  ;;  %v5191_v10 = vmax.f32 %v5189_v53, %v5190_v29 }
 0x24e   :  { %v2229_v56 = vmax.f32 %v2179_v27, 0.0  ;;  %v2073_v57 = vmax.f32 %v1510_v12, %v1994_v62  ;;  %v3520_v58 = vpop.f32.mrb[181].mxu0  ;;  %v3628_v23 = vpop.f32.mrb[181].mxu1  ;;  %v5192_v62 = vld [vmem:[#allocation48_spill] sm:$0xff] }
 0x24f   :  { %v1513_v33 = vpop.f32.mrb[182].mxu0  ;;  %v1997_v34 = vpop.f32.mrb[182].mxu1 }
 0x250   :  { %v3047_v20 = vpack.c.bf16 %v2229_v56, %v2228_v55  ;;  %v2123_v35 = vmax.f32 %v5179_v42, %v2073_v57  ;;  %v2074_v60 = vmax.f32 %v1513_v33, %v1997_v34  ;;  %v3521_v16 = vpop.f32.mrb[183].mxu0  ;;  %v3629_v17 = vpop.f32.mrb[183].mxu1  ;;  %v5193_v55 = vld [vmem:[#allocation49_spill] sm:$0xff] }
 0x251   :  { %v5194_v56 = vmax.f32 %v5192_v62, %v5193_v55  ;;  %v5195_v17 = vld [vmem:[#allocation50_spill] sm:$0xff] }
 0x252   :  { %3092 = vst [vmem:[%s4985_s3 + $0x98] sm:$0xff] %v3047_v20   ;;  %v2180_v7 = vadd.f32 %v4705_v30, %v2123_v35  ;;  %v2124_v37 = vmax.f32 %v5182_v63, %v2074_v60 }
 0x254   :  { %v2181_v38 = vadd.f32 %v4705_v30, %v2124_v37  ;;  %v2230_v41 = vmax.f32 %v2180_v7, 0.0  ;;  %v5196_v7 = vld [vmem:[#allocation51_spill] sm:$0xff] }
 0x255   :  { %v1518_v2 = vpop.f32.mrb[184].mxu0  ;;  %v2002_v40 = vpop.f32.mrb[184].mxu1  ;;  %v5197_v8 = vmax.f32 %v5195_v17, %v5196_v7 }
 0x256   :  { %v2231_v11 = vmax.f32 %v2181_v38, 0.0  ;;  %v2075_v15 = vmax.f32 %v1518_v2, %v2002_v40  ;;  %v3524_v19 = vpop.f32.mrb[185].mxu0  ;;  %v3632_v51 = vpop.f32.mrb[185].mxu1  ;;  %v5198_v40 = vld [vmem:[#allocation52_spill] sm:$0xff] }
 0x257   :  { %v1521_v1 = vpop.f32.mrb[186].mxu0  ;;  %v2005_v0 = vpop.f32.mrb[186].mxu1 }
 0x258   :  { %v3052_v47 = vpack.c.bf16 %v2231_v11, %v2230_v41  ;;  %v2125_v45 = vmax.f32 %v5185_v4, %v2075_v15  ;;  %v2076_v46 = vmax.f32 %v1521_v1, %v2005_v0  ;;  %v3525_v5 = vpop.f32.mrb[187].mxu0  ;;  %v3633_v14 = vpop.f32.mrb[187].mxu1  ;;  %v5199_v41 = vld [vmem:[#allocation53_spill] sm:$0xff] }
 0x259   :  { %v5200_v11 = vmax.f32 %v5198_v40, %v5199_v41  ;;  %v5201_v14 = vld [vmem:[#allocation54_spill] sm:$0xff] }
 0x25a   :  { %3093 = vst [vmem:[%s4985_s3 + $0xa0] sm:$0xff] %v3052_v47   ;;  %v2182_v49 = vadd.f32 %v4705_v30, %v2125_v45  ;;  %v2126_v48 = vmax.f32 %v5188_v32, %v2076_v46 }
 0x25c   :  { %v2183_v36 = vadd.f32 %v4705_v30, %v2126_v48  ;;  %v2232_v24 = vmax.f32 %v2182_v49, 0.0  ;;  %v5202_v49 = vld [vmem:[#allocation55_spill] sm:$0xff] }
 0x25d   :  { %v1526_v59 = vpop.f32.mrb[188].mxu0  ;;  %v2010_v54 = vpop.f32.mrb[188].mxu1  ;;  %v5203_v50 = vmax.f32 %v5201_v14, %v5202_v49 }
 0x25e   :  { %v2233_v25 = vmax.f32 %v2183_v36, 0.0  ;;  %v2077_v6 = vmax.f32 %v1526_v59, %v2010_v54  ;;  %v3528_v9 = vpop.f32.mrb[189].mxu0  ;;  %v3636_v39 = vpop.f32.mrb[189].mxu1  ;;  %v5204_v54 = vld [vmem:[#allocation56_spill] sm:$0xff] }
 0x25f   :  { %v1529_v43 = vpop.f32.mrb[190].mxu0  ;;  %v2013_v28 = vpop.f32.mrb[190].mxu1 }
 0x260   :  { %v3057_v52 = vpack.c.bf16 %v2233_v25, %v2232_v24  ;;  %v2127_v26 = vmax.f32 %v5191_v10, %v2077_v6  ;;  %v2078_v18 = vmax.f32 %v1529_v43, %v2013_v28  ;;  %v3529_v44 = vpop.f32.mrb[191].mxu0  ;;  %v3637_v27 = vpop.f32.mrb[191].mxu1  ;;  %v5205_v24 = vld [vmem:[#allocation57_spill] sm:$0xff] }
 0x261   :  { %v5206_v25 = vmax.f32 %v5204_v54, %v5205_v24 }
 0x262   :  { %3094 = vst [vmem:[%s4985_s3 + $0xa8] sm:$0xff] %v3057_v52   ;;  %v2184_v12 = vadd.f32 %v4705_v30, %v2127_v26  ;;  %v2128_v57 = vmax.f32 %v5194_v56, %v2078_v18 }
 0x264   :  { %v2185_v58 = vadd.f32 %v4705_v30, %v2128_v57  ;;  %v2234_v34 = vmax.f32 %v2184_v12, 0.0 }
 0x265   :  { %v1534_v23 = vpop.f32.mrb[192].mxu0  ;;  %v2018_v33 = vpop.f32.mrb[192].mxu1 }
 0x266   :  { %v2235_v20 = vmax.f32 %v2185_v58, 0.0  ;;  %v2079_v3 = vmax.f32 %v1534_v23, %v2018_v33  ;;  %v3532_v13 = vpop.f32.mrb[193].mxu0  ;;  %v3640_v42 = vpop.f32.mrb[193].mxu1 }
 0x267   :  { %v1537_v35 = vpop.f32.mrb[194].mxu0  ;;  %v2021_v60 = vpop.f32.mrb[194].mxu1 }
 0x268   :  { %v3062_v16 = vpack.c.bf16 %v2235_v20, %v2234_v34  ;;  %v2129_v61 = vmax.f32 %v5197_v8, %v2079_v3  ;;  %v2080_v63 = vmax.f32 %v1537_v35, %v2021_v60  ;;  %v3533_v37 = vpop.f32.mrb[195].mxu0  ;;  %v3641_v38 = vpop.f32.mrb[195].mxu1 }
 0x26a   :  { %3095 = vst [vmem:[%s4985_s3 + $0xb0] sm:$0xff] %v3062_v16   ;;  %v2186_v2 = vadd.f32 %v4705_v30, %v2129_v61  ;;  %v2130_v15 = vmax.f32 %v5200_v11, %v2080_v63 }
 0x26c   :  { %v2187_v19 = vadd.f32 %v4705_v30, %v2130_v15  ;;  %v2236_v0 = vmax.f32 %v2186_v2, 0.0 }
 0x26d   :  { %v1542_v51 = vpop.f32.mrb[196].mxu0  ;;  %v2026_v1 = vpop.f32.mrb[196].mxu1 }
 0x26e   :  { %v2237_v47 = vmax.f32 %v2187_v19, 0.0  ;;  %v2081_v21 = vmax.f32 %v1542_v51, %v2026_v1  ;;  %v3536_v22 = vpop.f32.mrb[197].mxu0  ;;  %v3644_v4 = vpop.f32.mrb[197].mxu1 }
 0x26f   :  { %v1545_v45 = vpop.f32.mrb[198].mxu0  ;;  %v2029_v46 = vpop.f32.mrb[198].mxu1 }
 0x270   :  { %v3067_v5 = vpack.c.bf16 %v2237_v47, %v2236_v0  ;;  %v2131_v31 = vmax.f32 %v5203_v50, %v2081_v21  ;;  %v2082_v32 = vmax.f32 %v1545_v45, %v2029_v46  ;;  %v3537_v48 = vpop.f32.mrb[199].mxu0  ;;  %v3645_v36 = vpop.f32.mrb[199].mxu1 }
 0x272   :  { %3096 = vst [vmem:[%s4985_s3 + $0xb8] sm:$0xff] %v3067_v5   ;;  %v2188_v59 = vadd.f32 %v4705_v30, %v2131_v31  ;;  %v2132_v6 = vmax.f32 %v5206_v25, %v2082_v32 }
 0x274   :  { %v2189_v9 = vadd.f32 %v4705_v30, %v2132_v6  ;;  %v2238_v39 = vmax.f32 %v2188_v59, 0.0 }
 0x276   :  { %v2239_v43 = vmax.f32 %v2189_v9, 0.0 }
 0x278   :  { %v3072_v28 = vpack.c.bf16 %v2239_v43, %v2238_v39 }
 0x27a   :  { %3097 = vst [vmem:[%s4985_s3 + $0xc0] sm:$0xff] %v3072_v28  }

// kernel: _lambda_.5
= control target key start
LH: loop header
LB: loop body
LE: loop exit
PB: predicated region body
PF: predicated region fallthrough
CT: control target
= control target key end

     0   :  { %v1158_v38 = vmov 0.0   ;;  %vm1159_vm0 = vmmov 0   ;;  %vm469_vm1 = vcmask 130048   ;;  %s1454_s1 = inlined_call_operand.vmem [shape: bf16[784,128], index: 1, kind: input, shape index: {}]   ;;  %s1455_s0 = inlined_call_operand.vmem [shape: bf16[16,784], index: 0, kind: input, shape index: {}]   ;;  %s1456_s3 = inlined_call_operand.vmem [shape: bf16[128,128], index: 3, kind: input, shape index: {}]   ;;  %s1457_s5 = inlined_call_operand.vmem [shape: bf16[128,128], index: 5, kind: input, shape index: {}]   ;;  %s1458_s2 = inlined_call_operand.vmem [shape: f32[1,128], index: 2, kind: input, shape index: {}, may-alias: {2,4,6}]   ;;  %s1459_s4 = inlined_call_operand.vmem [shape: f32[1,128], index: 4, kind: input, shape index: {}, may-alias: {2,4,6}]   ;;  %s1460_s6 = inlined_call_operand.vmem [shape: f32[1,128], index: 6, kind: input, shape index: {}, may-alias: {2,4,6}]   ;;  %s1461_s7 = inlined_call_operand.vmem [shape: f32[16,128], index: 7, kind: output, shape index: {}]  }
   0x1   :  { %v1083_v0 = vld [vmem:[%s1454_s1 + $0x40] sm:$0xff]   ;;  %v1087_v4 = vld [vmem:[%s1454_s1 + $0x48] sm:$0xff]   ;;  %v1091_v8 = vld [vmem:[%s1454_s1 + $0x50] sm:$0xff]  }
   0x2   :  { %v1084_v1 = vld [vmem:[%s1454_s1] sm:$0xff]   ;;  %949 = vmatprep.subr.bf16.mxu0 %v1083_v0  ;;  %v1088_v5 = vld [vmem:[%s1454_s1 + $0x8] sm:$0xff]   ;;  %v1092_v9 = vld [vmem:[%s1454_s1 + $0x10] sm:$0xff]  }
   0x3   :  { %v1085_v2 = vld [vmem:[%s1454_s1 + $0xc0] sm:$0xff]   ;;  %950 = vmatpush3.bf16.msra.mxu0 %v1084_v1  ;;  %v1089_v6 = vld [vmem:[%s1454_s1 + $0xc8] sm:$0xff]   ;;  %v1093_v10 = vld [vmem:[%s1454_s1 + $0xd0] sm:$0xff]  }
   0x4   :  { %v1086_v3 = vld [vmem:[%s1454_s1 + $0x80] sm:$0xff]   ;;  %971 = vmatprep.subr.bf16.mxu1 %v1085_v2  ;;  %951 = vmatprep.subr.bf16.mxu0 %v1087_v4  ;;  %v1090_v7 = vld [vmem:[%s1454_s1 + $0x88] sm:$0xff]   ;;  %v1094_v11 = vld [vmem:[%s1454_s1 + $0x90] sm:$0xff]  }
   0x5   :  { %972 = vmatpush3.bf16.msra.mxu1 %v1086_v3  ;;  %v1095_v12 = vld [vmem:[%s1454_s1 + $0x58] sm:$0xff]   ;;  %v1099_v16 = vld [vmem:[%s1454_s1 + $0x60] sm:$0xff]   ;;  %v1103_v20 = vld [vmem:[%s1454_s1 + $0x68] sm:$0xff]  }
   0x6   :  { %973 = vmatprep.subr.bf16.mxu1 %v1089_v6  ;;  %v1096_v13 = vld [vmem:[%s1454_s1 + $0x18] sm:$0xff]   ;;  %v1100_v17 = vld [vmem:[%s1454_s1 + $0x20] sm:$0xff]   ;;  %v1104_v21 = vld [vmem:[%s1454_s1 + $0x28] sm:$0xff]  }
   0x7   :  { %952 = vmatpush3.bf16.msra.mxu0 %v1088_v5  ;;  %v1097_v14 = vld [vmem:[%s1454_s1 + $0xd8] sm:$0xff]   ;;  %v1101_v18 = vld [vmem:[%s1454_s1 + $0xe0] sm:$0xff]   ;;  %v1105_v22 = vld [vmem:[%s1454_s1 + $0xe8] sm:$0xff]  }
   0x8   :  { %953 = vmatprep.subr.bf16.mxu0 %v1091_v8  ;;  %v1098_v15 = vld [vmem:[%s1454_s1 + $0x98] sm:$0xff]   ;;  %v1102_v19 = vld [vmem:[%s1454_s1 + $0xa0] sm:$0xff]   ;;  %v1106_v23 = vld [vmem:[%s1454_s1 + $0xa8] sm:$0xff]  }
   0x9   :  { %974 = vmatpush3.bf16.msra.mxu1 %v1090_v7  ;;  %v1107_v24 = vld [vmem:[%s1454_s1 + $0x70] sm:$0xff]   ;;  %v1111_v28 = vld [vmem:[%s1454_s1 + $0x78] sm:$0xff]   ;;  %v1116_v32 = vld [vmem:[%s1455_s0 + $0x4] ss:$28 sps:$4 sm:$0xff]  }
   0xa   :  { %975 = vmatprep.subr.bf16.mxu1 %v1093_v10  ;;  %v1108_v25 = vld [vmem:[%s1454_s1 + $0x30] sm:$0xff]   ;;  %v1112_v29 = vld [vmem:[%s1454_s1 + $0x38] sm:$0xff]   ;;  %505 = vmatprep.mubr.bf16.mxu0 %v1116_v32  ;;  %v1118_v34 = vld [vmem:[%s1454_s1 + $0x140] sm:$0xff]  }
   0xb   :  { %954 = vmatpush3.bf16.msra.mxu0 %v1092_v9  ;;  %v1109_v26 = vld [vmem:[%s1454_s1 + $0xf0] sm:$0xff]   ;;  %v1113_v30 = vld [vmem:[%s1454_s1 + $0xf8] sm:$0xff]   ;;  %v1119_v35 = vld [vmem:[%s1455_s0 + $0x8] ss:$28 sps:$4 sm:$0xff]  }
   0xc   :  { %955 = vmatprep.subr.bf16.mxu0 %v1095_v12  ;;  %v1110_v27 = vld [vmem:[%s1454_s1 + $0xb0] sm:$0xff]   ;;  %v1114_v31 = vld [vmem:[%s1455_s0] ss:$28 sps:$4 sm:$0xff]   ;;  %v1121_v36 = vld [vmem:[%s1455_s0 + $0xc] ss:$28 sps:$4 sm:$0xff]  }
   0xd   :  { %976 = vmatpush3.bf16.msra.mxu1 %v1094_v11  ;;  %v1117_v33 = vld [vmem:[%s1454_s1 + $0xb8] sm:$0xff]   ;;  %v1122_v37 = vld [vmem:[%s1454_s1 + $0x100] sm:$0xff]   ;;  %546 = vmatprep.mubr.bf16.mxu1 %v1121_v36  ;;  %v1123_v39 = vld [vmem:[%s1454_s1 + $0x148] sm:$0xff]  }
   0xe   :  { %977 = vmatprep.subr.bf16.mxu1 %v1097_v14  ;;  %v1124_v40 = vld [vmem:[%s1454_s1 + $0x108] sm:$0xff]   ;;  %v1125_v41 = vld [vmem:[%s1454_s1 + $0x150] sm:$0xff]   ;;  %v1127_v43 = vld [vmem:[%s1454_s1 + $0x158] sm:$0xff]  }
   0xf   :  { %956 = vmatpush3.bf16.msra.mxu0 %v1096_v13  ;;  %v1126_v42 = vld [vmem:[%s1454_s1 + $0x110] sm:$0xff]   ;;  %v1128_v44 = vld [vmem:[%s1454_s1 + $0x118] sm:$0xff]   ;;  %v1129_v45 = vld [vmem:[%s1454_s1 + $0x160] sm:$0xff]  }
  0x10   :  { %957 = vmatprep.subr.bf16.mxu0 %v1099_v16  ;;  %v1130_v46 = vld [vmem:[%s1454_s1 + $0x120] sm:$0xff]   ;;  %v1131_v47 = vld [vmem:[%s1454_s1 + $0x168] sm:$0xff]   ;;  %v1140_v49 = vld [vmem:[%s1455_s0 + $0x14] ss:$28 sps:$4 sm:$0xff]  }
  0x11   :  { %978 = vmatpush3.bf16.msra.mxu1 %v1098_v15  ;;  %v1137_v48 = vld [vmem:[%s1454_s1 + $0x180] sm:$0xff]   ;;  %v1141_v50 = vld [vmem:[%s1455_s0 + $0x18] ss:$28 sps:$4 sm:$0xff]   ;;  %v1132_v51 = vld [vmem:[%s1454_s1 + $0x128] sm:$0xff]  }
  0x12   :  { %979 = vmatprep.subr.bf16.mxu1 %v1101_v18  ;;  %v1133_v52 = vld [vmem:[%s1454_s1 + $0x170] sm:$0xff]   ;;  %v1135_v54 = vld [vmem:[%s1454_s1 + $0x178] sm:$0xff]   ;;  %v1142_v57 = vld [vmem:[%s1456_s3] sm:$0xff]  }
  0x13   :  { %958 = vmatpush3.bf16.msra.mxu0 %v1100_v17  ;;  %v1134_v53 = vld [vmem:[%s1454_s1 + $0x130] sm:$0xff]   ;;  %v1136_v55 = vld [vmem:[%s1454_s1 + $0x138] sm:$0xff]   ;;  %v1143_v58 = vld [vmem:[%s1456_s3 + $0x8] sm:$0xff]  }
  0x14   :  { %959 = vmatprep.subr.bf16.mxu0 %v1103_v20  ;;  %v1138_v56 = vld [vmem:[%s1455_s0 + $0x10] ss:$28 sps:$4 sm:$0xff]   ;;  %v1145_v60 = vld [vmem:[%s1456_s3 + $0x18] sm:$0xff]   ;;  %v1146_v61 = vld [vmem:[%s1456_s3 + $0x20] sm:$0xff]  }
  0x15   :  { %980 = vmatpush3.bf16.msra.mxu1 %v1102_v19  ;;  %v1144_v59 = vld [vmem:[%s1456_s3 + $0x10] sm:$0xff]   ;;  %v1147_v62 = vld [vmem:[%s1456_s3 + $0x28] sm:$0xff]   ;;  %v1149_v0 = vld [vmem:[%s1456_s3 + $0x38] sm:$0xff]  }
  0x16   :  { %981 = vmatprep.subr.bf16.mxu1 %v1105_v22  ;;  %v1148_v63 = vld [vmem:[%s1456_s3 + $0x30] sm:$0xff]   ;;  %v1150_v1 = vld [vmem:[%s1457_s5] sm:$0xff]   ;;  %v1151_v2 = vld [vmem:[%s1457_s5 + $0x8] sm:$0xff]  }
  0x17   :  { %960 = vmatpush3.bf16.msra.mxu0 %v1104_v21  ;;  %v1152_v3 = vld [vmem:[%s1457_s5 + $0x10] sm:$0xff]   ;;  %v1153_v4 = vld [vmem:[%s1457_s5 + $0x18] sm:$0xff]   ;;  %v1154_v5 = vld [vmem:[%s1457_s5 + $0x20] sm:$0xff]  }
  0x18   :  { %961 = vmatprep.subr.bf16.mxu0 %v1107_v24  ;;  %v1155_v6 = vld [vmem:[%s1457_s5 + $0x28] sm:$0xff]   ;;  %v873_v8 = vld [vmem:[%s1458_s2] ss:$0 sm:$0xff] }
  0x19   :  { %982 = vmatpush3.bf16.msra.mxu1 %v1106_v23 }
  0x1a   :  { %983 = vmatprep.subr.bf16.mxu1 %v1109_v26 }
  0x1b   :  { %962 = vmatpush3.bf16.msra.mxu0 %v1108_v25 }
  0x1c   :  { %963 = vmatprep.subr.bf16.mxu0 %v1111_v28 }
  0x1d   :  { %984 = vmatpush3.bf16.msra.mxu1 %v1110_v27 }
  0x1e   :  { %985 = vmatprep.subr.bf16.mxu1 %v1113_v30 }
  0x1f   :  { %964 = vmatpush3.bf16.msra.mxu0 %v1112_v29 }
  0x20   :  { %993 = vmatprep.subr.bf16.mxu0 %v1118_v34 }
  0x21   :  { %986 = vmatpush3.bf16.msra.mxu1 %v1117_v33 }
  0x22   :  { %506 = vmatmul.mubr.bf16.vlgmr.msra.gmra.mrb[0].mxu0 %v1114_v31  ;;  %1035 = vmatprep.subr.bf16.mxu1 %v1158_v38 }
  0x23   :  { %994 = vmatpush3.bf16.msra.mxu0 %v1122_v37  ;;  %587 = vmatprep.mubr.bf16.mxu0 %v1140_v49 }
  0x24   :  { %547 = vmatmul.mubr.bf16.vlgmr.msra.gmra.mrb[0].mxu1 %v1119_v35  ;;  %995 = vmatprep.subr.bf16.mxu0 %v1123_v39 }
  0x25   :  { %1037 = vmatprep.mubr.msk.bf16.mxu1 %vm1159_vm0, %v1158_v38  ;;  %1036 = vmatpush3.bf16.msra.mxu1 %v1137_v48 }
  0x26   :  { %1041 = vmatprep.subr.bf16.mxu1 %v1158_v38 }
  0x27   :  { %996 = vmatpush3.bf16.msra.mxu0 %v1124_v40 }
  0x28   :  { %997 = vmatprep.subr.bf16.mxu0 %v1125_v41 }
  0x2b   :  { %998 = vmatpush3.bf16.msra.mxu0 %v1126_v42  ;;  %v1156_v42 = vld [vmem:[%s1457_s5 + $0x30] sm:$0xff]  }
  0x2c   :  { %999 = vmatprep.subr.bf16.mxu0 %v1127_v43  ;;  %1038 = vmatmul.mubr.msk.bf16.vlgmr.msra.gmra.mrb[4].mxu1 %vm469_vm1, %v1141_v50  ;;  %v1157_v43 = vld [vmem:[%s1457_s5 + $0x38] sm:$0xff]  }
  0x2d   :  { %1057 = vmatprep.mubr.msk.bf16.mxu1 %vm1159_vm0, %v1158_v38  ;;  %1042 = vmatpush3.bf16.msra.mxu1 %v1142_v57 }
  0x2e   :  { %1043 = vmatprep.subr.bf16.mxu1 %v1158_v38 }
  0x2f   :  { %1000 = vmatpush3.bf16.msra.mxu0 %v1128_v44  ;;  %v931_v44 = vld [vmem:[%s1459_s4] ss:$0 sm:$0xff] }
  0x30   :  { %1001 = vmatprep.subr.bf16.mxu0 %v1129_v45 }
  0x31   :  { %1044 = vmatpush3.bf16.msra.mxu1 %v1143_v58 }
  0x32   :  { %1045 = vmatprep.subr.bf16.mxu1 %v1158_v38 }
  0x33   :  { %1002 = vmatpush3.bf16.msra.mxu0 %v1130_v46 }
  0x34   :  { %1003 = vmatprep.subr.bf16.mxu0 %v1131_v47 }
  0x35   :  { %1046 = vmatpush3.bf16.msra.mxu1 %v1144_v59 }
  0x36   :  { %1047 = vmatprep.subr.bf16.mxu1 %v1158_v38 }
  0x37   :  { %1004 = vmatpush3.bf16.msra.mxu0 %v1132_v51 }
  0x38   :  { %1005 = vmatprep.subr.bf16.mxu0 %v1133_v52 }
  0x39   :  { %1048 = vmatpush3.bf16.msra.mxu1 %v1145_v60 }
  0x3a   :  { %1049 = vmatprep.subr.bf16.mxu1 %v1158_v38 }
  0x3b   :  { %1006 = vmatpush3.bf16.msra.mxu0 %v1134_v53 }
  0x3c   :  { %1007 = vmatprep.subr.bf16.mxu0 %v1135_v54 }
  0x3d   :  { %1050 = vmatpush3.bf16.msra.mxu1 %v1146_v61 }
  0x3e   :  { %1051 = vmatprep.subr.bf16.mxu1 %v1158_v38 }
  0x3f   :  { %1008 = vmatpush3.bf16.msra.mxu0 %v1136_v55 }
  0x40   :  { %1061 = vmatprep.subr.bf16.mxu0 %v1158_v38 }
  0x41   :  { %1052 = vmatpush3.bf16.msra.mxu1 %v1147_v62 }
  0x42   :  { %588 = vmatmul.mubr.bf16.vlgmr.msra.gmra.mrb[4].mxu0 %v1138_v56  ;;  %1053 = vmatprep.subr.bf16.mxu1 %v1158_v38 }
  0x43   :  { %1077 = vmatprep.mubr.msk.bf16.mxu0 %vm1159_vm0, %v1158_v38  ;;  %1062 = vmatpush3.bf16.msra.mxu0 %v1150_v1 }
  0x44   :  { %1063 = vmatprep.subr.bf16.mxu0 %v1158_v38 }
  0x45   :  { %1054 = vmatpush3.bf16.msra.mxu1 %v1148_v63 }
  0x46   :  { %1055 = vmatprep.subr.bf16.mxu1 %v1158_v38 }
  0x47   :  { %1064 = vmatpush3.bf16.msra.mxu0 %v1151_v2 }
  0x48   :  { %1065 = vmatprep.subr.bf16.mxu0 %v1158_v38 }
  0x49   :  { %1056 = vmatpush3.bf16.msra.mxu1 %v1149_v0 }
  0x4b   :  { %1066 = vmatpush3.bf16.msra.mxu0 %v1152_v3 }
  0x4c   :  { %1067 = vmatprep.subr.bf16.mxu0 %v1158_v38 }
  0x4f   :  { %1068 = vmatpush3.bf16.msra.mxu0 %v1153_v4 }
  0x50   :  { %1069 = vmatprep.subr.bf16.mxu0 %v1158_v38 }
  0x53   :  { %1070 = vmatpush3.bf16.msra.mxu0 %v1154_v5 }
  0x54   :  { %1071 = vmatprep.subr.bf16.mxu0 %v1158_v38 }
  0x57   :  { %1072 = vmatpush3.bf16.msra.mxu0 %v1155_v6 }
  0x58   :  { %1073 = vmatprep.subr.bf16.mxu0 %v1158_v38 }
  0x5b   :  { %1074 = vmatpush3.bf16.msra.mxu0 %v1156_v42 }
  0x5c   :  { %1075 = vmatprep.subr.bf16.mxu0 %v1158_v38  ;;  %v940_v38 = vld [vmem:[%s1460_s6] ss:$0 sm:$0xff] }
  0x5f   :  { %1076 = vmatpush3.bf16.msra.mxu0 %v1157_v43 }
  0xf5   :  { %v965_v7 = vpop.f32.mrb[0].mxu0 }
  0xf6   :  { %v966_v9 = vpop.f32.mrb[1].mxu0 }
  0xf7   :  { %v967_v10 = vadd.f32 %v966_v9, %v965_v7  ;;  %v968_v11 = vpop.f32.mrb[2].mxu0  ;;  %v987_v12 = vpop.f32.mrb[0].mxu1 }
  0xf8   :  { %v969_v13 = vpop.f32.mrb[3].mxu0  ;;  %v988_v16 = vpop.f32.mrb[1].mxu1 }
  0xf9   :  { %v508_v14 = vadd.f32 %v967_v10, %v873_v8  ;;  %v970_v15 = vadd.f32 %v969_v13, %v968_v11  ;;  %v989_v17 = vadd.f32 %v988_v16, %v987_v12  ;;  %v990_v18 = vpop.f32.mrb[2].mxu1 }
  0xfa   :  { %v991_v20 = vpop.f32.mrb[3].mxu1 }
  0xfb   :  { %v511_v19 = vadd.f32 %v970_v15, %v873_v8  ;;  %v549_v21 = vadd.f32 %v989_v17, %v508_v14  ;;  %v992_v22 = vadd.f32 %v991_v20, %v990_v18 }
  0xfd   :  { %v552_v23 = vadd.f32 %v992_v22, %v511_v19 }
  0xff   :  { %v630_v24 = vpop.f32.mrb[4].mxu1 }
 0x100   :  { %v1039_v25 = vpop.f32.mrb[5].mxu1 }
 0x101   :  { %v633_v26 = vpop.f32.mrb[6].mxu1 }
 0x102   :  { %v1040_v27 = vpop.f32.mrb[7].mxu1 }
 0x115   :  { %v1009_v28 = vpop.f32.mrb[4].mxu0 }
 0x116   :  { %v1010_v29 = vpop.f32.mrb[5].mxu0 }
 0x117   :  { %v1011_v30 = vadd.f32 %v1010_v29, %v1009_v28  ;;  %v1012_v31 = vpop.f32.mrb[6].mxu0 }
 0x118   :  { %v1013_v32 = vpop.f32.mrb[7].mxu0 }
 0x119   :  { %v590_v33 = vadd.f32 %v1011_v30, %v549_v21  ;;  %v1014_v34 = vadd.f32 %v1013_v32, %v1012_v31 }
 0x11b   :  { %v631_v35 = vadd.f32 %v630_v24, %v590_v33  ;;  %v593_v36 = vadd.f32 %v1014_v34, %v552_v23 }
 0x11d   :  { %v634_v37 = vadd.f32 %v633_v26, %v593_v36  ;;  %v637_v39 = vmax.f32 %v631_v35, 0.0 }
 0x11f   :  { %v638_v40 = vmax.f32 %v634_v37, 0.0 }
 0x121   :  { %v639_v41 = vpack.c.bf16 %v638_v40, %v637_v39 }
 0x123   :  { %1058 = vmatmul.mubr.bf16.vlgmr.msra.gmra.mrb[8].mxu1 %v639_v41 }
 0x1f6   :  { %v745_v45 = vpop.f32.mrb[8].mxu1 }
 0x1f7   :  { %v746_v46 = vadd.f32 %v931_v44, %v745_v45  ;;  %v1059_v47 = vpop.f32.mrb[9].mxu1 }
 0x1f8   :  { %v748_v48 = vpop.f32.mrb[10].mxu1 }
 0x1f9   :  { %v749_v49 = vadd.f32 %v931_v44, %v748_v48  ;;  %v1060_v50 = vpop.f32.mrb[11].mxu1  ;;  %v752_v51 = vmax.f32 %v746_v46, 0.0 }
 0x1fb   :  { %v753_v52 = vmax.f32 %v749_v49, 0.0 }
 0x1fd   :  { %v754_v53 = vpack.c.bf16 %v753_v52, %v752_v51 }
 0x1ff   :  { %1078 = vmatmul.mubr.bf16.vlgmr.msra.gmra.mrb[8].mxu0 %v754_v53 }
 0x2d2   :  { %v860_v54 = vpop.f32.mrb[8].mxu0 }
 0x2d3   :  { %v861_v55 = vadd.f32 %v940_v38, %v860_v54  ;;  %v1079_v56 = vpop.f32.mrb[9].mxu0 }
 0x2d4   :  { %v863_v57 = vpop.f32.mrb[10].mxu0 }
 0x2d5   :  { %867 = vst [vmem:[%s1461_s7] sm:$0xff] %v861_v55  ;;  %v864_v58 = vadd.f32 %v940_v38, %v863_v57  ;;  %v1080_v59 = vpop.f32.mrb[11].mxu0 }
 0x2d7   :  { %868 = vst [vmem:[%s1461_s7 + $0x8] sm:$0xff] %v864_v58 }

</bundles_post_ra>
